<compile_context>
chip_gen: v5e
topology: v5e:2x2
jax: 0.10.0
libtpu: 0.0.40
codegen_flags: <defaults>
</compile_context>

<pallas_src>
import functools
import math

import jax
import jax.numpy as jnp
from jax.experimental import pallas as pl
from jax.experimental.pallas import tpu as pltpu


def _round_up(a, b):
    return ((a + b - 1) // b) * b


# ----------------------------------------------------------------------------
# Banded 3x3-conv weights: conv3x3 over (H, W, C) == 3 row-shifted matmuls of
# the (H, W*C) row layout with a (W*Cin, W*Cout) band matrix per dy.
# Width zero-padding is encoded by the band structure; height zero-padding is
# explicit zero rows around the input / scratch.
# ----------------------------------------------------------------------------
def build_banded_conv3x3_weight(w, Wh):
    """w: (Cout, Cin, 3, 3) torch-layout conv weight -> (3, Wh*Cin, Wh*Cout)."""
    Cout, Cin = int(w.shape[0]), int(w.shape[1])
    band = jnp.zeros((3, Wh * Cin, Wh * Cout), jnp.float32)
    w_out = jnp.arange(Wh)
    ci = jnp.arange(Cin)
    co = jnp.arange(Cout)
    for ky in range(3):
        for kx in range(3):
            w_in = w_out + (kx - 1)
            valid = (w_in >= 0) & (w_in < Wh)
            w_in_c = jnp.clip(w_in, 0, Wh - 1)
            rows = jnp.broadcast_to(
                w_in_c[:, None, None] * Cin + ci[None, :, None], (Wh, Cin, Cout))
            cols = jnp.broadcast_to(
                w_out[:, None, None] * Cout + co[None, None, :], (Wh, Cin, Cout))
            vals = (jnp.transpose(w[:, :, ky, kx])[None, :, :]
                    * valid[:, None, None].astype(w.dtype)).astype(jnp.float32)
            band = band.at[ky, rows, cols].add(vals)
    return band


# ----------------------------------------------------------------------------
# Kernel 1: tiled matmul + bias (1x1 convs down_h / down_l), bf16 MXU, bf16 out
# ----------------------------------------------------------------------------
def _matmul_bias_kernel(x_ref, w_ref, b_ref, o_ref):
    acc = jnp.dot(x_ref[...], w_ref[...], preferred_element_type=jnp.float32)
    o_ref[...] = (acc + b_ref[...]).astype(o_ref.dtype)


def pallas_matmul_bias(x, w, b, tm_max=256):
    """y = x @ w + b.  x: (M, K), w: (K, O), b: (O,) -> (M, O) bf16.

    tm is capped so the grid has >=2 "parallel" steps (pipelining, v7x megacore).
    """
    M, K = x.shape
    O = w.shape[1]
    tm = min(tm_max, _round_up(M, 8))
    Mp = _round_up(M, tm)
    xb = x.astype(jnp.bfloat16)
    if Mp != M:
        xb = jnp.pad(xb, ((0, Mp - M), (0, 0)))
    out = pl.pallas_call(
        _matmul_bias_kernel,
        out_shape=jax.ShapeDtypeStruct((Mp, O), jnp.bfloat16),
        grid=(Mp // tm,),
        in_specs=[
            pl.BlockSpec((tm, K), lambda i: (i, 0)),
            pl.BlockSpec((K, O), lambda i: (0, 0)),
            pl.BlockSpec((1, O), lambda i: (0, 0)),
        ],
        out_specs=pl.BlockSpec((tm, O), lambda i: (i, 0)),
        compiler_params=pltpu.CompilerParams(dimension_semantics=("parallel",)),
    )(xb, w.astype(jnp.bfloat16), b.reshape(1, O).astype(jnp.float32))
    return out[:M]


def conv1x1_nhwc(x, w, b):
    """x: (N, H, W, Cin) NHWC, w: torch (O, Cin), b: (O,) -> (N, H, W, O) bf16."""
    N, H, W, Cin = x.shape
    O = w.shape[0]
    y = pallas_matmul_bias(x.reshape(N * H * W, Cin), jnp.transpose(w), b)
    return y.reshape(N, H, W, O)


# ----------------------------------------------------------------------------
# Kernel 2: PointMatcher 3x3 conv + bias + sigmoid as 3 banded matmuls.
#   Input: concatenated embeddings reshaped to (Hh, Wh*2D), zero-row padded.
#   Output: lane-dense (Hh, Wh) certainty map.
# ----------------------------------------------------------------------------
def _matcher_band_kernel(x_ref, wb_ref, b_ref, o_ref, *, Hh, hpad):
    Wh = o_ref.shape[-1]
    acc = jnp.zeros((Hh, Wh), jnp.float32)
    for ti, dy in enumerate((-1, 0, 1)):
        acc = acc + jnp.dot(x_ref[0, hpad + dy:hpad + dy + Hh, :], wb_ref[ti],
                            preferred_element_type=jnp.float32)
    z = acc + b_ref[...]
    o_ref[0] = 1.0 / (1.0 + jnp.exp(-z))  # sigmoid in f32


def pallas_matcher(xa, xb, w, b):
    """xa, xb: (N, Hh, Wh, D) (high embed, upsampled low embed); w: (1, 2D, 3, 3).
    Returns sigmoid(conv3x3(cat([xa, xb], ch))) as (N, Hh, Wh) f32."""
    N, Hh, Wh, D = xa.shape
    hpad = 8
    xcat = jnp.concatenate([xa, xb], axis=-1).astype(jnp.bfloat16)      # (N,Hh,Wh,2D)
    xrow = jnp.pad(xcat.reshape(N, Hh, Wh * 2 * D), ((0, 0), (hpad, hpad), (0, 0)))
    wband = build_banded_conv3x3_weight(w, Wh).astype(jnp.bfloat16)     # (3, Wh*2D, Wh)
    # TODO(synk): at production resolutions tile the Hh axis (row bands with a
    #             +-1-row halo) and re-derive VMEM limits for v7x (64 MiB).
    out = pl.pallas_call(
        functools.partial(_matcher_band_kernel, Hh=Hh, hpad=hpad),
        out_shape=jax.ShapeDtypeStruct((N, Hh, Wh), jnp.float32),
        grid=(N,),
        in_specs=[
            pl.BlockSpec((1, Hh + 2 * hpad, Wh * 2 * D), lambda n: (n, 0, 0)),
            pl.BlockSpec((3, Wh * 2 * D, Wh), lambda n: (0, 0, 0)),
            pl.BlockSpec((1, 1), lambda n: (0, 0)),
        ],
        out_specs=pl.BlockSpec((1, Hh, Wh), lambda n: (n, 0, 0)),
        compiler_params=pltpu.CompilerParams(dimension_semantics=("parallel",)),
    )(xrow, wband, b.reshape(1, 1).astype(jnp.float32))
    return out


# ----------------------------------------------------------------------------
# Kernel 3: fused edge path (mask already folded into the bf16 input):
#   t = ReLU(conv3x3(x_high_edge, ef1))   -> VMEM scratch (never leaves VMEM)
#   edge_pred = conv3x3(t, ef2)           -> lane-dense (Hh, Wh) logits
# Both convs are banded (3 matmuls each).
# ----------------------------------------------------------------------------
def _edge_final_kernel(x_ref, w1_ref, w2_ref, o_ref, t_ref, *, Hh, hpad):
    Wh = o_ref.shape[-1]
    WC = x_ref.shape[-1]

    # conv1 (C -> C), banded
    acc1 = jnp.zeros((Hh, WC), jnp.float32)
    for ti, dy in enumerate((-1, 0, 1)):
        acc1 = acc1 + jnp.dot(x_ref[0, hpad + dy:hpad + dy + Hh, :], w1_ref[ti],
                              preferred_element_type=jnp.float32)
    # TODO(synk): Norm2d between ef1 and ReLU is modeled as identity.
    # zero only the halo rows of the scratch; the interior is fully overwritten
    t_ref[0:hpad, :] = jnp.zeros((hpad, WC), t_ref.dtype)
    t_ref[hpad + Hh:hpad + Hh + hpad, :] = jnp.zeros((hpad, WC), t_ref.dtype)
    t_ref[hpad:hpad + Hh, :] = jnp.maximum(acc1, 0.0).astype(t_ref.dtype)

    # conv2 (C -> 1), banded, lane-dense output
    acc2 = jnp.zeros((Hh, Wh), jnp.float32)
    for ti, dy in enumerate((-1, 0, 1)):
        acc2 = acc2 + jnp.dot(t_ref[hpad + dy:hpad + dy + Hh, :], w2_ref[ti],
                              preferred_element_type=jnp.float32)
    o_ref[0] = acc2


def pallas_edge_final(x_high, grid_map, w1, w2):
    """x_high: (N, Hh, Wh, C) f32, grid_map: (N, Hh, Wh, 1) f32 -> logits (N, Hh, Wh)."""
    N, Hh, Wh, C = x_high.shape
    hpad = 8
    # Edge mask applied exactly once; fused by XLA into the bf16 cast / pad that
    # has to happen anyway (removes the grid-map stream and 9x in-kernel VPU work).
    xm = (x_high * (1.0 - grid_map)).astype(jnp.bfloat16)
    xrow = jnp.pad(xm.reshape(N, Hh, Wh * C), ((0, 0), (hpad, hpad), (0, 0)))
    w1b = build_banded_conv3x3_weight(w1, Wh).astype(jnp.bfloat16)   # (3, Wh*C, Wh*C)
    w2b = build_banded_conv3x3_weight(w2, Wh).astype(jnp.bfloat16)   # (3, Wh*C, Wh)
    # TODO(synk): the (Wh*C, Wh*C) band for conv1 only makes sense at small
    #             Wh*C; at production sizes fall back to per-tap dense tiles.
    out = pl.pallas_call(
        functools.partial(_edge_final_kernel, Hh=Hh, hpad=hpad),
        out_shape=jax.ShapeDtypeStruct((N, Hh, Wh), jnp.float32),
        grid=(N,),
        in_specs=[
            pl.BlockSpec((1, Hh + 2 * hpad, Wh * C), lambda n: (n, 0, 0)),
            pl.BlockSpec((3, Wh * C, Wh * C), lambda n: (0, 0, 0)),
            pl.BlockSpec((3, Wh * C, Wh), lambda n: (0, 0, 0)),
        ],
        out_specs=pl.BlockSpec((1, Hh, Wh), lambda n: (n, 0, 0)),
        scratch_shapes=[pltpu.VMEM((Hh + 2 * hpad, Wh * C), jnp.bfloat16)],
        compiler_params=pltpu.CompilerParams(dimension_semantics=("parallel",)),
    )(xrow, w1b, w2b)
    return out


# ----------------------------------------------------------------------------
# Kernel 4: fused multi-head attention + residual, per batch element.
#   Dense (P,C)@(C,C) projections, 1/sqrt(d) folded into Wq, heads processed in
#   a static unrolled loop (bounded live ranges, no x broadcast over heads).
# ----------------------------------------------------------------------------
def _mha_kernel(xq_ref, xk_ref, wq_ref, wk_ref, wv_ref, wo_ref,
                bq_ref, bk_ref, bv_ref, bo_ref, o_ref, *, n_heads, d):
    xq = xq_ref[0]                                   # (P, C) f32, also the residual
    xqb = xq.astype(jnp.bfloat16)
    xkb = xk_ref[0]                                  # (P, C) bf16

    q = (jnp.dot(xqb, wq_ref[...], preferred_element_type=jnp.float32)
         + bq_ref[...]).astype(jnp.bfloat16)         # (P, C), already scaled
    k = (jnp.dot(xkb, wk_ref[...], preferred_element_type=jnp.float32)
         + bk_ref[...]).astype(jnp.bfloat16)
    v = (jnp.dot(xkb, wv_ref[...], preferred_element_type=jnp.float32)
         + bv_ref[...]).astype(jnp.bfloat16)

    y = bo_ref[...] + xq                             # (P, C): output bias + residual
    for h in range(n_heads):                         # static unroll over heads
        lo = h * d
        qh = q[:, lo:lo + d]
        kh = k[:, lo:lo + d]
        vh = v[:, lo:lo + d]
        s = jax.lax.dot_general(qh, kh, (((1,), (1,)), ((), ())),
                                preferred_element_type=jnp.float32)       # (P, P)
        s = s - jnp.max(s, axis=-1, keepdims=True)
        e = jnp.exp(s)
        p_attn = e * pl.reciprocal(jnp.sum(e, axis=-1, keepdims=True), approx=True)
        # TODO(synk): attention dropout (p=0.1) modeled in eval mode (identity).
        ctx = jnp.dot(p_attn.astype(jnp.bfloat16), vh,
                      preferred_element_type=jnp.float32)                 # (P, d)
        y = y + jnp.dot(ctx.astype(jnp.bfloat16), wo_ref[h],
                        preferred_element_type=jnp.float32)               # (P, C)
    o_ref[0] = y.astype(o_ref.dtype)


def pallas_mha_residual(xq, xk, p, n_heads=8):
    """xq, xk: (N, P, C); returns attention(xq, xk, xk) + xq, shape (N, P, C)."""
    N, P, C = xq.shape
    d = C // n_heads
    inv_scale = 1.0 / float(math.sqrt(d))

    # torch Linear weights are (out, in); transpose so projections are x @ W^T.
    wqT = (jnp.transpose(p["wq"]) * inv_scale).astype(jnp.bfloat16)   # scale folded in
    wkT = jnp.transpose(p["wk"]).astype(jnp.bfloat16)
    wvT = jnp.transpose(p["wv"]).astype(jnp.bfloat16)
    wo_h = jnp.transpose(p["wo"]).reshape(n_heads, d, C).astype(jnp.bfloat16)
    bq = (p["bq"] * inv_scale).reshape(1, C).astype(jnp.float32)
    bk = p["bk"].reshape(1, C).astype(jnp.float32)
    bv = p["bv"].reshape(1, C).astype(jnp.float32)
    bo = p["bo"].reshape(1, C).astype(jnp.float32)

    io_spec = pl.BlockSpec((1, P, C), lambda n: (n, 0, 0))
    w2d = pl.BlockSpec((C, C), lambda n: (0, 0))
    b2d = pl.BlockSpec((1, C), lambda n: (0, 0))
    out = pl.pallas_call(
        functools.partial(_mha_kernel, n_heads=n_heads, d=d),
        out_shape=jax.ShapeDtypeStruct((N, P, C), jnp.float32),
        grid=(N,),
        in_specs=[
            io_spec, io_spec,
            w2d, w2d, w2d,
            pl.BlockSpec((n_heads, d, C), lambda n: (0, 0, 0)),
            b2d, b2d, b2d, b2d,
        ],
        out_specs=io_spec,
        compiler_params=pltpu.CompilerParams(dimension_semantics=("parallel",)),
    )(xq.astype(jnp.float32), xk.astype(jnp.bfloat16),
      wqT, wkT, wvT, wo_h, bq, bk, bv, bo)
    return out


# ----------------------------------------------------------------------------
# JAX glue (NHWC): bilinear resize (align_corners=True), adaptive avg pool,
#                  grid_sample point sampling (align_corners=False, zeros pad)
# ----------------------------------------------------------------------------
def interp_bilinear_ac_nhwc(x, out_h, out_w):
    N, H, W, C = x.shape
    if out_h > 1:
        ys = jnp.arange(out_h, dtype=jnp.float32) * ((H - 1) / (out_h - 1))
    else:
        ys = jnp.zeros((out_h,), jnp.float32)
    if out_w > 1:
        xs = jnp.arange(out_w, dtype=jnp.float32) * ((W - 1) / (out_w - 1))
    else:
        xs = jnp.zeros((out_w,), jnp.float32)
    y0 = jnp.clip(jnp.floor(ys).astype(jnp.int32), 0, H - 1)
    y1 = jnp.clip(y0 + 1, 0, H - 1)
    wy = (ys - y0.astype(jnp.float32))[None, :, None, None]
    x0 = jnp.clip(jnp.floor(xs).astype(jnp.int32), 0, W - 1)
    x1 = jnp.clip(x0 + 1, 0, W - 1)
    wx = (xs - x0.astype(jnp.float32))[None, None, :, None]
    gy = x[:, y0, :, :] * (1.0 - wy) + x[:, y1, :, :] * wy
    return gy[:, :, x0, :] * (1.0 - wx) + gy[:, :, x1, :] * wx


def adaptive_avg_pool_nhwc(x, out_h, out_w):
    N, H, W, C = x.shape
    assert H % out_h == 0 and W % out_w == 0
    return x.reshape(N, out_h, H // out_h, out_w, W // out_w, C).mean(axis=(2, 4))


def point_sample_nhwc(inp, point_coords):
    """inp: (N, H, W, C), point_coords: (N, P, 2) in [0,1] as (x, y) -> (N, P, C).
    Equivalent to F.grid_sample(NCHW, 2*coords-1, bilinear, zeros, align_corners=False)."""
    N, H, W, C = inp.shape
    g = 2.0 * point_coords - 1.0
    ix = ((g[..., 0] + 1.0) * W - 1.0) / 2.0
    iy = ((g[..., 1] + 1.0) * H - 1.0) / 2.0
    x0 = jnp.floor(ix)
    x1 = x0 + 1.0
    y0 = jnp.floor(iy)
    y1 = y0 + 1.0
    wx1 = ix - x0
    wx0 = 1.0 - wx1
    wy1 = iy - y0
    wy0 = 1.0 - wy1
    flat = inp.reshape(N, H * W, C)

    def gather(yc, xc):
        valid = (xc >= 0) & (xc <= W - 1) & (yc >= 0) & (yc <= H - 1)
        xi = jnp.clip(xc, 0, W - 1).astype(jnp.int32)
        yi = jnp.clip(yc, 0, H - 1).astype(jnp.int32)
        idx = yi * W + xi
        v = jnp.take_along_axis(flat, idx[..., None], axis=1)
        return v * valid[..., None].astype(inp.dtype)

    return (gather(y0, x0) * (wy0 * wx0)[..., None]
            + gather(y0, x1) * (wy0 * wx1)[..., None]
            + gather(y1, x0) * (wy1 * wx0)[..., None]
            + gather(y1, x1) * (wy1 * wx1)[..., None])


# ----------------------------------------------------------------------------
# Full PointFlowModuleWithMaxAvgpool forward (NCHW in/out)
# ----------------------------------------------------------------------------
def point_flow_forward(x_high_nchw, x_low_nchw, p, avgpool_size=8, edge_points=64):
    N, C, H, W = x_low_nchw.shape
    _, _, H_h, W_h = x_high_nchw.shape
    stride_ratio = H / H_h

    # single boundary transpose into NHWC
    x_high = jnp.transpose(x_high_nchw, (0, 2, 3, 1))  # (N, H_h, W_h, C)
    x_low = jnp.transpose(x_low_nchw, (0, 2, 3, 1))    # (N, H, W, C)

    # down_h / down_l 1x1 convs (Pallas matmul, bf16 out)
    x_high_embed = conv1x1_nhwc(x_high, p["down_h_w"], p["down_h_b"])
    x_low_embed = conv1x1_nhwc(x_low, p["down_l_w"], p["down_l_b"])

    # PointMatcher: upsample low embed, banded 3x3 conv + sigmoid (Pallas)
    x_low_up = interp_bilinear_ac_nhwc(x_low_embed, H_h, W_h)
    certainty_map = pallas_matcher(x_high_embed, x_low_up,
                                   p["match_w"], p["match_b"])  # (N, H_h, W_h)

    # adaptive avg pool -> bilinear back to map size (JAX glue, tiny)
    avgpool_grid = adaptive_avg_pool_nhwc(certainty_map[..., None],
                                          avgpool_size, avgpool_size)
    avgpool_grid = interp_bilinear_ac_nhwc(avgpool_grid, H_h, W_h)  # (N,H_h,W_h,1)

    # fused: edge mask + conv3x3 + ReLU + conv3x3 (single Pallas kernel)
    edge_out = pallas_edge_final(x_high, avgpool_grid,
                                 p["ef1_w"], p["ef2_w"])            # (N, H_h, W_h)
    edge_flat = edge_out.reshape(N, H_h * W_h)

    # most-uncertain points on the H_h x W_h grid
    num_points = min(H_h * W_h, edge_points)
    _, point_indices = jax.lax.top_k(edge_flat, num_points)         # (N, P)

    w_step = 1.0 / float(W_h)
    h_step = 1.0 / float(H_h)
    px = w_step / 2.0 + (point_indices % W_h).astype(jnp.float32) * w_step
    py = h_step / 2.0 + (point_indices // W_h).astype(jnp.float32) * h_step
    point_coords = jnp.stack([px, py], axis=-1)                     # (N, P, 2)

    sample_x = (point_indices % W_h).astype(jnp.float32) * stride_ratio
    sample_y = (point_indices // W_h).astype(jnp.float32) * stride_ratio
    low_edge_indices = (sample_x + sample_y * W).astype(jnp.int32)  # (N, P)

    # point features via bilinear grid sampling (JAX gather glue), (N, P, C)
    high_edge_feat = point_sample_nhwc(x_high, point_coords)
    low_edge_feat = point_sample_nhwc(x_low, point_coords)

    # fused multi-head attention + residual (Pallas)
    fusion = pallas_mha_residual(low_edge_feat, high_edge_feat, p, n_heads=8)

    # scatter fused edge features back into x_low (row scatter in NHWC layout)
    flat_low = x_low.reshape(N, H * W, C)
    n_idx = jnp.arange(N)[:, None]
    final_flat = flat_low.at[n_idx, low_edge_indices].set(fusion)
    final_features = jnp.transpose(final_flat.reshape(N, H, W, C), (0, 3, 1, 2))
    edge_pred = edge_out.reshape(N, 1, H_h, W_h)
    return final_features, edge_pred


# ----------------------------------------------------------------------------
# Deterministic parameter init (PyTorch-like uniform bounds)
# ----------------------------------------------------------------------------
def init_params(key, in_planes, dim):
    C = in_planes
    keys = jax.random.split(key, 16)
    ki = iter(range(16))

    def u(k, shape, fan_in):
        bound = 1.0 / math.sqrt(fan_in)
        return jax.random.uniform(k, shape, jnp.float32, -bound, bound)

    p = {}
    p["down_h_w"] = u(keys[next(ki)], (dim, C), C)
    p["down_h_b"] = u(keys[next(ki)], (dim,), C)
    p["down_l_w"] = u(keys[next(ki)], (dim, C), C)
    p["down_l_b"] = u(keys[next(ki)], (dim,), C)
    p["match_w"] = u(keys[next(ki)], (1, 2 * dim, 3, 3), 2 * dim * 9)
    p["match_b"] = u(keys[next(ki)], (1,), 2 * dim * 9)
    p["ef1_w"] = u(keys[next(ki)], (C, C, 3, 3), C * 9)
    p["ef2_w"] = u(keys[next(ki)], (1, C, 3, 3), C * 9)
    for name in ("wq", "wk", "wv", "wo"):
        p[name] = u(keys[next(ki)], (C, C), C)
        p["b" + name[1]] = u(keys[next(ki)], (C,), C)
    return p


if __name__ == "__main__":
    key = jax.random.PRNGKey(0)
    k_params, k_high, k_low = jax.random.split(key, 3)

    # small, module-consistent shapes
    N, C = 2, 32            # in_planes = 32 (divisible by n_heads=8)
    H_h, W_h = 16, 16       # high-level (low-resolution) feature map
    H, W = 32, 32           # low-level (high-resolution) feature map
    dim = 32                # PointMatcher embedding dim
    edge_points = 64

    params = init_params(k_params, C, dim)
    x_high = jax.random.normal(k_high, (N, C, H_h, W_h), jnp.float32)
    x_low = jax.random.normal(k_low, (N, C, H, W), jnp.float32)

    fwd = jax.jit(point_flow_forward, static_argnames=("avgpool_size", "edge_points"))
    final_features, edge_pred = fwd(x_high, x_low, params,
                                    avgpool_size=8, edge_points=edge_points)

    jax.block_until_ready(final_features)
    jax.block_until_ready(edge_pred)

    assert final_features.shape == (N, C, H, W)
    assert edge_pred.shape == (N, 1, H_h, W_h)
    print("KERNEL_OK")
</pallas_src>

<mosaic_0001>
module attributes {stable_mosaic.version = 11 : i64} {
  func.func @_matmul_bias_kernel(%arg0: i32, %arg1: memref<256x32xbf16, #tpu.memory_space<vmem>>, %arg2: memref<32x32xbf16, #tpu.memory_space<vmem>>, %arg3: memref<1x32xf32, #tpu.memory_space<vmem>>, %arg4: memref<256x32xbf16, #tpu.memory_space<vmem>>) attributes {dimension_semantics = [#tpu.dimension_semantics<parallel>], iteration_bounds = array<i64: 2>, scalar_prefetch = 0 : i64, scratch_operands = 0 : i64, tpu.core_type = #tpu.core_type<tc>, window_params = [{transform_indices = @transform_0, window_bounds = array<i64: 256, 32>}, {pipeline_mode = #tpu.pipeline_mode<synchronous>, transform_indices = @transform_1, window_bounds = array<i64: 32, 32>}, {pipeline_mode = #tpu.pipeline_mode<synchronous>, transform_indices = @transform_2, window_bounds = array<i64: 1, 32>}, {transform_indices = @transform_3, window_bounds = array<i64: 256, 32>}]} {
    %c0 = arith.constant 0 : index
    %c0_0 = arith.constant 0 : index
    %0 = vector.load %arg1[%c0, %c0_0] : memref<256x32xbf16, #tpu.memory_space<vmem>>, vector<256x32xbf16>
    %c0_1 = arith.constant 0 : index
    %c0_2 = arith.constant 0 : index
    %1 = vector.load %arg2[%c0_1, %c0_2] : memref<32x32xbf16, #tpu.memory_space<vmem>>, vector<32x32xbf16>
    %cst = arith.constant dense<0.000000e+00> : vector<256x32xf32>
    %2 = tpu.matmul %0, %1, %cst {dimension_numbers = #tpu.dot_dimension_numbers<[1], [0], [0], [1], [0, 0, 1, 1], [], []>} : vector<256x32xbf16>, vector<32x32xbf16>, vector<256x32xf32> -> vector<256x32xf32>
    %c0_3 = arith.constant 0 : index
    %c0_4 = arith.constant 0 : index
    %3 = vector.load %arg3[%c0_3, %c0_4] : memref<1x32xf32, #tpu.memory_space<vmem>>, vector<1x32xf32>
    %4 = vector.broadcast %3 : vector<1x32xf32> to vector<256x32xf32>
    %5 = arith.addf %2, %4 : vector<256x32xf32>
    %6 = arith.truncf %5 : vector<256x32xf32> to vector<256x32xbf16>
    %c0_5 = arith.constant 0 : index
    %c0_6 = arith.constant 0 : index
    %7 = vector.load %arg4[%c0_5, %c0_6] : memref<256x32xbf16, #tpu.memory_space<vmem>>, vector<256x32xbf16>
    tpu.vector_store %arg4[%c0_5, %c0_6], %6 {strides = array<i32>} : memref<256x32xbf16, #tpu.memory_space<vmem>>, vector<256x32xbf16>,
    return
  }
  func.func @transform_0(%arg0: i32) -> (i32, i32) {
    %c0_i32 = arith.constant 0 : i32
    %c0_i32_0 = arith.constant 0 : i32
    return %arg0, %c0_i32 : i32, i32
  }
  func.func @transform_1(%arg0: i32) -> (i32, i32) {
    %c0_i32 = arith.constant 0 : i32
    %c0_i32_0 = arith.constant 0 : i32
    %c0_i32_1 = arith.constant 0 : i32
    return %c0_i32, %c0_i32_0 : i32, i32
  }
  func.func @transform_2(%arg0: i32) -> (i32, i32) {
    %c0_i32 = arith.constant 0 : i32
    %c0_i32_0 = arith.constant 0 : i32
    %c0_i32_1 = arith.constant 0 : i32
    return %c0_i32, %c0_i32_0 : i32, i32
  }
  func.func @transform_3(%arg0: i32) -> (i32, i32) {
    %c0_i32 = arith.constant 0 : i32
    %c0_i32_0 = arith.constant 0 : i32
    return %arg0, %c0_i32 : i32, i32
  }
}

module attributes {stable_mosaic.version = 11 : i64} {
  func.func @_matmul_bias_kernel(%arg0: i32, %arg1: memref<256x32xbf16, #tpu.memory_space<vmem>>, %arg2: memref<32x32xbf16, #tpu.memory_space<vmem>>, %arg3: memref<1x32xf32, #tpu.memory_space<vmem>>, %arg4: memref<256x32xbf16, #tpu.memory_space<vmem>>) attributes {dimension_semantics = [#tpu.dimension_semantics<parallel>], iteration_bounds = array<i64: 8>, scalar_prefetch = 0 : i64, scratch_operands = 0 : i64, tpu.core_type = #tpu.core_type<tc>, window_params = [{transform_indices = @transform_0, window_bounds = array<i64: 256, 32>}, {pipeline_mode = #tpu.pipeline_mode<synchronous>, transform_indices = @transform_1, window_bounds = array<i64: 32, 32>}, {pipeline_mode = #tpu.pipeline_mode<synchronous>, transform_indices = @transform_2, window_bounds = array<i64: 1, 32>}, {transform_indices = @transform_3, window_bounds = array<i64: 256, 32>}]} {
    %c0 = arith.constant 0 : index
    %c0_0 = arith.constant 0 : index
    %0 = vector.load %arg1[%c0, %c0_0] : memref<256x32xbf16, #tpu.memory_space<vmem>>, vector<256x32xbf16>
    %c0_1 = arith.constant 0 : index
    %c0_2 = arith.constant 0 : index
    %1 = vector.load %arg2[%c0_1, %c0_2] : memref<32x32xbf16, #tpu.memory_space<vmem>>, vector<32x32xbf16>
    %cst = arith.constant dense<0.000000e+00> : vector<256x32xf32>
    %2 = tpu.matmul %0, %1, %cst {dimension_numbers = #tpu.dot_dimension_numbers<[1], [0], [0], [1], [0, 0, 1, 1], [], []>} : vector<256x32xbf16>, vector<32x32xbf16>, vector<256x32xf32> -> vector<256x32xf32>
    %c0_3 = arith.constant 0 : index
    %c0_4 = arith.constant 0 : index
    %3 = vector.load %arg3[%c0_3, %c0_4] : memref<1x32xf32, #tpu.memory_space<vmem>>, vector<1x32xf32>
    %4 = vector.broadcast %3 : vector<1x32xf32> to vector<256x32xf32>
    %5 = arith.addf %2, %4 : vector<256x32xf32>
    %6 = arith.truncf %5 : vector<256x32xf32> to vector<256x32xbf16>
    %c0_5 = arith.constant 0 : index
    %c0_6 = arith.constant 0 : index
    %7 = vector.load %arg4[%c0_5, %c0_6] : memref<256x32xbf16, #tpu.memory_space<vmem>>, vector<256x32xbf16>
    tpu.vector_store %arg4[%c0_5, %c0_6], %6 {strides = array<i32>} : memref<256x32xbf16, #tpu.memory_space<vmem>>, vector<256x32xbf16>,
    return
  }
  func.func @transform_0(%arg0: i32) -> (i32, i32) {
    %c0_i32 = arith.constant 0 : i32
    %c0_i32_0 = arith.constant 0 : i32
    return %arg0, %c0_i32 : i32, i32
  }
  func.func @transform_1(%arg0: i32) -> (i32, i32) {
    %c0_i32 = arith.constant 0 : i32
    %c0_i32_0 = arith.constant 0 : i32
    %c0_i32_1 = arith.constant 0 : i32
    return %c0_i32, %c0_i32_0 : i32, i32
  }
  func.func @transform_2(%arg0: i32) -> (i32, i32) {
    %c0_i32 = arith.constant 0 : i32
    %c0_i32_0 = arith.constant 0 : i32
    %c0_i32_1 = arith.constant 0 : i32
    return %c0_i32, %c0_i32_0 : i32, i32
  }
  func.func @transform_3(%arg0: i32) -> (i32, i32) {
    %c0_i32 = arith.constant 0 : i32
    %c0_i32_0 = arith.constant 0 : i32
    return %arg0, %c0_i32 : i32, i32
  }
}

module attributes {stable_mosaic.version = 11 : i64} {
  func.func @_matcher_band_kernel(%arg0: i32, %arg1: memref<1x32x1024xbf16, #tpu.memory_space<vmem>>, %arg2: memref<3x1024x16xbf16, #tpu.memory_space<vmem>>, %arg3: memref<1x1xf32, #tpu.memory_space<vmem>>, %arg4: memref<1x16x16xf32, #tpu.memory_space<vmem>>) attributes {dimension_semantics = [#tpu.dimension_semantics<parallel>], iteration_bounds = array<i64: 2>, scalar_prefetch = 0 : i64, scratch_operands = 0 : i64, tpu.core_type = #tpu.core_type<tc>, window_params = [{transform_indices = @transform_0, window_bounds = array<i64: 1, 32, 1024>}, {pipeline_mode = #tpu.pipeline_mode<synchronous>, transform_indices = @transform_1, window_bounds = array<i64: 3, 1024, 16>}, {pipeline_mode = #tpu.pipeline_mode<synchronous>, transform_indices = @transform_2, window_bounds = array<i64: 1, 1>}, {transform_indices = @transform_3, window_bounds = array<i64: 1, 16, 16>}]} {
    %cst = arith.constant 0.000000e+00 : f32
    %0 = vector.broadcast %cst : f32 to vector<16x16xf32>
    %c0 = arith.constant 0 : index
    %c7 = arith.constant 7 : index
    %c0_0 = arith.constant 0 : index
    %1 = vector.load %arg1[%c0, %c7, %c0_0] : memref<1x32x1024xbf16, #tpu.memory_space<vmem>>, vector<1x16x1024xbf16>
    %2 = vector.shape_cast %1 : vector<1x16x1024xbf16> to vector<16x1024xbf16>
    %c0_1 = arith.constant 0 : index
    %c0_2 = arith.constant 0 : index
    %c0_3 = arith.constant 0 : index
    %3 = vector.load %arg2[%c0_1, %c0_2, %c0_3] : memref<3x1024x16xbf16, #tpu.memory_space<vmem>>, vector<1x1024x16xbf16>
    %4 = vector.shape_cast %3 : vector<1x1024x16xbf16> to vector<1024x16xbf16>
    %cst_4 = arith.constant dense<0.000000e+00> : vector<16x16xf32>
    %5 = tpu.matmul %2, %4, %cst_4 {dimension_numbers = #tpu.dot_dimension_numbers<[1], [0], [0], [1], [0, 0, 1, 1], [], []>} : vector<16x1024xbf16>, vector<1024x16xbf16>, vector<16x16xf32> -> vector<16x16xf32>
    %6 = arith.addf %0, %5 : vector<16x16xf32>
    %c0_5 = arith.constant 0 : index
    %c8 = arith.constant 8 : index
    %c0_6 = arith.constant 0 : index
    %7 = vector.load %arg1[%c0_5, %c8, %c0_6] : memref<1x32x1024xbf16, #tpu.memory_space<vmem>>, vector<1x16x1024xbf16>
    %8 = vector.shape_cast %7 : vector<1x16x1024xbf16> to vector<16x1024xbf16>
    %c1 = arith.constant 1 : index
    %c0_7 = arith.constant 0 : index
    %c0_8 = arith.constant 0 : index
    %9 = vector.load %arg2[%c1, %c0_7, %c0_8] : memref<3x1024x16xbf16, #tpu.memory_space<vmem>>, vector<1x1024x16xbf16>
    %10 = vector.shape_cast %9 : vector<1x1024x16xbf16> to vector<1024x16xbf16>
    %cst_9 = arith.constant dense<0.000000e+00> : vector<16x16xf32>
    %11 = tpu.matmul %8, %10, %cst_9 {dimension_numbers = #tpu.dot_dimension_numbers<[1], [0], [0], [1], [0, 0, 1, 1], [], []>} : vector<16x1024xbf16>, vector<1024x16xbf16>, vector<16x16xf32> -> vector<16x16xf32>
    %12 = arith.addf %6, %11 : vector<16x16xf32>
    %c0_10 = arith.constant 0 : index
    %c9 = arith.constant 9 : index
    %c0_11 = arith.constant 0 : index
    %13 = vector.load %arg1[%c0_10, %c9, %c0_11] : memref<1x32x1024xbf16, #tpu.memory_space<vmem>>, vector<1x16x1024xbf16>
    %14 = vector.shape_cast %13 : vector<1x16x1024xbf16> to vector<16x1024xbf16>
    %c2 = arith.constant 2 : index
    %c0_12 = arith.constant 0 : index
    %c0_13 = arith.constant 0 : index
    %15 = vector.load %arg2[%c2, %c0_12, %c0_13] : memref<3x1024x16xbf16, #tpu.memory_space<vmem>>, vector<1x1024x16xbf16>
    %16 = vector.shape_cast %15 : vector<1x1024x16xbf16> to vector<1024x16xbf16>
    %cst_14 = arith.constant dense<0.000000e+00> : vector<16x16xf32>
    %17 = tpu.matmul %14, %16, %cst_14 {dimension_numbers = #tpu.dot_dimension_numbers<[1], [0], [0], [1], [0, 0, 1, 1], [], []>} : vector<16x1024xbf16>, vector<1024x16xbf16>, vector<16x16xf32> -> vector<16x16xf32>
    %18 = arith.addf %12, %17 : vector<16x16xf32>
    %c0_15 = arith.constant 0 : index
    %c0_16 = arith.constant 0 : index
    %19 = vector.load %arg3[%c0_15, %c0_16] : memref<1x1xf32, #tpu.memory_space<vmem>>, vector<1x1xf32>
    %20 = vector.broadcast %19 : vector<1x1xf32> to vector<16x16xf32>
    %21 = arith.addf %18, %20 : vector<16x16xf32>
    %cst_17 = arith.constant 0.000000e+00 : f32
    %22 = vector.broadcast %cst_17 : f32 to vector<16x16xf32>
    %23 = arith.subf %22, %21 : vector<16x16xf32>
    %24 = math.exp %23 : vector<16x16xf32>
    %cst_18 = arith.constant 1.000000e+00 : f32
    %25 = vector.broadcast %cst_18 : f32 to vector<16x16xf32>
    %26 = arith.addf %25, %24 : vector<16x16xf32>
    %cst_19 = arith.constant 1.000000e+00 : f32
    %27 = vector.broadcast %cst_19 : f32 to vector<16x16xf32>
    %28 = arith.divf %27, %26 : vector<16x16xf32>
    %c0_20 = arith.constant 0 : index
    %c0_21 = arith.constant 0 : index
    %c0_22 = arith.constant 0 : index
    %29 = vector.load %arg4[%c0_20, %c0_21, %c0_22] : memref<1x16x16xf32, #tpu.memory_space<vmem>>, vector<1x16x16xf32>
    %30 = vector.shape_cast %29 : vector<1x16x16xf32> to vector<16x16xf32>
    %31 = vector.shape_cast %28 : vector<16x16xf32> to vector<1x16x16xf32>
    tpu.vector_store %arg4[%c0_20, %c0_21, %c0_22], %31 {strides = array<i32>} : memref<1x16x16xf32, #tpu.memory_space<vmem>>, vector<1x16x16xf32>,
    return
  }
  func.func @transform_0(%arg0: i32) -> (i32, i32, i32) {
    %c0_i32 = arith.constant 0 : i32
    %c0_i32_0 = arith.constant 0 : i32
    %c0_i32_1 = arith.constant 0 : i32
    return %arg0, %c0_i32, %c0_i32_0 : i32, i32, i32
  }
  func.func @transform_1(%arg0: i32) -> (i32, i32, i32) {
    %c0_i32 = arith.constant 0 : i32
    %c0_i32_0 = arith.constant 0 : i32
    %c0_i32_1 = arith.constant 0 : i32
    %c0_i32_2 = arith.constant 0 : i32
    return %c0_i32, %c0_i32_0, %c0_i32_1 : i32, i32, i32
  }
  func.func @transform_2(%arg0: i32) -> (i32, i32) {
    %c0_i32 = arith.constant 0 : i32
    %c0_i32_0 = arith.constant 0 : i32
    %c0_i32_1 = arith.constant 0 : i32
    return %c0_i32, %c0_i32_0 : i32, i32
  }
  func.func @transform_3(%arg0: i32) -> (i32, i32, i32) {
    %c0_i32 = arith.constant 0 : i32
    %c0_i32_0 = arith.constant 0 : i32
    %c0_i32_1 = arith.constant 0 : i32
    return %arg0, %c0_i32, %c0_i32_0 : i32, i32, i32
  }
}

module attributes {stable_mosaic.version = 11 : i64} {
  func.func @_edge_final_kernel(%arg0: i32, %arg1: memref<1x32x512xbf16, #tpu.memory_space<vmem>>, %arg2: memref<3x512x512xbf16, #tpu.memory_space<vmem>>, %arg3: memref<3x512x16xbf16, #tpu.memory_space<vmem>>, %arg4: memref<1x16x16xf32, #tpu.memory_space<vmem>>, %arg5: memref<32x512xbf16, #tpu.memory_space<vmem>>) attributes {dimension_semantics = [#tpu.dimension_semantics<parallel>], iteration_bounds = array<i64: 2>, scalar_prefetch = 0 : i64, scratch_operands = 1 : i64, tpu.core_type = #tpu.core_type<tc>, window_params = [{transform_indices = @transform_0, window_bounds = array<i64: 1, 32, 512>}, {pipeline_mode = #tpu.pipeline_mode<synchronous>, transform_indices = @transform_1, window_bounds = array<i64: 3, 512, 512>}, {pipeline_mode = #tpu.pipeline_mode<synchronous>, transform_indices = @transform_2, window_bounds = array<i64: 3, 512, 16>}, {transform_indices = @transform_3, window_bounds = array<i64: 1, 16, 16>}]} {
    %cst = arith.constant 0.000000e+00 : f32
    %0 = vector.broadcast %cst : f32 to vector<16x512xf32>
    %c0 = arith.constant 0 : index
    %c7 = arith.constant 7 : index
    %c0_0 = arith.constant 0 : index
    %1 = vector.load %arg1[%c0, %c7, %c0_0] : memref<1x32x512xbf16, #tpu.memory_space<vmem>>, vector<1x16x512xbf16>
    %2 = vector.shape_cast %1 : vector<1x16x512xbf16> to vector<16x512xbf16>
    %c0_1 = arith.constant 0 : index
    %c0_2 = arith.constant 0 : index
    %c0_3 = arith.constant 0 : index
    %3 = vector.load %arg2[%c0_1, %c0_2, %c0_3] : memref<3x512x512xbf16, #tpu.memory_space<vmem>>, vector<1x512x512xbf16>
    %4 = vector.shape_cast %3 : vector<1x512x512xbf16> to vector<512x512xbf16>
    %cst_4 = arith.constant dense<0.000000e+00> : vector<16x512xf32>
    %5 = tpu.matmul %2, %4, %cst_4 {dimension_numbers = #tpu.dot_dimension_numbers<[1], [0], [0], [1], [0, 0, 1, 1], [], []>} : vector<16x512xbf16>, vector<512x512xbf16>, vector<16x512xf32> -> vector<16x512xf32>
    %6 = arith.addf %0, %5 : vector<16x512xf32>
    %c0_5 = arith.constant 0 : index
    %c8 = arith.constant 8 : index
    %c0_6 = arith.constant 0 : index
    %7 = vector.load %arg1[%c0_5, %c8, %c0_6] : memref<1x32x512xbf16, #tpu.memory_space<vmem>>, vector<1x16x512xbf16>
    %8 = vector.shape_cast %7 : vector<1x16x512xbf16> to vector<16x512xbf16>
    %c1 = arith.constant 1 : index
    %c0_7 = arith.constant 0 : index
    %c0_8 = arith.constant 0 : index
    %9 = vector.load %arg2[%c1, %c0_7, %c0_8] : memref<3x512x512xbf16, #tpu.memory_space<vmem>>, vector<1x512x512xbf16>
    %10 = vector.shape_cast %9 : vector<1x512x512xbf16> to vector<512x512xbf16>
    %cst_9 = arith.constant dense<0.000000e+00> : vector<16x512xf32>
    %11 = tpu.matmul %8, %10, %cst_9 {dimension_numbers = #tpu.dot_dimension_numbers<[1], [0], [0], [1], [0, 0, 1, 1], [], []>} : vector<16x512xbf16>, vector<512x512xbf16>, vector<16x512xf32> -> vector<16x512xf32>
    %12 = arith.addf %6, %11 : vector<16x512xf32>
    %c0_10 = arith.constant 0 : index
    %c9 = arith.constant 9 : index
    %c0_11 = arith.constant 0 : index
    %13 = vector.load %arg1[%c0_10, %c9, %c0_11] : memref<1x32x512xbf16, #tpu.memory_space<vmem>>, vector<1x16x512xbf16>
    %14 = vector.shape_cast %13 : vector<1x16x512xbf16> to vector<16x512xbf16>
    %c2 = arith.constant 2 : index
    %c0_12 = arith.constant 0 : index
    %c0_13 = arith.constant 0 : index
    %15 = vector.load %arg2[%c2, %c0_12, %c0_13] : memref<3x512x512xbf16, #tpu.memory_space<vmem>>, vector<1x512x512xbf16>
    %16 = vector.shape_cast %15 : vector<1x512x512xbf16> to vector<512x512xbf16>
    %cst_14 = arith.constant dense<0.000000e+00> : vector<16x512xf32>
    %17 = tpu.matmul %14, %16, %cst_14 {dimension_numbers = #tpu.dot_dimension_numbers<[1], [0], [0], [1], [0, 0, 1, 1], [], []>} : vector<16x512xbf16>, vector<512x512xbf16>, vector<16x512xf32> -> vector<16x512xf32>
    %18 = arith.addf %12, %17 : vector<16x512xf32>
    %cst_15 = arith.constant 0.000000e+00 : bf16
    %19 = vector.broadcast %cst_15 : bf16 to vector<8x512xbf16>
    %c0_16 = arith.constant 0 : index
    %c0_17 = arith.constant 0 : index
    %20 = vector.load %arg5[%c0_16, %c0_17] : memref<32x512xbf16, #tpu.memory_space<vmem>>, vector<8x512xbf16>
    tpu.vector_store %arg5[%c0_16, %c0_17], %19 {strides = array<i32>} : memref<32x512xbf16, #tpu.memory_space<vmem>>, vector<8x512xbf16>,
    %cst_18 = arith.constant 0.000000e+00 : bf16
    %21 = vector.broadcast %cst_18 : bf16 to vector<8x512xbf16>
    %c24 = arith.constant 24 : index
    %c0_19 = arith.constant 0 : index
    %22 = vector.load %arg5[%c24, %c0_19] : memref<32x512xbf16, #tpu.memory_space<vmem>>, vector<8x512xbf16>
    tpu.vector_store %arg5[%c24, %c0_19], %21 {strides = array<i32>} : memref<32x512xbf16, #tpu.memory_space<vmem>>, vector<8x512xbf16>,
    %cst_20 = arith.constant 0.000000e+00 : f32
    %23 = vector.broadcast %cst_20 : f32 to vector<16x512xf32>
    %24 = arith.maximumf %18, %23 : vector<16x512xf32>
    %25 = arith.truncf %24 : vector<16x512xf32> to vector<16x512xbf16>
    %c8_21 = arith.constant 8 : index
    %c0_22 = arith.constant 0 : index
    %26 = vector.load %arg5[%c8_21, %c0_22] : memref<32x512xbf16, #tpu.memory_space<vmem>>, vector<16x512xbf16>
    tpu.vector_store %arg5[%c8_21, %c0_22], %25 {strides = array<i32>} : memref<32x512xbf16, #tpu.memory_space<vmem>>, vector<16x512xbf16>,
    %cst_23 = arith.constant 0.000000e+00 : f32
    %27 = vector.broadcast %cst_23 : f32 to vector<16x16xf32>
    %c7_24 = arith.constant 7 : index
    %c0_25 = arith.constant 0 : index
    %28 = vector.load %arg5[%c7_24, %c0_25] : memref<32x512xbf16, #tpu.memory_space<vmem>>, vector<16x512xbf16>
    %c0_26 = arith.constant 0 : index
    %c0_27 = arith.constant 0 : index
    %c0_28 = arith.constant 0 : index
    %29 = vector.load %arg3[%c0_26, %c0_27, %c0_28] : memref<3x512x16xbf16, #tpu.memory_space<vmem>>, vector<1x512x16xbf16>
    %30 = vector.shape_cast %29 : vector<1x512x16xbf16> to vector<512x16xbf16>
    %cst_29 = arith.constant dense<0.000000e+00> : vector<16x16xf32>
    %31 = tpu.matmul %28, %30, %cst_29 {dimension_numbers = #tpu.dot_dimension_numbers<[1], [0], [0], [1], [0, 0, 1, 1], [], []>} : vector<16x512xbf16>, vector<512x16xbf16>, vector<16x16xf32> -> vector<16x16xf32>
    %32 = arith.addf %27, %31 : vector<16x16xf32>
    %c8_30 = arith.constant 8 : index
    %c0_31 = arith.constant 0 : index
    %33 = vector.load %arg5[%c8_30, %c0_31] : memref<32x512xbf16, #tpu.memory_space<vmem>>, vector<16x512xbf16>
    %c1_32 = arith.constant 1 : index
    %c0_33 = arith.constant 0 : index
    %c0_34 = arith.constant 0 : index
    %34 = vector.load %arg3[%c1_32, %c0_33, %c0_34] : memref<3x512x16xbf16, #tpu.memory_space<vmem>>, vector<1x512x16xbf16>
    %35 = vector.shape_cast %34 : vector<1x512x16xbf16> to vector<512x16xbf16>
    %cst_35 = arith.constant dense<0.000000e+00> : vector<16x16xf32>
    %36 = tpu.matmul %33, %35, %cst_35 {dimension_numbers = #tpu.dot_dimension_numbers<[1], [0], [0], [1], [0, 0, 1, 1], [], []>} : vector<16x512xbf16>, vector<512x16xbf16>, vector<16x16xf32> -> vector<16x16xf32>
    %37 = arith.addf %32, %36 : vector<16x16xf32>
    %c9_36 = arith.constant 9 : index
    %c0_37 = arith.constant 0 : index
    %38 = vector.load %arg5[%c9_36, %c0_37] : memref<32x512xbf16, #tpu.memory_space<vmem>>, vector<16x512xbf16>
    %c2_38 = arith.constant 2 : index
    %c0_39 = arith.constant 0 : index
    %c0_40 = arith.constant 0 : index
    %39 = vector.load %arg3[%c2_38, %c0_39, %c0_40] : memref<3x512x16xbf16, #tpu.memory_space<vmem>>, vector<1x512x16xbf16>
    %40 = vector.shape_cast %39 : vector<1x512x16xbf16> to vector<512x16xbf16>
    %cst_41 = arith.constant dense<0.000000e+00> : vector<16x16xf32>
    %41 = tpu.matmul %38, %40, %cst_41 {dimension_numbers = #tpu.dot_dimension_numbers<[1], [0], [0], [1], [0, 0, 1, 1], [], []>} : vector<16x512xbf16>, vector<512x16xbf16>, vector<16x16xf32> -> vector<16x16xf32>
    %42 = arith.addf %37, %41 : vector<16x16xf32>
    %c0_42 = arith.constant 0 : index
    %c0_43 = arith.constant 0 : index
    %c0_44 = arith.constant 0 : index
    %43 = vector.load %arg4[%c0_42, %c0_43, %c0_44] : memref<1x16x16xf32, #tpu.memory_space<vmem>>, vector<1x16x16xf32>
    %44 = vector.shape_cast %43 : vector<1x16x16xf32> to vector<16x16xf32>
    %45 = vector.shape_cast %42 : vector<16x16xf32> to vector<1x16x16xf32>
    tpu.vector_store %arg4[%c0_42, %c0_43, %c0_44], %45 {strides = array<i32>} : memref<1x16x16xf32, #tpu.memory_space<vmem>>, vector<1x16x16xf32>,
    return
  }
  func.func @transform_0(%arg0: i32) -> (i32, i32, i32) {
    %c0_i32 = arith.constant 0 : i32
    %c0_i32_0 = arith.constant 0 : i32
    %c0_i32_1 = arith.constant 0 : i32
    return %arg0, %c0_i32, %c0_i32_0 : i32, i32, i32
  }
  func.func @transform_1(%arg0: i32) -> (i32, i32, i32) {
    %c0_i32 = arith.constant 0 : i32
    %c0_i32_0 = arith.constant 0 : i32
    %c0_i32_1 = arith.constant 0 : i32
    %c0_i32_2 = arith.constant 0 : i32
    return %c0_i32, %c0_i32_0, %c0_i32_1 : i32, i32, i32
  }
  func.func @transform_2(%arg0: i32) -> (i32, i32, i32) {
    %c0_i32 = arith.constant 0 : i32
    %c0_i32_0 = arith.constant 0 : i32
    %c0_i32_1 = arith.constant 0 : i32
    %c0_i32_2 = arith.constant 0 : i32
    return %c0_i32, %c0_i32_0, %c0_i32_1 : i32, i32, i32
  }
  func.func @transform_3(%arg0: i32) -> (i32, i32, i32) {
    %c0_i32 = arith.constant 0 : i32
    %c0_i32_0 = arith.constant 0 : i32
    %c0_i32_1 = arith.constant 0 : i32
    return %arg0, %c0_i32, %c0_i32_0 : i32, i32, i32
  }
}

module attributes {stable_mosaic.version = 11 : i64} {
  func.func @_mha_kernel(%arg0: i32, %arg1: memref<1x64x32xf32, #tpu.memory_space<vmem>>, %arg2: memref<1x64x32xbf16, #tpu.memory_space<vmem>>, %arg3: memref<32x32xbf16, #tpu.memory_space<vmem>>, %arg4: memref<32x32xbf16, #tpu.memory_space<vmem>>, %arg5: memref<32x32xbf16, #tpu.memory_space<vmem>>, %arg6: memref<8x4x32xbf16, #tpu.memory_space<vmem>>, %arg7: memref<1x32xf32, #tpu.memory_space<vmem>>, %arg8: memref<1x32xf32, #tpu.memory_space<vmem>>, %arg9: memref<1x32xf32, #tpu.memory_space<vmem>>, %arg10: memref<1x32xf32, #tpu.memory_space<vmem>>, %arg11: memref<1x64x32xf32, #tpu.memory_space<vmem>>) attributes {dimension_semantics = [#tpu.dimension_semantics<parallel>], iteration_bounds = array<i64: 2>, scalar_prefetch = 0 : i64, scratch_operands = 0 : i64, tpu.core_type = #tpu.core_type<tc>, window_params = [{transform_indices = @transform_0, window_bounds = array<i64: 1, 64, 32>}, {transform_indices = @transform_1, window_bounds = array<i64: 1, 64, 32>}, {pipeline_mode = #tpu.pipeline_mode<synchronous>, transform_indices = @transform_2, window_bounds = array<i64: 32, 32>}, {pipeline_mode = #tpu.pipeline_mode<synchronous>, transform_indices = @transform_3, window_bounds = array<i64: 32, 32>}, {pipeline_mode = #tpu.pipeline_mode<synchronous>, transform_indices = @transform_4, window_bounds = array<i64: 32, 32>}, {pipeline_mode = #tpu.pipeline_mode<synchronous>, transform_indices = @transform_5, window_bounds = array<i64: 8, 4, 32>}, {pipeline_mode = #tpu.pipeline_mode<synchronous>, transform_indices = @transform_6, window_bounds = array<i64: 1, 32>}, {pipeline_mode = #tpu.pipeline_mode<synchronous>, transform_indices = @transform_7, window_bounds = array<i64: 1, 32>}, {pipeline_mode = #tpu.pipeline_mode<synchronous>, transform_indices = @transform_8, window_bounds = array<i64: 1, 32>}, {pipeline_mode = #tpu.pipeline_mode<synchronous>, transform_indices = @transform_9, window_bounds = array<i64: 1, 32>}, {transform_indices = @transform_10, window_bounds = array<i64: 1, 64, 32>}]} {
    %c0 = arith.constant 0 : index
    %c0_0 = arith.constant 0 : index
    %c0_1 = arith.constant 0 : index
    %0 = vector.load %arg1[%c0, %c0_0, %c0_1] : memref<1x64x32xf32, #tpu.memory_space<vmem>>, vector<1x64x32xf32>
    %1 = vector.shape_cast %0 : vector<1x64x32xf32> to vector<64x32xf32>
    %2 = arith.truncf %1 : vector<64x32xf32> to vector<64x32xbf16>
    %c0_2 = arith.constant 0 : index
    %c0_3 = arith.constant 0 : index
    %c0_4 = arith.constant 0 : index
    %3 = vector.load %arg2[%c0_2, %c0_3, %c0_4] : memref<1x64x32xbf16, #tpu.memory_space<vmem>>, vector<1x64x32xbf16>
    %4 = vector.shape_cast %3 : vector<1x64x32xbf16> to vector<64x32xbf16>
    %c0_5 = arith.constant 0 : index
    %c0_6 = arith.constant 0 : index
    %5 = vector.load %arg3[%c0_5, %c0_6] : memref<32x32xbf16, #tpu.memory_space<vmem>>, vector<32x32xbf16>
    %cst = arith.constant dense<0.000000e+00> : vector<64x32xf32>
    %6 = tpu.matmul %2, %5, %cst {dimension_numbers = #tpu.dot_dimension_numbers<[1], [0], [0], [1], [0, 0, 1, 1], [], []>} : vector<64x32xbf16>, vector<32x32xbf16>, vector<64x32xf32> -> vector<64x32xf32>
    %c0_7 = arith.constant 0 : index
    %c0_8 = arith.constant 0 : index
    %7 = vector.load %arg7[%c0_7, %c0_8] : memref<1x32xf32, #tpu.memory_space<vmem>>, vector<1x32xf32>
    %8 = vector.broadcast %7 : vector<1x32xf32> to vector<64x32xf32>
    %9 = arith.addf %6, %8 : vector<64x32xf32>
    %10 = arith.truncf %9 : vector<64x32xf32> to vector<64x32xbf16>
    %c0_9 = arith.constant 0 : index
    %c0_10 = arith.constant 0 : index
    %11 = vector.load %arg4[%c0_9, %c0_10] : memref<32x32xbf16, #tpu.memory_space<vmem>>, vector<32x32xbf16>
    %cst_11 = arith.constant dense<0.000000e+00> : vector<64x32xf32>
    %12 = tpu.matmul %4, %11, %cst_11 {dimension_numbers = #tpu.dot_dimension_numbers<[1], [0], [0], [1], [0, 0, 1, 1], [], []>} : vector<64x32xbf16>, vector<32x32xbf16>, vector<64x32xf32> -> vector<64x32xf32>
    %c0_12 = arith.constant 0 : index
    %c0_13 = arith.constant 0 : index
    %13 = vector.load %arg8[%c0_12, %c0_13] : memref<1x32xf32, #tpu.memory_space<vmem>>, vector<1x32xf32>
    %14 = vector.broadcast %13 : vector<1x32xf32> to vector<64x32xf32>
    %15 = arith.addf %12, %14 : vector<64x32xf32>
    %16 = arith.truncf %15 : vector<64x32xf32> to vector<64x32xbf16>
    %c0_14 = arith.constant 0 : index
    %c0_15 = arith.constant 0 : index
    %17 = vector.load %arg5[%c0_14, %c0_15] : memref<32x32xbf16, #tpu.memory_space<vmem>>, vector<32x32xbf16>
    %cst_16 = arith.constant dense<0.000000e+00> : vector<64x32xf32>
    %18 = tpu.matmul %4, %17, %cst_16 {dimension_numbers = #tpu.dot_dimension_numbers<[1], [0], [0], [1], [0, 0, 1, 1], [], []>} : vector<64x32xbf16>, vector<32x32xbf16>, vector<64x32xf32> -> vector<64x32xf32>
    %c0_17 = arith.constant 0 : index
    %c0_18 = arith.constant 0 : index
    %19 = vector.load %arg9[%c0_17, %c0_18] : memref<1x32xf32, #tpu.memory_space<vmem>>, vector<1x32xf32>
    %20 = vector.broadcast %19 : vector<1x32xf32> to vector<64x32xf32>
    %21 = arith.addf %18, %20 : vector<64x32xf32>
    %22 = arith.truncf %21 : vector<64x32xf32> to vector<64x32xbf16>
    %c0_19 = arith.constant 0 : index
    %c0_20 = arith.constant 0 : index
    %23 = vector.load %arg10[%c0_19, %c0_20] : memref<1x32xf32, #tpu.memory_space<vmem>>, vector<1x32xf32>
    %24 = vector.broadcast %23 : vector<1x32xf32> to vector<64x32xf32>
    %25 = arith.addf %24, %1 : vector<64x32xf32>
    %26 = vector.extract_strided_slice %10 {offsets = [0, 0], sizes = [64, 4], strides = [1, 1]} : vector<64x32xbf16> to vector<64x4xbf16>
    %27 = vector.extract_strided_slice %16 {offsets = [0, 0], sizes = [64, 4], strides = [1, 1]} : vector<64x32xbf16> to vector<64x4xbf16>
    %28 = vector.extract_strided_slice %22 {offsets = [0, 0], sizes = [64, 4], strides = [1, 1]} : vector<64x32xbf16> to vector<64x4xbf16>
    %cst_21 = arith.constant dense<0.000000e+00> : vector<64x64xf32>
    %29 = tpu.matmul %26, %27, %cst_21 {dimension_numbers = #tpu.dot_dimension_numbers<[1], [1], [0], [0], [0, 0, 1, 0], [], []>} : vector<64x4xbf16>, vector<64x4xbf16>, vector<64x64xf32> -> vector<64x64xf32>
    %cst_22 = arith.constant dense<0xFF800000> : vector<64xf32>
    %30 = vector.multi_reduction <maximumf>, %29, %cst_22 [1] : vector<64x64xf32> to vector<64xf32>
    %31 = vector.shape_cast %30 : vector<64xf32> to vector<64x1xf32>
    %32 = vector.broadcast %31 : vector<64x1xf32> to vector<64x64xf32>
    %33 = arith.subf %29, %32 : vector<64x64xf32>
    %34 = math.exp %33 : vector<64x64xf32>
    %cst_23 = arith.constant dense<0.000000e+00> : vector<64xf32>
    %35 = vector.multi_reduction <add>, %34, %cst_23 [1] : vector<64x64xf32> to vector<64xf32>
    %36 = vector.shape_cast %35 : vector<64xf32> to vector<64x1xf32>
    %37 = tpu.reciprocal %36 {approx = true} : vector<64x1xf32> -> vector<64x1xf32>
    %38 = vector.broadcast %37 : vector<64x1xf32> to vector<64x64xf32>
    %39 = arith.mulf %34, %38 : vector<64x64xf32>
    %40 = arith.truncf %39 : vector<64x64xf32> to vector<64x64xbf16>
    %cst_24 = arith.constant dense<0.000000e+00> : vector<64x4xf32>
    %41 = tpu.matmul %40, %28, %cst_24 {dimension_numbers = #tpu.dot_dimension_numbers<[1], [0], [0], [1], [0, 0, 1, 1], [], []>} : vector<64x64xbf16>, vector<64x4xbf16>, vector<64x4xf32> -> vector<64x4xf32>
    %42 = arith.truncf %41 : vector<64x4xf32> to vector<64x4xbf16>
    %c0_25 = arith.constant 0 : index
    %c0_26 = arith.constant 0 : index
    %c0_27 = arith.constant 0 : index
    %43 = vector.load %arg6[%c0_25, %c0_26, %c0_27] : memref<8x4x32xbf16, #tpu.memory_space<vmem>>, vector<1x4x32xbf16>
    %44 = vector.shape_cast %43 : vector<1x4x32xbf16> to vector<4x32xbf16>
    %cst_28 = arith.constant dense<0.000000e+00> : vector<64x32xf32>
    %45 = tpu.matmul %42, %44, %cst_28 {dimension_numbers = #tpu.dot_dimension_numbers<[1], [0], [0], [1], [0, 0, 1, 1], [], []>} : vector<64x4xbf16>, vector<4x32xbf16>, vector<64x32xf32> -> vector<64x32xf32>
    %46 = arith.addf %25, %45 : vector<64x32xf32>
    %47 = vector.extract_strided_slice %10 {offsets = [0, 4], sizes = [64, 4], strides = [1, 1]} : vector<64x32xbf16> to vector<64x4xbf16>
    %48 = vector.extract_strided_slice %16 {offsets = [0, 4], sizes = [64, 4], strides = [1, 1]} : vector<64x32xbf16> to vector<64x4xbf16>
    %49 = vector.extract_strided_slice %22 {offsets = [0, 4], sizes = [64, 4], strides = [1, 1]} : vector<64x32xbf16> to vector<64x4xbf16>
    %cst_29 = arith.constant dense<0.000000e+00> : vector<64x64xf32>
    %50 = tpu.matmul %47, %48, %cst_29 {dimension_numbers = #tpu.dot_dimension_numbers<[1], [1], [0], [0], [0, 0, 1, 0], [], []>} : vector<64x4xbf16>, vector<64x4xbf16>, vector<64x64xf32> -> vector<64x64xf32>
    %cst_30 = arith.constant dense<0xFF800000> : vector<64xf32>
    %51 = vector.multi_reduction <maximumf>, %50, %cst_30 [1] : vector<64x64xf32> to vector<64xf32>
    %52 = vector.shape_cast %51 : vector<64xf32> to vector<64x1xf32>
    %53 = vector.broadcast %52 : vector<64x1xf32> to vector<64x64xf32>
    %54 = arith.subf %50, %53 : vector<64x64xf32>
    %55 = math.exp %54 : vector<64x64xf32>
    %cst_31 = arith.constant dense<0.000000e+00> : vector<64xf32>
    %56 = vector.multi_reduction <add>, %55, %cst_31 [1] : vector<64x64xf32> to vector<64xf32>
    %57 = vector.shape_cast %56 : vector<64xf32> to vector<64x1xf32>
    %58 = tpu.reciprocal %57 {approx = true} : vector<64x1xf32> -> vector<64x1xf32>
    %59 = vector.broadcast %58 : vector<64x1xf32> to vector<64x64xf32>
    %60 = arith.mulf %55, %59 : vector<64x64xf32>
    %61 = arith.truncf %60 : vector<64x64xf32> to vector<64x64xbf16>
    %cst_32 = arith.constant dense<0.000000e+00> : vector<64x4xf32>
    %62 = tpu.matmul %61, %49, %cst_32 {dimension_numbers = #tpu.dot_dimension_numbers<[1], [0], [0], [1], [0, 0, 1, 1], [], []>} : vector<64x64xbf16>, vector<64x4xbf16>, vector<64x4xf32> -> vector<64x4xf32>
    %63 = arith.truncf %62 : vector<64x4xf32> to vector<64x4xbf16>
    %c1 = arith.constant 1 : index
    %c0_33 = arith.constant 0 : index
    %c0_34 = arith.constant 0 : index
    %64 = vector.load %arg6[%c1, %c0_33, %c0_34] : memref<8x4x32xbf16, #tpu.memory_space<vmem>>, vector<1x4x32xbf16>
    %65 = vector.shape_cast %64 : vector<1x4x32xbf16> to vector<4x32xbf16>
    %cst_35 = arith.constant dense<0.000000e+00> : vector<64x32xf32>
    %66 = tpu.matmul %63, %65, %cst_35 {dimension_numbers = #tpu.dot_dimension_numbers<[1], [0], [0], [1], [0, 0, 1, 1], [], []>} : vector<64x4xbf16>, vector<4x32xbf16>, vector<64x32xf32> -> vector<64x32xf32>
    %67 = arith.addf %46, %66 : vector<64x32xf32>
    %68 = vector.extract_strided_slice %10 {offsets = [0, 8], sizes = [64, 4], strides = [1, 1]} : vector<64x32xbf16> to vector<64x4xbf16>
    %69 = vector.extract_strided_slice %16 {offsets = [0, 8], sizes = [64, 4], strides = [1, 1]} : vector<64x32xbf16> to vector<64x4xbf16>
    %70 = vector.extract_strided_slice %22 {offsets = [0, 8], sizes = [64, 4], strides = [1, 1]} : vector<64x32xbf16> to vector<64x4xbf16>
    %cst_36 = arith.constant dense<0.000000e+00> : vector<64x64xf32>
    %71 = tpu.matmul %68, %69, %cst_36 {dimension_numbers = #tpu.dot_dimension_numbers<[1], [1], [0], [0], [0, 0, 1, 0], [], []>} : vector<64x4xbf16>, vector<64x4xbf16>, vector<64x64xf32> -> vector<64x64xf32>
    %cst_37 = arith.constant dense<0xFF800000> : vector<64xf32>
    %72 = vector.multi_reduction <maximumf>, %71, %cst_37 [1] : vector<64x64xf32> to vector<64xf32>
    %73 = vector.shape_cast %72 : vector<64xf32> to vector<64x1xf32>
    %74 = vector.broadcast %73 : vector<64x1xf32> to vector<64x64xf32>
    %75 = arith.subf %71, %74 : vector<64x64xf32>
    %76 = math.exp %75 : vector<64x64xf32>
    %cst_38 = arith.constant dense<0.000000e+00> : vector<64xf32>
    %77 = vector.multi_reduction <add>, %76, %cst_38 [1] : vector<64x64xf32> to vector<64xf32>
    %78 = vector.shape_cast %77 : vector<64xf32> to vector<64x1xf32>
    %79 = tpu.reciprocal %78 {approx = true} : vector<64x1xf32> -> vector<64x1xf32>
    %80 = vector.broadcast %79 : vector<64x1xf32> to vector<64x64xf32>
    %81 = arith.mulf %76, %80 : vector<64x64xf32>
    %82 = arith.truncf %81 : vector<64x64xf32> to vector<64x64xbf16>
    %cst_39 = arith.constant dense<0.000000e+00> : vector<64x4xf32>
    %83 = tpu.matmul %82, %70, %cst_39 {dimension_numbers = #tpu.dot_dimension_numbers<[1], [0], [0], [1], [0, 0, 1, 1], [], []>} : vector<64x64xbf16>, vector<64x4xbf16>, vector<64x4xf32> -> vector<64x4xf32>
    %84 = arith.truncf %83 : vector<64x4xf32> to vector<64x4xbf16>
    %c2 = arith.constant 2 : index
    %c0_40 = arith.constant 0 : index
    %c0_41 = arith.constant 0 : index
    %85 = vector.load %arg6[%c2, %c0_40, %c0_41] : memref<8x4x32xbf16, #tpu.memory_space<vmem>>, vector<1x4x32xbf16>
    %86 = vector.shape_cast %85 : vector<1x4x32xbf16> to vector<4x32xbf16>
    %cst_42 = arith.constant dense<0.000000e+00> : vector<64x32xf32>
    %87 = tpu.matmul %84, %86, %cst_42 {dimension_numbers = #tpu.dot_dimension_numbers<[1], [0], [0], [1], [0, 0, 1, 1], [], []>} : vector<64x4xbf16>, vector<4x32xbf16>, vector<64x32xf32> -> vector<64x32xf32>
    %88 = arith.addf %67, %87 : vector<64x32xf32>
    %89 = vector.extract_strided_slice %10 {offsets = [0, 12], sizes = [64, 4], strides = [1, 1]} : vector<64x32xbf16> to vector<64x4xbf16>
    %90 = vector.extract_strided_slice %16 {offsets = [0, 12], sizes = [64, 4], strides = [1, 1]} : vector<64x32xbf16> to vector<64x4xbf16>
    %91 = vector.extract_strided_slice %22 {offsets = [0, 12], sizes = [64, 4], strides = [1, 1]} : vector<64x32xbf16> to vector<64x4xbf16>
    %cst_43 = arith.constant dense<0.000000e+00> : vector<64x64xf32>
    %92 = tpu.matmul %89, %90, %cst_43 {dimension_numbers = #tpu.dot_dimension_numbers<[1], [1], [0], [0], [0, 0, 1, 0], [], []>} : vector<64x4xbf16>, vector<64x4xbf16>, vector<64x64xf32> -> vector<64x64xf32>
    %cst_44 = arith.constant dense<0xFF800000> : vector<64xf32>
    %93 = vector.multi_reduction <maximumf>, %92, %cst_44 [1] : vector<64x64xf32> to vector<64xf32>
    %94 = vector.shape_cast %93 : vector<64xf32> to vector<64x1xf32>
    %95 = vector.broadcast %94 : vector<64x1xf32> to vector<64x64xf32>
    %96 = arith.subf %92, %95 : vector<64x64xf32>
    %97 = math.exp %96 : vector<64x64xf32>
    %cst_45 = arith.constant dense<0.000000e+00> : vector<64xf32>
    %98 = vector.multi_reduction <add>, %97, %cst_45 [1] : vector<64x64xf32> to vector<64xf32>
    %99 = vector.shape_cast %98 : vector<64xf32> to vector<64x1xf32>
    %100 = tpu.reciprocal %99 {approx = true} : vector<64x1xf32> -> vector<64x1xf32>
    %101 = vector.broadcast %100 : vector<64x1xf32> to vector<64x64xf32>
    %102 = arith.mulf %97, %101 : vector<64x64xf32>
    %103 = arith.truncf %102 : vector<64x64xf32> to vector<64x64xbf16>
    %cst_46 = arith.constant dense<0.000000e+00> : vector<64x4xf32>
    %104 = tpu.matmul %103, %91, %cst_46 {dimension_numbers = #tpu.dot_dimension_numbers<[1], [0], [0], [1], [0, 0, 1, 1], [], []>} : vector<64x64xbf16>, vector<64x4xbf16>, vector<64x4xf32> -> vector<64x4xf32>
    %105 = arith.truncf %104 : vector<64x4xf32> to vector<64x4xbf16>
    %c3 = arith.constant 3 : index
    %c0_47 = arith.constant 0 : index
    %c0_48 = arith.constant 0 : index
    %106 = vector.load %arg6[%c3, %c0_47, %c0_48] : memref<8x4x32xbf16, #tpu.memory_space<vmem>>, vector<1x4x32xbf16>
    %107 = vector.shape_cast %106 : vector<1x4x32xbf16> to vector<4x32xbf16>
    %cst_49 = arith.constant dense<0.000000e+00> : vector<64x32xf32>
    %108 = tpu.matmul %105, %107, %cst_49 {dimension_numbers = #tpu.dot_dimension_numbers<[1], [0], [0], [1], [0, 0, 1, 1], [], []>} : vector<64x4xbf16>, vector<4x32xbf16>, vector<64x32xf32> -> vector<64x32xf32>
    %109 = arith.addf %88, %108 : vector<64x32xf32>
    %110 = vector.extract_strided_slice %10 {offsets = [0, 16], sizes = [64, 4], strides = [1, 1]} : vector<64x32xbf16> to vector<64x4xbf16>
    %111 = vector.extract_strided_slice %16 {offsets = [0, 16], sizes = [64, 4], strides = [1, 1]} : vector<64x32xbf16> to vector<64x4xbf16>
    %112 = vector.extract_strided_slice %22 {offsets = [0, 16], sizes = [64, 4], strides = [1, 1]} : vector<64x32xbf16> to vector<64x4xbf16>
    %cst_50 = arith.constant dense<0.000000e+00> : vector<64x64xf32>
    %113 = tpu.matmul %110, %111, %cst_50 {dimension_numbers = #tpu.dot_dimension_numbers<[1], [1], [0], [0], [0, 0, 1, 0], [], []>} : vector<64x4xbf16>, vector<64x4xbf16>, vector<64x64xf32> -> vector<64x64xf32>
    %cst_51 = arith.constant dense<0xFF800000> : vector<64xf32>
    %114 = vector.multi_reduction <maximumf>, %113, %cst_51 [1] : vector<64x64xf32> to vector<64xf32>
    %115 = vector.shape_cast %114 : vector<64xf32> to vector<64x1xf32>
    %116 = vector.broadcast %115 : vector<64x1xf32> to vector<64x64xf32>
    %117 = arith.subf %113, %116 : vector<64x64xf32>
    %118 = math.exp %117 : vector<64x64xf32>
    %cst_52 = arith.constant dense<0.000000e+00> : vector<64xf32>
    %119 = vector.multi_reduction <add>, %118, %cst_52 [1] : vector<64x64xf32> to vector<64xf32>
    %120 = vector.shape_cast %119 : vector<64xf32> to vector<64x1xf32>
    %121 = tpu.reciprocal %120 {approx = true} : vector<64x1xf32> -> vector<64x1xf32>
    %122 = vector.broadcast %121 : vector<64x1xf32> to vector<64x64xf32>
    %123 = arith.mulf %118, %122 : vector<64x64xf32>
    %124 = arith.truncf %123 : vector<64x64xf32> to vector<64x64xbf16>
    %cst_53 = arith.constant dense<0.000000e+00> : vector<64x4xf32>
    %125 = tpu.matmul %124, %112, %cst_53 {dimension_numbers = #tpu.dot_dimension_numbers<[1], [0], [0], [1], [0, 0, 1, 1], [], []>} : vector<64x64xbf16>, vector<64x4xbf16>, vector<64x4xf32> -> vector<64x4xf32>
    %126 = arith.truncf %125 : vector<64x4xf32> to vector<64x4xbf16>
    %c4 = arith.constant 4 : index
    %c0_54 = arith.constant 0 : index
    %c0_55 = arith.constant 0 : index
    %127 = vector.load %arg6[%c4, %c0_54, %c0_55] : memref<8x4x32xbf16, #tpu.memory_space<vmem>>, vector<1x4x32xbf16>
    %128 = vector.shape_cast %127 : vector<1x4x32xbf16> to vector<4x32xbf16>
    %cst_56 = arith.constant dense<0.000000e+00> : vector<64x32xf32>
    %129 = tpu.matmul %126, %128, %cst_56 {dimension_numbers = #tpu.dot_dimension_numbers<[1], [0], [0], [1], [0, 0, 1, 1], [], []>} : vector<64x4xbf16>, vector<4x32xbf16>, vector<64x32xf32> -> vector<64x32xf32>
    %130 = arith.addf %109, %129 : vector<64x32xf32>
    %131 = vector.extract_strided_slice %10 {offsets = [0, 20], sizes = [64, 4], strides = [1, 1]} : vector<64x32xbf16> to vector<64x4xbf16>
    %132 = vector.extract_strided_slice %16 {offsets = [0, 20], sizes = [64, 4], strides = [1, 1]} : vector<64x32xbf16> to vector<64x4xbf16>
    %133 = vector.extract_strided_slice %22 {offsets = [0, 20], sizes = [64, 4], strides = [1, 1]} : vector<64x32xbf16> to vector<64x4xbf16>
    %cst_57 = arith.constant dense<0.000000e+00> : vector<64x64xf32>
    %134 = tpu.matmul %131, %132, %cst_57 {dimension_numbers = #tpu.dot_dimension_numbers<[1], [1], [0], [0], [0, 0, 1, 0], [], []>} : vector<64x4xbf16>, vector<64x4xbf16>, vector<64x64xf32> -> vector<64x64xf32>
    %cst_58 = arith.constant dense<0xFF800000> : vector<64xf32>
    %135 = vector.multi_reduction <maximumf>, %134, %cst_58 [1] : vector<64x64xf32> to vector<64xf32>
    %136 = vector.shape_cast %135 : vector<64xf32> to vector<64x1xf32>
    %137 = vector.broadcast %136 : vector<64x1xf32> to vector<64x64xf32>
    %138 = arith.subf %134, %137 : vector<64x64xf32>
    %139 = math.exp %138 : vector<64x64xf32>
    %cst_59 = arith.constant dense<0.000000e+00> : vector<64xf32>
    %140 = vector.multi_reduction <add>, %139, %cst_59 [1] : vector<64x64xf32> to vector<64xf32>
    %141 = vector.shape_cast %140 : vector<64xf32> to vector<64x1xf32>
    %142 = tpu.reciprocal %141 {approx = true} : vector<64x1xf32> -> vector<64x1xf32>
    %143 = vector.broadcast %142 : vector<64x1xf32> to vector<64x64xf32>
    %144 = arith.mulf %139, %143 : vector<64x64xf32>
    %145 = arith.truncf %144 : vector<64x64xf32> to vector<64x64xbf16>
    %cst_60 = arith.constant dense<0.000000e+00> : vector<64x4xf32>
    %146 = tpu.matmul %145, %133, %cst_60 {dimension_numbers = #tpu.dot_dimension_numbers<[1], [0], [0], [1], [0, 0, 1, 1], [], []>} : vector<64x64xbf16>, vector<64x4xbf16>, vector<64x4xf32> -> vector<64x4xf32>
    %147 = arith.truncf %146 : vector<64x4xf32> to vector<64x4xbf16>
    %c5 = arith.constant 5 : index
    %c0_61 = arith.constant 0 : index
    %c0_62 = arith.constant 0 : index
    %148 = vector.load %arg6[%c5, %c0_61, %c0_62] : memref<8x4x32xbf16, #tpu.memory_space<vmem>>, vector<1x4x32xbf16>
    %149 = vector.shape_cast %148 : vector<1x4x32xbf16> to vector<4x32xbf16>
    %cst_63 = arith.constant dense<0.000000e+00> : vector<64x32xf32>
    %150 = tpu.matmul %147, %149, %cst_63 {dimension_numbers = #tpu.dot_dimension_numbers<[1], [0], [0], [1], [0, 0, 1, 1], [], []>} : vector<64x4xbf16>, vector<4x32xbf16>, vector<64x32xf32> -> vector<64x32xf32>
    %151 = arith.addf %130, %150 : vector<64x32xf32>
    %152 = vector.extract_strided_slice %10 {offsets = [0, 24], sizes = [64, 4], strides = [1, 1]} : vector<64x32xbf16> to vector<64x4xbf16>
    %153 = vector.extract_strided_slice %16 {offsets = [0, 24], sizes = [64, 4], strides = [1, 1]} : vector<64x32xbf16> to vector<64x4xbf16>
    %154 = vector.extract_strided_slice %22 {offsets = [0, 24], sizes = [64, 4], strides = [1, 1]} : vector<64x32xbf16> to vector<64x4xbf16>
    %cst_64 = arith.constant dense<0.000000e+00> : vector<64x64xf32>
    %155 = tpu.matmul %152, %153, %cst_64 {dimension_numbers = #tpu.dot_dimension_numbers<[1], [1], [0], [0], [0, 0, 1, 0], [], []>} : vector<64x4xbf16>, vector<64x4xbf16>, vector<64x64xf32> -> vector<64x64xf32>
    %cst_65 = arith.constant dense<0xFF800000> : vector<64xf32>
    %156 = vector.multi_reduction <maximumf>, %155, %cst_65 [1] : vector<64x64xf32> to vector<64xf32>
    %157 = vector.shape_cast %156 : vector<64xf32> to vector<64x1xf32>
    %158 = vector.broadcast %157 : vector<64x1xf32> to vector<64x64xf32>
    %159 = arith.subf %155, %158 : vector<64x64xf32>
    %160 = math.exp %159 : vector<64x64xf32>
    %cst_66 = arith.constant dense<0.000000e+00> : vector<64xf32>
    %161 = vector.multi_reduction <add>, %160, %cst_66 [1] : vector<64x64xf32> to vector<64xf32>
    %162 = vector.shape_cast %161 : vector<64xf32> to vector<64x1xf32>
    %163 = tpu.reciprocal %162 {approx = true} : vector<64x1xf32> -> vector<64x1xf32>
    %164 = vector.broadcast %163 : vector<64x1xf32> to vector<64x64xf32>
    %165 = arith.mulf %160, %164 : vector<64x64xf32>
    %166 = arith.truncf %165 : vector<64x64xf32> to vector<64x64xbf16>
    %cst_67 = arith.constant dense<0.000000e+00> : vector<64x4xf32>
    %167 = tpu.matmul %166, %154, %cst_67 {dimension_numbers = #tpu.dot_dimension_numbers<[1], [0], [0], [1], [0, 0, 1, 1], [], []>} : vector<64x64xbf16>, vector<64x4xbf16>, vector<64x4xf32> -> vector<64x4xf32>
    %168 = arith.truncf %167 : vector<64x4xf32> to vector<64x4xbf16>
    %c6 = arith.constant 6 : index
    %c0_68 = arith.constant 0 : index
    %c0_69 = arith.constant 0 : index
    %169 = vector.load %arg6[%c6, %c0_68, %c0_69] : memref<8x4x32xbf16, #tpu.memory_space<vmem>>, vector<1x4x32xbf16>
    %170 = vector.shape_cast %169 : vector<1x4x32xbf16> to vector<4x32xbf16>
    %cst_70 = arith.constant dense<0.000000e+00> : vector<64x32xf32>
    %171 = tpu.matmul %168, %170, %cst_70 {dimension_numbers = #tpu.dot_dimension_numbers<[1], [0], [0], [1], [0, 0, 1, 1], [], []>} : vector<64x4xbf16>, vector<4x32xbf16>, vector<64x32xf32> -> vector<64x32xf32>
    %172 = arith.addf %151, %171 : vector<64x32xf32>
    %173 = vector.extract_strided_slice %10 {offsets = [0, 28], sizes = [64, 4], strides = [1, 1]} : vector<64x32xbf16> to vector<64x4xbf16>
    %174 = vector.extract_strided_slice %16 {offsets = [0, 28], sizes = [64, 4], strides = [1, 1]} : vector<64x32xbf16> to vector<64x4xbf16>
    %175 = vector.extract_strided_slice %22 {offsets = [0, 28], sizes = [64, 4], strides = [1, 1]} : vector<64x32xbf16> to vector<64x4xbf16>
    %cst_71 = arith.constant dense<0.000000e+00> : vector<64x64xf32>
    %176 = tpu.matmul %173, %174, %cst_71 {dimension_numbers = #tpu.dot_dimension_numbers<[1], [1], [0], [0], [0, 0, 1, 0], [], []>} : vector<64x4xbf16>, vector<64x4xbf16>, vector<64x64xf32> -> vector<64x64xf32>
    %cst_72 = arith.constant dense<0xFF800000> : vector<64xf32>
    %177 = vector.multi_reduction <maximumf>, %176, %cst_72 [1] : vector<64x64xf32> to vector<64xf32>
    %178 = vector.shape_cast %177 : vector<64xf32> to vector<64x1xf32>
    %179 = vector.broadcast %178 : vector<64x1xf32> to vector<64x64xf32>
    %180 = arith.subf %176, %179 : vector<64x64xf32>
    %181 = math.exp %180 : vector<64x64xf32>
    %cst_73 = arith.constant dense<0.000000e+00> : vector<64xf32>
    %182 = vector.multi_reduction <add>, %181, %cst_73 [1] : vector<64x64xf32> to vector<64xf32>
    %183 = vector.shape_cast %182 : vector<64xf32> to vector<64x1xf32>
    %184 = tpu.reciprocal %183 {approx = true} : vector<64x1xf32> -> vector<64x1xf32>
    %185 = vector.broadcast %184 : vector<64x1xf32> to vector<64x64xf32>
    %186 = arith.mulf %181, %185 : vector<64x64xf32>
    %187 = arith.truncf %186 : vector<64x64xf32> to vector<64x64xbf16>
    %cst_74 = arith.constant dense<0.000000e+00> : vector<64x4xf32>
    %188 = tpu.matmul %187, %175, %cst_74 {dimension_numbers = #tpu.dot_dimension_numbers<[1], [0], [0], [1], [0, 0, 1, 1], [], []>} : vector<64x64xbf16>, vector<64x4xbf16>, vector<64x4xf32> -> vector<64x4xf32>
    %189 = arith.truncf %188 : vector<64x4xf32> to vector<64x4xbf16>
    %c7 = arith.constant 7 : index
    %c0_75 = arith.constant 0 : index
    %c0_76 = arith.constant 0 : index
    %190 = vector.load %arg6[%c7, %c0_75, %c0_76] : memref<8x4x32xbf16, #tpu.memory_space<vmem>>, vector<1x4x32xbf16>
    %191 = vector.shape_cast %190 : vector<1x4x32xbf16> to vector<4x32xbf16>
    %cst_77 = arith.constant dense<0.000000e+00> : vector<64x32xf32>
    %192 = tpu.matmul %189, %191, %cst_77 {dimension_numbers = #tpu.dot_dimension_numbers<[1], [0], [0], [1], [0, 0, 1, 1], [], []>} : vector<64x4xbf16>, vector<4x32xbf16>, vector<64x32xf32> -> vector<64x32xf32>
    %193 = arith.addf %172, %192 : vector<64x32xf32>
    %c0_78 = arith.constant 0 : index
    %c0_79 = arith.constant 0 : index
    %c0_80 = arith.constant 0 : index
    %194 = vector.load %arg11[%c0_78, %c0_79, %c0_80] : memref<1x64x32xf32, #tpu.memory_space<vmem>>, vector<1x64x32xf32>
    %195 = vector.shape_cast %194 : vector<1x64x32xf32> to vector<64x32xf32>
    %196 = vector.shape_cast %193 : vector<64x32xf32> to vector<1x64x32xf32>
    tpu.vector_store %arg11[%c0_78, %c0_79, %c0_80], %196 {strides = array<i32>} : memref<1x64x32xf32, #tpu.memory_space<vmem>>, vector<1x64x32xf32>,
    return
  }
  func.func @transform_0(%arg0: i32) -> (i32, i32, i32) {
    %c0_i32 = arith.constant 0 : i32
    %c0_i32_0 = arith.constant 0 : i32
    %c0_i32_1 = arith.constant 0 : i32
    return %arg0, %c0_i32, %c0_i32_0 : i32, i32, i32
  }
  func.func @transform_1(%arg0: i32) -> (i32, i32, i32) {
    %c0_i32 = arith.constant 0 : i32
    %c0_i32_0 = arith.constant 0 : i32
    %c0_i32_1 = arith.constant 0 : i32
    return %arg0, %c0_i32, %c0_i32_0 : i32, i32, i32
  }
  func.func @transform_2(%arg0: i32) -> (i32, i32) {
    %c0_i32 = arith.constant 0 : i32
    %c0_i32_0 = arith.constant 0 : i32
    %c0_i32_1 = arith.constant 0 : i32
    return %c0_i32, %c0_i32_0 : i32, i32
  }
  func.func @transform_3(%arg0: i32) -> (i32, i32) {
    %c0_i32 = arith.constant 0 : i32
    %c0_i32_0 = arith.constant 0 : i32
    %c0_i32_1 = arith.constant 0 : i32
    return %c0_i32, %c0_i32_0 : i32, i32
  }
  func.func @transform_4(%arg0: i32) -> (i32, i32) {
    %c0_i32 = arith.constant 0 : i32
    %c0_i32_0 = arith.constant 0 : i32
    %c0_i32_1 = arith.constant 0 : i32
    return %c0_i32, %c0_i32_0 : i32, i32
  }
  func.func @transform_5(%arg0: i32) -> (i32, i32, i32) {
    %c0_i32 = arith.constant 0 : i32
    %c0_i32_0 = arith.constant 0 : i32
    %c0_i32_1 = arith.constant 0 : i32
    %c0_i32_2 = arith.constant 0 : i32
    return %c0_i32, %c0_i32_0, %c0_i32_1 : i32, i32, i32
  }
  func.func @transform_6(%arg0: i32) -> (i32, i32) {
    %c0_i32 = arith.constant 0 : i32
    %c0_i32_0 = arith.constant 0 : i32
    %c0_i32_1 = arith.constant 0 : i32
    return %c0_i32, %c0_i32_0 : i32, i32
  }
  func.func @transform_7(%arg0: i32) -> (i32, i32) {
    %c0_i32 = arith.constant 0 : i32
    %c0_i32_0 = arith.constant 0 : i32
    %c0_i32_1 = arith.constant 0 : i32
    return %c0_i32, %c0_i32_0 : i32, i32
  }
  func.func @transform_8(%arg0: i32) -> (i32, i32) {
    %c0_i32 = arith.constant 0 : i32
    %c0_i32_0 = arith.constant 0 : i32
    %c0_i32_1 = arith.constant 0 : i32
    return %c0_i32, %c0_i32_0 : i32, i32
  }
  func.func @transform_9(%arg0: i32) -> (i32, i32) {
    %c0_i32 = arith.constant 0 : i32
    %c0_i32_0 = arith.constant 0 : i32
    %c0_i32_1 = arith.constant 0 : i32
    return %c0_i32, %c0_i32_0 : i32, i32
  }
  func.func @transform_10(%arg0: i32) -> (i32, i32, i32) {
    %c0_i32 = arith.constant 0 : i32
    %c0_i32_0 = arith.constant 0 : i32
    %c0_i32_1 = arith.constant 0 : i32
    return %arg0, %c0_i32, %c0_i32_0 : i32, i32, i32
  }
}

</mosaic_0001>

<bundles_post_ra>
// kernel: point_flow_forward.5
= control target key start
LH: loop header
LB: loop body
LE: loop exit
PB: predicated region body
PF: predicated region fallthrough
CT: control target
= control target key end

     0   :  { %8 = vsyncpa [#allocation3], 0  ;;  %s801_s12 = smov 0   ;;  %s968_s0 = inlined_call_operand.vmem [shape: bf16[512,32], index: 0, kind: input, shape index: {}]   ;;  %s969_s1 = inlined_call_operand.vmem [shape: bf16[32,32], index: 1, kind: input, shape index: {}]   ;;  %s970_s2 = inlined_call_operand.hbm [shape: f32[1,32], index: 2, kind: input, shape index: {}]   ;;  %s971_s3 = inlined_call_operand.vmem [shape: bf16[512,32], index: 3, kind: output, shape index: {}]  }
   0x1 LB: > { %s593_s13 = sadd.s32 4294967295, %s778_s12   ;;  %p595_p0 = scmp.ge.s32.totalorder %s778_s12, 1  ;;  %s778_s12 = sphi %s801_s12, %s14_s12  }
   0x2   : > { %p113_p1 = scmp.lt.s32.totalorder %s778_s12, 3  ;;  %s128_s16 = sshll.u32 %s970_s2, 4  ;;  %s129_s16 = int_to_ptr.hbm [resolvable:$true] %s128_s16 }
   0x3   : > { %p726_p3 = scmp.eq.s32.totalorder %s593_s13, 0  ;;  %s780_s17 = smov [#allocation2]  }
   0x4   : > { %p114_p2 = pnand %p595_p0, %p113_p1  ;;  %s130_s18 = sshll.u32 %s780_s17, 4  ;;  %s131_s18 = int_to_ptr.vmem [resolvable:$true] %s130_s18 }
   0x6   : > { %p722_p4 = pneg %p114_p2  ;;  %152 = sbr.rel (%p114_p2) target bundleno = 215 (0xd7), region = 32 }
   0x8   : > { %p723_p5 = pnand %p726_p3, %p722_p4 }
   0xa   : > { %725 = dma.hbm_to_vmem [thread:$0]  (!%p723_p5), %s129_s16, 16, %s131_s18, [#allocation3]  }
   0xb   : > { %773 = dma.done.wait (%p726_p3), [#allocation3], 16  }
   0xc   : > { %775 = vsyncadd (%p726_p3), [#allocation3], 4294967280  ;;  %s600_s19 = sshll.u32 %s593_s13, 5  ;;  %v711_v0 = vld [vmem:[%s969_s1 + $0x8] sm:$0xff]  ;;  %v710_v1 = vld [vmem:[%s969_s1] sm:$0xff]  ;;  %vm322_vm0 = vcmask 261120  }
   0xd   : > { %p178_p6 = scmp.lt.s32.totalorder %s600_s19, 63  ;;  %377 = vmatpush.bf16.msra.mxu0 %v711_v0  ;;  %712 = vmatpush.bf16.msra.mxu1 %v711_v0  ;;  %v860_v18 = vld [vmem:[#allocation2] ss:$0 sm:$0xff]  ;;  %vm492_vm1 = vcmask 257024  }
   0xe   : > { %713 = vmatpush.bf16.msra.mxu2 %v711_v0  ;;  %714 = vmatpush.bf16.msra.mxu3 %v711_v0 }
   0xf   : > { %s973_s19 = smov (!%p178_p6, %s600_s19), 63 }
  0x10   : > { %s601_s20 = sshll.u32 %s973_s19, 2 }
  0x11   : > { %s826_s27 = scalar_lea.vmem %s968_s0, %s601_s20  ;;  %378 = vmatpush.bf16.msra.mxu0 %v710_v1  ;;  %715 = vmatpush.bf16.msra.mxu1 %v710_v1  ;;  %s869_s30 = scalar_lea.vmem %s971_s3, %s601_s20 }
  0x12   : > { %v694_v2 = vld [vmem:[%s826_s27] sm:$0xff]  ;;  %716 = vmatpush.bf16.msra.mxu2 %v710_v1  ;;  %717 = vmatpush.bf16.msra.mxu3 %v710_v1  ;;  %v695_v6 = vld [vmem:[%s826_s27 + $0x8] sm:$0xff]  ;;  %v696_v10 = vld [vmem:[%s826_s27 + $0x10] sm:$0xff] }
  0x13   : > { %v698_v3 = vld [vmem:[%s826_s27 + $0x20] sm:$0xff]  ;;  %v699_v7 = vld [vmem:[%s826_s27 + $0x28] sm:$0xff]  ;;  %v700_v11 = vld [vmem:[%s826_s27 + $0x30] sm:$0xff] }
  0x14   : > { %v702_v4 = vld [vmem:[%s826_s27 + $0x40] sm:$0xff]  ;;  %676 = vmatmul.msk.bf16.vlgmr.msra.gmra.mxu0 %vm322_vm0, %v694_v2  ;;  %680 = vmatmul.msk.bf16.vlgmr.msra.gmra.mxu1 %vm322_vm0, %v698_v3  ;;  %v703_v8 = vld [vmem:[%s826_s27 + $0x48] sm:$0xff]  ;;  %v704_v12 = vld [vmem:[%s826_s27 + $0x50] sm:$0xff] }
  0x15   : > { %v706_v5 = vld [vmem:[%s826_s27 + $0x60] sm:$0xff]  ;;  %684 = vmatmul.msk.bf16.vlgmr.msra.gmra.mxu2 %vm322_vm0, %v702_v4  ;;  %v707_v9 = vld [vmem:[%s826_s27 + $0x68] sm:$0xff]  ;;  %v708_v13 = vld [vmem:[%s826_s27 + $0x70] sm:$0xff] }
  0x16   : > { %688 = vmatmul.msk.bf16.vlgmr.msra.gmra.mxu3 %vm322_vm0, %v706_v5  ;;  %v697_v14 = vld [vmem:[%s826_s27 + $0x18] sm:$0xff] }
  0x17   : > { %v701_v15 = vld [vmem:[%s826_s27 + $0x38] sm:$0xff] }
  0x18   : > { %v705_v16 = vld [vmem:[%s826_s27 + $0x58] sm:$0xff] }
  0x19   : > { %v709_v17 = vld [vmem:[%s826_s27 + $0x78] sm:$0xff] }
  0x24   : > { %677 = vmatmul.msk.bf16.gmra.mxu0 %vm322_vm0, %v695_v6  ;;  %681 = vmatmul.msk.bf16.gmra.mxu1 %vm322_vm0, %v699_v7 }
  0x25   : > { %685 = vmatmul.msk.bf16.gmra.mxu2 %vm322_vm0, %v703_v8 }
  0x26   : > { %689 = vmatmul.msk.bf16.gmra.mxu3 %vm322_vm0, %v707_v9 }
  0x34   : > { %678 = vmatmul.msk.bf16.gmra.mxu0 %vm322_vm0, %v696_v10  ;;  %682 = vmatmul.msk.bf16.gmra.mxu1 %vm322_vm0, %v700_v11 }
  0x35   : > { %686 = vmatmul.msk.bf16.gmra.mxu2 %vm322_vm0, %v704_v12 }
  0x36   : > { %690 = vmatmul.msk.bf16.gmra.mxu3 %vm322_vm0, %v708_v13 }
  0x44   : > { %679 = vmatmul.msk.bf16.gmra.mxu0 %vm322_vm0, %v697_v14  ;;  %683 = vmatmul.msk.bf16.gmra.mxu1 %vm322_vm0, %v701_v15 }
  0x45   : > { %687 = vmatmul.msk.bf16.gmra.mxu2 %vm322_vm0, %v705_v16 }
  0x46   : > { %691 = vmatmul.msk.bf16.gmra.mxu3 %vm322_vm0, %v709_v17 }
  0x91   : > { %v380_v19 = vpop.f32.mrf.mxu0  ;;  %v400_v20 = vpop.f32.mrf.mxu1 }
  0x92   : > { %v381_v21 = vadd.f32 %v860_v18, %v380_v19  ;;  %v401_v22 = vadd.f32 %v860_v18, %v400_v20 }
  0x94   : > { %v460_v23 = vpack.c.bf16 %v381_v21, %v381_v21  ;;  %v468_v24 = vpack.c.bf16 %v401_v22, %v401_v22 }
  0x96   : > { %493 = vst.msk [vmem:[%s869_s30] sm:$0xf] %vm492_vm1, %v460_v23 }
  0x97   : > { %501 = vst.msk [vmem:[%s869_s30 + $0x20] sm:$0xf] %vm492_vm1, %v468_v24 }
  0x98   : > { %v420_v25 = vpop.f32.mrf.mxu2 }
  0x99   : > { %v440_v26 = vpop.f32.mrf.mxu3  ;;  %v421_v27 = vadd.f32 %v860_v18, %v420_v25  ;;  %v382_v29 = vpop.f32.mrf.mxu0 }
  0x9a   : > { %v441_v28 = vadd.f32 %v860_v18, %v440_v26  ;;  %v402_v30 = vpop.f32.mrf.mxu1  ;;  %v383_v31 = vadd.f32 %v860_v18, %v382_v29 }
  0x9b   : > { %v403_v32 = vadd.f32 %v860_v18, %v402_v30  ;;  %v476_v33 = vpack.c.bf16 %v421_v27, %v421_v27 }
  0x9c   : > { %v484_v34 = vpack.c.bf16 %v441_v28, %v441_v28  ;;  %v461_v35 = vpack.c.bf16 %v383_v31, %v383_v31 }
  0x9d   : > { %v469_v36 = vpack.c.bf16 %v403_v32, %v403_v32  ;;  %509 = vst.msk [vmem:[%s869_s30 + $0x40] sm:$0xf] %vm492_vm1, %v476_v33 }
  0x9e   : > { %517 = vst.msk [vmem:[%s869_s30 + $0x60] sm:$0xf] %vm492_vm1, %v484_v34 }
  0x9f   : > { %494 = vst.msk [vmem:[%s869_s30 + $0x4] sm:$0xf] %vm492_vm1, %v461_v35 }
  0xa0   : > { %502 = vst.msk [vmem:[%s869_s30 + $0x24] sm:$0xf] %vm492_vm1, %v469_v36  ;;  %v422_v37 = vpop.f32.mrf.mxu2 }
  0xa1   : > { %v442_v38 = vpop.f32.mrf.mxu3  ;;  %v423_v39 = vadd.f32 %v860_v18, %v422_v37  ;;  %v385_v41 = vpop.f32.mrf.mxu0 }
  0xa2   : > { %v443_v40 = vadd.f32 %v860_v18, %v442_v38  ;;  %v405_v42 = vpop.f32.mrf.mxu1  ;;  %v386_v43 = vadd.f32 %v860_v18, %v385_v41 }
  0xa3   : > { %v406_v44 = vadd.f32 %v860_v18, %v405_v42  ;;  %v477_v45 = vpack.c.bf16 %v423_v39, %v423_v39 }
  0xa4   : > { %v485_v46 = vpack.c.bf16 %v443_v40, %v443_v40  ;;  %v462_v47 = vpack.c.bf16 %v386_v43, %v386_v43 }
  0xa5   : > { %v470_v48 = vpack.c.bf16 %v406_v44, %v406_v44  ;;  %510 = vst.msk [vmem:[%s869_s30 + $0x44] sm:$0xf] %vm492_vm1, %v477_v45 }
  0xa6   : > { %518 = vst.msk [vmem:[%s869_s30 + $0x64] sm:$0xf] %vm492_vm1, %v485_v46 }
  0xa7   : > { %495 = vst.msk [vmem:[%s869_s30 + $0x8] sm:$0xf] %vm492_vm1, %v462_v47 }
  0xa8   : > { %503 = vst.msk [vmem:[%s869_s30 + $0x28] sm:$0xf] %vm492_vm1, %v470_v48  ;;  %v425_v49 = vpop.f32.mrf.mxu2 }
  0xa9   : > { %v445_v50 = vpop.f32.mrf.mxu3  ;;  %v426_v51 = vadd.f32 %v860_v18, %v425_v49  ;;  %v387_v53 = vpop.f32.mrf.mxu0 }
  0xaa   : > { %v446_v52 = vadd.f32 %v860_v18, %v445_v50  ;;  %v407_v54 = vpop.f32.mrf.mxu1  ;;  %v388_v55 = vadd.f32 %v860_v18, %v387_v53 }
  0xab   : > { %v408_v56 = vadd.f32 %v860_v18, %v407_v54  ;;  %v478_v57 = vpack.c.bf16 %v426_v51, %v426_v51 }
  0xac   : > { %v486_v58 = vpack.c.bf16 %v446_v52, %v446_v52  ;;  %v463_v59 = vpack.c.bf16 %v388_v55, %v388_v55 }
  0xad   : > { %v471_v60 = vpack.c.bf16 %v408_v56, %v408_v56  ;;  %511 = vst.msk [vmem:[%s869_s30 + $0x48] sm:$0xf] %vm492_vm1, %v478_v57 }
  0xae   : > { %519 = vst.msk [vmem:[%s869_s30 + $0x68] sm:$0xf] %vm492_vm1, %v486_v58 }
  0xaf   : > { %496 = vst.msk [vmem:[%s869_s30 + $0xc] sm:$0xf] %vm492_vm1, %v463_v59 }
  0xb0   : > { %504 = vst.msk [vmem:[%s869_s30 + $0x2c] sm:$0xf] %vm492_vm1, %v471_v60  ;;  %v427_v61 = vpop.f32.mrf.mxu2 }
  0xb1   : > { %v447_v62 = vpop.f32.mrf.mxu3  ;;  %v428_v63 = vadd.f32 %v860_v18, %v427_v61  ;;  %v390_v1 = vpop.f32.mrf.mxu0 }
  0xb2   : > { %v448_v0 = vadd.f32 %v860_v18, %v447_v62  ;;  %v410_v2 = vpop.f32.mrf.mxu1  ;;  %v391_v3 = vadd.f32 %v860_v18, %v390_v1 }
  0xb3   : > { %v411_v4 = vadd.f32 %v860_v18, %v410_v2  ;;  %v479_v5 = vpack.c.bf16 %v428_v63, %v428_v63 }
  0xb4   : > { %v487_v6 = vpack.c.bf16 %v448_v0, %v448_v0  ;;  %v464_v7 = vpack.c.bf16 %v391_v3, %v391_v3 }
  0xb5   : > { %v472_v8 = vpack.c.bf16 %v411_v4, %v411_v4  ;;  %512 = vst.msk [vmem:[%s869_s30 + $0x4c] sm:$0xf] %vm492_vm1, %v479_v5 }
  0xb6   : > { %520 = vst.msk [vmem:[%s869_s30 + $0x6c] sm:$0xf] %vm492_vm1, %v487_v6 }
  0xb7   : > { %497 = vst.msk [vmem:[%s869_s30 + $0x10] sm:$0xf] %vm492_vm1, %v464_v7 }
  0xb8   : > { %505 = vst.msk [vmem:[%s869_s30 + $0x30] sm:$0xf] %vm492_vm1, %v472_v8  ;;  %v430_v9 = vpop.f32.mrf.mxu2 }
  0xb9   : > { %v450_v10 = vpop.f32.mrf.mxu3  ;;  %v431_v11 = vadd.f32 %v860_v18, %v430_v9  ;;  %v392_v13 = vpop.f32.mrf.mxu0 }
  0xba   : > { %v451_v12 = vadd.f32 %v860_v18, %v450_v10  ;;  %v412_v14 = vpop.f32.mrf.mxu1  ;;  %v393_v15 = vadd.f32 %v860_v18, %v392_v13 }
  0xbb   : > { %v413_v16 = vadd.f32 %v860_v18, %v412_v14  ;;  %v480_v17 = vpack.c.bf16 %v431_v11, %v431_v11 }
  0xbc   : > { %v488_v19 = vpack.c.bf16 %v451_v12, %v451_v12  ;;  %v465_v20 = vpack.c.bf16 %v393_v15, %v393_v15 }
  0xbd   : > { %v473_v21 = vpack.c.bf16 %v413_v16, %v413_v16  ;;  %513 = vst.msk [vmem:[%s869_s30 + $0x50] sm:$0xf] %vm492_vm1, %v480_v17 }
  0xbe   : > { %521 = vst.msk [vmem:[%s869_s30 + $0x70] sm:$0xf] %vm492_vm1, %v488_v19 }
  0xbf   : > { %498 = vst.msk [vmem:[%s869_s30 + $0x14] sm:$0xf] %vm492_vm1, %v465_v20 }
  0xc0   : > { %506 = vst.msk [vmem:[%s869_s30 + $0x34] sm:$0xf] %vm492_vm1, %v473_v21  ;;  %v432_v22 = vpop.f32.mrf.mxu2 }
  0xc1   : > { %v452_v23 = vpop.f32.mrf.mxu3  ;;  %v433_v24 = vadd.f32 %v860_v18, %v432_v22  ;;  %v395_v26 = vpop.f32.mrf.mxu0 }
  0xc2   : > { %v453_v25 = vadd.f32 %v860_v18, %v452_v23  ;;  %v415_v27 = vpop.f32.mrf.mxu1  ;;  %v396_v28 = vadd.f32 %v860_v18, %v395_v26 }
  0xc3   : > { %v416_v29 = vadd.f32 %v860_v18, %v415_v27  ;;  %v481_v30 = vpack.c.bf16 %v433_v24, %v433_v24 }
  0xc4   : > { %v489_v31 = vpack.c.bf16 %v453_v25, %v453_v25  ;;  %v466_v32 = vpack.c.bf16 %v396_v28, %v396_v28 }
  0xc5   : > { %v474_v33 = vpack.c.bf16 %v416_v29, %v416_v29  ;;  %514 = vst.msk [vmem:[%s869_s30 + $0x54] sm:$0xf] %vm492_vm1, %v481_v30 }
  0xc6   : > { %522 = vst.msk [vmem:[%s869_s30 + $0x74] sm:$0xf] %vm492_vm1, %v489_v31 }
  0xc7   : > { %499 = vst.msk [vmem:[%s869_s30 + $0x18] sm:$0xf] %vm492_vm1, %v466_v32 }
  0xc8   : > { %507 = vst.msk [vmem:[%s869_s30 + $0x38] sm:$0xf] %vm492_vm1, %v474_v33  ;;  %v435_v34 = vpop.f32.mrf.mxu2 }
  0xc9   : > { %v455_v35 = vpop.f32.mrf.mxu3  ;;  %v436_v36 = vadd.f32 %v860_v18, %v435_v34  ;;  %v397_v38 = vpop.f32.mrf.mxu0 }
  0xca   : > { %v456_v37 = vadd.f32 %v860_v18, %v455_v35  ;;  %v417_v39 = vpop.f32.mrf.mxu1  ;;  %v398_v40 = vadd.f32 %v860_v18, %v397_v38 }
  0xcb   : > { %v418_v41 = vadd.f32 %v860_v18, %v417_v39  ;;  %v482_v42 = vpack.c.bf16 %v436_v36, %v436_v36 }
  0xcc   : > { %v490_v43 = vpack.c.bf16 %v456_v37, %v456_v37  ;;  %v467_v44 = vpack.c.bf16 %v398_v40, %v398_v40 }
  0xcd   : > { %v475_v45 = vpack.c.bf16 %v418_v41, %v418_v41  ;;  %515 = vst.msk [vmem:[%s869_s30 + $0x58] sm:$0xf] %vm492_vm1, %v482_v42 }
  0xce   : > { %523 = vst.msk [vmem:[%s869_s30 + $0x78] sm:$0xf] %vm492_vm1, %v490_v43 }
  0xcf   : > { %500 = vst.msk [vmem:[%s869_s30 + $0x1c] sm:$0xf] %vm492_vm1, %v467_v44 }
  0xd0   : > { %508 = vst.msk [vmem:[%s869_s30 + $0x3c] sm:$0xf] %vm492_vm1, %v475_v45  ;;  %v437_v46 = vpop.f32.mrf.mxu2 }
  0xd1   : > { %v457_v47 = vpop.f32.mrf.mxu3  ;;  %v438_v48 = vadd.f32 %v860_v18, %v437_v46 }
  0xd2   : > { %v458_v49 = vadd.f32 %v860_v18, %v457_v47 }
  0xd3   : > { %v483_v50 = vpack.c.bf16 %v438_v48, %v438_v48 }
  0xd4   : > { %v491_v51 = vpack.c.bf16 %v458_v49, %v458_v49 }
  0xd5   : > { %516 = vst.msk [vmem:[%s869_s30 + $0x5c] sm:$0xf] %vm492_vm1, %v483_v50 }
  0xd6   : > { %524 = vst.msk [vmem:[%s869_s30 + $0x7c] sm:$0xf] %vm492_vm1, %v491_v51 }
  0xd7 PF: > { %s14_s12 = sadd.s32 1, %s778_s12  }
  0xd8   : > { %p11_p7 = scmp.ge.s32.totalorder %s14_s12, 4  }
  0xda   :  { %13 = sbr.rel (!%p11_p7) target bundleno = 1 (0x1), region = 67 }
  0xdf   :  { %547 = vsyncpa [#allocation3], 1 }
  0xe0   :  { %549 = vsyncpa [#allocation3 + $0x1], 1 }

// kernel: point_flow_forward.6
= control target key start
LH: loop header
LB: loop body
LE: loop exit
PB: predicated region body
PF: predicated region fallthrough
CT: control target
= control target key end

     0   :  { %s726_s12 = smov 0   ;;  %s893_s0 = inlined_call_operand.vmem [shape: bf16[2048,32], index: 0, kind: input, shape index: {}]   ;;  %s894_s1 = inlined_call_operand.vmem [shape: bf16[32,32], index: 1, kind: input, shape index: {}]   ;;  %s895_s2 = inlined_call_operand.vmem [shape: f32[1,32], index: 2, kind: input, shape index: {}]   ;;  %s896_s3 = inlined_call_operand.vmem [shape: bf16[2048,32], index: 3, kind: output, shape index: {}]  }
   0x1 LB: > { %s566_s13 = sadd.s32 4294967295, %s704_s12   ;;  %p570_p0 = scmp.ge.s32.totalorder %s704_s12, 1  ;;  %s704_s12 = sphi %s726_s12, %s13_s12  }
   0x2   : > { %p138_p1 = scmp.lt.s32.totalorder %s704_s12, 9 }
   0x4   : > { %p139_p2 = pnand %p570_p0, %p138_p1 }
   0x5   : > { %s571_s16 = sshll.u32 (!%p139_p2), %s566_s13, 5 }
   0x6   : > { %142 = sbr.rel (%p139_p2) target bundleno = 214 (0xd6), region = 32  ;;  %p163_p3 = scmp.lt.s32.totalorder (!%p139_p2), %s571_s16, 255 }
   0xb   : > { %v682_v0 = vld [vmem:[%s894_s1 + $0x8] sm:$0xff]  ;;  %v681_v1 = vld [vmem:[%s894_s1] sm:$0xff]  ;;  %s898_s16 = smov (!%p163_p3, %s571_s16), 255  ;;  %vm307_vm0 = vcmask 261120   ;;  %vm477_vm1 = vcmask 257024  }
   0xc   : > { %362 = vmatpush.bf16.msra.mxu0 %v682_v0  ;;  %683 = vmatpush.bf16.msra.mxu1 %v682_v0  ;;  %s572_s19 = sshll.u32 %s898_s16, 2  ;;  %v785_v18 = vld [vmem:[%s895_s2] ss:$0 sm:$0xff] }
   0xd   : > { %684 = vmatpush.bf16.msra.mxu2 %v682_v0  ;;  %685 = vmatpush.bf16.msra.mxu3 %v682_v0  ;;  %s748_s22 = scalar_lea.vmem %s893_s0, %s572_s19  ;;  %s794_s27 = scalar_lea.vmem %s896_s3, %s572_s19 }
   0xe   : > { %v665_v2 = vld [vmem:[%s748_s22] sm:$0xff]  ;;  %v666_v6 = vld [vmem:[%s748_s22 + $0x8] sm:$0xff]  ;;  %v667_v10 = vld [vmem:[%s748_s22 + $0x10] sm:$0xff] }
   0xf   : > { %v669_v3 = vld [vmem:[%s748_s22 + $0x20] sm:$0xff]  ;;  %v670_v7 = vld [vmem:[%s748_s22 + $0x28] sm:$0xff]  ;;  %v671_v11 = vld [vmem:[%s748_s22 + $0x30] sm:$0xff] }
  0x10   : > { %363 = vmatpush.bf16.msra.mxu0 %v681_v1  ;;  %686 = vmatpush.bf16.msra.mxu1 %v681_v1  ;;  %v673_v4 = vld [vmem:[%s748_s22 + $0x40] sm:$0xff]  ;;  %v674_v8 = vld [vmem:[%s748_s22 + $0x48] sm:$0xff]  ;;  %v675_v12 = vld [vmem:[%s748_s22 + $0x50] sm:$0xff] }
  0x11   : > { %687 = vmatpush.bf16.msra.mxu2 %v681_v1  ;;  %688 = vmatpush.bf16.msra.mxu3 %v681_v1  ;;  %v677_v5 = vld [vmem:[%s748_s22 + $0x60] sm:$0xff]  ;;  %v678_v9 = vld [vmem:[%s748_s22 + $0x68] sm:$0xff]  ;;  %v679_v13 = vld [vmem:[%s748_s22 + $0x70] sm:$0xff] }
  0x12   : > { %v668_v14 = vld [vmem:[%s748_s22 + $0x18] sm:$0xff] }
  0x13   : > { %647 = vmatmul.msk.bf16.vlgmr.msra.gmra.mxu0 %vm307_vm0, %v665_v2  ;;  %651 = vmatmul.msk.bf16.vlgmr.msra.gmra.mxu1 %vm307_vm0, %v669_v3  ;;  %v672_v15 = vld [vmem:[%s748_s22 + $0x38] sm:$0xff] }
  0x14   : > { %655 = vmatmul.msk.bf16.vlgmr.msra.gmra.mxu2 %vm307_vm0, %v673_v4  ;;  %659 = vmatmul.msk.bf16.vlgmr.msra.gmra.mxu3 %vm307_vm0, %v677_v5  ;;  %v676_v16 = vld [vmem:[%s748_s22 + $0x58] sm:$0xff] }
  0x15   : > { %v680_v17 = vld [vmem:[%s748_s22 + $0x78] sm:$0xff] }
  0x23   : > { %648 = vmatmul.msk.bf16.gmra.mxu0 %vm307_vm0, %v666_v6  ;;  %652 = vmatmul.msk.bf16.gmra.mxu1 %vm307_vm0, %v670_v7 }
  0x24   : > { %656 = vmatmul.msk.bf16.gmra.mxu2 %vm307_vm0, %v674_v8  ;;  %660 = vmatmul.msk.bf16.gmra.mxu3 %vm307_vm0, %v678_v9 }
  0x33   : > { %649 = vmatmul.msk.bf16.gmra.mxu0 %vm307_vm0, %v667_v10  ;;  %653 = vmatmul.msk.bf16.gmra.mxu1 %vm307_vm0, %v671_v11 }
  0x34   : > { %657 = vmatmul.msk.bf16.gmra.mxu2 %vm307_vm0, %v675_v12  ;;  %661 = vmatmul.msk.bf16.gmra.mxu3 %vm307_vm0, %v679_v13 }
  0x43   : > { %650 = vmatmul.msk.bf16.gmra.mxu0 %vm307_vm0, %v668_v14  ;;  %654 = vmatmul.msk.bf16.gmra.mxu1 %vm307_vm0, %v672_v15 }
  0x44   : > { %658 = vmatmul.msk.bf16.gmra.mxu2 %vm307_vm0, %v676_v16  ;;  %662 = vmatmul.msk.bf16.gmra.mxu3 %vm307_vm0, %v680_v17 }
  0x90   : > { %v365_v19 = vpop.f32.mrf.mxu0  ;;  %v385_v20 = vpop.f32.mrf.mxu1 }
  0x91   : > { %v366_v21 = vadd.f32 %v785_v18, %v365_v19  ;;  %v386_v22 = vadd.f32 %v785_v18, %v385_v20 }
  0x93   : > { %v445_v23 = vpack.c.bf16 %v366_v21, %v366_v21  ;;  %v453_v24 = vpack.c.bf16 %v386_v22, %v386_v22 }
  0x95   : > { %478 = vst.msk [vmem:[%s794_s27] sm:$0xf] %vm477_vm1, %v445_v23 }
  0x96   : > { %486 = vst.msk [vmem:[%s794_s27 + $0x20] sm:$0xf] %vm477_vm1, %v453_v24 }
  0x97   : > { %v405_v25 = vpop.f32.mrf.mxu2  ;;  %v425_v26 = vpop.f32.mrf.mxu3 }
  0x98   : > { %v406_v27 = vadd.f32 %v785_v18, %v405_v25  ;;  %v426_v28 = vadd.f32 %v785_v18, %v425_v26  ;;  %v367_v29 = vpop.f32.mrf.mxu0  ;;  %v387_v30 = vpop.f32.mrf.mxu1 }
  0x99   : > { %v368_v31 = vadd.f32 %v785_v18, %v367_v29  ;;  %v388_v32 = vadd.f32 %v785_v18, %v387_v30 }
  0x9a   : > { %v461_v33 = vpack.c.bf16 %v406_v27, %v406_v27  ;;  %v469_v34 = vpack.c.bf16 %v426_v28, %v426_v28 }
  0x9b   : > { %v446_v35 = vpack.c.bf16 %v368_v31, %v368_v31  ;;  %v454_v36 = vpack.c.bf16 %v388_v32, %v388_v32 }
  0x9c   : > { %494 = vst.msk [vmem:[%s794_s27 + $0x40] sm:$0xf] %vm477_vm1, %v461_v33 }
  0x9d   : > { %502 = vst.msk [vmem:[%s794_s27 + $0x60] sm:$0xf] %vm477_vm1, %v469_v34 }
  0x9e   : > { %479 = vst.msk [vmem:[%s794_s27 + $0x4] sm:$0xf] %vm477_vm1, %v446_v35 }
  0x9f   : > { %487 = vst.msk [vmem:[%s794_s27 + $0x24] sm:$0xf] %vm477_vm1, %v454_v36  ;;  %v407_v37 = vpop.f32.mrf.mxu2  ;;  %v427_v38 = vpop.f32.mrf.mxu3 }
  0xa0   : > { %v408_v39 = vadd.f32 %v785_v18, %v407_v37  ;;  %v428_v40 = vadd.f32 %v785_v18, %v427_v38  ;;  %v370_v41 = vpop.f32.mrf.mxu0  ;;  %v390_v42 = vpop.f32.mrf.mxu1 }
  0xa1   : > { %v371_v43 = vadd.f32 %v785_v18, %v370_v41  ;;  %v391_v44 = vadd.f32 %v785_v18, %v390_v42 }
  0xa2   : > { %v462_v45 = vpack.c.bf16 %v408_v39, %v408_v39  ;;  %v470_v46 = vpack.c.bf16 %v428_v40, %v428_v40 }
  0xa3   : > { %v447_v47 = vpack.c.bf16 %v371_v43, %v371_v43  ;;  %v455_v48 = vpack.c.bf16 %v391_v44, %v391_v44 }
  0xa4   : > { %495 = vst.msk [vmem:[%s794_s27 + $0x44] sm:$0xf] %vm477_vm1, %v462_v45 }
  0xa5   : > { %503 = vst.msk [vmem:[%s794_s27 + $0x64] sm:$0xf] %vm477_vm1, %v470_v46 }
  0xa6   : > { %480 = vst.msk [vmem:[%s794_s27 + $0x8] sm:$0xf] %vm477_vm1, %v447_v47 }
  0xa7   : > { %488 = vst.msk [vmem:[%s794_s27 + $0x28] sm:$0xf] %vm477_vm1, %v455_v48  ;;  %v410_v49 = vpop.f32.mrf.mxu2  ;;  %v430_v50 = vpop.f32.mrf.mxu3 }
  0xa8   : > { %v411_v51 = vadd.f32 %v785_v18, %v410_v49  ;;  %v431_v52 = vadd.f32 %v785_v18, %v430_v50  ;;  %v372_v53 = vpop.f32.mrf.mxu0  ;;  %v392_v54 = vpop.f32.mrf.mxu1 }
  0xa9   : > { %v373_v55 = vadd.f32 %v785_v18, %v372_v53  ;;  %v393_v56 = vadd.f32 %v785_v18, %v392_v54 }
  0xaa   : > { %v463_v57 = vpack.c.bf16 %v411_v51, %v411_v51  ;;  %v471_v58 = vpack.c.bf16 %v431_v52, %v431_v52 }
  0xab   : > { %v448_v59 = vpack.c.bf16 %v373_v55, %v373_v55  ;;  %v456_v60 = vpack.c.bf16 %v393_v56, %v393_v56 }
  0xac   : > { %496 = vst.msk [vmem:[%s794_s27 + $0x48] sm:$0xf] %vm477_vm1, %v463_v57 }
  0xad   : > { %504 = vst.msk [vmem:[%s794_s27 + $0x68] sm:$0xf] %vm477_vm1, %v471_v58 }
  0xae   : > { %481 = vst.msk [vmem:[%s794_s27 + $0xc] sm:$0xf] %vm477_vm1, %v448_v59 }
  0xaf   : > { %489 = vst.msk [vmem:[%s794_s27 + $0x2c] sm:$0xf] %vm477_vm1, %v456_v60  ;;  %v412_v61 = vpop.f32.mrf.mxu2  ;;  %v432_v62 = vpop.f32.mrf.mxu3 }
  0xb0   : > { %v413_v63 = vadd.f32 %v785_v18, %v412_v61  ;;  %v433_v0 = vadd.f32 %v785_v18, %v432_v62  ;;  %v375_v1 = vpop.f32.mrf.mxu0  ;;  %v395_v2 = vpop.f32.mrf.mxu1 }
  0xb1   : > { %v376_v3 = vadd.f32 %v785_v18, %v375_v1  ;;  %v396_v4 = vadd.f32 %v785_v18, %v395_v2 }
  0xb2   : > { %v464_v5 = vpack.c.bf16 %v413_v63, %v413_v63  ;;  %v472_v6 = vpack.c.bf16 %v433_v0, %v433_v0 }
  0xb3   : > { %v449_v7 = vpack.c.bf16 %v376_v3, %v376_v3  ;;  %v457_v8 = vpack.c.bf16 %v396_v4, %v396_v4 }
  0xb4   : > { %497 = vst.msk [vmem:[%s794_s27 + $0x4c] sm:$0xf] %vm477_vm1, %v464_v5 }
  0xb5   : > { %505 = vst.msk [vmem:[%s794_s27 + $0x6c] sm:$0xf] %vm477_vm1, %v472_v6 }
  0xb6   : > { %482 = vst.msk [vmem:[%s794_s27 + $0x10] sm:$0xf] %vm477_vm1, %v449_v7 }
  0xb7   : > { %490 = vst.msk [vmem:[%s794_s27 + $0x30] sm:$0xf] %vm477_vm1, %v457_v8  ;;  %v415_v9 = vpop.f32.mrf.mxu2  ;;  %v435_v10 = vpop.f32.mrf.mxu3 }
  0xb8   : > { %v416_v11 = vadd.f32 %v785_v18, %v415_v9  ;;  %v436_v12 = vadd.f32 %v785_v18, %v435_v10  ;;  %v377_v13 = vpop.f32.mrf.mxu0  ;;  %v397_v14 = vpop.f32.mrf.mxu1 }
  0xb9   : > { %v378_v15 = vadd.f32 %v785_v18, %v377_v13  ;;  %v398_v16 = vadd.f32 %v785_v18, %v397_v14 }
  0xba   : > { %v465_v17 = vpack.c.bf16 %v416_v11, %v416_v11  ;;  %v473_v19 = vpack.c.bf16 %v436_v12, %v436_v12 }
  0xbb   : > { %v450_v20 = vpack.c.bf16 %v378_v15, %v378_v15  ;;  %v458_v21 = vpack.c.bf16 %v398_v16, %v398_v16 }
  0xbc   : > { %498 = vst.msk [vmem:[%s794_s27 + $0x50] sm:$0xf] %vm477_vm1, %v465_v17 }
  0xbd   : > { %506 = vst.msk [vmem:[%s794_s27 + $0x70] sm:$0xf] %vm477_vm1, %v473_v19 }
  0xbe   : > { %483 = vst.msk [vmem:[%s794_s27 + $0x14] sm:$0xf] %vm477_vm1, %v450_v20 }
  0xbf   : > { %491 = vst.msk [vmem:[%s794_s27 + $0x34] sm:$0xf] %vm477_vm1, %v458_v21  ;;  %v417_v22 = vpop.f32.mrf.mxu2  ;;  %v437_v23 = vpop.f32.mrf.mxu3 }
  0xc0   : > { %v418_v24 = vadd.f32 %v785_v18, %v417_v22  ;;  %v438_v25 = vadd.f32 %v785_v18, %v437_v23  ;;  %v380_v26 = vpop.f32.mrf.mxu0  ;;  %v400_v27 = vpop.f32.mrf.mxu1 }
  0xc1   : > { %v381_v28 = vadd.f32 %v785_v18, %v380_v26  ;;  %v401_v29 = vadd.f32 %v785_v18, %v400_v27 }
  0xc2   : > { %v466_v30 = vpack.c.bf16 %v418_v24, %v418_v24  ;;  %v474_v31 = vpack.c.bf16 %v438_v25, %v438_v25 }
  0xc3   : > { %v451_v32 = vpack.c.bf16 %v381_v28, %v381_v28  ;;  %v459_v33 = vpack.c.bf16 %v401_v29, %v401_v29 }
  0xc4   : > { %499 = vst.msk [vmem:[%s794_s27 + $0x54] sm:$0xf] %vm477_vm1, %v466_v30 }
  0xc5   : > { %507 = vst.msk [vmem:[%s794_s27 + $0x74] sm:$0xf] %vm477_vm1, %v474_v31 }
  0xc6   : > { %484 = vst.msk [vmem:[%s794_s27 + $0x18] sm:$0xf] %vm477_vm1, %v451_v32 }
  0xc7   : > { %492 = vst.msk [vmem:[%s794_s27 + $0x38] sm:$0xf] %vm477_vm1, %v459_v33  ;;  %v420_v34 = vpop.f32.mrf.mxu2  ;;  %v440_v35 = vpop.f32.mrf.mxu3 }
  0xc8   : > { %v421_v36 = vadd.f32 %v785_v18, %v420_v34  ;;  %v441_v37 = vadd.f32 %v785_v18, %v440_v35  ;;  %v382_v38 = vpop.f32.mrf.mxu0  ;;  %v402_v39 = vpop.f32.mrf.mxu1 }
  0xc9   : > { %v383_v40 = vadd.f32 %v785_v18, %v382_v38  ;;  %v403_v41 = vadd.f32 %v785_v18, %v402_v39 }
  0xca   : > { %v467_v42 = vpack.c.bf16 %v421_v36, %v421_v36  ;;  %v475_v43 = vpack.c.bf16 %v441_v37, %v441_v37 }
  0xcb   : > { %v452_v44 = vpack.c.bf16 %v383_v40, %v383_v40  ;;  %v460_v45 = vpack.c.bf16 %v403_v41, %v403_v41 }
  0xcc   : > { %500 = vst.msk [vmem:[%s794_s27 + $0x58] sm:$0xf] %vm477_vm1, %v467_v42 }
  0xcd   : > { %508 = vst.msk [vmem:[%s794_s27 + $0x78] sm:$0xf] %vm477_vm1, %v475_v43 }
  0xce   : > { %485 = vst.msk [vmem:[%s794_s27 + $0x1c] sm:$0xf] %vm477_vm1, %v452_v44 }
  0xcf   : > { %493 = vst.msk [vmem:[%s794_s27 + $0x3c] sm:$0xf] %vm477_vm1, %v460_v45  ;;  %v422_v46 = vpop.f32.mrf.mxu2  ;;  %v442_v47 = vpop.f32.mrf.mxu3 }
  0xd0   : > { %v423_v48 = vadd.f32 %v785_v18, %v422_v46  ;;  %v443_v49 = vadd.f32 %v785_v18, %v442_v47 }
  0xd2   : > { %v468_v50 = vpack.c.bf16 %v423_v48, %v423_v48  ;;  %v476_v51 = vpack.c.bf16 %v443_v49, %v443_v49 }
  0xd4   : > { %501 = vst.msk [vmem:[%s794_s27 + $0x5c] sm:$0xf] %vm477_vm1, %v468_v50 }
  0xd5   : > { %509 = vst.msk [vmem:[%s794_s27 + $0x7c] sm:$0xf] %vm477_vm1, %v476_v51 }
  0xd6 PF: > { %s13_s12 = sadd.s32 1, %s704_s12  }
  0xd7   : > { %p10_p4 = scmp.ge.s32.totalorder %s13_s12, 10  }
  0xd9   :  { %12 = sbr.rel (!%p10_p4) target bundleno = 1 (0x1), region = 62 }

// kernel: point_flow_forward.7
= control target key start
LH: loop header
LB: loop body
LE: loop exit
PB: predicated region body
PF: predicated region fallthrough
CT: control target
= control target key end

     0   :  { %s3868_s14 = smov 0   ;;  %s4609_s0 = inlined_call_operand.vmem [shape: bf16[2,32,1024], index: 0, kind: input, shape index: {}]   ;;  %s4610_s1 = inlined_call_operand.vmem [shape: bf16[3,1024,16], index: 1, kind: input, shape index: {}]   ;;  %s4611_s2 = inlined_call_operand.<no memory space> [shape: f32[1,1], index: 2, kind: input, shape index: {}]   ;;  %s4612_s3 = inlined_call_operand.vmem [shape: f32[2,16,16], index: 3, kind: output, shape index: {}]  }
   0x1   :  { %v8_v0 = vstv %s4611_s2 }
   0x2   :  { %9 = vst [vmem:[#allocation2] sm:$0x1] %v8_v0 }
   0x3 LB: > { %s2548_s15 = sadd.s32 4294967295, %s3842_s14   ;;  %p2552_p0 = scmp.ge.s32.totalorder %s3842_s14, 1  ;;  %s3842_s14 = sphi %s3868_s14, %s15_s14  }
   0x4   : > { %p139_p1 = scmp.lt.s32.totalorder %s3842_s14, 3 }
   0x6   : > { %p140_p2 = pnand %p2552_p0, %p139_p1 }
   0x7   : > { %p163_p3 = scmp.lt.s32.totalorder (!%p140_p2), %s2548_s15, 1 }
   0x8   : > { %143 = sbr.rel (%p140_p2) target bundleno = 386 (0x182), region = 32 }
   0xd   : > { %v3688_v1 = vld [vmem:[%s4610_s1 + $0x238] sm:$0xff]  ;;  %v3687_v5 = vld [vmem:[%s4610_s1 + $0x230] sm:$0xff]  ;;  %v3686_v9 = vld [vmem:[%s4610_s1 + $0x228] sm:$0xff]  ;;  %s4614_s15 = smov (!%p163_p3, %s2548_s15), 1  ;;  %vm1006_vm0 = vsmask.f32 4352 }
   0xe   : > { %v3696_v2 = vld [vmem:[%s4610_s1 + $0x278] sm:$0xff]  ;;  %866 = vmatpush.bf16.msra.mxu0 %v3688_v1  ;;  %v3695_v6 = vld [vmem:[%s4610_s1 + $0x270] sm:$0xff]  ;;  %v3694_v10 = vld [vmem:[%s4610_s1 + $0x268] sm:$0xff]  ;;  %s3615_s29 = sshll.u32 %s4614_s15, 7  ;;  %vm1840_vm1 = vsmask.f32 7424 }
   0xf   : > { %v3704_v3 = vld [vmem:[%s4610_s1 + $0x2b8] sm:$0xff]  ;;  %880 = vmatpush.bf16.msra.mxu1 %v3696_v2  ;;  %v3703_v7 = vld [vmem:[%s4610_s1 + $0x2b0] sm:$0xff]  ;;  %v3702_v11 = vld [vmem:[%s4610_s1 + $0x2a8] sm:$0xff]  ;;  %s3958_s13 = scalar_lea.vmem %s4609_s0, %s3615_s29  ;;  %vm2490_vm4 = vcmask 130048  }
  0x10   : > { %v3712_v4 = vld [vmem:[%s4610_s1 + $0x2f8] sm:$0xff]  ;;  %894 = vmatpush.bf16.msra.mxu2 %v3704_v3  ;;  %v3711_v8 = vld [vmem:[%s4610_s1 + $0x2f0] sm:$0xff]  ;;  %v3710_v12 = vld [vmem:[%s4610_s1 + $0x2e8] sm:$0xff] }
  0x11   : > { %908 = vmatpush.bf16.msra.mxu3 %v3712_v4  ;;  %v3685_v13 = vld [vmem:[%s4610_s1 + $0x220] sm:$0xff]  ;;  %v3684_v17 = vld [vmem:[%s4610_s1 + $0x218] sm:$0xff]  ;;  %v3683_v21 = vld [vmem:[%s4610_s1 + $0x210] sm:$0xff] }
  0x12   : > { %867 = vmatpush.bf16.msra.mxu0 %v3687_v5  ;;  %v3693_v14 = vld [vmem:[%s4610_s1 + $0x260] sm:$0xff]  ;;  %v3692_v18 = vld [vmem:[%s4610_s1 + $0x258] sm:$0xff]  ;;  %v3691_v22 = vld [vmem:[%s4610_s1 + $0x250] sm:$0xff] }
  0x13   : > { %881 = vmatpush.bf16.msra.mxu1 %v3695_v6  ;;  %v3701_v15 = vld [vmem:[%s4610_s1 + $0x2a0] sm:$0xff]  ;;  %v3700_v19 = vld [vmem:[%s4610_s1 + $0x298] sm:$0xff]  ;;  %v3699_v23 = vld [vmem:[%s4610_s1 + $0x290] sm:$0xff] }
  0x14   : > { %895 = vmatpush.bf16.msra.mxu2 %v3703_v7  ;;  %v3709_v16 = vld [vmem:[%s4610_s1 + $0x2e0] sm:$0xff]  ;;  %v3708_v20 = vld [vmem:[%s4610_s1 + $0x2d8] sm:$0xff]  ;;  %v3707_v24 = vld [vmem:[%s4610_s1 + $0x2d0] sm:$0xff] }
  0x15   : > { %909 = vmatpush.bf16.msra.mxu3 %v3711_v8  ;;  %v3682_v25 = vld [vmem:[%s4610_s1 + $0x208] sm:$0xff]  ;;  %v3973_v29 = vld [vmem:[%s3958_s13 + $0x20] sm:$0xff]  ;;  %v3720_v45 = vld [vmem:[%s4610_s1 + $0x338] sm:$0xff] }
  0x16   : > { %868 = vmatpush.bf16.msra.mxu0 %v3686_v9  ;;  %v3690_v26 = vld [vmem:[%s4610_s1 + $0x248] sm:$0xff]  ;;  %v181_v30 = vld [vmem:[%s3958_s13 + $0x40] sm:$0xff]  ;;  %v450_v35 = vunpack.c.l.b16 %v3973_v29  ;;  %v451_v41 = vunpack.c.h.b16 %v3973_v29  ;;  %v3728_v46 = vld [vmem:[%s4610_s1 + $0x378] sm:$0xff] }
  0x17   : > { %882 = vmatpush.bf16.msra.mxu1 %v3694_v10  ;;  %v3698_v27 = vld [vmem:[%s4610_s1 + $0x288] sm:$0xff]  ;;  %v3681_v33 = vld [vmem:[%s4610_s1 + $0x200] sm:$0xff]  ;;  %v3987_v36 = vunpack.c.l.b16 %v181_v30  ;;  %v3999_v42 = vunpack.c.h.b16 %v181_v30  ;;  %v3736_v47 = vld [vmem:[%s4610_s1 + $0x3b8] sm:$0xff] }
  0x18   : > { %896 = vmatpush.bf16.msra.mxu2 %v3702_v11  ;;  %v3706_v28 = vld [vmem:[%s4610_s1 + $0x2c8] sm:$0xff]  ;;  %v3689_v34 = vld [vmem:[%s4610_s1 + $0x240] sm:$0xff]  ;;  %v3744_v48 = vld [vmem:[%s4610_s1 + $0x3f8] sm:$0xff] }
  0x19   : > { %910 = vmatpush.bf16.msra.mxu3 %v3710_v12  ;;  %v3977_v31 = vld [vmem:[%s3958_s13 + $0x28] sm:$0xff]  ;;  %v3697_v39 = vld [vmem:[%s4610_s1 + $0x280] sm:$0xff]  ;;  %v466_v49 = vpack.c.b16 %v3987_v36, %v450_v35  ;;  %v467_v51 = vpack.c.b16 %v3999_v42, %v451_v41  ;;  %v3719_v53 = vld [vmem:[%s4610_s1 + $0x330] sm:$0xff] }
  0x1a   : > { %869 = vmatpush.bf16.msra.mxu0 %v3685_v13  ;;  %v182_v32 = vld [vmem:[%s3958_s13 + $0x48] sm:$0xff]  ;;  %v452_v37 = vunpack.c.l.b16 %v3977_v31  ;;  %v3705_v40 = vld [vmem:[%s4610_s1 + $0x2c0] sm:$0xff]  ;;  %v453_v43 = vunpack.c.h.b16 %v3977_v31  ;;  %v3727_v54 = vld [vmem:[%s4610_s1 + $0x370] sm:$0xff] }
  0x1b   : > { %883 = vmatpush.bf16.msra.mxu1 %v3693_v14  ;;  %v3990_v38 = vunpack.c.l.b16 %v182_v32  ;;  %v4002_v44 = vunpack.c.h.b16 %v182_v32  ;;  %v3735_v55 = vld [vmem:[%s4610_s1 + $0x3b0] sm:$0xff]  ;;  %v3718_v57 = vld [vmem:[%s4610_s1 + $0x328] sm:$0xff]  ;;  %v3717_v61 = vld [vmem:[%s4610_s1 + $0x320] sm:$0xff] }
  0x1c   : > { %897 = vmatpush.bf16.msra.mxu2 %v3701_v15  ;;  %v3743_v56 = vld [vmem:[%s4610_s1 + $0x3f0] sm:$0xff]  ;;  %v3726_v58 = vld [vmem:[%s4610_s1 + $0x368] sm:$0xff]  ;;  %v3725_v62 = vld [vmem:[%s4610_s1 + $0x360] sm:$0xff] }
  0x1d   : > { %911 = vmatpush.bf16.msra.mxu3 %v3709_v16  ;;  %v468_v50 = vpack.c.b16 %v3990_v38, %v452_v37  ;;  %v469_v52 = vpack.c.b16 %v4002_v44, %v453_v43  ;;  %v3734_v59 = vld [vmem:[%s4610_s1 + $0x3a8] sm:$0xff]  ;;  %v3733_v63 = vld [vmem:[%s4610_s1 + $0x3a0] sm:$0xff]  ;;  %v3716_v1 = vld [vmem:[%s4610_s1 + $0x318] sm:$0xff]  ;;  %v1001_v29 = vpack.c.b16 %v4002_v44, %v4002_v44 }
  0x1e   : > { %870 = vmatpush.bf16.msra.mxu0 %v3684_v17  ;;  %v3742_v60 = vld [vmem:[%s4610_s1 + $0x3e8] sm:$0xff]  ;;  %v3741_v0 = vld [vmem:[%s4610_s1 + $0x3e0] sm:$0xff]  ;;  %v3724_v2 = vld [vmem:[%s4610_s1 + $0x358] sm:$0xff] }
  0x1f   : > { %884 = vmatpush.bf16.msra.mxu1 %v3692_v18  ;;  %v3732_v3 = vld [vmem:[%s4610_s1 + $0x398] sm:$0xff]  ;;  %v3715_v5 = vld [vmem:[%s4610_s1 + $0x310] sm:$0xff]  ;;  %v3714_v9 = vld [vmem:[%s4610_s1 + $0x308] sm:$0xff] }
  0x20   : > { %898 = vmatpush.bf16.msra.mxu2 %v3700_v19  ;;  %v3740_v4 = vld [vmem:[%s4610_s1 + $0x3d8] sm:$0xff]  ;;  %v3723_v6 = vld [vmem:[%s4610_s1 + $0x350] sm:$0xff]  ;;  %v3722_v10 = vld [vmem:[%s4610_s1 + $0x348] sm:$0xff] }
  0x21   : > { %912 = vmatpush.bf16.msra.mxu3 %v3708_v20  ;;  %v3731_v7 = vld [vmem:[%s4610_s1 + $0x390] sm:$0xff]  ;;  %v3730_v11 = vld [vmem:[%s4610_s1 + $0x388] sm:$0xff]  ;;  %v4105_v15 = vld [vmem:[%s3958_s13 + $0x38] sm:$0xff] }
  0x22   : > { %871 = vmatpush.bf16.msra.mxu0 %v3683_v21  ;;  %v3739_v8 = vld [vmem:[%s4610_s1 + $0x3d0] sm:$0xff]  ;;  %v3738_v12 = vld [vmem:[%s4610_s1 + $0x3c8] sm:$0xff]  ;;  %v184_v16 = vld [vmem:[%s3958_s13 + $0x58] sm:$0xff]  ;;  %v456_v21 = vunpack.c.l.b16 %v4105_v15 }
  0x23   : > { %885 = vmatpush.bf16.msra.mxu1 %v3691_v22  ;;  %v4101_v13 = vld [vmem:[%s3958_s13 + $0x30] sm:$0xff]  ;;  %v3713_v17 = vld [vmem:[%s4610_s1 + $0x300] sm:$0xff]  ;;  %v4118_v22 = vunpack.c.l.b16 %v184_v16  ;;  %v3624_v30 = vld [vmem:[%s4610_s1 + $0x38] sm:$0xff] }
  0x24   : > { %899 = vmatpush.bf16.msra.mxu2 %v3699_v23  ;;  %v183_v14 = vld [vmem:[%s3958_s13 + $0x50] sm:$0xff]  ;;  %v3721_v18 = vld [vmem:[%s4610_s1 + $0x340] sm:$0xff]  ;;  %v454_v19 = vunpack.c.l.b16 %v4101_v13  ;;  %v3632_v32 = vld [vmem:[%s4610_s1 + $0x78] sm:$0xff] }
  0x25   : > { %913 = vmatpush.bf16.msra.mxu3 %v3707_v24  ;;  %v4115_v20 = vunpack.c.l.b16 %v183_v14  ;;  %v3729_v23 = vld [vmem:[%s4610_s1 + $0x380] sm:$0xff]  ;;  %v3627_v31 = vld [vmem:[%s4610_s1 + $0x50] sm:$0xff] }
  0x26   : > { %872 = vmatpush.bf16.msra.mxu0 %v3682_v25  ;;  %v3737_v24 = vld [vmem:[%s4610_s1 + $0x3c0] sm:$0xff]  ;;  %v455_v25 = vunpack.c.h.b16 %v4101_v13 }
  0x27   : > { %886 = vmatpush.bf16.msra.mxu1 %v3690_v26  ;;  %v4127_v26 = vunpack.c.h.b16 %v183_v14 }
  0x28   : > { %900 = vmatpush.bf16.msra.mxu2 %v3698_v27  ;;  %v457_v27 = vunpack.c.h.b16 %v4105_v15  ;;  %v3659_v15 = vld [vmem:[%s4610_s1 + $0x150] sm:$0xff] }
  0x29   : > { %914 = vmatpush.bf16.msra.mxu3 %v3706_v28  ;;  %v4130_v28 = vunpack.c.h.b16 %v184_v16  ;;  %v3619_v16 = vld [vmem:[%s4610_s1 + $0x10] sm:$0xff] }
  0x2a   : > { %873 = vmatpush.bf16.msra.mxu0 %v3681_v33  ;;  %v3640_v33 = vld [vmem:[%s4610_s1 + $0xb8] sm:$0xff] }
  0x2b   : > { %887 = vmatpush.bf16.msra.mxu1 %v3689_v34  ;;  %v3648_v34 = vld [vmem:[%s4610_s1 + $0xf8] sm:$0xff]  ;;  %v1005_v13 = vpack.c.b16 %v4130_v28, %v4130_v28 }
  0x2c   : > { %901 = vmatpush.bf16.msra.mxu2 %v3697_v39  ;;  %v470_v39 = vpack.c.b16 %v4115_v20, %v454_v19 }
  0x2d   : > { %915 = vmatpush.bf16.msra.mxu3 %v3705_v40  ;;  %874 = vmatmul.bf16.vlgmr.msra.gmra.mxu0 %v466_v49  ;;  %v472_v40 = vpack.c.b16 %v4118_v22, %v456_v21  ;;  %v3639_v49 = vld [vmem:[%s4610_s1 + $0xb0] sm:$0xff] }
  0x2e   : > { %922 = vmatpush.bf16.msrb.mxu0 %v3720_v45  ;;  %888 = vmatmul.bf16.vlgmr.msra.gmra.mxu1 %v467_v51  ;;  %v471_v45 = vpack.c.b16 %v4127_v26, %v455_v25  ;;  %v173_v51 = vld [vmem:[%s3958_s13] sm:$0x88] }
  0x2f   : > { %936 = vmatpush.bf16.msrb.mxu1 %v3728_v46  ;;  %902 = vmatmul.bf16.vlgmr.msra.gmra.mxu2 %v468_v50  ;;  %v473_v46 = vpack.c.b16 %v4130_v28, %v457_v27  ;;  %v3647_v50 = vld [vmem:[%s4610_s1 + $0xf0] sm:$0xff] }
  0x30   : > { %950 = vmatpush.bf16.msrb.mxu2 %v3736_v47  ;;  %916 = vmatmul.bf16.vlgmr.msra.gmra.mxu3 %v469_v52  ;;  %v3623_v47 = vld [vmem:[%s4610_s1 + $0x30] sm:$0xff]  ;;  %v3622_v52 = vld [vmem:[%s4610_s1 + $0x28] sm:$0xff] }
  0x31   : > { %964 = vmatpush.bf16.msrb.mxu3 %v3744_v48  ;;  %v3631_v48 = vld [vmem:[%s4610_s1 + $0x70] sm:$0xff] }
  0x32   : > { %923 = vmatpush.bf16.msrb.mxu0 %v3719_v53  ;;  %v3630_v53 = vld [vmem:[%s4610_s1 + $0x68] sm:$0xff] }
  0x33   : > { %937 = vmatpush.bf16.msrb.mxu1 %v3727_v54  ;;  %v174_v54 = vld [vmem:[%s3958_s13 + $0x8] sm:$0x88] }
  0x34   : > { %951 = vmatpush.bf16.msrb.mxu2 %v3735_v55  ;;  %v3638_v55 = vld [vmem:[%s4610_s1 + $0xa8] sm:$0xff] }
  0x35   : > { %965 = vmatpush.bf16.msrb.mxu3 %v3743_v56  ;;  %v3646_v56 = vld [vmem:[%s4610_s1 + $0xe8] sm:$0xff] }
  0x36   : > { %924 = vmatpush.bf16.msrb.mxu0 %v3718_v57  ;;  %v982_v57 = vunpack.c.l.b16 %v173_v51 }
  0x37   : > { %938 = vmatpush.bf16.msrb.mxu1 %v3726_v58  ;;  %v984_v58 = vunpack.c.l.b16 %v174_v54 }
  0x38   : > { %952 = vmatpush.bf16.msrb.mxu2 %v3734_v59  ;;  %v3621_v59 = vld [vmem:[%s4610_s1 + $0x20] sm:$0xff] }
  0x39   : > { %966 = vmatpush.bf16.msrb.mxu3 %v3742_v60  ;;  %v3629_v60 = vld [vmem:[%s4610_s1 + $0x60] sm:$0xff] }
  0x3a   : > { %925 = vmatpush.bf16.msrb.mxu0 %v3717_v61  ;;  %v983_v61 = vunpack.c.h.b16 %v173_v51  ;;  %v3618_v51 = vld [vmem:[%s4610_s1 + $0x8] sm:$0xff] }
  0x3b   : > { %939 = vmatpush.bf16.msrb.mxu1 %v3725_v62  ;;  %v3637_v62 = vld [vmem:[%s4610_s1 + $0xa0] sm:$0xff] }
  0x3c   : > { %953 = vmatpush.bf16.msrb.mxu2 %v3733_v63  ;;  %v3645_v63 = vld [vmem:[%s4610_s1 + $0xe0] sm:$0xff] }
  0x3d   : > { %967 = vmatpush.bf16.msrb.mxu3 %v3741_v0  ;;  %v985_v0 = vunpack.c.h.b16 %v174_v54 }
  0x3e   : > { %926 = vmatpush.bf16.msrb.mxu0 %v3716_v1  ;;  %v990_v1 = vpack.c.b16 %v450_v35, %v982_v57  ;;  %v991_v35 = vpack.c.b16 %v451_v41, %v983_v61  ;;  %v3634_v57 = vld [vmem:[%s4610_s1 + $0x88] sm:$0xff] }
  0x3f   : > { %940 = vmatpush.bf16.msrb.mxu1 %v3724_v2  ;;  %v998_v2 = vpack.c.b16 %v3987_v36, %v3987_v36  ;;  %v999_v36 = vpack.c.b16 %v3999_v42, %v3999_v42 }
  0x40   : > { %954 = vmatpush.bf16.msrb.mxu2 %v3732_v3  ;;  %v992_v3 = vpack.c.b16 %v452_v37, %v984_v58  ;;  %v3636_v37 = vld [vmem:[%s4610_s1 + $0x98] sm:$0xff]  ;;  %v1008_v41 = vshrl.u32 %v990_v1, 16  ;;  %v1028_v44 = vshll.u32 %v991_v35, 16  ;;  %v3642_v58 = vld [vmem:[%s4610_s1 + $0xc8] sm:$0xff] }
  0x41   : > { %968 = vmatpush.bf16.msrb.mxu3 %v3740_v4  ;;  %v1000_v4 = vpack.c.b16 %v3990_v38, %v3990_v38  ;;  %v3644_v38 = vld [vmem:[%s4610_s1 + $0xd8] sm:$0xff]  ;;  %v1019_v42 = vshll.u32 %v998_v2, 16 }
  0x42   : > { %927 = vmatpush.bf16.msrb.mxu0 %v3715_v5  ;;  %v3620_v5 = vld [vmem:[%s4610_s1 + $0x18] sm:$0xff]  ;;  %v1030_v54 = vrot.slane %v1028_v44, 4  ;;  %v3654_v44 = vld [vmem:[%s4610_s1 + $0x128] sm:$0xff] }
  0x43   : > { %941 = vmatpush.bf16.msrb.mxu1 %v3723_v6  ;;  %v3628_v6 = vld [vmem:[%s4610_s1 + $0x58] sm:$0xff]  ;;  %v1053_v14 = vshll.u32 %v1000_v4, 16 }
  0x44   : > { %955 = vmatpush.bf16.msrb.mxu2 %v3731_v7  ;;  %v993_v7 = vpack.c.b16 %v453_v43, %v985_v0  ;;  %v1025_v43 = vshrl.u32 %v991_v35, 16  ;;  %v3625_v0 = vld [vmem:[%s4610_s1 + $0x40] sm:$0xff]  ;;  %v3656_v35 = vld [vmem:[%s4610_s1 + $0x138] sm:$0xff] }
  0x45   : > { %969 = vmatpush.bf16.msrb.mxu3 %v3739_v8  ;;  %v1011_v8 = vshll.u32 %v990_v1, 16 }
  0x46   : > { %928 = vmatpush.bf16.msrb.mxu0 %v3714_v9  ;;  %v1016_v9 = vshrl.u32 %v998_v2, 16  ;;  %v3633_v2 = vld [vmem:[%s4610_s1 + $0x80] sm:$0xff] }
  0x47   : > { %942 = vmatpush.bf16.msrb.mxu1 %v3722_v10  ;;  %v1042_v10 = vshrl.u32 %v992_v3, 16 }
  0x48   : > { %956 = vmatpush.bf16.msrb.mxu2 %v3730_v11  ;;  %v1045_v11 = vshll.u32 %v992_v3, 16  ;;  %v3641_v3 = vld [vmem:[%s4610_s1 + $0xc0] sm:$0xff] }
  0x49   : > { %970 = vmatpush.bf16.msrb.mxu3 %v3738_v12  ;;  %v1050_v12 = vshrl.u32 %v1000_v4, 16 }
  0x4a   : > { %929 = vmatpush.bf16.msrb.mxu0 %v3713_v17  ;;  %v1033_v17 = vshrl.u32 %v999_v36, 16 }
  0x4b   : > { %943 = vmatpush.bf16.msrb.mxu1 %v3721_v18  ;;  %v1036_v18 = vshll.u32 %v999_v36, 16  ;;  %v3664_v36 = vld [vmem:[%s4610_s1 + $0x178] sm:$0xff] }
  0x4c   : > { %957 = vmatpush.bf16.msrb.mxu2 %v3729_v23  ;;  %v3635_v23 = vld [vmem:[%s4610_s1 + $0x90] sm:$0xff] }
  0x4d   : > { %971 = vmatpush.bf16.msrb.mxu3 %v3737_v24  ;;  %930 = vmatmul.bf16.vlgmr.msrb.gmra.mxu0 %v470_v39  ;;  %v3643_v24 = vld [vmem:[%s4610_s1 + $0xd0] sm:$0xff]  ;;  %v1010_v39 = vrot.slane %v1008_v41, 3  ;;  %v3672_v41 = vld [vmem:[%s4610_s1 + $0x1b8] sm:$0xff] }
  0x4e   : > { %1535 = vmatpush.bf16.msra.mxu0 %v3624_v30  ;;  %944 = vmatmul.bf16.vlgmr.msrb.gmra.mxu1 %v471_v45  ;;  %v1059_v30 = vshrl.u32 %v993_v7, 16  ;;  %v1018_v45 = vrot.slane %v1016_v9, 3 }
  0x4f   : > { %1549 = vmatpush.bf16.msra.mxu1 %v3632_v32  ;;  %958 = vmatmul.bf16.vlgmr.msrb.gmra.mxu2 %v472_v40  ;;  %v1062_v32 = vshll.u32 %v993_v7, 16  ;;  %v1013_v40 = vrot.slane %v1011_v8, 4  ;;  %v3680_v8 = vld [vmem:[%s4610_s1 + $0x1f8] sm:$0xff] }
  0x50   : > { %1563 = vmatpush.bf16.msra.mxu2 %v3640_v33  ;;  %972 = vmatmul.bf16.vlgmr.msrb.gmra.mxu3 %v473_v46  ;;  %v1067_v33 = vshrl.u32 %v1001_v29, 16  ;;  %v1021_v46 = vrot.slane %v1019_v42, 4 }
  0x51   : > { %1577 = vmatpush.bf16.msra.mxu3 %v3648_v34  ;;  %v1070_v34 = vshll.u32 %v1001_v29, 16  ;;  %v1014_v1 = vor.u32 %v1013_v40, %v1010_v39  ;;  %v3669_v40 = vld [vmem:[%s4610_s1 + $0x1a0] sm:$0xff] }
  0x52   : > { %1536 = vmatpush.bf16.msra.mxu0 %v3623_v47  ;;  %v1044_v47 = vrot.slane %v1042_v10, 3  ;;  %v1069_v61 = vrot.slane %v1067_v33, 3  ;;  %v1022_v4 = vor.u32 %v1021_v46, %v1018_v45  ;;  %v3653_v33 = vld [vmem:[%s4610_s1 + $0x120] sm:$0xff] }
  0x53   : > { %1550 = vmatpush.bf16.msra.mxu1 %v3631_v48  ;;  %v1047_v48 = vrot.slane %v1045_v11, 4  ;;  %v3677_v45 = vld [vmem:[%s4610_s1 + $0x1e0] sm:$0xff] }
  0x54   : > { %1564 = vmatpush.bf16.msra.mxu2 %v3639_v49  ;;  %v1052_v49 = vrot.slane %v1050_v12, 3  ;;  %v1023_v9 = vsel %vm1006_vm0, %v1014_v1, %v1022_v4  ;;  %v3655_v12 = vld [vmem:[%s4610_s1 + $0x130] sm:$0xff]  ;;  %v1138_v4 = vshll.u32 %v1005_v13, 16 }
  0x55   : > { %1578 = vmatpush.bf16.msra.mxu3 %v3647_v50  ;;  %v1055_v50 = vrot.slane %v1053_v14, 4  ;;  %v3663_v14 = vld [vmem:[%s4610_s1 + $0x170] sm:$0xff] }
  0x56   : > { %1537 = vmatpush.bf16.msra.mxu0 %v3622_v52  ;;  %v3626_v52 = vld [vmem:[%s4610_s1 + $0x48] sm:$0xff] }
  0x57   : > { %1551 = vmatpush.bf16.msra.mxu1 %v3630_v53  ;;  %v1027_v53 = vrot.slane %v1025_v43, 3  ;;  %v175_v43 = vld [vmem:[%s3958_s13 + $0x10] sm:$0x88] }
  0x58   : > { %1565 = vmatpush.bf16.msra.mxu2 %v3638_v55  ;;  %v1035_v55 = vrot.slane %v1033_v17, 3  ;;  %v3662_v17 = vld [vmem:[%s4610_s1 + $0x168] sm:$0xff]  ;;  %v987_v39 = vunpack.c.h.b16 %v175_v43 }
  0x59   : > { %1579 = vmatpush.bf16.msra.mxu3 %v3646_v56  ;;  %v1038_v56 = vrot.slane %v1036_v18, 4  ;;  %v176_v18 = vld [vmem:[%s3958_s13 + $0x18] sm:$0x88] }
  0x5a   : > { %1538 = vmatpush.bf16.msra.mxu0 %v3621_v59  ;;  %v1061_v59 = vrot.slane %v1059_v30, 3  ;;  %v986_v30 = vunpack.c.l.b16 %v175_v43  ;;  %v989_v46 = vunpack.c.h.b16 %v176_v18 }
  0x5b   : > { %1552 = vmatpush.bf16.msra.mxu1 %v3629_v60  ;;  %v1064_v60 = vrot.slane %v1062_v32, 4  ;;  %v988_v32 = vunpack.c.l.b16 %v176_v18  ;;  %v3657_v18 = vld [vmem:[%s4610_s1 + $0x140] sm:$0xff] }
  0x5c   : > { %1566 = vmatpush.bf16.msra.mxu2 %v3637_v62  ;;  %v1072_v62 = vrot.slane %v1070_v34, 4  ;;  %v3661_v34 = vld [vmem:[%s4610_s1 + $0x160] sm:$0xff] }
  0x5d   : > { %1580 = vmatpush.bf16.msra.mxu3 %v3645_v63  ;;  %v3617_v63 = vld [vmem:[%s4610_s1] sm:$0xff]  ;;  %v1065_v7 = vor.u32 %v1064_v60, %v1061_v59  ;;  %v3651_v60 = vld [vmem:[%s4610_s1 + $0x110] sm:$0xff] }
  0x5e   : > { %1539 = vmatpush.bf16.msra.mxu0 %v3620_v5  ;;  %v1048_v5 = vor.u32 %v1047_v48, %v1044_v47  ;;  %v1073_v29 = vor.u32 %v1072_v62, %v1069_v61  ;;  %v994_v47 = vpack.c.b16 %v454_v19, %v986_v30  ;;  %v1002_v48 = vpack.c.b16 %v4115_v20, %v4115_v20  ;;  %v3673_v30 = vld [vmem:[%s4610_s1 + $0x1c0] sm:$0xff] }
  0x5f   : > { %1553 = vmatpush.bf16.msra.mxu1 %v3628_v6  ;;  %v1056_v6 = vor.u32 %v1055_v50, %v1052_v49  ;;  %v996_v49 = vpack.c.b16 %v456_v21, %v988_v32  ;;  %v1004_v50 = vpack.c.b16 %v4118_v22, %v4118_v22  ;;  %v995_v19 = vpack.c.b16 %v455_v25, %v987_v39  ;;  %v3668_v21 = vld [vmem:[%s4610_s1 + $0x198] sm:$0xff] }
  0x60   : > { %1567 = vmatpush.bf16.msra.mxu2 %v3636_v37  ;;  %v1031_v37 = vor.u32 %v1030_v54, %v1027_v53  ;;  %v1074_v11 = vsel %vm1006_vm0, %v1065_v7, %v1073_v29  ;;  %v1003_v20 = vpack.c.b16 %v4127_v26, %v4127_v26  ;;  %v3676_v22 = vld [vmem:[%s4610_s1 + $0x1d8] sm:$0xff]  ;;  %v997_v53 = vpack.c.b16 %v457_v27, %v989_v46 }
  0x61   : > { %1581 = vmatpush.bf16.msra.mxu3 %v3644_v38  ;;  %v1039_v38 = vor.u32 %v1038_v56, %v1035_v55  ;;  %v1057_v42 = vsel %vm1006_vm0, %v1048_v5, %v1056_v6  ;;  %v1076_v25 = vshrl.u32 %v994_v47, 16  ;;  %v1079_v54 = vshll.u32 %v994_v47, 16  ;;  %v3760_v39 = vld [vmem:[%s4610_s1 + $0x438] sm:$0xff] }
  0x62   : > { %1540 = vmatpush.bf16.msra.mxu0 %v3619_v16  ;;  %v3671_v16 = vld [vmem:[%s4610_s1 + $0x1b0] sm:$0xff]  ;;  %v1084_v55 = vshrl.u32 %v1002_v48, 16  ;;  %v1087_v26 = vshll.u32 %v1002_v48, 16  ;;  %v1110_v56 = vshrl.u32 %v996_v49, 16  ;;  %v1121_v59 = vshll.u32 %v1004_v50, 16 }
  0x63   : > { %1554 = vmatpush.bf16.msra.mxu1 %v3627_v31  ;;  %v1040_v10 = vsel %vm1006_vm0, %v1031_v37, %v1039_v38  ;;  %v3679_v31 = vld [vmem:[%s4610_s1 + $0x1f0] sm:$0xff]  ;;  %v1093_v27 = vshrl.u32 %v995_v19, 16  ;;  %v1096_v28 = vshll.u32 %v995_v19, 16  ;;  %v1101_v61 = vshrl.u32 %v1003_v20, 16  ;;  %v3650_v37 = vld [vmem:[%s4610_s1 + $0x108] sm:$0xff] }
  0x64   : > { %1568 = vmatpush.bf16.msra.mxu2 %v3635_v23  ;;  %v3670_v23 = vld [vmem:[%s4610_s1 + $0x1a8] sm:$0xff]  ;;  %v1104_v62 = vshll.u32 %v1003_v20, 16  ;;  %v1127_v1 = vshrl.u32 %v997_v53, 16  ;;  %v1078_v5 = vrot.slane %v1076_v25, 3  ;;  %v1081_v6 = vrot.slane %v1079_v54, 4 }
  0x65   : > { %1582 = vmatpush.bf16.msra.mxu3 %v3643_v24  ;;  %v3678_v24 = vld [vmem:[%s4610_s1 + $0x1e8] sm:$0xff]  ;;  %v1112_v7 = vrot.slane %v1110_v56, 3  ;;  %v3757_v56 = vld [vmem:[%s4610_s1 + $0x420] sm:$0xff] }
  0x66   : > { %1541 = vmatpush.bf16.msra.mxu0 %v3618_v51  ;;  %v3652_v51 = vld [vmem:[%s4610_s1 + $0x118] sm:$0xff]  ;;  %v3658_v38 = vld [vmem:[%s4610_s1 + $0x148] sm:$0xff] }
  0x67   : > { %1555 = vmatpush.bf16.msra.mxu1 %v3626_v52  ;;  %v3660_v52 = vld [vmem:[%s4610_s1 + $0x158] sm:$0xff]  ;;  %v3758_v25 = vld [vmem:[%s4610_s1 + $0x428] sm:$0xff] }
  0x68   : > { %1569 = vmatpush.bf16.msra.mxu2 %v3634_v57  ;;  %v1113_v57 = vshll.u32 %v996_v49, 16  ;;  %v3776_v49 = vld [vmem:[%s4610_s1 + $0x4b8] sm:$0xff]  ;;  %v3766_v54 = vld [vmem:[%s4610_s1 + $0x468] sm:$0xff] }
  0x69   : > { %1583 = vmatpush.bf16.msra.mxu3 %v3642_v58  ;;  %v1118_v58 = vshrl.u32 %v1004_v50, 16  ;;  %v3784_v50 = vld [vmem:[%s4610_s1 + $0x4f8] sm:$0xff] }
  0x6a   : > { %1542 = vmatpush.bf16.msra.mxu0 %v3617_v63  ;;  %v3667_v63 = vld [vmem:[%s4610_s1 + $0x190] sm:$0xff]  ;;  %v1115_v29 = vrot.slane %v1113_v57, 4  ;;  %v3765_v57 = vld [vmem:[%s4610_s1 + $0x460] sm:$0xff] }
  0x6b   : > { %1556 = vmatpush.bf16.msra.mxu1 %v3625_v0  ;;  %v3675_v0 = vld [vmem:[%s4610_s1 + $0x1d0] sm:$0xff] }
  0x6c   : > { %1570 = vmatpush.bf16.msra.mxu2 %v3633_v2  ;;  %v1130_v2 = vshll.u32 %v997_v53, 16  ;;  %v3775_v53 = vld [vmem:[%s4610_s1 + $0x4b0] sm:$0xff] }
  0x6d   : > { %1584 = vmatpush.bf16.msra.mxu3 %v3641_v3  ;;  %1543 = vmatmul.bf16.vlgmr.msra.gmra.mxu0 %v1023_v9  ;;  %v1135_v3 = vshrl.u32 %v1005_v13, 16  ;;  %v3666_v9 = vld [vmem:[%s4610_s1 + $0x188] sm:$0xff]  ;;  %v3783_v13 = vld [vmem:[%s4610_s1 + $0x4f0] sm:$0xff] }
  0x6e   : > { %1591 = vmatpush.bf16.msrb.mxu0 %v3656_v35  ;;  %1557 = vmatmul.bf16.vlgmr.msra.gmra.mxu1 %v1040_v10  ;;  %v1086_v35 = vrot.slane %v1084_v55, 3  ;;  %v1095_v10 = vrot.slane %v1093_v27, 3  ;;  %v3774_v55 = vld [vmem:[%s4610_s1 + $0x4a8] sm:$0xff] }
  0x6f   : > { %1605 = vmatpush.bf16.msrb.mxu1 %v3664_v36  ;;  %1571 = vmatmul.bf16.vlgmr.msra.gmra.mxu2 %v1057_v42  ;;  %v1089_v36 = vrot.slane %v1087_v26, 4  ;;  %v3674_v42 = vld [vmem:[%s4610_s1 + $0x1c8] sm:$0xff]  ;;  %v1137_v43 = vrot.slane %v1135_v3, 3  ;;  %v3756_v3 = vld [vmem:[%s4610_s1 + $0x418] sm:$0xff] }
  0x70   : > { %1619 = vmatpush.bf16.msrb.mxu2 %v3672_v41  ;;  %1585 = vmatmul.bf16.vlgmr.msra.gmra.mxu3 %v1074_v11  ;;  %v1120_v41 = vrot.slane %v1118_v58, 3  ;;  %v1098_v11 = vrot.slane %v1096_v28, 4  ;;  %v3782_v26 = vld [vmem:[%s4610_s1 + $0x4e8] sm:$0xff]  ;;  %v3773_v58 = vld [vmem:[%s4610_s1 + $0x4a0] sm:$0xff] }
  0x71   : > { %1633 = vmatpush.bf16.msrb.mxu3 %v3680_v8  ;;  %v1123_v8 = vrot.slane %v1121_v59, 4  ;;  %v1090_v32 = vor.u32 %v1089_v36, %v1086_v35  ;;  %v3781_v59 = vld [vmem:[%s4610_s1 + $0x4e0] sm:$0xff]  ;;  %v1656_v27 = vld [vmem:[%s3958_s13 + $0x68] sm:$0x11]  ;;  %v3772_v35 = vld [vmem:[%s4610_s1 + $0x498] sm:$0xff] }
  0x72   : > { %1592 = vmatpush.bf16.msrb.mxu0 %v3655_v12  ;;  %v1103_v12 = vrot.slane %v1101_v61, 3  ;;  %v3746_v28 = vld [vmem:[%s3958_s13 + $0x2c] sm:$0xf]  ;;  %v3780_v36 = vld [vmem:[%s4610_s1 + $0x4d8] sm:$0xff] }
  0x73   : > { %1606 = vmatpush.bf16.msrb.mxu1 %v3663_v14  ;;  %v1106_v14 = vrot.slane %v1104_v62, 4  ;;  %v3337_v61 = vld [vmem:[%s3958_s13 + $0x48] sm:$0xf0]  ;;  %v3327_v62 = vld [vmem:[%s3958_s13 + $0x20] sm:$0xf] }
  0x74   : > { %1620 = vmatpush.bf16.msrb.mxu2 %v3671_v16  ;;  %v1129_v16 = vrot.slane %v1127_v1, 3  ;;  %v3745_v1 = vld [vmem:[%s3958_s13 + $0x24] sm:$0xf] }
  0x75   : > { %1634 = vmatpush.bf16.msrb.mxu3 %v3679_v31  ;;  %v1132_v31 = vrot.slane %v1130_v2, 4  ;;  %v1107_v46 = vor.u32 %v1106_v14, %v1103_v12  ;;  %v3329_v2 = vld [vmem:[%s3958_s13 + $0x40] sm:$0xf0]  ;;  %v3771_v12 = vld [vmem:[%s4610_s1 + $0x490] sm:$0xff] }
  0x76   : > { %1593 = vmatpush.bf16.msrb.mxu0 %v3654_v44  ;;  %v1140_v44 = vrot.slane %v1138_v4, 4  ;;  %v3764_v4 = vld [vmem:[%s4610_s1 + $0x458] sm:$0xff]  ;;  %v3779_v14 = vld [vmem:[%s4610_s1 + $0x4d0] sm:$0xff] }
  0x77   : > { %1607 = vmatpush.bf16.msrb.mxu1 %v3662_v17  ;;  %v3649_v17 = vld [vmem:[%s4610_s1 + $0x100] sm:$0xff]  ;;  %v1133_v47 = vor.u32 %v1132_v31, %v1129_v16 }
  0x78   : > { %1621 = vmatpush.bf16.msrb.mxu2 %v3670_v23  ;;  %v1082_v23 = vor.u32 %v1081_v6, %v1078_v5  ;;  %v1141_v48 = vor.u32 %v1140_v44, %v1137_v43  ;;  %v1818_v5 = vunpack.c.l.b16 %v1656_v27 }
  0x79   : > { %1635 = vmatpush.bf16.msrb.mxu3 %v3678_v24  ;;  %v3665_v24 = vld [vmem:[%s4610_s1 + $0x180] sm:$0xff] }
  0x7a   : > { %1594 = vmatpush.bf16.msrb.mxu0 %v3653_v33  ;;  %v1116_v33 = vor.u32 %v1115_v29, %v1112_v7  ;;  %v1142_v20 = vsel %vm1006_vm0, %v1133_v47, %v1141_v48 }
  0x7b   : > { %1608 = vmatpush.bf16.msrb.mxu1 %v3661_v34  ;;  %v1124_v34 = vor.u32 %v1123_v8, %v1120_v41  ;;  %v3332_v8 = vor.u32 %v3745_v1, %v3329_v2  ;;  %v3807_v1 = vld [vmem:[%s4610_s1 + $0x5b0] sm:$0xff] }
  0x7c   : > { %1622 = vmatpush.bf16.msrb.mxu2 %v3669_v40  ;;  %v3768_v40 = vld [vmem:[%s4610_s1 + $0x478] sm:$0xff]  ;;  %v3815_v2 = vld [vmem:[%s4610_s1 + $0x5f0] sm:$0xff] }
  0x7d   : > { %1636 = vmatpush.bf16.msrb.mxu3 %v3677_v45  ;;  %v1099_v45 = vor.u32 %v1098_v11, %v1095_v10  ;;  %v1834_v10 = vpack.c.b16 %v1818_v5, %v1818_v5  ;;  %v3806_v5 = vld [vmem:[%s4610_s1 + $0x5a8] sm:$0xff] }
  0x7e   : > { %1595 = vmatpush.bf16.msrb.mxu0 %v3652_v51  ;;  %v1091_v51 = vsel %vm1006_vm0, %v1082_v23, %v1090_v32  ;;  %v3754_v23 = vld [vmem:[%s4610_s1 + $0x408] sm:$0xff] }
  0x7f   : > { %1609 = vmatpush.bf16.msrb.mxu1 %v3660_v52  ;;  %v1125_v52 = vsel %vm1006_vm0, %v1116_v33, %v1124_v34  ;;  %v1108_v19 = vsel %vm1006_vm0, %v1099_v45, %v1107_v46  ;;  %v1873_v33 = vshll.u32 %v1834_v10, 16  ;;  %v1658_v10 = vld [vmem:[%s3958_s13 + $0x78] sm:$0x11] }
  0x80   : > { %1623 = vmatpush.bf16.msrb.mxu2 %v3668_v21  ;;  %v3759_v21 = vld [vmem:[%s4610_s1 + $0x430] sm:$0xff] }
  0x81   : > { %1637 = vmatpush.bf16.msrb.mxu3 %v3676_v22  ;;  %v3767_v22 = vld [vmem:[%s4610_s1 + $0x470] sm:$0xff] }
  0x82   : > { %1596 = vmatpush.bf16.msrb.mxu0 %v3651_v60  ;;  %v3335_v60 = vld [vmem:[%s3958_s13 + $0x28] sm:$0xf] }
  0x83   : > { %1610 = vmatpush.bf16.msrb.mxu1 %v3659_v15  ;;  %v3750_v15 = vld [vmem:[%s3958_s13 + $0x44] sm:$0xf0] }
  0x84   : > { %1624 = vmatpush.bf16.msrb.mxu2 %v3667_v63  ;;  %v3749_v63 = vld [vmem:[%s3958_s13 + $0x3c] sm:$0xf0]  ;;  %v3336_v6 = vor.u32 %v3750_v15, %v3335_v60  ;;  %v3808_v60 = vld [vmem:[%s4610_s1 + $0x5b8] sm:$0xff] }
  0x85   : > { %1638 = vmatpush.bf16.msrb.mxu3 %v3675_v0  ;;  %v1655_v0 = vld [vmem:[%s3958_s13 + $0x60] sm:$0x11]  ;;  %v3328_v7 = vor.u32 %v3749_v63, %v3327_v62  ;;  %v3816_v15 = vld [vmem:[%s4610_s1 + $0x5f8] sm:$0xff]  ;;  %v3799_v62 = vld [vmem:[%s4610_s1 + $0x570] sm:$0xff] }
  0x86   : > { %1597 = vmatpush.bf16.msrb.mxu0 %v3650_v37  ;;  %v1819_v37 = vunpack.c.h.b16 %v1656_v27  ;;  %v1816_v29 = vunpack.c.l.b16 %v1655_v0  ;;  %v1817_v41 = vunpack.c.h.b16 %v1655_v0  ;;  %v1868_v11 = vshll.u32 %v3336_v6, 16 }
  0x87   : > { %1611 = vmatpush.bf16.msrb.mxu1 %v3658_v38  ;;  %v3340_v38 = vor.u32 %v3746_v28, %v3337_v61  ;;  %v1844_v43 = vshll.u32 %v3328_v7, 16  ;;  %v1842_v47 = vshrl.u32 %v3328_v7, 16  ;;  %v3791_v61 = vld [vmem:[%s4610_s1 + $0x530] sm:$0xff] }
  0x88   : > { %1625 = vmatpush.bf16.msrb.mxu2 %v3666_v9  ;;  %v3755_v9 = vld [vmem:[%s4610_s1 + $0x410] sm:$0xff]  ;;  %v1835_v16 = vpack.c.b16 %v1819_v37, %v1819_v37  ;;  %v1832_v44 = vpack.c.b16 %v1816_v29, %v1816_v29  ;;  %v1870_v32 = vrot.slane %v1868_v11, 1  ;;  %v3805_v37 = vld [vmem:[%s4610_s1 + $0x5a0] sm:$0xff]  ;;  %v3752_v11 = vld [vmem:[%s3958_s13 + $0x54] sm:$0xf0] }
  0x89   : > { %1639 = vmatpush.bf16.msrb.mxu3 %v3674_v42  ;;  %v3763_v42 = vld [vmem:[%s4610_s1 + $0x450] sm:$0xff]  ;;  %v1880_v31 = vshll.u32 %v3340_v38, 16  ;;  %v1878_v34 = vshrl.u32 %v3340_v38, 16  ;;  %v1846_v48 = vrot.slane %v1844_v43, 1  ;;  %v3813_v38 = vld [vmem:[%s4610_s1 + $0x5e0] sm:$0xff]  ;;  %v3788_v43 = vld [vmem:[%s4610_s1 + $0x518] sm:$0xff] }
  0x8a   : > { %1598 = vmatpush.bf16.msrb.mxu0 %v3649_v17  ;;  %v1833_v17 = vpack.c.b16 %v1817_v41, %v1817_v41  ;;  %v1885_v46 = vshll.u32 %v1835_v16, 16  ;;  %v3343_v7 = vld [vmem:[%s3958_s13 + $0x30] sm:$0xf] }
  0x8b   : > { %1612 = vmatpush.bf16.msrb.mxu1 %v3657_v18  ;;  %v1856_v18 = vshll.u32 %v3332_v8, 16  ;;  %v1882_v45 = vrot.slane %v1880_v31, 1  ;;  %v3751_v29 = vld [vmem:[%s3958_s13 + $0x4c] sm:$0xf0] }
  0x8c   : > { %1626 = vmatpush.bf16.msrb.mxu2 %v3665_v24  ;;  %v3762_v24 = vld [vmem:[%s4610_s1 + $0x448] sm:$0xff]  ;;  %v1657_v41 = vld [vmem:[%s3958_s13 + $0x70] sm:$0x11]  ;;  %v3344_v31 = vor.u32 %v3751_v29, %v3343_v7 }
  0x8d   : > { %1640 = vmatpush.bf16.msrb.mxu3 %v3673_v30  ;;  %1599 = vmatmul.bf16.vlgmr.msrb.gmra.mxu0 %v1091_v51  ;;  %v1866_v30 = vshrl.u32 %v3336_v6, 16  ;;  %v1858_v51 = vrot.slane %v1856_v18, 1  ;;  %v3814_v6 = vld [vmem:[%s4610_s1 + $0x5e8] sm:$0xff]  ;;  %v1820_v16 = vunpack.c.l.b16 %v1657_v41 }
  0x8e   : > { %2329 = vmatpush.bf16.msra.mxu0 %v3760_v39  ;;  %1613 = vmatmul.bf16.vlgmr.msrb.gmra.mxu1 %v1108_v19  ;;  %v3770_v39 = vld [vmem:[%s4610_s1 + $0x488] sm:$0xff]  ;;  %v3753_v19 = vld [vmem:[%s4610_s1 + $0x400] sm:$0xff] }
  0x8f   : > { %2343 = vmatpush.bf16.msra.mxu1 %v3768_v40  ;;  %1627 = vmatmul.bf16.vlgmr.msrb.gmra.mxu2 %v1125_v52  ;;  %v3778_v40 = vld [vmem:[%s4610_s1 + $0x4c8] sm:$0xff]  ;;  %v1861_v52 = vshll.u32 %v1833_v17, 16  ;;  %v1821_v17 = vunpack.c.h.b16 %v1657_v41 }
  0x90   : > { %2357 = vmatpush.bf16.msra.mxu2 %v3776_v49  ;;  %1641 = vmatmul.bf16.vlgmr.msrb.gmra.mxu3 %v1142_v20  ;;  %v1849_v49 = vshll.u32 %v1832_v44, 16  ;;  %v3761_v20 = vld [vmem:[%s4610_s1 + $0x440] sm:$0xff]  ;;  %v3796_v44 = vld [vmem:[%s4610_s1 + $0x558] sm:$0xff] }
  0x91   : > { %2371 = vmatpush.bf16.msra.mxu3 %v3784_v50  ;;  %v1854_v50 = vshrl.u32 %v3332_v8, 16  ;;  %v3747_v8 = vld [vmem:[%s3958_s13 + $0x34] sm:$0xf] }
  0x92   : > { %2330 = vmatpush.bf16.msra.mxu0 %v3759_v21  ;;  %v1871_v21 = vor.u32 %v1870_v32, %v1866_v30  ;;  %v3812_v30 = vld [vmem:[%s4610_s1 + $0x5d8] sm:$0xff] }
  0x93   : > { %2344 = vmatpush.bf16.msra.mxu1 %v3767_v22  ;;  %v3769_v22 = vld [vmem:[%s4610_s1 + $0x480] sm:$0xff] }
  0x94   : > { %2358 = vmatpush.bf16.msra.mxu2 %v3775_v53  ;;  %v3777_v53 = vld [vmem:[%s4610_s1 + $0x4c0] sm:$0xff] }
  0x95   : > { %2372 = vmatpush.bf16.msra.mxu3 %v3783_v13  ;;  %v1875_v13 = vrot.slane %v1873_v33, 1  ;;  %v1823_v33 = vunpack.c.h.b16 %v1658_v10 }
  0x96   : > { %2331 = vmatpush.bf16.msra.mxu0 %v3758_v25  ;;  %v1883_v25 = vor.u32 %v1882_v45, %v1878_v34  ;;  %v3787_v45 = vld [vmem:[%s4610_s1 + $0x510] sm:$0xff] }
  0x97   : > { %2345 = vmatpush.bf16.msra.mxu1 %v3766_v54  ;;  %v1887_v54 = vrot.slane %v1885_v46, 1  ;;  %v1876_v27 = vsel %vm1840_vm1, %v1871_v21, %v1875_v13  ;;  %v3795_v46 = vld [vmem:[%s4610_s1 + $0x550] sm:$0xff] }
  0x98   : > { %2359 = vmatpush.bf16.msra.mxu2 %v3774_v55  ;;  %v3792_v55 = vld [vmem:[%s4610_s1 + $0x538] sm:$0xff] }
  0x99   : > { %2373 = vmatpush.bf16.msra.mxu3 %v3782_v26  ;;  %v3800_v26 = vld [vmem:[%s4610_s1 + $0x578] sm:$0xff]  ;;  %v1888_v28 = vsel %vm1840_vm1, %v1883_v25, %v1887_v54 }
  0x9a   : > { %2332 = vmatpush.bf16.msra.mxu0 %v3757_v56  ;;  %v1847_v56 = vor.u32 %v1846_v48, %v1842_v47  ;;  %v1837_v47 = vpack.c.b16 %v1821_v17, %v1821_v17 }
  0x9b   : > { %2346 = vmatpush.bf16.msra.mxu1 %v3765_v57  ;;  %v1851_v57 = vrot.slane %v1849_v49, 1 }
  0x9c   : > { %2360 = vmatpush.bf16.msra.mxu2 %v3773_v58  ;;  %v1859_v58 = vor.u32 %v1858_v51, %v1854_v50  ;;  %v3827_v50 = vld [vmem:[#allocation2] ss:$0 sm:$0xff]  ;;  %v3803_v51 = vld [vmem:[%s4610_s1 + $0x590] sm:$0xff] }
  0x9d   : > { %2374 = vmatpush.bf16.msra.mxu3 %v3781_v59  ;;  %v1863_v59 = vrot.slane %v1861_v52, 1  ;;  %v1852_v63 = vsel %vm1840_vm1, %v1847_v56, %v1851_v57  ;;  %v3811_v52 = vld [vmem:[%s4610_s1 + $0x5d0] sm:$0xff]  ;;  %v1909_v57 = vshll.u32 %v1837_v47, 16 }
  0x9e   : > { %2333 = vmatpush.bf16.msra.mxu0 %v3756_v3  ;;  %v3790_v3 = vld [vmem:[%s4610_s1 + $0x528] sm:$0xff] }
  0x9f   : > { %2347 = vmatpush.bf16.msra.mxu1 %v3764_v4  ;;  %v1864_v0 = vsel %vm1840_vm1, %v1859_v58, %v1863_v59  ;;  %v3798_v4 = vld [vmem:[%s4610_s1 + $0x568] sm:$0xff] }
  0xa0   : > { %2361 = vmatpush.bf16.msra.mxu2 %v3772_v35  ;;  %v3789_v35 = vld [vmem:[%s4610_s1 + $0x520] sm:$0xff] }
  0xa1   : > { %2375 = vmatpush.bf16.msra.mxu3 %v3780_v36  ;;  %v3797_v36 = vld [vmem:[%s4610_s1 + $0x560] sm:$0xff] }
  0xa2   : > { %2334 = vmatpush.bf16.msra.mxu0 %v3755_v9  ;;  %v3345_v9 = vld [vmem:[%s3958_s13 + $0x50] sm:$0xf0] }
  0xa3   : > { %2348 = vmatpush.bf16.msra.mxu1 %v3763_v42  ;;  %v3351_v42 = vld [vmem:[%s3958_s13 + $0x38] sm:$0xf]  ;;  %v3348_v18 = vor.u32 %v3747_v8, %v3345_v9 }
  0xa4   : > { %2362 = vmatpush.bf16.msra.mxu2 %v3771_v12  ;;  %v3748_v12 = vld [vmem:[%s3958_s13 + $0x3c] sm:$0xf]  ;;  %v3352_v32 = vor.u32 %v3752_v11, %v3351_v42 }
  0xa5   : > { %2376 = vmatpush.bf16.msra.mxu3 %v3779_v14  ;;  %v3353_v14 = vld [vmem:[%s3958_s13 + $0x58] sm:$0xf0]  ;;  %v1904_v48 = vshll.u32 %v3348_v18, 16  ;;  %v1902_v54 = vshrl.u32 %v3348_v18, 16  ;;  %s3616_s13 = sshll.u32 %s4614_s15, 4 }
  0xa6   : > { %2335 = vmatpush.bf16.msra.mxu0 %v3754_v23  ;;  %v1822_v23 = vunpack.c.l.b16 %v1658_v10  ;;  %v3356_v34 = vor.u32 %v3748_v12, %v3353_v14  ;;  %v1914_v58 = vshrl.u32 %v3352_v32, 16  ;;  %s172_s27 = scalar_lea.vmem %s4612_s3, %s3616_s13 }
  0xa7   : > { %2349 = vmatpush.bf16.msra.mxu1 %v3762_v24  ;;  %v3804_v24 = vld [vmem:[%s4610_s1 + $0x598] sm:$0xff]  ;;  %v1906_v56 = vrot.slane %v1904_v48, 1 }
  0xa8   : > { %2363 = vmatpush.bf16.msra.mxu2 %v3770_v39  ;;  %v1836_v39 = vpack.c.b16 %v1820_v16, %v1820_v16  ;;  %v1838_v49 = vpack.c.b16 %v1822_v23, %v1822_v23  ;;  %v1928_v21 = vshll.u32 %v3356_v34, 16 }
  0xa9   : > { %2377 = vmatpush.bf16.msra.mxu3 %v3778_v40  ;;  %v1892_v40 = vshll.u32 %v3344_v31, 16 }
  0xaa   : > { %2336 = vmatpush.bf16.msra.mxu0 %v3753_v19  ;;  %v1916_v19 = vshll.u32 %v3352_v32, 16  ;;  %v1897_v25 = vshll.u32 %v1836_v39, 16  ;;  %v1921_v59 = vshll.u32 %v1838_v49, 16  ;;  %v875_v9 = vpop.f32.mrf.mxu0 }
  0xab   : > { %2350 = vmatpush.bf16.msra.mxu1 %v3761_v20  ;;  %v1839_v20 = vpack.c.b16 %v1823_v33, %v1823_v33  ;;  %v1894_v13 = vrot.slane %v1892_v40, 1  ;;  %v889_v42 = vpop.f32.mrf.mxu1 }
  0xac   : > { %2364 = vmatpush.bf16.msra.mxu2 %v3769_v22  ;;  %v3844_v22 = vmov 0   ;;  %v890_v47 = vadd.f32 %v889_v42, %v875_v9 }
  0xad   : > { %2378 = vmatpush.bf16.msra.mxu3 %v3777_v53  ;;  %2337 = vmatmul.bf16.vlgmr.msra.gmra.mxu0 %v1852_v63  ;;  %v1890_v53 = vshrl.u32 %v3344_v31, 16  ;;  %v3785_v63 = vld [vmem:[%s4610_s1 + $0x500] sm:$0xff] }
  0xae   : > { %2385 = vmatpush.bf16.msrb.mxu0 %v3792_v55  ;;  %2351 = vmatmul.bf16.vlgmr.msra.gmra.mxu1 %v1864_v0  ;;  %v3786_v55 = vld [vmem:[%s4610_s1 + $0x508] sm:$0xff]  ;;  %v3793_v0 = vld [vmem:[%s4610_s1 + $0x540] sm:$0xff] }
  0xaf   : > { %2399 = vmatpush.bf16.msrb.mxu1 %v3800_v26  ;;  %2365 = vmatmul.bf16.vlgmr.msra.gmra.mxu2 %v1876_v27  ;;  %v3794_v26 = vld [vmem:[%s4610_s1 + $0x548] sm:$0xff]  ;;  %v1918_v27 = vrot.slane %v1916_v19, 1 }
  0xb0   : > { %2413 = vmatpush.bf16.msrb.mxu2 %v3808_v60  ;;  %2379 = vmatmul.bf16.vlgmr.msra.gmra.mxu3 %v1888_v28  ;;  %v3802_v60 = vld [vmem:[%s4610_s1 + $0x588] sm:$0xff]  ;;  %v1926_v28 = vshrl.u32 %v3356_v34, 16 }
  0xb1   : > { %2427 = vmatpush.bf16.msrb.mxu3 %v3816_v15  ;;  %3826 = vset.pattern.permute.xlu0 %v3844_v22  ;;  %v3810_v15 = vld [vmem:[%s4610_s1 + $0x5c8] sm:$0xff] }
  0xb2   : > { %2386 = vmatpush.bf16.msrb.mxu0 %v3791_v61  ;;  %2447 = vperm.xlu0 %3826, %v3827_v50   ;;  %v1930_v61 = vrot.slane %v1928_v21, 1  ;;  %v903_v10 = vpop.f32.mrf.mxu2  ;;  %v877_v12 = vpop.f32.mrf.mxu0 }
  0xb3   : > { %2400 = vmatpush.bf16.msrb.mxu1 %v3799_v62  ;;  %v1933_v62 = vshll.u32 %v1839_v20, 16  ;;  %v917_v11 = vpop.f32.mrf.mxu3  ;;  %v891_v14 = vpop.f32.mrf.mxu1 }
  0xb4   : > { %2414 = vmatpush.bf16.msrb.mxu2 %v3807_v1  ;;  %v1895_v1 = vor.u32 %v1894_v13, %v1890_v53  ;;  %v892_v22 = vadd.f32 %v891_v14, %v877_v12 }
  0xb5   : > { %2428 = vmatpush.bf16.msrb.mxu3 %v3815_v2  ;;  %v1899_v2 = vrot.slane %v1897_v25, 1 }
  0xb6   : > { %2387 = vmatpush.bf16.msrb.mxu0 %v3790_v3  ;;  %v1907_v3 = vor.u32 %v1906_v56, %v1902_v54 }
  0xb7   : > { %2401 = vmatpush.bf16.msrb.mxu1 %v3798_v4  ;;  %v1911_v4 = vrot.slane %v1909_v57, 1  ;;  %v1900_v7 = vsel %vm1840_vm1, %v1895_v1, %v1899_v2 }
  0xb8   : > { %2415 = vmatpush.bf16.msrb.mxu2 %v3806_v5  ;;  %v3801_v5 = vld [vmem:[%s4610_s1 + $0x580] sm:$0xff] }
  0xb9   : > { %2429 = vmatpush.bf16.msrb.mxu3 %v3814_v6  ;;  %v3809_v6 = vld [vmem:[%s4610_s1 + $0x5c0] sm:$0xff]  ;;  %v1912_v29 = vsel %vm1840_vm1, %v1907_v3, %v1911_v4 }
  0xba   : > { %2388 = vmatpush.bf16.msrb.mxu0 %v3789_v35  ;;  %v1919_v35 = vor.u32 %v1918_v27, %v1914_v58  ;;  %v905_v16 = vpop.f32.mrf.mxu2 }
  0xbb   : > { %2402 = vmatpush.bf16.msrb.mxu1 %v3797_v36  ;;  %v1923_v36 = vrot.slane %v1921_v59, 1  ;;  %v919_v31 = vpop.f32.mrf.mxu3  ;;  %v906_v54 = vadd.f32 %v905_v16, %v892_v22 }
  0xbc   : > { %2416 = vmatpush.bf16.msrb.mxu2 %v3805_v37  ;;  %v1931_v37 = vor.u32 %v1930_v61, %v1926_v28 }
  0xbd   : > { %2430 = vmatpush.bf16.msrb.mxu3 %v3813_v38  ;;  %v1935_v38 = vrot.slane %v1933_v62, 1  ;;  %v1924_v41 = vsel %vm1840_vm1, %v1919_v35, %v1923_v36  ;;  %v920_v57 = vadd.f32 %v919_v31, %v906_v54 }
  0xbe   : > { %2389 = vmatpush.bf16.msrb.mxu0 %v3788_v43 }
  0xbf   : > { %2403 = vmatpush.bf16.msrb.mxu1 %v3796_v44  ;;  %v1936_v8 = vsel %vm1840_vm1, %v1931_v37, %v1935_v38 }
  0xc0   : > { %2417 = vmatpush.bf16.msrb.mxu2 %v3804_v24 }
  0xc1   : > { %2431 = vmatpush.bf16.msrb.mxu3 %v3812_v30 }
  0xc2   : > { %2390 = vmatpush.bf16.msrb.mxu0 %v3787_v45 }
  0xc3   : > { %2404 = vmatpush.bf16.msrb.mxu1 %v3795_v46 }
  0xc4   : > { %2418 = vmatpush.bf16.msrb.mxu2 %v3803_v51  ;;  %v904_v51 = vadd.f32 %v903_v10, %v890_v47 }
  0xc5   : > { %2432 = vmatpush.bf16.msrb.mxu3 %v3811_v52 }
  0xc6   : > { %2391 = vmatpush.bf16.msrb.mxu0 %v3786_v55  ;;  %v918_v19 = vadd.f32 %v917_v11, %v904_v51 }
  0xc7   : > { %2405 = vmatpush.bf16.msrb.mxu1 %v3794_v26 }
  0xc8   : > { %2419 = vmatpush.bf16.msrb.mxu2 %v3802_v60 }
  0xc9   : > { %2433 = vmatpush.bf16.msrb.mxu3 %v3810_v15 }
  0xca   : > { %2392 = vmatpush.bf16.msrb.mxu0 %v3785_v63  ;;  %v931_v43 = vpop.f32.mrf.mxu0 }
  0xcb   : > { %2406 = vmatpush.bf16.msrb.mxu1 %v3793_v0  ;;  %v945_v44 = vpop.f32.mrf.mxu1  ;;  %v932_v53 = vadd.f32 %v931_v43, %v918_v19 }
  0xcc   : > { %2420 = vmatpush.bf16.msrb.mxu2 %v3801_v5 }
  0xcd   : > { %2434 = vmatpush.bf16.msrb.mxu3 %v3809_v6  ;;  %2393 = vmatmul.bf16.vlgmr.msrb.gmra.mxu0 %v1900_v7  ;;  %v946_v55 = vadd.f32 %v945_v44, %v932_v53 }
  0xce   : > { %2407 = vmatmul.bf16.vlgmr.msrb.gmra.mxu1 %v1912_v29 }
  0xcf   : > { %2421 = vmatmul.bf16.vlgmr.msrb.gmra.mxu2 %v1924_v41 }
  0xd0   : > { %2435 = vmatmul.bf16.vlgmr.msrb.gmra.mxu3 %v1936_v8 }
  0xd2   : > { %v959_v17 = vpop.f32.mrf.mxu2  ;;  %v933_v23 = vpop.f32.mrf.mxu0 }
  0xd3   : > { %v973_v18 = vpop.f32.mrf.mxu3  ;;  %v947_v24 = vpop.f32.mrf.mxu1  ;;  %v960_v58 = vadd.f32 %v959_v17, %v946_v55  ;;  %v934_v60 = vadd.f32 %v933_v23, %v920_v57 }
  0xd5   : > { %v974_v27 = vadd.f32 %v973_v18, %v960_v58  ;;  %v948_v28 = vadd.f32 %v947_v24, %v934_v60 }
  0xda   : > { %v961_v30 = vpop.f32.mrf.mxu2 }
  0xdb   : > { %v975_v32 = vpop.f32.mrf.mxu3  ;;  %v962_v0 = vadd.f32 %v961_v30, %v948_v28 }
  0xdd   : > { %v976_v4 = vadd.f32 %v975_v32, %v962_v0 }
  0xea   : > { %v1544_v33 = vpop.f32.mrf.mxu0 }
  0xeb   : > { %v1558_v34 = vpop.f32.mrf.mxu1  ;;  %v1545_v61 = vadd.f32 %v1544_v33, %v974_v27 }
  0xed   : > { %v1559_v1 = vadd.f32 %v1558_v34, %v1545_v61 }
  0xf2   : > { %v1572_v39 = vpop.f32.mrf.mxu2  ;;  %v1546_v45 = vpop.f32.mrf.mxu0 }
  0xf3   : > { %v1586_v40 = vpop.f32.mrf.mxu3  ;;  %v1560_v46 = vpop.f32.mrf.mxu1  ;;  %v1573_v5 = vadd.f32 %v1572_v39, %v1559_v1  ;;  %v1547_v35 = vadd.f32 %v1546_v45, %v976_v4 }
  0xf5   : > { %v1587_v37 = vadd.f32 %v1586_v40, %v1573_v5  ;;  %v1561_v29 = vadd.f32 %v1560_v46, %v1547_v35 }
  0xfa   : > { %v1574_v48 = vpop.f32.mrf.mxu2 }
  0xfb   : > { %v1588_v49 = vpop.f32.mrf.mxu3  ;;  %v1575_v10 = vadd.f32 %v1574_v48, %v1561_v29 }
  0xfd   : > { %v1589_v31 = vadd.f32 %v1588_v49, %v1575_v10 }
 0x10a   : > { %v1600_v50 = vpop.f32.mrf.mxu0 }
 0x10b   : > { %v1614_v52 = vpop.f32.mrf.mxu1  ;;  %v1601_v41 = vadd.f32 %v1600_v50, %v1587_v37 }
 0x10d   : > { %v1615_v14 = vadd.f32 %v1614_v52, %v1601_v41 }
 0x112   : > { %v1628_v20 = vpop.f32.mrf.mxu2  ;;  %v1602_v13 = vpop.f32.mrf.mxu0 }
 0x113   : > { %v1642_v21 = vpop.f32.mrf.mxu3  ;;  %v1616_v25 = vpop.f32.mrf.mxu1  ;;  %v1629_v43 = vadd.f32 %v1628_v20, %v1615_v14  ;;  %v1603_v23 = vadd.f32 %v1602_v13, %v1589_v31 }
 0x115   : > { %v1643_v33 = vadd.f32 %v1642_v21, %v1629_v43  ;;  %v1617_v45 = vadd.f32 %v1616_v25, %v1603_v23 }
 0x11a   : > { %v1630_v26 = vpop.f32.mrf.mxu2 }
 0x11b   : > { %v1644_v56 = vpop.f32.mrf.mxu3  ;;  %v1631_v48 = vadd.f32 %v1630_v26, %v1617_v45 }
 0x11d   : > { %v1645_v22 = vadd.f32 %v1644_v56, %v1631_v48 }
 0x124   : > { %v2448_v40 = vpop.permute.xlu0 %2447 }
 0x12a   : > { %v2338_v59 = vpop.f32.mrf.mxu0 }
 0x12b   : > { %v2352_v15 = vpop.f32.mrf.mxu1 }
 0x12c   : > { %v2353_v2 = vadd.f32 %v2352_v15, %v2338_v59 }
 0x132   : > { %v2366_v62 = vpop.f32.mrf.mxu2  ;;  %v2340_v3 = vpop.f32.mrf.mxu0 }
 0x133   : > { %v2380_v63 = vpop.f32.mrf.mxu3  ;;  %v2354_v6 = vpop.f32.mrf.mxu1  ;;  %v2367_v36 = vadd.f32 %v2366_v62, %v2353_v2 }
 0x134   : > { %v2355_v9 = vadd.f32 %v2354_v6, %v2340_v3 }
 0x135   : > { %v2381_v8 = vadd.f32 %v2380_v63, %v2367_v36 }
 0x13a   : > { %v2368_v38 = vpop.f32.mrf.mxu2 }
 0x13b   : > { %v2382_v7 = vpop.f32.mrf.mxu3  ;;  %v2369_v16 = vadd.f32 %v2368_v38, %v2355_v9 }
 0x13d   : > { %v2383_v24 = vadd.f32 %v2382_v7, %v2369_v16 }
 0x14a   : > { %v2394_v42 = vpop.f32.mrf.mxu0 }
 0x14b   : > { %v2395_v11 = vadd.f32 %v2394_v42, %v2381_v8  ;;  %v2408_v12 = vpop.f32.mrf.mxu1 }
 0x14d   : > { %v2409_v44 = vadd.f32 %v2408_v12, %v2395_v11 }
 0x152   : > { %v2422_v17 = vpop.f32.mrf.mxu2  ;;  %v2396_v32 = vpop.f32.mrf.mxu0 }
 0x153   : > { %v2436_v18 = vpop.f32.mrf.mxu3  ;;  %v2423_v30 = vadd.f32 %v2422_v17, %v2409_v44  ;;  %v2397_v39 = vadd.f32 %v2396_v32, %v2383_v24  ;;  %v2410_v47 = vpop.f32.mrf.mxu1 }
 0x155   : > { %v2437_v34 = vadd.f32 %v2436_v18, %v2423_v30  ;;  %v2411_v50 = vadd.f32 %v2410_v47, %v2397_v39 }
 0x157   : > { %v2441_v46 = vadd.f32 %v2437_v34, %v1643_v33 }
 0x159   : > { %v2450_v51 = vadd.f32 %v2448_v40, %v2441_v46 }
 0x15a   : > { %v2424_v52 = vpop.f32.mrf.mxu2 }
 0x15b   : > { %v2452_v49 = vsub.f32 0.0, %v2450_v51  ;;  %v2425_v19 = vadd.f32 %v2424_v52, %v2411_v50  ;;  %v2438_v20 = vpop.f32.mrf.mxu3 }
 0x15d   : > { %v2454_v53 = vmul.f32 1.442695, %v2452_v49  ;;  %v2439_v13 = vadd.f32 %v2438_v20, %v2425_v19 }
 0x15f   : > { %3828 = vpow2.f32 %v2454_v53  ;;  %v2442_v54 = vadd.f32 %v2439_v13, %v1645_v22 }
 0x161   : > { %v2451_v21 = vadd.f32 %v2448_v40, %v2442_v54 }
 0x163   : > { %v2453_v55 = vsub.f32 0.0, %v2451_v21 }
 0x165   : > { %v3829_v57 = vpop.eup %3828  ;;  %v2456_v58 = vmul.f32 1.442695, %v2453_v55 }
 0x166   : > { %v2458_v25 = vadd.f32 1.0, %v3829_v57 }
 0x167   : > { %3830 = vpow2.f32 %v2456_v58 }
 0x168   : > { %3832 = vrcp.f32 %v2458_v25  ;;  %v2471_v28 = vand.u32 2147483648, %v2458_v25  ;;  %v2469_v61 = vand.u32 2147483647, %v2458_v25  ;;  %vm2465_vm3 = vweird.f32 %v2458_v25 }
 0x16a   : > { %v2472_v0 = vor.u32 1.1754944e-38, %v2471_v28  ;;  %vm2470_vm6 = vcmp.eq.f32.partialorder %v2469_v61, 8.507059e+37 }
 0x16d   : > { %v3831_v26 = vpop.eup %3830 }
 0x16e   : > { %v3833_v59 = vpop.eup %3832  ;;  %v2459_v60 = vadd.f32 1.0, %v3831_v26 }
 0x16f   : > { %v2461_v15 = vmul.f32 %v3833_v59, %v2458_v25  ;;  %vm2466_vm2 = vweird.f32 %v3833_v59 }
 0x170   : > { %3834 = vrcp.f32 %v2459_v60  ;;  %vm2467_vm5 = vmor %vm2465_vm3, %vm2466_vm2  ;;  %v2486_v5 = vand.u32 2147483648, %v2459_v60  ;;  %v2484_v35 = vand.u32 2147483647, %v2459_v60  ;;  %vm2480_vm8 = vweird.f32 %v2459_v60 }
 0x171   : > { %v2462_v27 = vsub.f32 1.0, %v2461_v15 }
 0x172   : > { %v2487_v37 = vor.u32 1.1754944e-38, %v2486_v5  ;;  %vm2485_vm10 = vcmp.eq.f32.partialorder %v2484_v35, 8.507059e+37 }
 0x173   : > { %v2463_v56 = vmul.f32 %v3833_v59, %v2462_v27 }
 0x175   : > { %v2464_v62 = vadd.f32 %v3833_v59, %v2463_v56 }
 0x176   : > { %v3835_v63 = vpop.eup %3834 }
 0x177   : > { %v2468_v1 = vsel %vm2467_vm5, %v3833_v59, %v2464_v62  ;;  %v2476_v2 = vmul.f32 %v3835_v63, %v2459_v60  ;;  %vm2481_vm7 = vweird.f32 %v3835_v63 }
 0x178   : > { %v2473_v3 = vsel %vm2470_vm6, %v2472_v0, %v2468_v1  ;;  %vm2482_vm9 = vmor %vm2480_vm8, %vm2481_vm7 }
 0x179   : > { %2491 = vst.msk [vmem:[%s172_s27] sm:$0xff] %vm2490_vm4, %v2473_v3  ;;  %v2477_v4 = vsub.f32 1.0, %v2476_v2 }
 0x17b   : > { %v2478_v6 = vmul.f32 %v3835_v63, %v2477_v4 }
 0x17d   : > { %v2479_v36 = vadd.f32 %v3835_v63, %v2478_v6 }
 0x17f   : > { %v2483_v38 = vsel %vm2482_vm9, %v3835_v63, %v2479_v36 }
 0x180   : > { %v2488_v7 = vsel %vm2485_vm10, %v2487_v37, %v2483_v38 }
 0x181   : > { %2492 = vst.msk [vmem:[%s172_s27 + $0x8] sm:$0xff] %vm2490_vm4, %v2488_v7 }
 0x182 PF: > { %s15_s14 = sadd.s32 1, %s3842_s14  }
 0x183   : > { %p12_p4 = scmp.ge.s32.totalorder %s15_s14, 4  }
 0x185   :  { %14 = sbr.rel (!%p12_p4) target bundleno = 3 (0x3), region = 64 }

// kernel: point_flow_forward.8
= control target key start
LH: loop header
LB: loop body
LE: loop exit
PB: predicated region body
PF: predicated region fallthrough
CT: control target
= control target key end

     0   :  { %s7445_s12 = smov 0   ;;  %s10539_s0 = inlined_call_operand.vmem [shape: bf16[2,32,512], index: 0, kind: input, shape index: {}]   ;;  %s10540_s1 = inlined_call_operand.vmem [shape: bf16[3,512,512], index: 1, kind: input, shape index: {}]   ;;  %s10541_s2 = inlined_call_operand.vmem [shape: bf16[3,512,16], index: 2, kind: input, shape index: {}]   ;;  %s10542_s3 = inlined_call_operand.vmem [shape: f32[2,16,16], index: 3, kind: output, shape index: {}]  }
   0x1 LB: > { %s4570_s13 = sadd.s32 4294967295, %s7422_s12   ;;  %p4574_p0 = scmp.ge.s32.totalorder %s7422_s12, 1  ;;  %s7422_s12 = sphi %s7445_s12, %s13_s12  }
   0x2   : > { %p137_p1 = scmp.lt.s32.totalorder %s7422_s12, 3 }
   0x4   : > { %p138_p2 = pnand %p4574_p0, %p137_p1 }
   0x5   : > { %p161_p3 = scmp.lt.s32.totalorder (!%p138_p2), %s4570_s13, 1 }
   0x6   : > { %141 = sbr.rel (%p138_p2) target bundleno = 732 (0x2dc), region = 32 }
   0xb   : > { %v4821_v0 = vld [vmem:[%s10540_s1 + $0x4e0] sm:$0xf]  ;;  %v7077_v1 = vld [vmem:[%s10540_s1 + $0x4ec] sm:$0xf0]  ;;  %s10544_s13 = smov (!%p161_p3, %s4570_s13), 1  ;;  %vm4512_vm2 = vcmask 130048  }
   0xc   : > { %v4949_v2 = vld [vmem:[%s10540_s1 + $0x5e0] sm:$0xf]  ;;  %v4822_v3 = vor.u32 %v7077_v1, %v4821_v0  ;;  %v7109_v4 = vld [vmem:[%s10540_s1 + $0x5ec] sm:$0xf0]  ;;  %s6917_s10 = sshll.u32 %s10544_s13, 6  ;;  %s6918_s6 = sshll.u32 %s10544_s13, 4 }
   0xd   : > { %v5077_v5 = vld [vmem:[%s10540_s1 + $0x6e0] sm:$0xf]  ;;  %v7141_v6 = vld [vmem:[%s10540_s1 + $0x6ec] sm:$0xf0]  ;;  %v4950_v7 = vor.u32 %v7109_v4, %v4949_v2  ;;  %s7769_s21 = scalar_lea.vmem %s10539_s0, %s6917_s10  ;;  %vm1333_vm0 = vsmask.f32 4352  ;;  %s170_s9 = scalar_lea.vmem %s10542_s3, %s6918_s6 }
   0xe   : > { %v5078_v8 = vor.u32 %v7141_v6, %v5077_v5  ;;  %v5205_v9 = vld [vmem:[%s10540_s1 + $0x7e0] sm:$0xf]  ;;  %v7173_v10 = vld [vmem:[%s10540_s1 + $0x7ec] sm:$0xf0]  ;;  %1095 = vmatpush.bf16.msra.mxu0 %v4822_v3  ;;  %vm2431_vm1 = vsmask.f32 7424 }
   0xf   : > { %v4805_v11 = vld [vmem:[%s10540_s1 + $0x4c0] sm:$0xf]  ;;  %v5206_v12 = vor.u32 %v7173_v10, %v5205_v9  ;;  %v7073_v13 = vld [vmem:[%s10540_s1 + $0x4cc] sm:$0xf0]  ;;  %1109 = vmatpush.bf16.msra.mxu1 %v4950_v7 }
  0x10   : > { %v4933_v14 = vld [vmem:[%s10540_s1 + $0x5c0] sm:$0xf]  ;;  %v7105_v15 = vld [vmem:[%s10540_s1 + $0x5cc] sm:$0xf0]  ;;  %1123 = vmatpush.bf16.msra.mxu2 %v5078_v8  ;;  %v4806_v16 = vor.u32 %v7073_v13, %v4805_v11 }
  0x11   : > { %v4934_v17 = vor.u32 %v7105_v15, %v4933_v14  ;;  %v5061_v18 = vld [vmem:[%s10540_s1 + $0x6c0] sm:$0xf]  ;;  %v7137_v19 = vld [vmem:[%s10540_s1 + $0x6cc] sm:$0xf0]  ;;  %1137 = vmatpush.bf16.msra.mxu3 %v5206_v12 }
  0x12   : > { %v5189_v20 = vld [vmem:[%s10540_s1 + $0x7c0] sm:$0xf]  ;;  %v5062_v21 = vor.u32 %v7137_v19, %v5061_v18  ;;  %v7169_v22 = vld [vmem:[%s10540_s1 + $0x7cc] sm:$0xf0]  ;;  %1096 = vmatpush.bf16.msra.mxu0 %v4806_v16 }
  0x13   : > { %v4789_v23 = vld [vmem:[%s10540_s1 + $0x4a0] sm:$0xf]  ;;  %v7069_v24 = vld [vmem:[%s10540_s1 + $0x4ac] sm:$0xf0]  ;;  %v5190_v25 = vor.u32 %v7169_v22, %v5189_v20  ;;  %1110 = vmatpush.bf16.msra.mxu1 %v4934_v17 }
  0x14   : > { %v4917_v26 = vld [vmem:[%s10540_s1 + $0x5a0] sm:$0xf]  ;;  %v7101_v27 = vld [vmem:[%s10540_s1 + $0x5ac] sm:$0xf0]  ;;  %v4790_v29 = vor.u32 %v7069_v24, %v4789_v23  ;;  %1124 = vmatpush.bf16.msra.mxu2 %v5062_v21 }
  0x15   : > { %v5045_v28 = vld [vmem:[%s10540_s1 + $0x6a0] sm:$0xf]  ;;  %v7133_v30 = vld [vmem:[%s10540_s1 + $0x6ac] sm:$0xf0]  ;;  %v4918_v33 = vor.u32 %v7101_v27, %v4917_v26  ;;  %1138 = vmatpush.bf16.msra.mxu3 %v5190_v25 }
  0x16   : > { %v5173_v31 = vld [vmem:[%s10540_s1 + $0x7a0] sm:$0xf]  ;;  %v7165_v32 = vld [vmem:[%s10540_s1 + $0x7ac] sm:$0xf0]  ;;  %v5046_v34 = vor.u32 %v7133_v30, %v5045_v28  ;;  %1097 = vmatpush.bf16.msra.mxu0 %v4790_v29  ;;  %v7075_v28 = vld [vmem:[%s10540_s1 + $0x4e4] sm:$0xf] }
  0x17   : > { %v4773_v35 = vld [vmem:[%s10540_s1 + $0x480] sm:$0xf]  ;;  %v7065_v36 = vld [vmem:[%s10540_s1 + $0x48c] sm:$0xf0]  ;;  %v5174_v38 = vor.u32 %v7165_v32, %v5173_v31  ;;  %1111 = vmatpush.bf16.msra.mxu1 %v4918_v33  ;;  %v4823_v29 = vld [vmem:[%s10540_s1 + $0x4f0] sm:$0xf0] }
  0x18   : > { %v4901_v37 = vld [vmem:[%s10540_s1 + $0x580] sm:$0xf]  ;;  %v7097_v39 = vld [vmem:[%s10540_s1 + $0x58c] sm:$0xf0]  ;;  %v4774_v44 = vor.u32 %v7065_v36, %v4773_v35  ;;  %1125 = vmatpush.bf16.msra.mxu2 %v5046_v34  ;;  %v7107_v30 = vld [vmem:[%s10540_s1 + $0x5e4] sm:$0xf] }
  0x19   : > { %v5029_v40 = vld [vmem:[%s10540_s1 + $0x680] sm:$0xf]  ;;  %v7129_v41 = vld [vmem:[%s10540_s1 + $0x68c] sm:$0xf0]  ;;  %v4902_v45 = vor.u32 %v7097_v39, %v4901_v37  ;;  %1139 = vmatpush.bf16.msra.mxu3 %v5174_v38  ;;  %v4951_v32 = vld [vmem:[%s10540_s1 + $0x5f0] sm:$0xf0] }
  0x1a   : > { %v5157_v42 = vld [vmem:[%s10540_s1 + $0x780] sm:$0xf]  ;;  %v7161_v43 = vld [vmem:[%s10540_s1 + $0x78c] sm:$0xf0]  ;;  %v5030_v46 = vor.u32 %v7129_v41, %v5029_v40  ;;  %1098 = vmatpush.bf16.msra.mxu0 %v4774_v44  ;;  %v7139_v33 = vld [vmem:[%s10540_s1 + $0x6e4] sm:$0xf]  ;;  %v4826_v40 = vor.u32 %v7075_v28, %v4823_v29  ;;  %v4954_v41 = vor.u32 %v7107_v30, %v4951_v32 }
  0x1b   : > { %v4757_v47 = vld [vmem:[%s10540_s1 + $0x460] sm:$0xf]  ;;  %v7061_v48 = vld [vmem:[%s10540_s1 + $0x46c] sm:$0xf0]  ;;  %v5158_v50 = vor.u32 %v7161_v43, %v5157_v42  ;;  %1112 = vmatpush.bf16.msra.mxu1 %v4902_v45  ;;  %v5079_v34 = vld [vmem:[%s10540_s1 + $0x6f0] sm:$0xf0] }
  0x1c   : > { %v4885_v49 = vld [vmem:[%s10540_s1 + $0x560] sm:$0xf]  ;;  %v7093_v51 = vld [vmem:[%s10540_s1 + $0x56c] sm:$0xf0]  ;;  %v4758_v56 = vor.u32 %v7061_v48, %v4757_v47  ;;  %1126 = vmatpush.bf16.msra.mxu2 %v5030_v46  ;;  %v7171_v37 = vld [vmem:[%s10540_s1 + $0x7e4] sm:$0xf]  ;;  %v5082_v42 = vor.u32 %v7139_v33, %v5079_v34 }
  0x1d   : > { %v5013_v52 = vld [vmem:[%s10540_s1 + $0x660] sm:$0xf]  ;;  %v7125_v53 = vld [vmem:[%s10540_s1 + $0x66c] sm:$0xf0]  ;;  %v4886_v57 = vor.u32 %v7093_v51, %v4885_v49  ;;  %1140 = vmatpush.bf16.msra.mxu3 %v5158_v50  ;;  %v5207_v38 = vld [vmem:[%s10540_s1 + $0x7f0] sm:$0xf0] }
  0x1e   : > { %v5141_v54 = vld [vmem:[%s10540_s1 + $0x760] sm:$0xf]  ;;  %v7157_v55 = vld [vmem:[%s10540_s1 + $0x76c] sm:$0xf0]  ;;  %v5014_v58 = vor.u32 %v7125_v53, %v5013_v52  ;;  %1099 = vmatpush.bf16.msra.mxu0 %v4758_v56  ;;  %v7071_v43 = vld [vmem:[%s10540_s1 + $0x4c4] sm:$0xf]  ;;  %v5210_v46 = vor.u32 %v7171_v37, %v5207_v38 }
  0x1f   : > { %v4741_v59 = vld [vmem:[%s10540_s1 + $0x440] sm:$0xf]  ;;  %v7057_v60 = vld [vmem:[%s10540_s1 + $0x44c] sm:$0xf0]  ;;  %v5142_v62 = vor.u32 %v7157_v55, %v5141_v54  ;;  %1113 = vmatpush.bf16.msra.mxu1 %v4886_v57  ;;  %v4807_v44 = vld [vmem:[%s10540_s1 + $0x4d0] sm:$0xf0] }
  0x20   : > { %v4869_v61 = vld [vmem:[%s10540_s1 + $0x540] sm:$0xf]  ;;  %v7089_v63 = vld [vmem:[%s10540_s1 + $0x54c] sm:$0xf0]  ;;  %v4742_v4 = vor.u32 %v7057_v60, %v4741_v59  ;;  %1127 = vmatpush.bf16.msra.mxu2 %v5014_v58  ;;  %v7103_v45 = vld [vmem:[%s10540_s1 + $0x5c4] sm:$0xf]  ;;  %v4810_v52 = vor.u32 %v7071_v43, %v4807_v44 }
  0x21   : > { %v4997_v0 = vld [vmem:[%s10540_s1 + $0x640] sm:$0xf]  ;;  %v7121_v1 = vld [vmem:[%s10540_s1 + $0x64c] sm:$0xf0]  ;;  %v4870_v5 = vor.u32 %v7089_v63, %v4869_v61  ;;  %1141 = vmatpush.bf16.msra.mxu3 %v5142_v62  ;;  %v4935_v47 = vld [vmem:[%s10540_s1 + $0x5d0] sm:$0xf0] }
  0x22   : > { %v5125_v2 = vld [vmem:[%s10540_s1 + $0x740] sm:$0xf]  ;;  %v7153_v3 = vld [vmem:[%s10540_s1 + $0x74c] sm:$0xf0]  ;;  %v4998_v6 = vor.u32 %v7121_v1, %v4997_v0  ;;  %1100 = vmatpush.bf16.msra.mxu0 %v4742_v4  ;;  %v7135_v48 = vld [vmem:[%s10540_s1 + $0x6c4] sm:$0xf]  ;;  %v4938_v53 = vor.u32 %v7103_v45, %v4935_v47 }
  0x23   : > { %v4725_v7 = vld [vmem:[%s10540_s1 + $0x420] sm:$0xf]  ;;  %v7053_v8 = vld [vmem:[%s10540_s1 + $0x42c] sm:$0xf0]  ;;  %v5126_v10 = vor.u32 %v7153_v3, %v5125_v2  ;;  %1114 = vmatpush.bf16.msra.mxu1 %v4870_v5  ;;  %v5063_v49 = vld [vmem:[%s10540_s1 + $0x6d0] sm:$0xf0] }
  0x24   : > { %v4853_v9 = vld [vmem:[%s10540_s1 + $0x520] sm:$0xf]  ;;  %v7085_v11 = vld [vmem:[%s10540_s1 + $0x52c] sm:$0xf0]  ;;  %v4726_v16 = vor.u32 %v7053_v8, %v4725_v7  ;;  %1128 = vmatpush.bf16.msra.mxu2 %v4998_v6  ;;  %v7167_v50 = vld [vmem:[%s10540_s1 + $0x7c4] sm:$0xf]  ;;  %v5066_v54 = vor.u32 %v7135_v48, %v5063_v49 }
  0x25   : > { %v4981_v12 = vld [vmem:[%s10540_s1 + $0x620] sm:$0xf]  ;;  %v7117_v13 = vld [vmem:[%s10540_s1 + $0x62c] sm:$0xf0]  ;;  %v4854_v19 = vor.u32 %v7085_v11, %v4853_v9  ;;  %1142 = vmatpush.bf16.msra.mxu3 %v5126_v10  ;;  %v5191_v51 = vld [vmem:[%s10540_s1 + $0x7d0] sm:$0xf0] }
  0x26   : > { %v5109_v14 = vld [vmem:[%s10540_s1 + $0x720] sm:$0xf]  ;;  %v7149_v15 = vld [vmem:[%s10540_s1 + $0x72c] sm:$0xf0]  ;;  %v4982_v20 = vor.u32 %v7117_v13, %v4981_v12  ;;  %1101 = vmatpush.bf16.msra.mxu0 %v4726_v16  ;;  %v7067_v55 = vld [vmem:[%s10540_s1 + $0x4a4] sm:$0xf]  ;;  %v5194_v58 = vor.u32 %v7167_v50, %v5191_v51 }
  0x27   : > { %v4709_v17 = vld [vmem:[%s10540_s1 + $0x400] sm:$0xf]  ;;  %v7049_v18 = vld [vmem:[%s10540_s1 + $0x40c] sm:$0xf0]  ;;  %v5110_v24 = vor.u32 %v7149_v15, %v5109_v14  ;;  %1115 = vmatpush.bf16.msra.mxu1 %v4854_v19  ;;  %v4791_v56 = vld [vmem:[%s10540_s1 + $0x4b0] sm:$0xf0] }
  0x28   : > { %v4837_v21 = vld [vmem:[%s10540_s1 + $0x500] sm:$0xf]  ;;  %v7081_v22 = vld [vmem:[%s10540_s1 + $0x50c] sm:$0xf0]  ;;  %v4710_v31 = vor.u32 %v7049_v18, %v4709_v17  ;;  %1129 = vmatpush.bf16.msra.mxu2 %v4982_v20  ;;  %v7099_v57 = vld [vmem:[%s10540_s1 + $0x5a4] sm:$0xf]  ;;  %v4794_v0 = vor.u32 %v7067_v55, %v4791_v56 }
  0x29   : > { %v4965_v23 = vld [vmem:[%s10540_s1 + $0x600] sm:$0xf]  ;;  %v7113_v25 = vld [vmem:[%s10540_s1 + $0x60c] sm:$0xf0]  ;;  %v4838_v35 = vor.u32 %v7081_v22, %v4837_v21  ;;  %1143 = vmatpush.bf16.msra.mxu3 %v5110_v24  ;;  %v4919_v59 = vld [vmem:[%s10540_s1 + $0x5b0] sm:$0xf0] }
  0x2a   : > { %v5093_v26 = vld [vmem:[%s10540_s1 + $0x700] sm:$0xf]  ;;  %v7145_v27 = vld [vmem:[%s10540_s1 + $0x70c] sm:$0xf0]  ;;  %v4966_v36 = vor.u32 %v7113_v25, %v4965_v23  ;;  %1102 = vmatpush.bf16.msra.mxu0 %v4710_v31  ;;  %v7131_v60 = vld [vmem:[%s10540_s1 + $0x6a4] sm:$0xf]  ;;  %v4922_v2 = vor.u32 %v7099_v57, %v4919_v59 }
  0x2b   : > { %v5094_v39 = vor.u32 %v7145_v27, %v5093_v26  ;;  %1116 = vmatpush.bf16.msra.mxu1 %v4838_v35  ;;  %v5047_v61 = vld [vmem:[%s10540_s1 + $0x6b0] sm:$0xf0]  ;;  %v7163_v62 = vld [vmem:[%s10540_s1 + $0x7a4] sm:$0xf]  ;;  %v7775_v23 = vld [vmem:[%s7769_s21 + $0x18] sm:$0xff] }
  0x2c   : > { %1130 = vmatpush.bf16.msra.mxu2 %v4966_v36  ;;  %v5175_v63 = vld [vmem:[%s10540_s1 + $0x7b0] sm:$0xf0]  ;;  %v7063_v1 = vld [vmem:[%s10540_s1 + $0x484] sm:$0xf]  ;;  %v5050_v3 = vor.u32 %v7131_v60, %v5047_v61  ;;  %v177_v24 = vld [vmem:[%s7769_s21 + $0x28] sm:$0xff]  ;;  %v441_v26 = vunpack.c.l.b16 %v7775_v23  ;;  %v442_v28 = vunpack.c.h.b16 %v7775_v23 }
  0x2d   : > { %1144 = vmatpush.bf16.msra.mxu3 %v5094_v39  ;;  %v4775_v4 = vld [vmem:[%s10540_s1 + $0x490] sm:$0xf0]  ;;  %v7095_v5 = vld [vmem:[%s10540_s1 + $0x584] sm:$0xf]  ;;  %v5178_v7 = vor.u32 %v7163_v62, %v5175_v63  ;;  %v7782_v27 = vunpack.c.l.b16 %v177_v24  ;;  %v7789_v32 = vunpack.c.h.b16 %v177_v24  ;;  %v8406_v23 = vld [vmem:[%s10540_s1 + $0xa0] sm:$0xf] }
  0x2e   : > { %1151 = vmatpush.bf16.msrb.mxu0 %v4826_v40  ;;  %v4903_v6 = vld [vmem:[%s10540_s1 + $0x590] sm:$0xf0]  ;;  %v7127_v8 = vld [vmem:[%s10540_s1 + $0x684] sm:$0xf]  ;;  %v4778_v13 = vor.u32 %v7063_v1, %v4775_v4 }
  0x2f   : > { %1165 = vmatpush.bf16.msrb.mxu1 %v4954_v41  ;;  %v5031_v9 = vld [vmem:[%s10540_s1 + $0x690] sm:$0xf0]  ;;  %v7159_v10 = vld [vmem:[%s10540_s1 + $0x784] sm:$0xf]  ;;  %v4906_v16 = vor.u32 %v7095_v5, %v4903_v6  ;;  %v7806_v40 = vpack.c.b16 %v7782_v27, %v441_v26  ;;  %v7820_v45 = vpack.c.b16 %v7789_v32, %v442_v28 }
  0x30   : > { %1179 = vmatpush.bf16.msrb.mxu2 %v5082_v42  ;;  %v5159_v11 = vld [vmem:[%s10540_s1 + $0x790] sm:$0xf0]  ;;  %v7059_v12 = vld [vmem:[%s10540_s1 + $0x464] sm:$0xf]  ;;  %v5034_v17 = vor.u32 %v7127_v8, %v5031_v9 }
  0x31   : > { %1193 = vmatpush.bf16.msrb.mxu3 %v5210_v46  ;;  %v4759_v14 = vld [vmem:[%s10540_s1 + $0x470] sm:$0xf0]  ;;  %v7091_v15 = vld [vmem:[%s10540_s1 + $0x564] sm:$0xf]  ;;  %v5162_v21 = vor.u32 %v7159_v10, %v5159_v11  ;;  %1131 = vmatmul.bf16.vlgmr.msra.gmra.mxu2 %v7806_v40 }
  0x32   : > { %1152 = vmatpush.bf16.msrb.mxu0 %v4810_v52  ;;  %v4887_v18 = vld [vmem:[%s10540_s1 + $0x570] sm:$0xf0]  ;;  %v7123_v19 = vld [vmem:[%s10540_s1 + $0x664] sm:$0xf]  ;;  %v4762_v31 = vor.u32 %v7059_v12, %v4759_v14  ;;  %1145 = vmatmul.bf16.vlgmr.msra.gmra.mxu3 %v7820_v45  ;;  %v4829_v12 = vld [vmem:[%s10540_s1 + $0x4e8] sm:$0xf] }
  0x33   : > { %1166 = vmatpush.bf16.msrb.mxu1 %v4938_v53  ;;  %v5015_v20 = vld [vmem:[%s10540_s1 + $0x670] sm:$0xf0]  ;;  %v7155_v22 = vld [vmem:[%s10540_s1 + $0x764] sm:$0xf]  ;;  %v4890_v35 = vor.u32 %v7091_v15, %v4887_v18  ;;  %v4957_v14 = vld [vmem:[%s10540_s1 + $0x5e8] sm:$0xf] }
  0x34   : > { %1180 = vmatpush.bf16.msrb.mxu2 %v5066_v54  ;;  %v5143_v25 = vld [vmem:[%s10540_s1 + $0x770] sm:$0xf0]  ;;  %v176_v30 = vld [vmem:[%s7769_s21 + $0x20] sm:$0xff]  ;;  %v5018_v36 = vor.u32 %v7123_v19, %v5015_v20  ;;  %v7142_v18 = vld [vmem:[%s10540_s1 + $0x6f4] sm:$0xf0] }
  0x35   : > { %1194 = vmatpush.bf16.msrb.mxu3 %v5194_v58  ;;  %v7786_v29 = vld [vmem:[%s7769_s21 + $0x10] sm:$0xff]  ;;  %v7792_v34 = vunpack.c.l.b16 %v176_v30  ;;  %v7055_v37 = vld [vmem:[%s10540_s1 + $0x444] sm:$0xf]  ;;  %v5146_v41 = vor.u32 %v7155_v22, %v5143_v25  ;;  %v7835_v50 = vunpack.c.h.b16 %v176_v30  ;;  %v7174_v22 = vld [vmem:[%s10540_s1 + $0x7f4] sm:$0xf0] }
  0x36   : > { %1153 = vmatpush.bf16.msrb.mxu0 %v4794_v0  ;;  %v439_v33 = vunpack.c.l.b16 %v7786_v29  ;;  %v4743_v38 = vld [vmem:[%s10540_s1 + $0x450] sm:$0xf0]  ;;  %v7087_v39 = vld [vmem:[%s10540_s1 + $0x544] sm:$0xf]  ;;  %v440_v49 = vunpack.c.h.b16 %v7786_v29  ;;  %v8454_v29 = vld [vmem:[%s10540_s1 + $0x3a0] sm:$0xf] }
  0x37   : > { %1167 = vmatpush.bf16.msrb.mxu1 %v4922_v2  ;;  %v4871_v42 = vld [vmem:[%s10540_s1 + $0x550] sm:$0xf0]  ;;  %v7119_v43 = vld [vmem:[%s10540_s1 + $0x644] sm:$0xf]  ;;  %v4746_v51 = vor.u32 %v7055_v37, %v4743_v38  ;;  %v4941_v37 = vld [vmem:[%s10540_s1 + $0x5c8] sm:$0xf] }
  0x38   : > { %1181 = vmatpush.bf16.msrb.mxu2 %v5050_v3  ;;  %v4999_v44 = vld [vmem:[%s10540_s1 + $0x650] sm:$0xf0]  ;;  %v7825_v46 = vpack.c.b16 %v7792_v34, %v439_v33  ;;  %v7151_v47 = vld [vmem:[%s10540_s1 + $0x744] sm:$0xf]  ;;  %v4874_v52 = vor.u32 %v7087_v39, %v4871_v42  ;;  %v7850_v57 = vpack.c.b16 %v7835_v50, %v440_v49  ;;  %v7106_v39 = vld [vmem:[%s10540_s1 + $0x5d4] sm:$0xf0] }
  0x39   : > { %1195 = vmatpush.bf16.msrb.mxu3 %v5178_v7  ;;  %v5127_v48 = vld [vmem:[%s10540_s1 + $0x750] sm:$0xf0]  ;;  %v5002_v53 = vor.u32 %v7119_v43, %v4999_v44  ;;  %v7051_v54 = vld [vmem:[%s10540_s1 + $0x424] sm:$0xf]  ;;  %v7138_v42 = vld [vmem:[%s10540_s1 + $0x6d4] sm:$0xf0] }
  0x3a   : > { %1154 = vmatpush.bf16.msrb.mxu0 %v4778_v13  ;;  %v4727_v55 = vld [vmem:[%s10540_s1 + $0x430] sm:$0xf0]  ;;  %v7083_v56 = vld [vmem:[%s10540_s1 + $0x524] sm:$0xf]  ;;  %v5130_v58 = vor.u32 %v7151_v47, %v5127_v48  ;;  %1117 = vmatmul.bf16.vlgmr.msra.gmra.mxu1 %v7850_v57  ;;  %v7078_v13 = vld [vmem:[%s10540_s1 + $0x4f4] sm:$0xf0]  ;;  %v4942_v48 = vor.u32 %v7106_v39, %v4941_v37 }
  0x3b   : > { %1168 = vmatpush.bf16.msrb.mxu1 %v4906_v16  ;;  %v4855_v59 = vld [vmem:[%s10540_s1 + $0x530] sm:$0xf0]  ;;  %v7115_v60 = vld [vmem:[%s10540_s1 + $0x624] sm:$0xf]  ;;  %1103 = vmatmul.bf16.vlgmr.msra.gmra.mxu0 %v7825_v46  ;;  %v4730_v0 = vor.u32 %v7051_v54, %v4727_v55  ;;  %v7110_v16 = vld [vmem:[%s10540_s1 + $0x5f4] sm:$0xf0]  ;;  %v4830_v25 = vor.u32 %v7078_v13, %v4829_v12 }
  0x3c   : > { %1182 = vmatpush.bf16.msrb.mxu2 %v5034_v17  ;;  %v4983_v61 = vld [vmem:[%s10540_s1 + $0x630] sm:$0xf0]  ;;  %v7147_v62 = vld [vmem:[%s10540_s1 + $0x724] sm:$0xf]  ;;  %v4858_v3 = vor.u32 %v7083_v56, %v4855_v59  ;;  %v5085_v17 = vld [vmem:[%s10540_s1 + $0x6e8] sm:$0xf]  ;;  %v4958_v30 = vor.u32 %v7110_v16, %v4957_v14 }
  0x3d   : > { %1196 = vmatpush.bf16.msrb.mxu3 %v5162_v21  ;;  %v5111_v63 = vld [vmem:[%s10540_s1 + $0x730] sm:$0xf0]  ;;  %v7047_v1 = vld [vmem:[%s10540_s1 + $0x404] sm:$0xf]  ;;  %v4986_v4 = vor.u32 %v7115_v60, %v4983_v61  ;;  %v5213_v21 = vld [vmem:[%s10540_s1 + $0x7e8] sm:$0xf] }
  0x3e   : > { %1155 = vmatpush.bf16.msrb.mxu0 %v4762_v31  ;;  %v4711_v2 = vld [vmem:[%s10540_s1 + $0x410] sm:$0xf0]  ;;  %v7079_v5 = vld [vmem:[%s10540_s1 + $0x504] sm:$0xf]  ;;  %v5114_v8 = vor.u32 %v7147_v62, %v5111_v63  ;;  %v5086_v31 = vor.u32 %v7142_v18, %v5085_v17  ;;  %v5214_v38 = vor.u32 %v7174_v22, %v5213_v21  ;;  %v5197_v43 = vld [vmem:[%s10540_s1 + $0x7c8] sm:$0xf] }
  0x3f   : > { %1169 = vmatpush.bf16.msrb.mxu1 %v4890_v35  ;;  %v4839_v6 = vld [vmem:[%s10540_s1 + $0x510] sm:$0xf0]  ;;  %v7111_v7 = vld [vmem:[%s10540_s1 + $0x604] sm:$0xf]  ;;  %v4714_v15 = vor.u32 %v7047_v1, %v4711_v2  ;;  %v4813_v35 = vld [vmem:[%s10540_s1 + $0x4c8] sm:$0xf] }
  0x40   : > { %1183 = vmatpush.bf16.msrb.mxu2 %v5018_v36  ;;  %v4967_v9 = vld [vmem:[%s10540_s1 + $0x610] sm:$0xf0]  ;;  %v7143_v10 = vld [vmem:[%s10540_s1 + $0x704] sm:$0xf]  ;;  %v4842_v19 = vor.u32 %v7079_v5, %v4839_v6  ;;  %v7074_v36 = vld [vmem:[%s10540_s1 + $0x4d4] sm:$0xf0] }
  0x41   : > { %1197 = vmatpush.bf16.msrb.mxu3 %v5146_v41  ;;  %v5095_v11 = vld [vmem:[%s10540_s1 + $0x710] sm:$0xf0]  ;;  %v4970_v20 = vor.u32 %v7111_v7, %v4967_v9  ;;  %v5069_v41 = vld [vmem:[%s10540_s1 + $0x6c8] sm:$0xf]  ;;  %v7170_v44 = vld [vmem:[%s10540_s1 + $0x7d4] sm:$0xf0]  ;;  %v4814_v47 = vor.u32 %v7074_v36, %v4813_v35 }
  0x42   : > { %1156 = vmatpush.bf16.msrb.mxu0 %v4746_v51  ;;  %v5098_v24 = vor.u32 %v7143_v10, %v5095_v11  ;;  %v5070_v51 = vor.u32 %v7138_v42, %v5069_v41  ;;  %v4925_v54 = vld [vmem:[%s10540_s1 + $0x5a8] sm:$0xf]  ;;  %v5198_v55 = vor.u32 %v7170_v44, %v5197_v43  ;;  %v7102_v56 = vld [vmem:[%s10540_s1 + $0x5b4] sm:$0xf0] }
  0x43   : > { %1170 = vmatpush.bf16.msrb.mxu1 %v4874_v52  ;;  %v4797_v52 = vld [vmem:[%s10540_s1 + $0x4a8] sm:$0xf]  ;;  %v7134_v59 = vld [vmem:[%s10540_s1 + $0x6b4] sm:$0xf0]  ;;  %v4926_v63 = vor.u32 %v7102_v56, %v4925_v54 }
  0x44   : > { %1184 = vmatpush.bf16.msrb.mxu2 %v5002_v53  ;;  %v7070_v53 = vld [vmem:[%s10540_s1 + $0x4b4] sm:$0xf0]  ;;  %v5181_v60 = vld [vmem:[%s10540_s1 + $0x7a8] sm:$0xf] }
  0x45   : > { %1198 = vmatpush.bf16.msrb.mxu3 %v5130_v58  ;;  %v5053_v58 = vld [vmem:[%s10540_s1 + $0x6a8] sm:$0xf]  ;;  %v7166_v61 = vld [vmem:[%s10540_s1 + $0x7b4] sm:$0xf0]  ;;  %v4798_v62 = vor.u32 %v7070_v53, %v4797_v52 }
  0x46   : > { %1157 = vmatpush.bf16.msrb.mxu0 %v4730_v0  ;;  %v5054_v0 = vor.u32 %v7134_v59, %v5053_v58  ;;  %v4781_v1 = vld [vmem:[%s10540_s1 + $0x488] sm:$0xf]  ;;  %v7066_v2 = vld [vmem:[%s10540_s1 + $0x494] sm:$0xf0] }
  0x47   : > { %1171 = vmatpush.bf16.msrb.mxu1 %v4858_v3  ;;  %v4909_v3 = vld [vmem:[%s10540_s1 + $0x588] sm:$0xf]  ;;  %v7098_v5 = vld [vmem:[%s10540_s1 + $0x594] sm:$0xf0]  ;;  %v4782_v10 = vor.u32 %v7066_v2, %v4781_v1 }
  0x48   : > { %1185 = vmatpush.bf16.msrb.mxu2 %v4986_v4  ;;  %v5182_v4 = vor.u32 %v7166_v61, %v5181_v60  ;;  %v5037_v6 = vld [vmem:[%s10540_s1 + $0x688] sm:$0xf]  ;;  %v7130_v7 = vld [vmem:[%s10540_s1 + $0x694] sm:$0xf0]  ;;  %v4910_v11 = vor.u32 %v7098_v5, %v4909_v3 }
  0x49   : > { %1199 = vmatpush.bf16.msrb.mxu3 %v5114_v8  ;;  %v5165_v8 = vld [vmem:[%s10540_s1 + $0x788] sm:$0xf]  ;;  %v7162_v9 = vld [vmem:[%s10540_s1 + $0x794] sm:$0xf0]  ;;  %v5038_v12 = vor.u32 %v7130_v7, %v5037_v6 }
  0x4a   : > { %1158 = vmatpush.bf16.msrb.mxu0 %v4714_v15  ;;  %v4765_v13 = vld [vmem:[%s10540_s1 + $0x468] sm:$0xf]  ;;  %v7062_v14 = vld [vmem:[%s10540_s1 + $0x474] sm:$0xf0]  ;;  %v5166_v16 = vor.u32 %v7162_v9, %v5165_v8  ;;  %v7076_v8 = vld [vmem:[%s10540_s1 + $0x4ec] sm:$0xf] }
  0x4b   : > { %1172 = vmatpush.bf16.msrb.mxu1 %v4842_v19  ;;  %v4893_v15 = vld [vmem:[%s10540_s1 + $0x568] sm:$0xf]  ;;  %v7094_v17 = vld [vmem:[%s10540_s1 + $0x574] sm:$0xf0]  ;;  %v4766_v22 = vor.u32 %v7062_v14, %v4765_v13  ;;  %v4831_v9 = vld [vmem:[%s10540_s1 + $0x4f8] sm:$0xf0] }
  0x4c   : > { %1186 = vmatpush.bf16.msrb.mxu2 %v4970_v20  ;;  %v5021_v18 = vld [vmem:[%s10540_s1 + $0x668] sm:$0xf]  ;;  %v7126_v19 = vld [vmem:[%s10540_s1 + $0x674] sm:$0xf0]  ;;  %v7140_v13 = vld [vmem:[%s10540_s1 + $0x6ec] sm:$0xf] }
  0x4d   : > { %1200 = vmatpush.bf16.msrb.mxu3 %v5098_v24  ;;  %1159 = vmatmul.bf16.vlgmr.msrb.gmra.mxu0 %v7825_v46  ;;  %v5149_v20 = vld [vmem:[%s10540_s1 + $0x768] sm:$0xf]  ;;  %v7158_v21 = vld [vmem:[%s10540_s1 + $0x774] sm:$0xf0]  ;;  %v4894_v24 = vor.u32 %v7094_v17, %v4893_v15  ;;  %v5087_v14 = vld [vmem:[%s10540_s1 + $0x6f8] sm:$0xf0] }
  0x4e   : > { %1207 = vmatpush.bf16.msra.mxu0 %v4830_v25  ;;  %1173 = vmatmul.bf16.vlgmr.msrb.gmra.mxu1 %v7850_v57  ;;  %v5022_v25 = vor.u32 %v7126_v19, %v5021_v18  ;;  %v4877_v35 = vld [vmem:[%s10540_s1 + $0x548] sm:$0xf]  ;;  %v5150_v36 = vor.u32 %v7158_v21, %v5149_v20  ;;  %v7090_v37 = vld [vmem:[%s10540_s1 + $0x554] sm:$0xf0]  ;;  %v7172_v17 = vld [vmem:[%s10540_s1 + $0x7ec] sm:$0xf]  ;;  %v4834_v20 = vor.u32 %v7076_v8, %v4831_v9 }
  0x4f   : > { %1221 = vmatpush.bf16.msra.mxu1 %v4958_v30  ;;  %1187 = vmatmul.bf16.vlgmr.msrb.gmra.mxu2 %v7806_v40  ;;  %v4749_v30 = vld [vmem:[%s10540_s1 + $0x448] sm:$0xf]  ;;  %v7122_v39 = vld [vmem:[%s10540_s1 + $0x654] sm:$0xf0]  ;;  %v4878_v44 = vor.u32 %v7090_v37, %v4877_v35  ;;  %v5215_v18 = vld [vmem:[%s10540_s1 + $0x7f8] sm:$0xf0] }
  0x50   : > { %1235 = vmatpush.bf16.msra.mxu2 %v5086_v31  ;;  %1201 = vmatmul.bf16.vlgmr.msrb.gmra.mxu3 %v7820_v45  ;;  %v7058_v31 = vld [vmem:[%s10540_s1 + $0x454] sm:$0xf0]  ;;  %v5133_v41 = vld [vmem:[%s10540_s1 + $0x748] sm:$0xf]  ;;  %v4943_v35 = vld [vmem:[%s10540_s1 + $0x5d8] sm:$0xf0] }
  0x51   : > { %1249 = vmatpush.bf16.msra.mxu3 %v5214_v38  ;;  %v5005_v38 = vld [vmem:[%s10540_s1 + $0x648] sm:$0xf]  ;;  %v7154_v42 = vld [vmem:[%s10540_s1 + $0x754] sm:$0xf0]  ;;  %v4750_v43 = vor.u32 %v7058_v31, %v4749_v30  ;;  %v7104_v30 = vld [vmem:[%s10540_s1 + $0x5cc] sm:$0xf]  ;;  %v5218_v31 = vor.u32 %v7172_v17, %v5215_v18 }
  0x52   : > { %1208 = vmatpush.bf16.msra.mxu0 %v4814_v47  ;;  %v5006_v47 = vor.u32 %v7122_v39, %v5005_v38  ;;  %v4861_v52 = vld [vmem:[%s10540_s1 + $0x528] sm:$0xf]  ;;  %v5134_v53 = vor.u32 %v7154_v42, %v5133_v41  ;;  %v7086_v54 = vld [vmem:[%s10540_s1 + $0x534] sm:$0xf0]  ;;  %v5071_v37 = vld [vmem:[%s10540_s1 + $0x6d8] sm:$0xf0]  ;;  %v4946_v42 = vor.u32 %v7104_v30, %v4943_v35 }
  0x53   : > { %1222 = vmatpush.bf16.msra.mxu1 %v4942_v48  ;;  %v4733_v48 = vld [vmem:[%s10540_s1 + $0x428] sm:$0xf]  ;;  %v7118_v56 = vld [vmem:[%s10540_s1 + $0x634] sm:$0xf0]  ;;  %v7168_v38 = vld [vmem:[%s10540_s1 + $0x7cc] sm:$0xf] }
  0x54   : > { %1236 = vmatpush.bf16.msra.mxu2 %v5070_v51  ;;  %v7054_v51 = vld [vmem:[%s10540_s1 + $0x434] sm:$0xf0]  ;;  %v5117_v58 = vld [vmem:[%s10540_s1 + $0x728] sm:$0xf]  ;;  %v5199_v39 = vld [vmem:[%s10540_s1 + $0x7d8] sm:$0xf0] }
  0x55   : > { %1250 = vmatpush.bf16.msra.mxu3 %v5198_v55  ;;  %v4989_v55 = vld [vmem:[%s10540_s1 + $0x628] sm:$0xf]  ;;  %v7150_v59 = vld [vmem:[%s10540_s1 + $0x734] sm:$0xf0]  ;;  %v4734_v60 = vor.u32 %v7054_v51, %v4733_v48  ;;  %v7100_v48 = vld [vmem:[%s10540_s1 + $0x5ac] sm:$0xf]  ;;  %v5202_v51 = vor.u32 %v7168_v38, %v5199_v39 }
  0x56   : > { %1209 = vmatpush.bf16.msra.mxu0 %v4798_v62  ;;  %v4717_v61 = vld [vmem:[%s10540_s1 + $0x408] sm:$0xf]  ;;  %v7050_v62 = vld [vmem:[%s10540_s1 + $0x414] sm:$0xf0]  ;;  %v7060_v9 = vld [vmem:[%s10540_s1 + $0x46c] sm:$0xf] }
  0x57   : > { %1223 = vmatpush.bf16.msra.mxu1 %v4926_v63  ;;  %v4862_v63 = vor.u32 %v7086_v54, %v4861_v52  ;;  %v4845_v1 = vld [vmem:[%s10540_s1 + $0x508] sm:$0xf]  ;;  %v7082_v2 = vld [vmem:[%s10540_s1 + $0x514] sm:$0xf0]  ;;  %v4927_v52 = vld [vmem:[%s10540_s1 + $0x5b8] sm:$0xf0] }
  0x58   : > { %1237 = vmatpush.bf16.msra.mxu2 %v5054_v0  ;;  %v4990_v0 = vor.u32 %v7118_v56, %v4989_v55  ;;  %v4973_v3 = vld [vmem:[%s10540_s1 + $0x608] sm:$0xf]  ;;  %v7114_v5 = vld [vmem:[%s10540_s1 + $0x614] sm:$0xf0]  ;;  %v4846_v15 = vor.u32 %v7082_v2, %v4845_v1  ;;  %v5055_v54 = vld [vmem:[%s10540_s1 + $0x6b8] sm:$0xf0] }
  0x59   : > { %1251 = vmatpush.bf16.msra.mxu3 %v5182_v4  ;;  %v5118_v4 = vor.u32 %v7150_v59, %v5117_v58  ;;  %v5101_v6 = vld [vmem:[%s10540_s1 + $0x708] sm:$0xf]  ;;  %v7146_v7 = vld [vmem:[%s10540_s1 + $0x714] sm:$0xf0]  ;;  %v7164_v55 = vld [vmem:[%s10540_s1 + $0x7ac] sm:$0xf]  ;;  %v4930_v59 = vor.u32 %v7100_v48, %v4927_v52 }
  0x5a   : > { %1210 = vmatpush.bf16.msra.mxu0 %v4782_v10  ;;  %v7108_v10 = vld [vmem:[%s10540_s1 + $0x5ec] sm:$0xf]  ;;  %v5102_v19 = vor.u32 %v7146_v7, %v5101_v6  ;;  %v5183_v56 = vld [vmem:[%s10540_s1 + $0x7b8] sm:$0xf0]  ;;  %v8239_v39 = vld [vmem:[%s7769_s21] sm:$0x88] }
  0x5b   : > { %1224 = vmatpush.bf16.msra.mxu1 %v4910_v11  ;;  %v4718_v11 = vor.u32 %v7050_v62, %v4717_v61  ;;  %v7064_v61 = vld [vmem:[%s10540_s1 + $0x48c] sm:$0xf]  ;;  %v4783_v62 = vld [vmem:[%s10540_s1 + $0x498] sm:$0xf0] }
  0x5c   : > { %1238 = vmatpush.bf16.msra.mxu2 %v5038_v12  ;;  %v4959_v12 = vld [vmem:[%s10540_s1 + $0x5f8] sm:$0xf0]  ;;  %v7128_v2 = vld [vmem:[%s10540_s1 + $0x68c] sm:$0xf]  ;;  %v4786_v6 = vor.u32 %v7064_v61, %v4783_v62  ;;  %v1321_v62 = vunpack.c.l.b16 %v8239_v39 }
  0x5d   : > { %1252 = vmatpush.bf16.msra.mxu3 %v5166_v16  ;;  %v4974_v16 = vor.u32 %v7114_v5, %v4973_v3  ;;  %v4962_v21 = vor.u32 %v7108_v10, %v4959_v12  ;;  %v4911_v1 = vld [vmem:[%s10540_s1 + $0x598] sm:$0xf0]  ;;  %v173_v38 = vld [vmem:[%s7769_s21 + $0x8] sm:$0x88] }
  0x5e   : > { %1211 = vmatpush.bf16.msra.mxu0 %v4766_v22  ;;  %v5090_v22 = vor.u32 %v7140_v13, %v5087_v14  ;;  %v5039_v3 = vld [vmem:[%s10540_s1 + $0x698] sm:$0xf0]  ;;  %v7124_v14 = vld [vmem:[%s10540_s1 + $0x66c] sm:$0xf] }
  0x5f   : > { %1225 = vmatpush.bf16.msra.mxu1 %v4894_v24  ;;  %v7072_v24 = vld [vmem:[%s10540_s1 + $0x4cc] sm:$0xf]  ;;  %v5167_v5 = vld [vmem:[%s10540_s1 + $0x798] sm:$0xf0]  ;;  %v5042_v8 = vor.u32 %v7128_v2, %v5039_v3 }
  0x60   : > { %1239 = vmatpush.bf16.msra.mxu2 %v5022_v25  ;;  %v4815_v25 = vld [vmem:[%s10540_s1 + $0x4d8] sm:$0xf0]  ;;  %v7084_v48 = vld [vmem:[%s10540_s1 + $0x52c] sm:$0xf] }
  0x61   : > { %1253 = vmatpush.bf16.msra.mxu3 %v5150_v36  ;;  %v7136_v36 = vld [vmem:[%s10540_s1 + $0x6cc] sm:$0xf]  ;;  %v4818_v41 = vor.u32 %v7072_v24, %v4815_v25  ;;  %v4767_v10 = vld [vmem:[%s10540_s1 + $0x478] sm:$0xf0] }
  0x62   : > { %1212 = vmatpush.bf16.msra.mxu0 %v4750_v43  ;;  %v5074_v43 = vor.u32 %v7136_v36, %v5071_v37  ;;  %v4895_v13 = vld [vmem:[%s10540_s1 + $0x578] sm:$0xf0]  ;;  %v4770_v18 = vor.u32 %v7060_v9, %v4767_v10  ;;  %v7088_v24 = vld [vmem:[%s10540_s1 + $0x54c] sm:$0xf]  ;;  %v8310_v9 = vld [vmem:[%s10540_s1 + $0xe0] sm:$0xf] }
  0x63   : > { %1226 = vmatpush.bf16.msra.mxu1 %v4878_v44  ;;  %v7068_v44 = vld [vmem:[%s10540_s1 + $0x4ac] sm:$0xf]  ;;  %v5151_v17 = vld [vmem:[%s10540_s1 + $0x778] sm:$0xf0]  ;;  %v8315_v10 = vld [vmem:[%s10540_s1 + $0xec] sm:$0xf0] }
  0x64   : > { %1240 = vmatpush.bf16.msra.mxu2 %v5006_v47  ;;  %v4799_v47 = vld [vmem:[%s10540_s1 + $0x4b8] sm:$0xf0]  ;;  %v7152_v36 = vld [vmem:[%s10540_s1 + $0x74c] sm:$0xf] }
  0x65   : > { %1254 = vmatpush.bf16.msra.mxu3 %v5134_v53  ;;  %v7132_v53 = vld [vmem:[%s10540_s1 + $0x6ac] sm:$0xf]  ;;  %v4802_v58 = vor.u32 %v7068_v44, %v4799_v47  ;;  %v4879_v30 = vld [vmem:[%s10540_s1 + $0x558] sm:$0xf0] }
  0x66   : > { %1213 = vmatpush.bf16.msra.mxu0 %v4734_v60  ;;  %v5058_v60 = vor.u32 %v7132_v53, %v5055_v54  ;;  %v5007_v35 = vld [vmem:[%s10540_s1 + $0x658] sm:$0xf0]  ;;  %v7116_v53 = vld [vmem:[%s10540_s1 + $0x62c] sm:$0xf] }
  0x67   : > { %1227 = vmatpush.bf16.msra.mxu1 %v4862_v63  ;;  %v7096_v63 = vld [vmem:[%s10540_s1 + $0x58c] sm:$0xf]  ;;  %v5135_v37 = vld [vmem:[%s10540_s1 + $0x758] sm:$0xf0] }
  0x68   : > { %1241 = vmatpush.bf16.msra.mxu2 %v4990_v0  ;;  %v5186_v0 = vor.u32 %v7164_v55, %v5183_v56  ;;  %v4914_v7 = vor.u32 %v7096_v63, %v4911_v1  ;;  %v4735_v47 = vld [vmem:[%s10540_s1 + $0x438] sm:$0xf0]  ;;  %v5138_v52 = vor.u32 %v7152_v36, %v5135_v37  ;;  %v7148_v55 = vld [vmem:[%s10540_s1 + $0x72c] sm:$0xf]  ;;  %v1323_v56 = vunpack.c.l.b16 %v173_v38  ;;  %v8396_v36 = vld [vmem:[%s10540_s1 + $0x3c0] sm:$0xf] }
  0x69   : > { %1255 = vmatpush.bf16.msra.mxu3 %v5118_v4  ;;  %v7160_v4 = vld [vmem:[%s10540_s1 + $0x78c] sm:$0xf]  ;;  %v4991_v54 = vld [vmem:[%s10540_s1 + $0x638] sm:$0xf0] }
  0x6a   : > { %1214 = vmatpush.bf16.msra.mxu0 %v4718_v11  ;;  %v7092_v11 = vld [vmem:[%s10540_s1 + $0x56c] sm:$0xf]  ;;  %v5170_v12 = vor.u32 %v7160_v4, %v5167_v5  ;;  %v8273_v61 = vld [vmem:[%s10540_s1 + $0x418] sm:$0xf0]  ;;  %v1322_v4 = vunpack.c.h.b16 %v8239_v39 }
  0x6b   : > { %1228 = vmatpush.bf16.msra.mxu1 %v4846_v15  ;;  %v5023_v15 = vld [vmem:[%s10540_s1 + $0x678] sm:$0xf0]  ;;  %v8289_v2 = vld [vmem:[%s10540_s1 + $0x60c] sm:$0xf] }
  0x6c   : > { %1242 = vmatpush.bf16.msra.mxu2 %v4974_v16  ;;  %v7156_v16 = vld [vmem:[%s10540_s1 + $0x76c] sm:$0xf]  ;;  %v8284_v1 = vld [vmem:[%s10540_s1 + $0x518] sm:$0xf0] }
  0x6d   : > { %1256 = vmatpush.bf16.msra.mxu3 %v5102_v19  ;;  %1215 = vmatmul.bf16.vlgmr.msra.gmra.mxu0 %v7825_v46  ;;  %v4898_v19 = vor.u32 %v7092_v11, %v4895_v13  ;;  %v5154_v25 = vor.u32 %v7156_v16, %v5151_v17  ;;  %v8294_v3 = vld [vmem:[%s10540_s1 + $0x618] sm:$0xf0]  ;;  %v8320_v11 = vld [vmem:[%s10540_s1 + $0x1e0] sm:$0xf]  ;;  %v8345_v17 = vld [vmem:[%s10540_s1 + $0x3ec] sm:$0xf0] }
  0x6e   : > { %1263 = vmatpush.bf16.msrb.mxu0 %v4834_v20  ;;  %1229 = vmatmul.bf16.vlgmr.msra.gmra.mxu1 %v7850_v57  ;;  %v5026_v20 = vor.u32 %v7124_v14, %v5023_v15  ;;  %v8330_v13 = vld [vmem:[%s10540_s1 + $0x2e0] sm:$0xf]  ;;  %v8335_v14 = vld [vmem:[%s10540_s1 + $0x2ec] sm:$0xf0] }
  0x6f   : > { %1277 = vmatpush.bf16.msrb.mxu1 %v4962_v21  ;;  %1243 = vmatmul.bf16.vlgmr.msra.gmra.mxu2 %v7806_v40  ;;  %v7056_v21 = vld [vmem:[%s10540_s1 + $0x44c] sm:$0xf]  ;;  %v8340_v16 = vld [vmem:[%s10540_s1 + $0x3e0] sm:$0xf] }
  0x70   : > { %1291 = vmatpush.bf16.msrb.mxu2 %v5090_v22  ;;  %1257 = vmatmul.bf16.vlgmr.msra.gmra.mxu3 %v7820_v45  ;;  %v4751_v22 = vld [vmem:[%s10540_s1 + $0x458] sm:$0xf0] }
  0x71   : > { %1305 = vmatpush.bf16.msrb.mxu3 %v5218_v31  ;;  %v7120_v31 = vld [vmem:[%s10540_s1 + $0x64c] sm:$0xf] }
  0x72   : > { %1264 = vmatpush.bf16.msrb.mxu0 %v4818_v41  ;;  %v4754_v41 = vor.u32 %v7056_v21, %v4751_v22  ;;  %v5010_v44 = vor.u32 %v7120_v31, %v5007_v35  ;;  %v8365_v21 = vld [vmem:[%s10540_s1 + $0x1cc] sm:$0xf0]  ;;  %v8370_v22 = vld [vmem:[%s10540_s1 + $0x2c0] sm:$0xf]  ;;  %v8391_v35 = vpack.c.b16 %v7789_v32, %v7789_v32  ;;  %v8414_v32 = vpack.c.b16 %v7835_v50, %v7835_v50 }
  0x73   : > { %1278 = vmatpush.bf16.msrb.mxu1 %v4946_v42  ;;  %v7052_v42 = vld [vmem:[%s10540_s1 + $0x42c] sm:$0xf]  ;;  %v8435_v50 = vpack.c.b16 %v440_v49, %v1322_v4 }
  0x74   : > { %1292 = vmatpush.bf16.msrb.mxu2 %v5074_v43  ;;  %v4882_v43 = vor.u32 %v7088_v24, %v4879_v30  ;;  %v4738_v63 = vor.u32 %v7052_v42, %v4735_v47  ;;  %v8375_v24 = vld [vmem:[%s10540_s1 + $0x2cc] sm:$0xf0]  ;;  %v8383_v30 = vpack.c.b16 %v7782_v27, %v7782_v27  ;;  %v1325_v27 = vpack.c.b16 %v439_v33, %v1321_v62  ;;  %v8426_v33 = vld [vmem:[%s10540_s1 + $0x1a0] sm:$0xf] }
  0x75   : > { %1306 = vmatpush.bf16.msrb.mxu3 %v5202_v51  ;;  %v4863_v51 = vld [vmem:[%s10540_s1 + $0x538] sm:$0xf0]  ;;  %v8444_v42 = vld [vmem:[%s10540_s1 + $0x2a0] sm:$0xf] }
  0x76   : > { %1265 = vmatpush.bf16.msrb.mxu0 %v4802_v58  ;;  %v1324_v58 = vunpack.c.h.b16 %v173_v38  ;;  %v4866_v5 = vor.u32 %v7084_v48, %v4863_v51  ;;  %v8421_v38 = vld [vmem:[%s10540_s1 + $0xac] sm:$0xf0]  ;;  %v5590_v48 = vor.u32 %v8335_v14, %v8330_v13  ;;  %v1338_v4 = vshll.u32 %v1325_v27, 16 }
  0x77   : > { %1279 = vmatpush.bf16.msrb.mxu1 %v4930_v59  ;;  %v5119_v59 = vld [vmem:[%s10540_s1 + $0x738] sm:$0xf0]  ;;  %v8467_v51 = vld [vmem:[%s10540_s1 + $0x3ac] sm:$0xf0]  ;;  %v5302_v62 = vor.u32 %v8421_v38, %v8406_v23  ;;  %v1377_v14 = vshrl.u32 %v8383_v30, 16 }
  0x78   : > { %1293 = vmatpush.bf16.msrb.mxu2 %v5058_v60  ;;  %v8268_v60 = vld [vmem:[%s10540_s1 + $0x40c] sm:$0xf]  ;;  %v5122_v15 = vor.u32 %v7148_v55, %v5119_v59  ;;  %v8387_v31 = vpack.c.b16 %v442_v28, %v1324_v58  ;;  %v1329_v28 = vpack.c.b16 %v7792_v34, %v7792_v34  ;;  %v8431_v34 = vld [vmem:[%s10540_s1 + $0x1ac] sm:$0xf0]  ;;  %v5574_v58 = vor.u32 %v8375_v24, %v8370_v22  ;;  %v8490_v59 = vld [vmem:[%s10540_s1 + $0x180] sm:$0xf] }
  0x79   : > { %1307 = vmatpush.bf16.msrb.mxu3 %v5186_v0  ;;  %v8279_v0 = vld [vmem:[%s10540_s1 + $0x50c] sm:$0xf]  ;;  %v4722_v37 = vor.u32 %v8268_v60, %v8273_v61  ;;  %v8495_v60 = vld [vmem:[%s10540_s1 + $0x18c] sm:$0xf0]  ;;  %v1355_v22 = vshll.u32 %v8435_v50, 16 }
  0x7a   : > { %1266 = vmatpush.bf16.msrb.mxu0 %v4786_v6  ;;  %v4994_v6 = vor.u32 %v7116_v53, %v4991_v54  ;;  %v4850_v39 = vor.u32 %v8279_v0, %v8284_v1  ;;  %v8477_v53 = vld [vmem:[%s10540_s1 + $0x8c] sm:$0xf0]  ;;  %v5718_v54 = vor.u32 %v8345_v17, %v8340_v16  ;;  %v5686_v1 = vor.u32 %v8467_v51, %v8454_v29 }
  0x7b   : > { %1280 = vmatpush.bf16.msrb.mxu1 %v4914_v7  ;;  %v8300_v7 = vld [vmem:[%s10540_s1 + $0x70c] sm:$0xf] }
  0x7c   : > { %1294 = vmatpush.bf16.msrb.mxu2 %v5042_v8  ;;  %v8305_v8 = vld [vmem:[%s10540_s1 + $0x718] sm:$0xf0] }
  0x7d   : > { %1308 = vmatpush.bf16.msrb.mxu3 %v5170_v12  ;;  %v8325_v12 = vld [vmem:[%s10540_s1 + $0x1ec] sm:$0xf0]  ;;  %v5106_v49 = vor.u32 %v8300_v7, %v8305_v8  ;;  %v1346_v7 = vshll.u32 %v1329_v28, 16 }
  0x7e   : > { %1267 = vmatpush.bf16.msrb.mxu0 %v4770_v18  ;;  %v8350_v18 = vld [vmem:[%s10540_s1 + $0xc0] sm:$0xf]  ;;  %v5462_v47 = vor.u32 %v8325_v12, %v8320_v11 }
  0x7f   : > { %1281 = vmatpush.bf16.msrb.mxu1 %v4898_v19  ;;  %v8355_v19 = vld [vmem:[%s10540_s1 + $0xcc] sm:$0xf0]  ;;  %v1348_v13 = vrot.slane %v1346_v7, 4 }
  0x80   : > { %1295 = vmatpush.bf16.msrb.mxu2 %v5026_v20  ;;  %v8360_v20 = vld [vmem:[%s10540_s1 + $0x1c0] sm:$0xf]  ;;  %v5318_v55 = vor.u32 %v8355_v19, %v8350_v18  ;;  %v1352_v19 = vshrl.u32 %v8435_v50, 16  ;;  %v1389_v50 = vshll.u32 %v8387_v31, 16  ;;  %v6929_v7 = vld [vmem:[%s10540_s1 + $0x4c] sm:$0xf0] }
  0x81   : > { %1309 = vmatpush.bf16.msrb.mxu3 %v5154_v25  ;;  %v8379_v25 = vpack.c.b16 %v441_v26, %v1323_v56  ;;  %v8401_v26 = vld [vmem:[%s10540_s1 + $0x3cc] sm:$0xf0]  ;;  %v5446_v56 = vor.u32 %v8365_v21, %v8360_v20 }
  0x82   : > { %1268 = vmatpush.bf16.msrb.mxu0 %v4754_v41  ;;  %v4978_v41 = vor.u32 %v8289_v2, %v8294_v3  ;;  %v5702_v61 = vor.u32 %v8401_v26, %v8396_v36  ;;  %v1335_v3 = vshrl.u32 %v1325_v27, 16  ;;  %v1354_v24 = vrot.slane %v1352_v19, 3  ;;  %v5669_v36 = vld [vmem:[%s10540_s1 + $0x380] sm:$0xf]  ;;  %v6989_v19 = vld [vmem:[%s10540_s1 + $0x22c] sm:$0xf0] }
  0x83   : > { %1282 = vmatpush.bf16.msrb.mxu1 %v4882_v43  ;;  %v8449_v43 = vld [vmem:[%s10540_s1 + $0x2ac] sm:$0xf0]  ;;  %v1372_v11 = vshll.u32 %v8379_v25, 16  ;;  %v1357_v27 = vrot.slane %v1355_v22, 4  ;;  %v5221_v22 = vld [vmem:[%s10540_s1] sm:$0xf] }
  0x84   : > { %1296 = vmatpush.bf16.msrb.mxu2 %v5010_v44  ;;  %v5334_v44 = vor.u32 %v8315_v10, %v8310_v9  ;;  %v5558_v0 = vor.u32 %v8449_v43, %v8444_v42  ;;  %v1337_v8 = vrot.slane %v1335_v3, 3  ;;  %v1340_v9 = vrot.slane %v1338_v4, 4  ;;  %v6997_v42 = vld [vmem:[%s10540_s1 + $0x26c] sm:$0xf0] }
  0x85   : > { %1310 = vmatpush.bf16.msrb.mxu3 %v5138_v52  ;;  %v8472_v52 = vld [vmem:[%s10540_s1 + $0x80] sm:$0xf]  ;;  %v1369_v10 = vshrl.u32 %v8379_v25, 16  ;;  %v1374_v18 = vrot.slane %v1372_v11, 4  ;;  %v1360_v25 = vshrl.u32 %v8414_v32, 16 }
  0x86   : > { %1269 = vmatpush.bf16.msrb.mxu0 %v4738_v63  ;;  %v5430_v63 = vor.u32 %v8431_v34, %v8426_v33  ;;  %v5286_v2 = vor.u32 %v8477_v53, %v8472_v52  ;;  %v1341_v16 = vor.u32 %v1340_v9, %v1337_v8  ;;  %v5525_v34 = vld [vmem:[%s10540_s1 + $0x260] sm:$0xf]  ;;  %v7025_v9 = vld [vmem:[%s10540_s1 + $0x34c] sm:$0xf0] }
  0x87   : > { %1283 = vmatpush.bf16.msrb.mxu1 %v4866_v5  ;;  %v5414_v5 = vor.u32 %v8495_v60, %v8490_v59  ;;  %v1371_v17 = vrot.slane %v1369_v10, 3  ;;  %v5526_v4 = vor.u32 %v6997_v42, %v5525_v34  ;;  %v5381_v52 = vld [vmem:[%s10540_s1 + $0x140] sm:$0xf]  ;;  %v6961_v59 = vld [vmem:[%s10540_s1 + $0x14c] sm:$0xf0] }
  0x88   : > { %1297 = vmatpush.bf16.msrb.mxu2 %v4994_v6  ;;  %v1343_v6 = vshrl.u32 %v1329_v28, 16  ;;  %v1386_v28 = vshrl.u32 %v8387_v31, 16  ;;  %v5509_v60 = vld [vmem:[%s10540_s1 + $0x240] sm:$0xf]  ;;  %v5382_v11 = vor.u32 %v6961_v59, %v5381_v52  ;;  %v6975_v34 = vld [vmem:[%s10540_s1 + $0x1c4] sm:$0xf] }
  0x89   : > { %1311 = vmatpush.bf16.msrb.mxu3 %v5122_v15  ;;  %v1380_v15 = vshll.u32 %v8383_v30, 16  ;;  %v1363_v30 = vshll.u32 %v8414_v32, 16  ;;  %v7033_v32 = vld [vmem:[%s10540_s1 + $0x38c] sm:$0xf0]  ;;  %v5637_v8 = vld [vmem:[%s10540_s1 + $0x340] sm:$0xf] }
  0x8a   : > { %1270 = vmatpush.bf16.msrb.mxu0 %v4722_v37  ;;  %v1345_v12 = vrot.slane %v1343_v6, 3  ;;  %v1362_v37 = vrot.slane %v1360_v25, 3  ;;  %v5670_v33 = vor.u32 %v7033_v32, %v5669_v36  ;;  %v5253_v6 = vld [vmem:[%s10540_s1 + $0x40] sm:$0xf]  ;;  %v6947_v32 = vld [vmem:[%s10540_s1 + $0xe4] sm:$0xf] }
  0x8b   : > { %1284 = vmatpush.bf16.msrb.mxu1 %v4850_v39  ;;  %v1382_v21 = vrot.slane %v1380_v15, 4  ;;  %v1365_v38 = vrot.slane %v1363_v30, 4  ;;  %v1394_v39 = vshrl.u32 %v8391_v35, 16  ;;  %v5254_v10 = vor.u32 %v6929_v7, %v5253_v6  ;;  %v5365_v15 = vld [vmem:[%s10540_s1 + $0x120] sm:$0xf] }
  0x8c   : > { %1298 = vmatpush.bf16.msrb.mxu2 %v4978_v41  ;;  %v1349_v20 = vor.u32 %v1348_v13, %v1345_v12  ;;  %v5269_v41 = vld [vmem:[%s10540_s1 + $0x60] sm:$0xf]  ;;  %v6953_v30 = vld [vmem:[%s10540_s1 + $0x10c] sm:$0xf0]  ;;  %v6939_v6 = vld [vmem:[%s10540_s1 + $0xa4] sm:$0xf] }
  0x8d   : > { %1312 = vmatpush.bf16.msrb.mxu3 %v5106_v49  ;;  %1271 = vmatmul.bf16.vlgmr.msrb.gmra.mxu0 %v7825_v46  ;;  %v1379_v46 = vrot.slane %v1377_v14, 3  ;;  %v6933_v49 = vld [vmem:[%s10540_s1 + $0x6c] sm:$0xf0]  ;;  %v5237_v13 = vld [vmem:[%s10540_s1 + $0x20] sm:$0xf] }
  0x8e   : > { %2046 = vmatpush.bf16.msra.mxu0 %v5334_v44  ;;  %1285 = vmatmul.bf16.vlgmr.msrb.gmra.mxu1 %v7850_v57  ;;  %v1375_v57 = vor.u32 %v1374_v18, %v1371_v17  ;;  %v8533_v26 = vsel %vm1333_vm0, %v1341_v16, %v1349_v20  ;;  %v6925_v14 = vld [vmem:[%s10540_s1 + $0x2c] sm:$0xf0]  ;;  %v5638_v16 = vor.u32 %v7025_v9, %v5637_v8  ;;  %v5493_v18 = vld [vmem:[%s10540_s1 + $0x220] sm:$0xf]  ;;  %v5303_v7 = vld [vmem:[%s10540_s1 + $0xb0] sm:$0xf0] }
  0x8f   : > { %2060 = vmatpush.bf16.msra.mxu1 %v5462_v47  ;;  %1299 = vmatmul.bf16.vlgmr.msrb.gmra.mxu2 %v7806_v40  ;;  %v5541_v40 = vld [vmem:[%s10540_s1 + $0x280] sm:$0xf]  ;;  %v1383_v23 = vor.u32 %v1382_v21, %v1379_v46  ;;  %v1358_v47 = vor.u32 %v1357_v27, %v1354_v24  ;;  %v6957_v17 = vld [vmem:[%s10540_s1 + $0x12c] sm:$0xf0]  ;;  %v5238_v21 = vor.u32 %v6925_v14, %v5237_v13  ;;  %v6971_v52 = vld [vmem:[%s10540_s1 + $0x1a4] sm:$0xf] }
  0x90   : > { %2074 = vmatpush.bf16.msra.mxu2 %v5590_v48  ;;  %1313 = vmatmul.bf16.vlgmr.msrb.gmra.mxu3 %v7820_v45  ;;  %v7001_v45 = vld [vmem:[%s10540_s1 + $0x28c] sm:$0xf0]  ;;  %v1388_v48 = vrot.slane %v1386_v28, 3  ;;  %v5621_v20 = vld [vmem:[%s10540_s1 + $0x320] sm:$0xf]  ;;  %v5494_v24 = vor.u32 %v6989_v19, %v5493_v18 }
  0x91   : > { %2088 = vmatpush.bf16.msra.mxu3 %v5718_v54  ;;  %v8548_v44 = vsel %vm1333_vm0, %v1375_v57, %v1383_v23  ;;  %v1397_v54 = vshll.u32 %v8391_v35, 16  ;;  %v5542_v31 = vor.u32 %v7001_v45, %v5541_v40  ;;  %v1396_v35 = vrot.slane %v1394_v39, 3  ;;  %v7021_v46 = vld [vmem:[%s10540_s1 + $0x32c] sm:$0xf0]  ;;  %v5349_v25 = vld [vmem:[%s10540_s1 + $0x100] sm:$0xf] }
  0x92   : > { %2047 = vmatpush.bf16.msra.mxu0 %v5318_v55  ;;  %v5397_v55 = vld [vmem:[%s10540_s1 + $0x160] sm:$0xf]  ;;  %v6921_v40 = vld [vmem:[%s10540_s1 + $0xc] sm:$0xf0]  ;;  %v5366_v57 = vor.u32 %v6957_v17, %v5365_v15  ;;  %v5622_v36 = vor.u32 %v7021_v46, %v5621_v20  ;;  %v5463_v39 = vld [vmem:[%s10540_s1 + $0x1f0] sm:$0xf0] }
  0x93   : > { %2061 = vmatpush.bf16.msra.mxu1 %v5446_v56  ;;  %v6965_v56 = vld [vmem:[%s10540_s1 + $0x16c] sm:$0xf0]  ;;  %v1399_v43 = vrot.slane %v1397_v54, 4  ;;  %v5477_v45 = vld [vmem:[%s10540_s1 + $0x200] sm:$0xf] }
  0x94   : > { %2075 = vmatpush.bf16.msra.mxu2 %v5574_v58  ;;  %v1366_v58 = vor.u32 %v1365_v38, %v1362_v37  ;;  %v5398_v3 = vor.u32 %v6965_v56, %v5397_v55  ;;  %v6985_v23 = vld [vmem:[%s10540_s1 + $0x20c] sm:$0xf0]  ;;  %v5605_v27 = vld [vmem:[%s10540_s1 + $0x300] sm:$0xf]  ;;  %v5335_v37 = vld [vmem:[%s10540_s1 + $0xf0] sm:$0xf0] }
  0x95   : > { %2089 = vmatpush.bf16.msra.mxu3 %v5702_v61  ;;  %v1391_v61 = vrot.slane %v1389_v50, 4  ;;  %v7017_v28 = vld [vmem:[%s10540_s1 + $0x30c] sm:$0xf0]  ;;  %v6979_v38 = vld [vmem:[%s10540_s1 + $0x1e4] sm:$0xf]  ;;  %v5222_v50 = vor.u32 %v6921_v40, %v5221_v22  ;;  %v5338_v56 = vor.u32 %v6947_v32, %v5335_v37 }
  0x96   : > { %2048 = vmatpush.bf16.msra.mxu0 %v5302_v62  ;;  %v5653_v62 = vld [vmem:[%s10540_s1 + $0x360] sm:$0xf]  ;;  %v8579_v29 = vsel %vm1333_vm0, %v1358_v47, %v1366_v58  ;;  %v5350_v47 = vor.u32 %v6953_v30, %v5349_v25  ;;  %v7043_v54 = vld [vmem:[%s10540_s1 + $0x3e4] sm:$0xf]  ;;  %v5606_v55 = vor.u32 %v7017_v28, %v5605_v27  ;;  %v5466_v58 = vor.u32 %v6979_v38, %v5463_v39  ;;  %v5431_v59 = vld [vmem:[%s10540_s1 + $0x1b0] sm:$0xf0] }
  0x97   : > { %2062 = vmatpush.bf16.msra.mxu1 %v5430_v63  ;;  %v7029_v63 = vld [vmem:[%s10540_s1 + $0x36c] sm:$0xf0]  ;;  %v1392_v51 = vor.u32 %v1391_v61, %v1388_v48  ;;  %v5478_v48 = vor.u32 %v6985_v23, %v5477_v45  ;;  %v7035_v8 = vld [vmem:[%s10540_s1 + $0x3a4] sm:$0xf]  ;;  %v5687_v9 = vld [vmem:[%s10540_s1 + $0x3b0] sm:$0xf0] }
  0x98   : > { %2076 = vmatpush.bf16.msra.mxu2 %v5558_v0  ;;  %v5270_v0 = vor.u32 %v6933_v49, %v5269_v41  ;;  %v5654_v53 = vor.u32 %v7029_v63, %v5653_v62  ;;  %v7011_v41 = vld [vmem:[%s10540_s1 + $0x2e4] sm:$0xf]  ;;  %v5591_v49 = vld [vmem:[%s10540_s1 + $0x2f0] sm:$0xf0] }
  0x99   : > { %2090 = vmatpush.bf16.msra.mxu3 %v5686_v1  ;;  %v1400_v1 = vor.u32 %v1399_v43, %v1396_v35  ;;  %v5594_v61 = vor.u32 %v7011_v41, %v5591_v49  ;;  %v6943_v35 = vld [vmem:[%s10540_s1 + $0xc4] sm:$0xf]  ;;  %v5447_v43 = vld [vmem:[%s10540_s1 + $0x1d0] sm:$0xf0] }
  0x9a   : > { %2049 = vmatpush.bf16.msra.mxu0 %v5286_v2  ;;  %v6993_v2 = vld [vmem:[%s10540_s1 + $0x24c] sm:$0xf0]  ;;  %v7007_v62 = vld [vmem:[%s10540_s1 + $0x2c4] sm:$0xf]  ;;  %v5575_v63 = vld [vmem:[%s10540_s1 + $0x2d0] sm:$0xf0] }
  0x9b   : > { %2063 = vmatpush.bf16.msra.mxu1 %v5414_v5  ;;  %v8606_v5 = vsel %vm1333_vm0, %v1392_v51, %v1400_v1  ;;  %v5510_v12 = vor.u32 %v6993_v2, %v5509_v60  ;;  %v7039_v51 = vld [vmem:[%s10540_s1 + $0x3c4] sm:$0xf]  ;;  %v5559_v2 = vld [vmem:[%s10540_s1 + $0x2b0] sm:$0xf0] }
  0x9c   : > { %2077 = vmatpush.bf16.msra.mxu2 %v5542_v31  ;;  %v5719_v31 = vld [vmem:[%s10540_s1 + $0x3f0] sm:$0xf0]  ;;  %v7003_v60 = vld [vmem:[%s10540_s1 + $0x2a4] sm:$0xf] }
  0x9d   : > { %2091 = vmatpush.bf16.msra.mxu3 %v5670_v33  ;;  %v5319_v33 = vld [vmem:[%s10540_s1 + $0xd0] sm:$0xf0]  ;;  %v5722_v42 = vor.u32 %v7043_v54, %v5719_v31  ;;  %v6935_v13 = vld [vmem:[%s10540_s1 + $0x84] sm:$0xf] }
  0x9e   : > { %2050 = vmatpush.bf16.msra.mxu0 %v5270_v0  ;;  %v5703_v0 = vld [vmem:[%s10540_s1 + $0x3d0] sm:$0xf0]  ;;  %v5322_v1 = vor.u32 %v6943_v35, %v5319_v33  ;;  %v6967_v15 = vld [vmem:[%s10540_s1 + $0x184] sm:$0xf] }
  0x9f   : > { %2064 = vmatpush.bf16.msra.mxu1 %v5398_v3  ;;  %v5450_v3 = vor.u32 %v6975_v34, %v5447_v43  ;;  %v5287_v14 = vld [vmem:[%s10540_s1 + $0x90] sm:$0xf0]  ;;  %v6999_v18 = vld [vmem:[%s10540_s1 + $0x284] sm:$0xf] }
  0xa0   : > { %2078 = vmatpush.bf16.msra.mxu2 %v5526_v4  ;;  %v5578_v4 = vor.u32 %v7007_v62, %v5575_v63  ;;  %v5415_v17 = vld [vmem:[%s10540_s1 + $0x190] sm:$0xf0]  ;;  %v7031_v20 = vld [vmem:[%s10540_s1 + $0x384] sm:$0xf] }
  0xa1   : > { %2092 = vmatpush.bf16.msra.mxu3 %v5654_v53  ;;  %v5706_v53 = vor.u32 %v7039_v51, %v5703_v0  ;;  %v5543_v19 = vld [vmem:[%s10540_s1 + $0x290] sm:$0xf0]  ;;  %v5418_v22 = vor.u32 %v6967_v15, %v5415_v17  ;;  %v6963_v25 = vld [vmem:[%s10540_s1 + $0x164] sm:$0xf]  ;;  %v5597_v15 = vld [vmem:[%s10540_s1 + $0x2e8] sm:$0xf] }
  0xa2   : > { %2051 = vmatpush.bf16.msra.mxu0 %v5254_v10  ;;  %v5306_v10 = vor.u32 %v6939_v6, %v5303_v7  ;;  %v5671_v46 = vld [vmem:[%s10540_s1 + $0x390] sm:$0xf0]  ;;  %v5546_v40 = vor.u32 %v6999_v18, %v5543_v19  ;;  %v7027_v27 = vld [vmem:[%s10540_s1 + $0x364] sm:$0xf] }
  0xa3   : > { %2065 = vmatpush.bf16.msra.mxu1 %v5382_v11  ;;  %v5434_v11 = vor.u32 %v6971_v52, %v5431_v59  ;;  %v5674_v30 = vor.u32 %v7031_v20, %v5671_v46  ;;  %v5399_v45 = vld [vmem:[%s10540_s1 + $0x170] sm:$0xf0]  ;;  %v6959_v41 = vld [vmem:[%s10540_s1 + $0x144] sm:$0xf]  ;;  %v5725_v46 = vld [vmem:[%s10540_s1 + $0x3e8] sm:$0xf] }
  0xa4   : > { %2079 = vmatpush.bf16.msra.mxu2 %v5510_v12  ;;  %v5562_v12 = vor.u32 %v7003_v60, %v5559_v2  ;;  %v5527_v23 = vld [vmem:[%s10540_s1 + $0x270] sm:$0xf0]  ;;  %v5402_v37 = vor.u32 %v6963_v25, %v5399_v45  ;;  %v7023_v31 = vld [vmem:[%s10540_s1 + $0x344] sm:$0xf]  ;;  %v5325_v45 = vld [vmem:[%s10540_s1 + $0xc8] sm:$0xf] }
  0xa5   : > { %2093 = vmatpush.bf16.msra.mxu3 %v5638_v16  ;;  %v5690_v16 = vor.u32 %v7035_v8, %v5687_v9  ;;  %v5655_v28 = vld [vmem:[%s10540_s1 + $0x370] sm:$0xf0]  ;;  %v6923_v35 = vld [vmem:[%s10540_s1 + $0x24] sm:$0xf] }
  0xa6   : > { %2052 = vmatpush.bf16.msra.mxu0 %v5238_v21  ;;  %v5290_v21 = vor.u32 %v6935_v13, %v5287_v14  ;;  %v5255_v39 = vld [vmem:[%s10540_s1 + $0x50] sm:$0xf0]  ;;  %v5658_v49 = vor.u32 %v7027_v27, %v5655_v28  ;;  %v6955_v34 = vld [vmem:[%s10540_s1 + $0x124] sm:$0xf]  ;;  %v6982_v14 = vld [vmem:[%s10540_s1 + $0x1f4] sm:$0xf0] }
  0xa7   : > { %2066 = vmatpush.bf16.msra.mxu1 %v5366_v57  ;;  %v6931_v57 = vld [vmem:[%s10540_s1 + $0x64] sm:$0xf]  ;;  %v5511_v54 = vld [vmem:[%s10540_s1 + $0x250] sm:$0xf0] }
  0xa8   : > { %2080 = vmatpush.bf16.msra.mxu2 %v5494_v24  ;;  %v5271_v24 = vld [vmem:[%s10540_s1 + $0x70] sm:$0xf0]  ;;  %v6987_v62 = vld [vmem:[%s10540_s1 + $0x224] sm:$0xf] }
  0xa9   : > { %2094 = vmatpush.bf16.msra.mxu3 %v5622_v36  ;;  %v6995_v36 = vld [vmem:[%s10540_s1 + $0x264] sm:$0xf]  ;;  %v5274_v32 = vor.u32 %v6931_v57, %v5271_v24  ;;  %v5239_v33 = vld [vmem:[%s10540_s1 + $0x30] sm:$0xf0] }
  0xaa   : > { %2053 = vmatpush.bf16.msra.mxu0 %v5222_v50  ;;  %v5530_v38 = vor.u32 %v6995_v36, %v5527_v23  ;;  %v6927_v50 = vld [vmem:[%s10540_s1 + $0x44] sm:$0xf]  ;;  %v5367_v43 = vld [vmem:[%s10540_s1 + $0x130] sm:$0xf0]  ;;  %v6946_v36 = vld [vmem:[%s10540_s1 + $0xd4] sm:$0xf0] }
  0xab   : > { %2067 = vmatpush.bf16.msra.mxu1 %v5350_v47  ;;  %v5383_v47 = vld [vmem:[%s10540_s1 + $0x150] sm:$0xf0]  ;;  %v7019_v51 = vld [vmem:[%s10540_s1 + $0x324] sm:$0xf]  ;;  %v5370_v6 = vor.u32 %v6955_v34, %v5367_v43  ;;  %v5453_v23 = vld [vmem:[%s10540_s1 + $0x1c8] sm:$0xf] }
  0xac   : > { %2081 = vmatpush.bf16.msra.mxu2 %v5478_v48  ;;  %v6991_v48 = vld [vmem:[%s10540_s1 + $0x244] sm:$0xf]  ;;  %v5495_v63 = vld [vmem:[%s10540_s1 + $0x230] sm:$0xf0]  ;;  %v5693_v34 = vld [vmem:[%s10540_s1 + $0x3a8] sm:$0xf] }
  0xad   : > { %2095 = vmatpush.bf16.msra.mxu3 %v5606_v55  ;;  %2054 = vmatmul.bf16.vlgmr.msra.gmra.mxu0 %v8533_v26  ;;  %v5639_v55 = vld [vmem:[%s10540_s1 + $0x350] sm:$0xf0]  ;;  %v5498_v7 = vor.u32 %v6987_v62, %v5495_v63  ;;  %v6951_v52 = vld [vmem:[%s10540_s1 + $0x104] sm:$0xf] }
  0xae   : > { %2102 = vmatpush.bf16.msrb.mxu0 %v5338_v56  ;;  %2068 = vmatmul.bf16.vlgmr.msra.gmra.mxu1 %v8579_v29  ;;  %v5258_v56 = vor.u32 %v6927_v50, %v5255_v39  ;;  %v5623_v0 = vld [vmem:[%s10540_s1 + $0x330] sm:$0xf0]  ;;  %v6983_v59 = vld [vmem:[%s10540_s1 + $0x204] sm:$0xf]  ;;  %v5709_v39 = vld [vmem:[%s10540_s1 + $0x3c8] sm:$0xf] }
  0xaf   : > { %2116 = vmatpush.bf16.msrb.mxu1 %v5466_v58  ;;  %2082 = vmatmul.bf16.vlgmr.msra.gmra.mxu2 %v8548_v44  ;;  %v5386_v58 = vor.u32 %v6959_v41, %v5383_v47  ;;  %v5626_v60 = vor.u32 %v7019_v51, %v5623_v0  ;;  %v5479_v2 = vld [vmem:[%s10540_s1 + $0x210] sm:$0xf0]  ;;  %v7015_v8 = vld [vmem:[%s10540_s1 + $0x304] sm:$0xf]  ;;  %v7042_v41 = vld [vmem:[%s10540_s1 + $0x3d4] sm:$0xf0]  ;;  %v5326_v47 = vor.u32 %v6946_v36, %v5325_v45 }
  0xb0   : > { %2130 = vmatpush.bf16.msrb.mxu2 %v5594_v61  ;;  %2096 = vmatmul.bf16.vlgmr.msra.gmra.mxu3 %v8606_v5  ;;  %v5514_v61 = vor.u32 %v6991_v48, %v5511_v54  ;;  %v5607_v9 = vld [vmem:[%s10540_s1 + $0x310] sm:$0xf0]  ;;  %v5482_v20 = vor.u32 %v6983_v59, %v5479_v2  ;;  %v7034_v2 = vld [vmem:[%s10540_s1 + $0x394] sm:$0xf0] }
  0xb1   : > { %2144 = vmatpush.bf16.msrb.mxu3 %v5722_v42  ;;  %v5642_v42 = vor.u32 %v7023_v31, %v5639_v55  ;;  %v5309_v31 = vld [vmem:[%s10540_s1 + $0xa8] sm:$0xf]  ;;  %v6942_v55 = vld [vmem:[%s10540_s1 + $0xb4] sm:$0xf0] }
  0xb2   : > { %2103 = vmatpush.bf16.msrb.mxu0 %v5322_v1  ;;  %v5242_v1 = vor.u32 %v6923_v35, %v5239_v33  ;;  %v5565_v35 = vld [vmem:[%s10540_s1 + $0x2a8] sm:$0xf]  ;;  %v7006_v33 = vld [vmem:[%s10540_s1 + $0x2b4] sm:$0xf0]  ;;  %v5310_v43 = vor.u32 %v6942_v55, %v5309_v31 }
  0xb3   : > { %2117 = vmatpush.bf16.msrb.mxu1 %v5450_v3  ;;  %v6919_v3 = vld [vmem:[%s10540_s1 + $0x4] sm:$0xf]  ;;  %v5566_v0 = vor.u32 %v7006_v33, %v5565_v35  ;;  %v6926_v31 = vld [vmem:[%s10540_s1 + $0x34] sm:$0xf0]  ;;  %v5373_v55 = vld [vmem:[%s10540_s1 + $0x128] sm:$0xf] }
  0xb4   : > { %2131 = vmatpush.bf16.msrb.mxu2 %v5578_v4  ;;  %v5223_v4 = vld [vmem:[%s10540_s1 + $0x10] sm:$0xf0]  ;;  %v1132_v24 = vpop.f32.mrf.mxu2  ;;  %v5501_v35 = vld [vmem:[%s10540_s1 + $0x228] sm:$0xf]  ;;  %v6990_v33 = vld [vmem:[%s10540_s1 + $0x234] sm:$0xf0] }
  0xb5   : > { %2145 = vmatpush.bf16.msrb.mxu3 %v5706_v53  ;;  %v5351_v53 = vld [vmem:[%s10540_s1 + $0x110] sm:$0xf0]  ;;  %v5226_v13 = vor.u32 %v6919_v3, %v5223_v4  ;;  %v1146_v50 = vpop.f32.mrf.mxu3  ;;  %v6938_v3 = vld [vmem:[%s10540_s1 + $0x94] sm:$0xf0]  ;;  %v5421_v4 = vld [vmem:[%s10540_s1 + $0x188] sm:$0xf] }
  0xb6   : > { %2104 = vmatpush.bf16.msrb.mxu0 %v5306_v10  ;;  %v5341_v10 = vld [vmem:[%s10540_s1 + $0xe8] sm:$0xf]  ;;  %v5354_v19 = vor.u32 %v6951_v52, %v5351_v53  ;;  %v7002_v53 = vld [vmem:[%s10540_s1 + $0x294] sm:$0xf0] }
  0xb7   : > { %2118 = vmatpush.bf16.msrb.mxu1 %v5434_v11  ;;  %v6950_v11 = vld [vmem:[%s10540_s1 + $0xf4] sm:$0xf0]  ;;  %v1118_v18 = vpop.f32.mrf.mxu1  ;;  %v5549_v52 = vld [vmem:[%s10540_s1 + $0x288] sm:$0xf] }
  0xb8   : > { %2132 = vmatpush.bf16.msrb.mxu2 %v5562_v12  ;;  %v5469_v12 = vld [vmem:[%s10540_s1 + $0x1e8] sm:$0xf]  ;;  %v1104_v17 = vpop.f32.mrf.mxu0  ;;  %v5342_v57 = vor.u32 %v6950_v11, %v5341_v10  ;;  %v5550_v11 = vor.u32 %v7002_v53, %v5549_v52  ;;  %v6986_v53 = vld [vmem:[%s10540_s1 + $0x214] sm:$0xf0] }
  0xb9   : > { %2146 = vmatpush.bf16.msrb.mxu3 %v5690_v16  ;;  %v7014_v16 = vld [vmem:[%s10540_s1 + $0x2f4] sm:$0xf0]  ;;  %v5470_v25 = vor.u32 %v6982_v14, %v5469_v12  ;;  %v5277_v12 = vld [vmem:[%s10540_s1 + $0x68] sm:$0xf] }
  0xba   : > { %2105 = vmatpush.bf16.msrb.mxu0 %v5290_v21  ;;  %v7046_v21 = vld [vmem:[%s10540_s1 + $0x3f4] sm:$0xf0]  ;;  %v5405_v14 = vld [vmem:[%s10540_s1 + $0x168] sm:$0xf] }
  0xbb   : > { %2119 = vmatpush.bf16.msrb.mxu1 %v5418_v22  ;;  %v1119_v22 = vadd.f32 %v1118_v18, %v1104_v17  ;;  %v5726_v28 = vor.u32 %v7046_v21, %v5725_v46  ;;  %v5533_v17 = vld [vmem:[%s10540_s1 + $0x268] sm:$0xf]  ;;  %v6998_v18 = vld [vmem:[%s10540_s1 + $0x274] sm:$0xf0] }
  0xbc   : > { %2133 = vmatpush.bf16.msrb.mxu2 %v5546_v40  ;;  %v5610_v40 = vor.u32 %v7015_v8, %v5607_v9  ;;  %v8958_v59 = vpop.f32.mrf.mxu2 }
  0xbd   : > { %2147 = vmatpush.bf16.msrb.mxu3 %v5674_v30  ;;  %v5598_v30 = vor.u32 %v7014_v16, %v5597_v15  ;;  %v1133_v27 = vadd.f32 %v1132_v24, %v1119_v22  ;;  %v8966_v9 = vpop.f32.mrf.mxu3  ;;  %v6966_v16 = vld [vmem:[%s10540_s1 + $0x174] sm:$0xf0]  ;;  %v5261_v24 = vld [vmem:[%s10540_s1 + $0x48] sm:$0xf] }
  0xbe   : > { %2106 = vmatpush.bf16.msrb.mxu0 %v5274_v32  ;;  %v6978_v32 = vld [vmem:[%s10540_s1 + $0x1d4] sm:$0xf0] }
  0xbf   : > { %2120 = vmatpush.bf16.msrb.mxu1 %v5402_v37  ;;  %v5581_v37 = vld [vmem:[%s10540_s1 + $0x2c8] sm:$0xf]  ;;  %v5454_v48 = vor.u32 %v6978_v32, %v5453_v23  ;;  %v8938_v63 = vpop.f32.mrf.mxu1  ;;  %v6962_v23 = vld [vmem:[%s10540_s1 + $0x154] sm:$0xf0] }
  0xc0   : > { %2134 = vmatpush.bf16.msrb.mxu2 %v5530_v38  ;;  %v7010_v38 = vld [vmem:[%s10540_s1 + $0x2d4] sm:$0xf0]  ;;  %v8936_v62 = vpop.f32.mrf.mxu0 }
  0xc1   : > { %2148 = vmatpush.bf16.msrb.mxu3 %v5658_v49  ;;  %v8906_v49 = vadd.f32 %v1146_v50, %v1133_v27  ;;  %v5582_v54 = vor.u32 %v7010_v38, %v5581_v37  ;;  %v5517_v27 = vld [vmem:[%s10540_s1 + $0x248] sm:$0xf]  ;;  %v7026_v38 = vld [vmem:[%s10540_s1 + $0x354] sm:$0xf0] }
  0xc2   : > { %2107 = vmatpush.bf16.msrb.mxu0 %v5258_v56  ;;  %v5437_v56 = vld [vmem:[%s10540_s1 + $0x1a8] sm:$0xf] }
  0xc3   : > { %2121 = vmatpush.bf16.msrb.mxu1 %v5386_v58  ;;  %v5710_v58 = vor.u32 %v7042_v41, %v5709_v39  ;;  %v5645_v37 = vld [vmem:[%s10540_s1 + $0x348] sm:$0xf] }
  0xc4   : > { %2135 = vmatpush.bf16.msrb.mxu2 %v5514_v61  ;;  %v6974_v61 = vld [vmem:[%s10540_s1 + $0x1b4] sm:$0xf0] }
  0xc5   : > { %2149 = vmatpush.bf16.msrb.mxu3 %v5642_v42  ;;  %v7038_v42 = vld [vmem:[%s10540_s1 + $0x3b4] sm:$0xf0]  ;;  %v5438_v51 = vor.u32 %v6974_v61, %v5437_v56 }
  0xc6   : > { %2108 = vmatpush.bf16.msrb.mxu0 %v5242_v1  ;;  %v5293_v1 = vld [vmem:[%s10540_s1 + $0x88] sm:$0xf]  ;;  %v6958_v61 = vld [vmem:[%s10540_s1 + $0x134] sm:$0xf0] }
  0xc7   : > { %2122 = vmatpush.bf16.msrb.mxu1 %v5370_v6  ;;  %v5694_v6 = vor.u32 %v7038_v42, %v5693_v34  ;;  %v5294_v8 = vor.u32 %v6938_v3, %v5293_v1  ;;  %v5629_v34 = vld [vmem:[%s10540_s1 + $0x328] sm:$0xf]  ;;  %v7022_v42 = vld [vmem:[%s10540_s1 + $0x334] sm:$0xf0]  ;;  %v5374_v1 = vor.u32 %v6958_v61, %v5373_v55  ;;  %v5502_v3 = vor.u32 %v6990_v33, %v5501_v35  ;;  %v5567_v55 = vld [vmem:[%s10540_s1 + $0x2b8] sm:$0xf0] }
  0xc8   : > { %2136 = vmatpush.bf16.msrb.mxu2 %v5498_v7  ;;  %v6970_v7 = vld [vmem:[%s10540_s1 + $0x194] sm:$0xf0]  ;;  %v5630_v52 = vor.u32 %v7022_v42, %v5629_v34  ;;  %v5695_v61 = vld [vmem:[%s10540_s1 + $0x3b8] sm:$0xf0]  ;;  %v6936_v42 = vld [vmem:[%s10540_s1 + $0x8c] sm:$0xf] }
  0xc9   : > { %2150 = vmatpush.bf16.msrb.mxu3 %v5626_v60  ;;  %v5677_v60 = vld [vmem:[%s10540_s1 + $0x388] sm:$0xf]  ;;  %v5422_v10 = vor.u32 %v6970_v7, %v5421_v4 }
  0xca   : > { %2109 = vmatpush.bf16.msrb.mxu0 %v5226_v13  ;;  %v6934_v13 = vld [vmem:[%s10540_s1 + $0x74] sm:$0xf0]  ;;  %v5678_v15 = vor.u32 %v7034_v2, %v5677_v60  ;;  %v1160_v21 = vpop.f32.mrf.mxu0  ;;  %v5357_v4 = vld [vmem:[%s10540_s1 + $0x108] sm:$0xf] }
  0xcb   : > { %2123 = vmatpush.bf16.msrb.mxu1 %v5354_v19  ;;  %v5661_v19 = vld [vmem:[%s10540_s1 + $0x368] sm:$0xf]  ;;  %v5278_v46 = vor.u32 %v6934_v13, %v5277_v12  ;;  %v1174_v22 = vpop.f32.mrf.mxu1  ;;  %v7018_v2 = vld [vmem:[%s10540_s1 + $0x314] sm:$0xf0]  ;;  %v5471_v13 = vld [vmem:[%s10540_s1 + $0x1f8] sm:$0xf0] }
  0xcc   : > { %2137 = vmatpush.bf16.msrb.mxu2 %v5482_v20  ;;  %v7030_v20 = vld [vmem:[%s10540_s1 + $0x374] sm:$0xf0]  ;;  %v1175_v45 = vadd.f32 %v1174_v22, %v1160_v21  ;;  %v5485_v7 = vld [vmem:[%s10540_s1 + $0x208] sm:$0xf] }
  0xcd   : > { %2151 = vmatpush.bf16.msrb.mxu3 %v5610_v40  ;;  %2110 = vmatmul.bf16.vlgmr.msrb.gmra.mxu0 %v8533_v26  ;;  %v5406_v40 = vor.u32 %v6966_v16, %v5405_v14  ;;  %v5662_v36 = vor.u32 %v7030_v20, %v5661_v19  ;;  %v5613_v60 = vld [vmem:[%s10540_s1 + $0x308] sm:$0xf]  ;;  %v7012_v14 = vld [vmem:[%s10540_s1 + $0x2ec] sm:$0xf]  ;;  %v5727_v19 = vld [vmem:[%s10540_s1 + $0x3f8] sm:$0xf0] }
  0xce   : > { %2158 = vmatpush.bf16.msra.mxu0 %v5342_v57  ;;  %2124 = vmatmul.bf16.vlgmr.msrb.gmra.mxu1 %v8579_v29  ;;  %v5534_v57 = vor.u32 %v6998_v18, %v5533_v17  ;;  %v5486_v17 = vor.u32 %v6986_v53, %v5485_v7  ;;  %v7044_v18 = vld [vmem:[%s10540_s1 + $0x3ec] sm:$0xf]  ;;  %v5614_v20 = vor.u32 %v7018_v2, %v5613_v60 }
  0xcf   : > { %2172 = vmatpush.bf16.msra.mxu1 %v5470_v25  ;;  %2138 = vmatmul.bf16.vlgmr.msrb.gmra.mxu2 %v8548_v44  ;;  %v6930_v25 = vld [vmem:[%s10540_s1 + $0x54] sm:$0xf0]  ;;  %v7032_v7 = vld [vmem:[%s10540_s1 + $0x38c] sm:$0xf] }
  0xd0   : > { %2186 = vmatpush.bf16.msra.mxu2 %v5598_v30  ;;  %2152 = vmatmul.bf16.vlgmr.msrb.gmra.mxu3 %v8606_v5  ;;  %v5389_v30 = vld [vmem:[%s10540_s1 + $0x148] sm:$0xf]  ;;  %v5262_v39 = vor.u32 %v6930_v25, %v5261_v24  ;;  %v6976_v24 = vld [vmem:[%s10540_s1 + $0x1cc] sm:$0xf]  ;;  %v5730_v25 = vor.u32 %v7044_v18, %v5727_v19  ;;  %v5535_v18 = vld [vmem:[%s10540_s1 + $0x278] sm:$0xf0] }
  0xd1   : > { %2200 = vmatpush.bf16.msra.mxu3 %v5726_v28  ;;  %v6994_v28 = vld [vmem:[%s10540_s1 + $0x254] sm:$0xf0] }
  0xd2   : > { %2159 = vmatpush.bf16.msra.mxu0 %v5326_v47  ;;  %v1188_v32 = vpop.f32.mrf.mxu2  ;;  %v5390_v47 = vor.u32 %v6962_v23, %v5389_v30  ;;  %v5455_v30 = vld [vmem:[%s10540_s1 + $0x1d8] sm:$0xf0]  ;;  %v7040_v23 = vld [vmem:[%s10540_s1 + $0x3cc] sm:$0xf] }
  0xd3   : > { %2173 = vmatpush.bf16.msra.mxu1 %v5454_v48  ;;  %v1189_v50 = vadd.f32 %v1188_v32, %v1175_v45  ;;  %v1202_v41 = vpop.f32.mrf.mxu3  ;;  %v5518_v48 = vor.u32 %v6994_v28, %v5517_v27  ;;  %v7008_v45 = vld [vmem:[%s10540_s1 + $0x2cc] sm:$0xf]  ;;  %v5711_v27 = vld [vmem:[%s10540_s1 + $0x3d8] sm:$0xf0]  ;;  %v5458_v32 = vor.u32 %v6976_v24, %v5455_v30 }
  0xd4   : > { %2187 = vmatpush.bf16.msra.mxu2 %v5582_v54  ;;  %v5245_v54 = vld [vmem:[%s10540_s1 + $0x28] sm:$0xf]  ;;  %v5263_v24 = vld [vmem:[%s10540_s1 + $0x58] sm:$0xf0] }
  0xd5   : > { %2201 = vmatpush.bf16.msra.mxu3 %v5710_v58  ;;  %v9025_v56 = vadd.f32 %v1202_v41, %v1189_v50  ;;  %v5646_v58 = vor.u32 %v7026_v38, %v5645_v37  ;;  %v6940_v38 = vld [vmem:[%s10540_s1 + $0xac] sm:$0xf]  ;;  %v5311_v50 = vld [vmem:[%s10540_s1 + $0xb8] sm:$0xf0]  ;;  %v9123_v41 = vpop.f32.mrf.mxu0 }
  0xd6   : > { %2160 = vmatpush.bf16.msra.mxu0 %v5310_v43  ;;  %v5246_v43 = vor.u32 %v6926_v31, %v5245_v54  ;;  %v5439_v54 = vld [vmem:[%s10540_s1 + $0x1b8] sm:$0xf0]  ;;  %v7004_v31 = vld [vmem:[%s10540_s1 + $0x2ac] sm:$0xf]  ;;  %v5314_v35 = vor.u32 %v6940_v38, %v5311_v50 }
  0xd7   : > { %2174 = vmatpush.bf16.msra.mxu1 %v5438_v51  ;;  %v5229_v51 = vld [vmem:[%s10540_s1 + $0x8] sm:$0xf]  ;;  %v5570_v34 = vor.u32 %v7004_v31, %v5567_v55  ;;  %v6924_v31 = vld [vmem:[%s10540_s1 + $0x2c] sm:$0xf]  ;;  %v5247_v55 = vld [vmem:[%s10540_s1 + $0x38] sm:$0xf0] }
  0xd8   : > { %2188 = vmatpush.bf16.msra.mxu2 %v5566_v0  ;;  %v6922_v0 = vld [vmem:[%s10540_s1 + $0x14] sm:$0xf0] }
  0xd9   : > { %2202 = vmatpush.bf16.msra.mxu3 %v5694_v6  ;;  %v6954_v6 = vld [vmem:[%s10540_s1 + $0x114] sm:$0xf0]  ;;  %v5230_v12 = vor.u32 %v6922_v0, %v5229_v51  ;;  %v6968_v51 = vld [vmem:[%s10540_s1 + $0x18c] sm:$0xf] }
  0xda   : > { %2161 = vmatpush.bf16.msra.mxu0 %v5294_v8  ;;  %v6948_v8 = vld [vmem:[%s10540_s1 + $0xec] sm:$0xf]  ;;  %v5358_v16 = vor.u32 %v6954_v6, %v5357_v4  ;;  %v9155_v0 = vpop.f32.mrf.mxu2  ;;  %v5551_v6 = vld [vmem:[%s10540_s1 + $0x298] sm:$0xf0] }
  0xdb   : > { %2175 = vmatpush.bf16.msra.mxu1 %v5422_v10  ;;  %v5343_v10 = vld [vmem:[%s10540_s1 + $0xf8] sm:$0xf0]  ;;  %v7000_v4 = vld [vmem:[%s10540_s1 + $0x28c] sm:$0xf]  ;;  %v9172_v53 = vpop.f32.mrf.mxu3 }
  0xdc   : > { %2189 = vmatpush.bf16.msra.mxu2 %v5550_v11  ;;  %v6980_v11 = vld [vmem:[%s10540_s1 + $0x1ec] sm:$0xf] }
  0xdd   : > { %2203 = vmatpush.bf16.msra.mxu3 %v5678_v15  ;;  %v5599_v15 = vld [vmem:[%s10540_s1 + $0x2f8] sm:$0xf0]  ;;  %v5474_v21 = vor.u32 %v6980_v11, %v5471_v13 }
  0xde   : > { %2162 = vmatpush.bf16.msra.mxu0 %v5278_v46  ;;  %v5346_v46 = vor.u32 %v6948_v8, %v5343_v10  ;;  %v5602_v22 = vor.u32 %v7012_v14, %v5599_v15  ;;  %v5554_v8 = vor.u32 %v7000_v4, %v5551_v6  ;;  %v6932_v10 = vld [vmem:[%s10540_s1 + $0x6c] sm:$0xf]  ;;  %v5279_v11 = vld [vmem:[%s10540_s1 + $0x78] sm:$0xf0] }
  0xdf   : > { %2176 = vmatpush.bf16.msra.mxu1 %v5406_v40  ;;  %v6944_v40 = vld [vmem:[%s10540_s1 + $0xcc] sm:$0xf] }
  0xe0   : > { %2190 = vmatpush.bf16.msra.mxu2 %v5534_v57  ;;  %v5327_v57 = vld [vmem:[%s10540_s1 + $0xd8] sm:$0xf0] }
  0xe1   : > { %2204 = vmatpush.bf16.msra.mxu3 %v5662_v36  ;;  %v5583_v36 = vld [vmem:[%s10540_s1 + $0x2d8] sm:$0xf0]  ;;  %v5330_v28 = vor.u32 %v6944_v40, %v5327_v57  ;;  %v6928_v57 = vld [vmem:[%s10540_s1 + $0x4c] sm:$0xf] }
  0xe2   : > { %2163 = vmatpush.bf16.msra.mxu0 %v5262_v39  ;;  %v5586_v37 = vor.u32 %v7008_v45, %v5583_v36  ;;  %v6972_v39 = vld [vmem:[%s10540_s1 + $0x1ac] sm:$0xf]  ;;  %v5391_v36 = vld [vmem:[%s10540_s1 + $0x158] sm:$0xf0]  ;;  %v5266_v50 = vor.u32 %v6928_v57, %v5263_v24 }
  0xe3   : > { %2177 = vmatpush.bf16.msra.mxu1 %v5390_v47  ;;  %v9125_v47 = vpop.f32.mrf.mxu1  ;;  %v5442_v33 = vor.u32 %v6972_v39, %v5439_v54 }
  0xe4   : > { %2191 = vmatpush.bf16.msra.mxu2 %v5518_v48  ;;  %v5714_v48 = vor.u32 %v7040_v23, %v5711_v27  ;;  %v6992_v23 = vld [vmem:[%s10540_s1 + $0x24c] sm:$0xf]  ;;  %v5519_v27 = vld [vmem:[%s10540_s1 + $0x258] sm:$0xf0] }
  0xe5   : > { %2205 = vmatpush.bf16.msra.mxu3 %v5646_v58  ;;  %v7036_v58 = vld [vmem:[%s10540_s1 + $0x3ac] sm:$0xf]  ;;  %v5522_v54 = vor.u32 %v6992_v23, %v5519_v27  ;;  %v7237_v23 = vld [vmem:[%s10540_s1 + $0x9cc] sm:$0xf0]  ;;  %v6229_v27 = vld [vmem:[%s10540_s1 + $0xac0] sm:$0xf] }
  0xe6   : > { %2164 = vmatpush.bf16.msra.mxu0 %v5246_v43  ;;  %v5295_v43 = vld [vmem:[%s10540_s1 + $0x98] sm:$0xf0] }
  0xe7   : > { %2178 = vmatpush.bf16.msra.mxu1 %v5374_v1  ;;  %v5698_v1 = vor.u32 %v7036_v58, %v5695_v61  ;;  %v5298_v60 = vor.u32 %v6936_v42, %v5295_v43  ;;  %v6956_v58 = vld [vmem:[%s10540_s1 + $0x12c] sm:$0xf]  ;;  %v5631_v43 = vld [vmem:[%s10540_s1 + $0x338] sm:$0xf0] }
  0xe8   : > { %2192 = vmatpush.bf16.msra.mxu2 %v5502_v3  ;;  %v5423_v3 = vld [vmem:[%s10540_s1 + $0x198] sm:$0xf0]  ;;  %v7020_v42 = vld [vmem:[%s10540_s1 + $0x32c] sm:$0xf] }
  0xe9   : > { %2206 = vmatpush.bf16.msra.mxu3 %v5630_v52  ;;  %v5679_v52 = vld [vmem:[%s10540_s1 + $0x398] sm:$0xf0]  ;;  %v5426_v2 = vor.u32 %v6968_v51, %v5423_v3  ;;  %v5250_v51 = vor.u32 %v6924_v31, %v5247_v55  ;;  %v5957_v55 = vld [vmem:[%s10540_s1 + $0x8a0] sm:$0xf] }
  0xea   : > { %2165 = vmatpush.bf16.msra.mxu0 %v5230_v12  ;;  %v6964_v12 = vld [vmem:[%s10540_s1 + $0x16c] sm:$0xf]  ;;  %v1216_v13 = vpop.f32.mrf.mxu0  ;;  %v5682_v15 = vor.u32 %v7032_v7, %v5679_v52  ;;  %v5231_v3 = vld [vmem:[%s10540_s1 + $0x18] sm:$0xf0] }
  0xeb   : > { %2179 = vmatpush.bf16.msra.mxu1 %v5358_v16  ;;  %v1230_v14 = vpop.f32.mrf.mxu1  ;;  %v5407_v16 = vld [vmem:[%s10540_s1 + $0x178] sm:$0xf0]  ;;  %v6952_v7 = vld [vmem:[%s10540_s1 + $0x10c] sm:$0xf] }
  0xec   : > { %2193 = vmatpush.bf16.msra.mxu2 %v5486_v17  ;;  %v6996_v17 = vld [vmem:[%s10540_s1 + $0x26c] sm:$0xf]  ;;  %v1231_v19 = vadd.f32 %v1230_v14, %v1216_v13  ;;  %v5359_v52 = vld [vmem:[%s10540_s1 + $0x118] sm:$0xf0]  ;;  %v7209_v13 = vld [vmem:[%s10540_s1 + $0x8ec] sm:$0xf0] }
  0xed   : > { %2207 = vmatpush.bf16.msra.mxu3 %v5614_v20  ;;  %2166 = vmatmul.bf16.vlgmr.msra.gmra.mxu0 %v8533_v26  ;;  %v7028_v20 = vld [vmem:[%s10540_s1 + $0x36c] sm:$0xf]  ;;  %v5538_v40 = vor.u32 %v6996_v17, %v5535_v18  ;;  %v6117_v14 = vld [vmem:[%s10540_s1 + $0x9e0] sm:$0xf]  ;;  %v7273_v18 = vld [vmem:[%s10540_s1 + $0xaec] sm:$0xf0] }
  0xee   : > { %2214 = vmatpush.bf16.msrb.mxu0 %v5346_v46  ;;  %2180 = vmatmul.bf16.vlgmr.msra.gmra.mxu1 %v8579_v29  ;;  %v5663_v46 = vld [vmem:[%s10540_s1 + $0x378] sm:$0xf0]  ;;  %v6245_v17 = vld [vmem:[%s10540_s1 + $0xae0] sm:$0xf] }
  0xef   : > { %2228 = vmatpush.bf16.msrb.mxu1 %v5474_v21  ;;  %2194 = vmatmul.bf16.vlgmr.msra.gmra.mxu2 %v8548_v44  ;;  %v5282_v21 = vor.u32 %v6932_v10, %v5279_v11  ;;  %v5666_v45 = vor.u32 %v7028_v20, %v5663_v46  ;;  %v7016_v10 = vld [vmem:[%s10540_s1 + $0x30c] sm:$0xf]  ;;  %v5615_v11 = vld [vmem:[%s10540_s1 + $0x318] sm:$0xf0]  ;;  %v6373_v46 = vld [vmem:[%s10540_s1 + $0xbe0] sm:$0xf]  ;;  %v6246_v24 = vor.u32 %v7273_v18, %v6245_v17 }
  0xf0   : > { %2242 = vmatpush.bf16.msrb.mxu2 %v5602_v22  ;;  %2208 = vmatmul.bf16.vlgmr.msra.gmra.mxu3 %v8606_v5  ;;  %v5410_v22 = vor.u32 %v6964_v12, %v5407_v16  ;;  %v5989_v12 = vld [vmem:[%s10540_s1 + $0x8e0] sm:$0xf]  ;;  %v7241_v16 = vld [vmem:[%s10540_s1 + $0x9ec] sm:$0xf0] }
  0xf1   : > { %2256 = vmatpush.bf16.msrb.mxu3 %v5730_v25  ;;  %v6960_v25 = vld [vmem:[%s10540_s1 + $0x14c] sm:$0xf]  ;;  %v6118_v57 = vor.u32 %v7241_v16, %v6117_v14  ;;  %v9394_v16 = vld [vmem:[%s10540_s1 + $0x96c] sm:$0xf0]  ;;  %v9399_v17 = vld [vmem:[%s10540_s1 + $0xa60] sm:$0xf] }
  0xf2   : > { %2215 = vmatpush.bf16.msrb.mxu0 %v5330_v28  ;;  %v1244_v30 = vpop.f32.mrf.mxu2  ;;  %v9404_v18 = vld [vmem:[%s10540_s1 + $0xa6c] sm:$0xf0] }
  0xf3   : > { %2229 = vmatpush.bf16.msrb.mxu1 %v5458_v32  ;;  %v1245_v28 = vadd.f32 %v1244_v30, %v1231_v19  ;;  %v7024_v32 = vld [vmem:[%s10540_s1 + $0x34c] sm:$0xf]  ;;  %v1258_v38 = vpop.f32.mrf.mxu3  ;;  %v5362_v19 = vor.u32 %v6952_v7, %v5359_v52  ;;  %v7205_v30 = vld [vmem:[%s10540_s1 + $0x8cc] sm:$0xf0]  ;;  %v6197_v7 = vld [vmem:[%s10540_s1 + $0xa80] sm:$0xf] }
  0xf4   : > { %2243 = vmatpush.bf16.msrb.mxu2 %v5586_v37  ;;  %v5647_v37 = vld [vmem:[%s10540_s1 + $0x358] sm:$0xf0]  ;;  %v7261_v52 = vld [vmem:[%s10540_s1 + $0xa8c] sm:$0xf0] }
  0xf5   : > { %2257 = vmatpush.bf16.msrb.mxu3 %v5714_v48  ;;  %v9222_v39 = vadd.f32 %v1258_v38, %v1245_v28  ;;  %v5394_v48 = vor.u32 %v6960_v25, %v5391_v36  ;;  %v5650_v61 = vor.u32 %v7024_v32, %v5647_v37  ;;  %v5973_v25 = vld [vmem:[%s10540_s1 + $0x8c0] sm:$0xf]  ;;  %v7269_v28 = vld [vmem:[%s10540_s1 + $0xacc] sm:$0xf0]  ;;  %v9320_v38 = vpop.f32.mrf.mxu0 }
  0xf6   : > { %2216 = vmatpush.bf16.msrb.mxu0 %v5314_v35  ;;  %v5375_v35 = vld [vmem:[%s10540_s1 + $0x138] sm:$0xf0]  ;;  %v6357_v32 = vld [vmem:[%s10540_s1 + $0xbc0] sm:$0xf]  ;;  %v7301_v37 = vld [vmem:[%s10540_s1 + $0xbcc] sm:$0xf0]  ;;  %v6230_v31 = vor.u32 %v7269_v28, %v6229_v27 }
  0xf7   : > { %2230 = vmatpush.bf16.msrb.mxu1 %v5442_v33  ;;  %v6988_v33 = vld [vmem:[%s10540_s1 + $0x22c] sm:$0xf]  ;;  %v5378_v4 = vor.u32 %v6956_v58, %v5375_v35  ;;  %v7201_v58 = vld [vmem:[%s10540_s1 + $0x8ac] sm:$0xf0]  ;;  %v6358_v35 = vor.u32 %v7301_v37, %v6357_v32  ;;  %v9434_v28 = vld [vmem:[%s10540_s1 + $0x940] sm:$0xf] }
  0xf8   : > { %2244 = vmatpush.bf16.msrb.mxu2 %v5570_v34  ;;  %v5503_v34 = vld [vmem:[%s10540_s1 + $0x238] sm:$0xf0]  ;;  %v9429_v27 = vld [vmem:[%s10540_s1 + $0x84c] sm:$0xf0]  ;;  %v7177_v37 = vld [vmem:[%s7769_s21 + $0x1c] sm:$0xf0] }
  0xf9   : > { %2258 = vmatpush.bf16.msrb.mxu3 %v5698_v1  ;;  %v6920_v1 = vld [vmem:[%s10540_s1 + $0xc] sm:$0xf]  ;;  %v5506_v6 = vor.u32 %v6988_v33, %v5503_v34  ;;  %v7233_v33 = vld [vmem:[%s10540_s1 + $0x9ac] sm:$0xf0]  ;;  %v6213_v34 = vld [vmem:[%s10540_s1 + $0xaa0] sm:$0xf] }
  0xfa   : > { %2217 = vmatpush.bf16.msrb.mxu0 %v5298_v60  ;;  %v6984_v60 = vld [vmem:[%s10540_s1 + $0x20c] sm:$0xf]  ;;  %v5861_v32 = vld [vmem:[%s7769_s21 + $0x10] sm:$0xf] }
  0xfb   : > { %2231 = vmatpush.bf16.msrb.mxu1 %v5426_v2  ;;  %v5634_v2 = vor.u32 %v7020_v42, %v5631_v43  ;;  %v7265_v42 = vld [vmem:[%s10540_s1 + $0xaac] sm:$0xf0] }
  0xfc   : > { %2245 = vmatpush.bf16.msrb.mxu2 %v5554_v8  ;;  %v5487_v8 = vld [vmem:[%s10540_s1 + $0x218] sm:$0xf0]  ;;  %v7297_v43 = vld [vmem:[%s10540_s1 + $0xbac] sm:$0xf0] }
  0xfd   : > { %2259 = vmatpush.bf16.msrb.mxu3 %v5682_v15  ;;  %v5234_v15 = vor.u32 %v6920_v1, %v5231_v3  ;;  %v5490_v20 = vor.u32 %v6984_v60, %v5487_v8  ;;  %v5941_v1 = vld [vmem:[%s10540_s1 + $0x880] sm:$0xf]  ;;  %v7197_v3 = vld [vmem:[%s10540_s1 + $0x88c] sm:$0xf0] }
  0xfe   : > { %2218 = vmatpush.bf16.msrb.mxu0 %v5282_v21  ;;  %v7305_v21 = vld [vmem:[%s10540_s1 + $0xbec] sm:$0xf0]  ;;  %v6325_v60 = vld [vmem:[%s10540_s1 + $0xb80] sm:$0xf]  ;;  %v5942_v14 = vor.u32 %v7197_v3, %v5941_v1 }
  0xff   : > { %2232 = vmatpush.bf16.msrb.mxu1 %v5410_v22  ;;  %v5618_v22 = vor.u32 %v7016_v10, %v5615_v11  ;;  %v6374_v36 = vor.u32 %v7305_v21, %v6373_v46  ;;  %v7293_v8 = vld [vmem:[%s10540_s1 + $0xb8c] sm:$0xf0]  ;;  %v5925_v10 = vld [vmem:[%s10540_s1 + $0x860] sm:$0xf]  ;;  %v6198_v46 = vor.u32 %v7261_v52, %v6197_v7  ;;  %v9483_v7 = vor.u32 %v7177_v37, %v5861_v32 }
 0x100   : > { %2246 = vmatpush.bf16.msrb.mxu2 %v5538_v40  ;;  %v5990_v40 = vor.u32 %v7209_v13, %v5989_v12  ;;  %v7193_v11 = vld [vmem:[%s10540_s1 + $0x86c] sm:$0xf0]  ;;  %v9384_v12 = vpop.f32.mrf.mxu3  ;;  %v9409_v21 = vld [vmem:[%s10540_s1 + $0xb60] sm:$0xf] }
 0x101   : > { %2260 = vmatpush.bf16.msrb.mxu3 %v5666_v45  ;;  %v6101_v45 = vld [vmem:[%s10540_s1 + $0x9c0] sm:$0xf]  ;;  %v9478_v3 = vld [vmem:[%s10540_s1 + $0x82c] sm:$0xf0] }
 0x102   : > { %2219 = vmatpush.bf16.msrb.mxu0 %v5266_v50  ;;  %v5974_v50 = vor.u32 %v7205_v30, %v5973_v25  ;;  %v6326_v25 = vor.u32 %v7293_v8, %v6325_v60  ;;  %v7178_v30 = vld [vmem:[%s7769_s21 + $0x24] sm:$0xf0]  ;;  %v9488_v52 = vld [vmem:[%s10540_s1 + $0x920] sm:$0xf]  ;;  %v9493_v60 = vld [vmem:[%s10540_s1 + $0x92c] sm:$0xf0] }
 0x103   : > { %2233 = vmatpush.bf16.msrb.mxu1 %v5394_v48  ;;  %v9322_v48 = vpop.f32.mrf.mxu1  ;;  %v9498_v8 = vld [vmem:[%s10540_s1 + $0xa20] sm:$0xf]  ;;  %v6022_v37 = vor.u32 %v9493_v60, %v9488_v52  ;;  %v7239_v52 = vld [vmem:[%s10540_s1 + $0x9e4] sm:$0xf] }
 0x104   : > { %2247 = vmatpush.bf16.msrb.mxu2 %v5522_v54  ;;  %v6102_v54 = vor.u32 %v7237_v23, %v6101_v45  ;;  %v7176_v45 = vld [vmem:[%s7769_s21 + $0x1c] sm:$0xf]  ;;  %v9424_v23 = vld [vmem:[%s10540_s1 + $0x840] sm:$0xf] }
 0x105   : > { %2261 = vmatpush.bf16.msrb.mxu3 %v5650_v61  ;;  %v6085_v61 = vld [vmem:[%s10540_s1 + $0x9a0] sm:$0xf] }
 0x106   : > { %2220 = vmatpush.bf16.msrb.mxu0 %v5250_v51  ;;  %v5958_v51 = vor.u32 %v7201_v58, %v5957_v55  ;;  %v7175_v58 = vld [vmem:[%s7769_s21 + $0x14] sm:$0xf] }
 0x107   : > { %2234 = vmatpush.bf16.msrb.mxu1 %v5378_v4  ;;  %v6069_v4 = vld [vmem:[%s10540_s1 + $0x980] sm:$0xf] }
 0x108   : > { %2248 = vmatpush.bf16.msrb.mxu2 %v5506_v6 }
 0x109   : > { %2262 = vmatpush.bf16.msrb.mxu3 %v5634_v2  ;;  %v9373_v2 = vpop.f32.mrf.mxu2 }
 0x10a   : > { %2221 = vmatpush.bf16.msrb.mxu0 %v5234_v15  ;;  %v1272_v13 = vpop.f32.mrf.mxu0  ;;  %v9389_v15 = vld [vmem:[%s10540_s1 + $0x960] sm:$0xf] }
 0x10b   : > { %2235 = vmatpush.bf16.msrb.mxu1 %v5362_v19  ;;  %v1286_v19 = vpop.f32.mrf.mxu1 }
 0x10c   : > { %2249 = vmatpush.bf16.msrb.mxu2 %v5490_v20 }
 0x10d   : > { %2263 = vmatpush.bf16.msrb.mxu3 %v5618_v22  ;;  %2222 = vmatmul.bf16.vlgmr.msrb.gmra.mxu0 %v8533_v26  ;;  %v6341_v26 = vld [vmem:[%s10540_s1 + $0xba0] sm:$0xf]  ;;  %v9414_v22 = vld [vmem:[%s10540_s1 + $0xb6c] sm:$0xf0] }
 0x10e   : > { %3124 = vmatpush.bf16.msra.mxu0 %v5990_v40  ;;  %2236 = vmatmul.bf16.vlgmr.msrb.gmra.mxu1 %v8579_v29  ;;  %v6214_v29 = vor.u32 %v7265_v42, %v6213_v34  ;;  %v6342_v6 = vor.u32 %v7297_v43, %v6341_v26  ;;  %v1287_v40 = vadd.f32 %v1286_v19, %v1272_v13  ;;  %v6165_v34 = vld [vmem:[%s10540_s1 + $0xa40] sm:$0xf]  ;;  %v7253_v42 = vld [vmem:[%s10540_s1 + $0xa4c] sm:$0xf0] }
 0x10f   : > { %3138 = vmatpush.bf16.msra.mxu1 %v6118_v57  ;;  %2250 = vmatmul.bf16.vlgmr.msrb.gmra.mxu2 %v8548_v44  ;;  %v6086_v44 = vor.u32 %v7233_v33, %v6085_v61  ;;  %v5869_v57 = vld [vmem:[%s7769_s21 + $0x18] sm:$0xf]  ;;  %v5863_v61 = vld [vmem:[%s7769_s21 + $0x20] sm:$0xf0]  ;;  %v6182_v33 = vor.u32 %v9404_v18, %v9399_v17  ;;  %v9461_v26 = vld [vmem:[%s10540_s1 + $0xb40] sm:$0xf]  ;;  %v6310_v1 = vor.u32 %v9414_v22, %v9409_v21 }
 0x110   : > { %3152 = vmatpush.bf16.msra.mxu2 %v6246_v24  ;;  %2264 = vmatmul.bf16.vlgmr.msrb.gmra.mxu3 %v8606_v5  ;;  %v7229_v5 = vld [vmem:[%s10540_s1 + $0x98c] sm:$0xf0]  ;;  %v2275_v24 = vld [vmem:[%s7769_s21 + $0x38] sm:$0x11]  ;;  %v9463_v43 = vor.u32 %v7178_v30, %v5869_v57  ;;  %v6166_v17 = vor.u32 %v7253_v42, %v6165_v34  ;;  %v9515_v19 = vld [vmem:[%s10540_s1 + $0xb20] sm:$0xf] }
 0x111   : > { %3166 = vmatpush.bf16.msra.mxu3 %v6374_v36  ;;  %v6070_v20 = vor.u32 %v7229_v5, %v6069_v4  ;;  %v5871_v36 = vld [vmem:[%s7769_s21 + $0x28] sm:$0xf0]  ;;  %v2421_v55 = vunpack.c.l.b16 %v2275_v24  ;;  %v9510_v18 = vld [vmem:[%s10540_s1 + $0xa2c] sm:$0xf0] }
 0x112   : > { %3125 = vmatpush.bf16.msra.mxu0 %v5974_v50  ;;  %v9439_v50 = vld [vmem:[%s7769_s21 + $0x30] sm:$0x11]  ;;  %v1300_v4 = vpop.f32.mrf.mxu2  ;;  %v9480_v5 = vor.u32 %v7176_v45, %v5871_v36  ;;  %v1274_v21 = vpop.f32.mrf.mxu0 }
 0x113   : > { %3139 = vmatpush.bf16.msra.mxu1 %v6102_v54  ;;  %v5926_v54 = vor.u32 %v7193_v11, %v5925_v10  ;;  %v1301_v10 = vadd.f32 %v1300_v4, %v1287_v40  ;;  %v1314_v11 = vpop.f32.mrf.mxu3  ;;  %v2420_v13 = vunpack.c.h.b16 %v9439_v50  ;;  %v1288_v22 = vpop.f32.mrf.mxu1  ;;  %v9527_v40 = vld [vmem:[%s10540_s1 + $0x800] sm:$0xf]  ;;  %v9532_v57 = vld [vmem:[%s10540_s1 + $0x80c] sm:$0xf0] }
 0x114   : > { %3153 = vmatpush.bf16.msra.mxu2 %v6230_v31  ;;  %v9444_v31 = vld [vmem:[%s10540_s1 + $0x94c] sm:$0xf0]  ;;  %v1289_v45 = vadd.f32 %v1288_v22, %v1274_v21  ;;  %v5878_v42 = vor.u32 %v9532_v57, %v9527_v40  ;;  %v2469_v4 = vshrl.u32 %v9480_v5, 16  ;;  %v7303_v21 = vld [vmem:[%s10540_s1 + $0xbe4] sm:$0xf] }
 0x115   : > { %3167 = vmatpush.bf16.msra.mxu3 %v6358_v35  ;;  %v6054_v35 = vor.u32 %v9394_v16, %v9389_v15  ;;  %v5910_v15 = vor.u32 %v9429_v27, %v9424_v23  ;;  %v6038_v16 = vor.u32 %v9444_v31, %v9434_v28  ;;  %v2471_v23 = vshll.u32 %v9480_v5, 16  ;;  %v9557_v31 = vld [vmem:[%s10540_s1 + $0xa00] sm:$0xf]  ;;  %v6375_v40 = vld [vmem:[%s10540_s1 + $0xbf0] sm:$0xf0] }
 0x116   : > { %3126 = vmatpush.bf16.msra.mxu0 %v5958_v51  ;;  %v2422_v51 = vunpack.c.h.b16 %v2275_v24  ;;  %v2459_v24 = vshll.u32 %v9463_v43, 16  ;;  %v2435_v28 = vshll.u32 %v9483_v7, 16 }
 0x117   : > { %3140 = vmatpush.bf16.msra.mxu1 %v6086_v44  ;;  %v7285_v44 = vld [vmem:[%s10540_s1 + $0xb4c] sm:$0xf0]  ;;  %v2473_v60 = vrot.slane %v2471_v23, 1  ;;  %v7203_v23 = vld [vmem:[%s10540_s1 + $0x8c4] sm:$0xf] }
 0x118   : > { %3154 = vmatpush.bf16.msra.mxu2 %v6214_v29  ;;  %v9473_v29 = vld [vmem:[%s10540_s1 + $0x820] sm:$0xf]  ;;  %v2430_v30 = vpack.c.b16 %v2422_v51, %v2422_v51  ;;  %v6294_v36 = vor.u32 %v7285_v44, %v9461_v26  ;;  %v7277_v26 = vld [vmem:[%s10540_s1 + $0xb0c] sm:$0xf0]  ;;  %v7207_v51 = vld [vmem:[%s10540_s1 + $0x8e4] sm:$0xf] }
 0x119   : > { %3168 = vmatpush.bf16.msra.mxu3 %v6342_v6  ;;  %v2419_v6 = vunpack.c.l.b16 %v9439_v50  ;;  %v5894_v32 = vor.u32 %v9478_v3, %v9473_v29  ;;  %v9547_v50 = vld [vmem:[%s10540_s1 + $0x900] sm:$0xf]  ;;  %v5991_v44 = vld [vmem:[%s10540_s1 + $0x8f0] sm:$0xf0]  ;;  %v2461_v29 = vrot.slane %v2459_v24, 1 }
 0x11a   : > { %3127 = vmatpush.bf16.msra.mxu0 %v5942_v14  ;;  %v9501_v14 = vor.u32 %v7175_v58, %v5863_v61  ;;  %v9567_v58 = vld [vmem:[%s10540_s1 + $0xb00] sm:$0xf]  ;;  %v2428_v61 = vpack.c.b16 %v2420_v13, %v2420_v13  ;;  %v6119_v13 = vld [vmem:[%s10540_s1 + $0x9f0] sm:$0xf0] }
 0x11b   : > { %3141 = vmatpush.bf16.msra.mxu1 %v6070_v20  ;;  %v9520_v20 = vld [vmem:[%s10540_s1 + $0xb2c] sm:$0xf0]  ;;  %v2427_v27 = vpack.c.b16 %v2419_v6, %v2419_v6  ;;  %v2476_v6 = vshll.u32 %v2430_v30, 16  ;;  %v1316_v22 = vpop.f32.mrf.mxu3 }
 0x11c   : > { %3155 = vmatpush.bf16.msra.mxu2 %v6198_v46  ;;  %v9522_v46 = vpack.c.b16 %v2421_v55, %v2421_v55  ;;  %v9562_v55 = vld [vmem:[%s10540_s1 + $0xa0c] sm:$0xf0]  ;;  %v6278_v34 = vor.u32 %v9520_v20, %v9515_v19  ;;  %v2452_v5 = vshll.u32 %v2428_v61, 16  ;;  %v5994_v20 = vor.u32 %v7207_v51, %v5991_v44  ;;  %v6103_v61 = vld [vmem:[%s10540_s1 + $0x9d0] sm:$0xf0] }
 0x11d   : > { %3169 = vmatpush.bf16.msra.mxu3 %v6326_v25  ;;  %v9535_v25 = vadd.f32 %v1314_v11, %v1301_v10  ;;  %v2440_v10 = vshll.u32 %v2427_v27, 16  ;;  %v1302_v11 = vpop.f32.mrf.mxu2  ;;  %v6134_v19 = vor.u32 %v9562_v55, %v9557_v31 }
 0x11e   : > { %3128 = vmatpush.bf16.msra.mxu0 %v5926_v54  ;;  %v9552_v54 = vld [vmem:[%s10540_s1 + $0x90c] sm:$0xf0]  ;;  %v2464_v3 = vshll.u32 %v9522_v46, 16  ;;  %v7271_v46 = vld [vmem:[%s10540_s1 + $0xae4] sm:$0xf]  ;;  %v2454_v55 = vrot.slane %v2452_v5, 1 }
 0x11f   : > { %3142 = vmatpush.bf16.msra.mxu1 %v6054_v35  ;;  %v2447_v35 = vshll.u32 %v9501_v14, 16 }
 0x120   : > { %3156 = vmatpush.bf16.msra.mxu2 %v6182_v33  ;;  %v6150_v33 = vor.u32 %v9510_v18, %v9498_v8  ;;  %v2437_v8 = vrot.slane %v2435_v28, 1  ;;  %v6006_v18 = vor.u32 %v9552_v54, %v9547_v50  ;;  %v2466_v24 = vrot.slane %v2464_v3, 1  ;;  %v5975_v50 = vld [vmem:[%s10540_s1 + $0x8d0] sm:$0xf0]  ;;  %v7235_v54 = vld [vmem:[%s10540_s1 + $0x9c4] sm:$0xf] }
 0x121   : > { %3170 = vmatpush.bf16.msra.mxu3 %v6310_v1  ;;  %v2457_v1 = vshrl.u32 %v9463_v43, 16  ;;  %v2433_v43 = vshrl.u32 %v9483_v7, 16  ;;  %v6262_v7 = vor.u32 %v7277_v26, %v9567_v58  ;;  %v2442_v28 = vrot.slane %v2440_v10, 1  ;;  %v6359_v26 = vld [vmem:[%s10540_s1 + $0xbd0] sm:$0xf0] }
 0x122   : > { %3129 = vmatpush.bf16.msra.mxu0 %v5910_v15  ;;  %v2445_v15 = vshrl.u32 %v9501_v14, 16  ;;  %v6247_v14 = vld [vmem:[%s10540_s1 + $0xaf0] sm:$0xf0]  ;;  %v6378_v58 = vor.u32 %v7303_v21, %v6375_v40  ;;  %v7263_v10 = vld [vmem:[%s10540_s1 + $0xaa4] sm:$0xf] }
 0x123   : > { %3143 = vmatpush.bf16.msra.mxu1 %v6038_v16  ;;  %v2449_v16 = vrot.slane %v2447_v35, 1  ;;  %v2462_v57 = vor.u32 %v2461_v29, %v2457_v1  ;;  %v2438_v27 = vor.u32 %v2437_v8, %v2433_v43  ;;  %v7267_v35 = vld [vmem:[%s10540_s1 + $0xac4] sm:$0xf]  ;;  %v5978_v1 = vor.u32 %v7203_v23, %v5975_v50  ;;  %v6087_v8 = vld [vmem:[%s10540_s1 + $0x9b0] sm:$0xf0] }
 0x124   : > { %3157 = vmatpush.bf16.msra.mxu2 %v6166_v17  ;;  %v1303_v17 = vadd.f32 %v1302_v11, %v1289_v45  ;;  %v2474_v45 = vor.u32 %v2473_v60, %v2469_v4  ;;  %v6106_v29 = vor.u32 %v7235_v54, %v6103_v61  ;;  %v7231_v60 = vld [vmem:[%s10540_s1 + $0x9a4] sm:$0xf]  ;;  %v6215_v11 = vld [vmem:[%s10540_s1 + $0xab0] sm:$0xf0] }
 0x125   : > { %3171 = vmatpush.bf16.msra.mxu3 %v6294_v36  ;;  %v2478_v36 = vrot.slane %v2476_v6, 1  ;;  %v2450_v31 = vor.u32 %v2449_v16, %v2445_v15  ;;  %v9646_v44 = vsel %vm2431_vm1, %v2438_v27, %v2442_v28  ;;  %v7199_v6 = vld [vmem:[%s10540_s1 + $0x8a4] sm:$0xf]  ;;  %v6343_v15 = vld [vmem:[%s10540_s1 + $0xbb0] sm:$0xf0]  ;;  %v6090_v5 = vor.u32 %v7231_v60, %v6087_v8 }
 0x126   : > { %3130 = vmatpush.bf16.msra.mxu0 %v5894_v32  ;;  %v9613_v30 = vadd.f32 %v1316_v22, %v1303_v17  ;;  %v6122_v32 = vor.u32 %v7239_v52, %v6119_v13  ;;  %v5959_v52 = vld [vmem:[%s10540_s1 + $0x8b0] sm:$0xf0]  ;;  %v7295_v13 = vld [vmem:[%s10540_s1 + $0xba4] sm:$0xf]  ;;  %v6218_v17 = vor.u32 %v7263_v10, %v6215_v11 }
 0x127   : > { %3144 = vmatpush.bf16.msra.mxu1 %v6022_v37  ;;  %v6250_v37 = vor.u32 %v7271_v46, %v6247_v14  ;;  %v9643_v51 = vsel %vm2431_vm1, %v2474_v45, %v2478_v36  ;;  %v9649_v4 = vsel %vm2431_vm1, %v2450_v31, %v2454_v55  ;;  %v5962_v16 = vor.u32 %v7199_v6, %v5959_v52  ;;  %v6071_v14 = vld [vmem:[%s10540_s1 + $0x990] sm:$0xf0]  ;;  %v7259_v21 = vld [vmem:[%s10540_s1 + $0xa84] sm:$0xf] }
 0x128   : > { %3158 = vmatpush.bf16.msra.mxu2 %v6150_v33  ;;  %v6231_v33 = vld [vmem:[%s10540_s1 + $0xad0] sm:$0xf0]  ;;  %v6346_v46 = vor.u32 %v7295_v13, %v6343_v15  ;;  %v7191_v27 = vld [vmem:[%s10540_s1 + $0x864] sm:$0xf] }
 0x129   : > { %3172 = vmatpush.bf16.msra.mxu3 %v6278_v34  ;;  %v9634_v34 = vsel %vm2431_vm1, %v2462_v57, %v2466_v24  ;;  %v6234_v3 = vor.u32 %v7267_v35, %v6231_v33  ;;  %v6199_v22 = vld [vmem:[%s10540_s1 + $0xa90] sm:$0xf0]  ;;  %v7291_v57 = vld [vmem:[%s10540_s1 + $0xb84] sm:$0xf] }
 0x12a   : > { %3131 = vmatpush.bf16.msra.mxu0 %v5878_v42  ;;  %v7299_v42 = vld [vmem:[%s10540_s1 + $0xbc4] sm:$0xf]  ;;  %v2055_v40 = vpop.f32.mrf.mxu0  ;;  %v6202_v23 = vor.u32 %v7259_v21, %v6199_v22  ;;  %v5927_v28 = vld [vmem:[%s10540_s1 + $0x870] sm:$0xf0] }
 0x12b   : > { %3145 = vmatpush.bf16.msra.mxu1 %v6006_v18  ;;  %v6362_v43 = vor.u32 %v7299_v42, %v6359_v26  ;;  %v7195_v18 = vld [vmem:[%s10540_s1 + $0x884] sm:$0xf]  ;;  %v2069_v45 = vpop.f32.mrf.mxu1  ;;  %v6055_v54 = vld [vmem:[%s10540_s1 + $0x970] sm:$0xf0]  ;;  %v5930_v61 = vor.u32 %v7191_v27, %v5927_v28 }
 0x12c   : > { %3159 = vmatpush.bf16.msra.mxu2 %v6134_v19  ;;  %v5943_v19 = vld [vmem:[%s10540_s1 + $0x890] sm:$0xf0]  ;;  %v7255_v31 = vld [vmem:[%s10540_s1 + $0xa64] sm:$0xf] }
 0x12d   : > { %3173 = vmatpush.bf16.msra.mxu3 %v6262_v7  ;;  %3132 = vmatmul.bf16.vlgmr.msra.gmra.mxu0 %v9646_v44  ;;  %v7227_v7 = vld [vmem:[%s10540_s1 + $0x984] sm:$0xf]  ;;  %v5946_v24 = vor.u32 %v7195_v18, %v5943_v19  ;;  %v6183_v55 = vld [vmem:[%s10540_s1 + $0xa70] sm:$0xf0] }
 0x12e   : > { %3180 = vmatpush.bf16.msrb.mxu0 %v5994_v20  ;;  %3146 = vmatmul.bf16.vlgmr.msra.gmra.mxu1 %v9649_v4  ;;  %v1121_v20 = vadd.f32 %v8938_v63, %v8936_v62  ;;  %v6327_v62 = vld [vmem:[%s10540_s1 + $0xb90] sm:$0xf0]  ;;  %v2056_v63 = vadd.f32 %v2055_v40, %v8906_v49  ;;  %v6074_v36 = vor.u32 %v7227_v7, %v6071_v14  ;;  %v7187_v42 = vld [vmem:[%s10540_s1 + $0x844] sm:$0xf] }
 0x12f   : > { %3194 = vmatpush.bf16.msrb.mxu1 %v6122_v32  ;;  %3160 = vmatmul.bf16.vlgmr.msra.gmra.mxu2 %v9634_v34  ;;  %v7223_v32 = vld [vmem:[%s10540_s1 + $0x964] sm:$0xf]  ;;  %v6186_v33 = vor.u32 %v7255_v31, %v6183_v55  ;;  %v5911_v26 = vld [vmem:[%s10540_s1 + $0x850] sm:$0xf0] }
 0x130   : > { %3208 = vmatpush.bf16.msrb.mxu2 %v6250_v37  ;;  %3174 = vmatmul.bf16.vlgmr.msra.gmra.mxu3 %v9643_v51  ;;  %v1135_v49 = vadd.f32 %v8958_v59, %v1121_v20  ;;  %v6330_v37 = vor.u32 %v7291_v57, %v6327_v62  ;;  %v2070_v50 = vadd.f32 %v2069_v45, %v2056_v63  ;;  %v6311_v59 = vld [vmem:[%s10540_s1 + $0xb70] sm:$0xf0]  ;;  %v7251_v60 = vld [vmem:[%s10540_s1 + $0xa44] sm:$0xf] }
 0x131   : > { %3222 = vmatpush.bf16.msrb.mxu3 %v6378_v58  ;;  %v7287_v58 = vld [vmem:[%s10540_s1 + $0xb64] sm:$0xf]  ;;  %v6058_v35 = vor.u32 %v7223_v32, %v6055_v54  ;;  %v6039_v52 = vld [vmem:[%s10540_s1 + $0x950] sm:$0xf0] }
 0x132   : > { %3181 = vmatpush.bf16.msrb.mxu0 %v5978_v1  ;;  %v7219_v1 = vld [vmem:[%s10540_s1 + $0x944] sm:$0xf]  ;;  %v2083_v6 = vpop.f32.mrf.mxu2  ;;  %v2057_v10 = vpop.f32.mrf.mxu0  ;;  %v6295_v13 = vld [vmem:[%s10540_s1 + $0xb50] sm:$0xf0] }
 0x133   : > { %3195 = vmatpush.bf16.msrb.mxu1 %v6106_v29  ;;  %v1149_v29 = vadd.f32 %v8966_v9, %v1135_v49  ;;  %v2084_v8 = vadd.f32 %v2083_v6, %v2070_v50  ;;  %v2097_v11 = vpop.f32.mrf.mxu3  ;;  %v7283_v9 = vld [vmem:[%s10540_s1 + $0xb44] sm:$0xf]  ;;  %v6042_v18 = vor.u32 %v7219_v1, %v6039_v52  ;;  %v5895_v20 = vld [vmem:[%s10540_s1 + $0x830] sm:$0xf0]  ;;  %v6253_v1 = vld [vmem:[%s10540_s1 + $0xae8] sm:$0xf] }
 0x134   : > { %3209 = vmatpush.bf16.msrb.mxu2 %v6234_v3  ;;  %v6314_v3 = vor.u32 %v7287_v58, %v6311_v59  ;;  %v7183_v7 = vld [vmem:[%s10540_s1 + $0x824] sm:$0xf]  ;;  %v6298_v14 = vor.u32 %v7283_v9, %v6295_v13  ;;  %v6023_v22 = vld [vmem:[%s10540_s1 + $0x930] sm:$0xf0]  ;;  %v5981_v13 = vld [vmem:[%s10540_s1 + $0x8c8] sm:$0xf] }
 0x135   : > { %3223 = vmatpush.bf16.msrb.mxu3 %v6362_v43  ;;  %v6167_v43 = vld [vmem:[%s10540_s1 + $0xa50] sm:$0xf0]  ;;  %v2058_v15 = vadd.f32 %v2057_v10, %v1149_v29  ;;  %v7247_v40 = vld [vmem:[%s10540_s1 + $0xa24] sm:$0xf]  ;;  %v7274_v29 = vld [vmem:[%s10540_s1 + $0xaf4] sm:$0xf0] }
 0x136   : > { %3182 = vmatpush.bf16.msrb.mxu0 %v5962_v16  ;;  %v5914_v16 = vor.u32 %v7187_v42, %v5911_v26  ;;  %v6170_v19 = vor.u32 %v7251_v60, %v6167_v43  ;;  %v6151_v57 = vld [vmem:[%s10540_s1 + $0xa30] sm:$0xf0]  ;;  %v7279_v62 = vld [vmem:[%s10540_s1 + $0xb24] sm:$0xf]  ;;  %v7242_v26 = vld [vmem:[%s10540_s1 + $0x9f4] sm:$0xf0]  ;;  %v6254_v9 = vor.u32 %v7274_v29, %v6253_v1 }
 0x137   : > { %3196 = vmatpush.bf16.msrb.mxu1 %v6090_v5  ;;  %v2071_v5 = vpop.f32.mrf.mxu1  ;;  %v6279_v63 = vld [vmem:[%s10540_s1 + $0xb30] sm:$0xf0]  ;;  %v7179_v45 = vld [vmem:[%s10540_s1 + $0x804] sm:$0xf]  ;;  %v6154_v27 = vor.u32 %v7247_v40, %v6151_v57  ;;  %v6381_v60 = vld [vmem:[%s10540_s1 + $0xbe8] sm:$0xf] }
 0x138   : > { %3210 = vmatpush.bf16.msrb.mxu2 %v6218_v17  ;;  %v9756_v17 = vadd.f32 %v2097_v11, %v2084_v8  ;;  %v2072_v21 = vadd.f32 %v2071_v5, %v2058_v15  ;;  %v7211_v28 = vld [vmem:[%s10540_s1 + $0x904] sm:$0xf]  ;;  %v6007_v32 = vld [vmem:[%s10540_s1 + $0x910] sm:$0xf0]  ;;  %v7306_v43 = vld [vmem:[%s10540_s1 + $0xbf4] sm:$0xf0] }
 0x139   : > { %3224 = vmatpush.bf16.msrb.mxu3 %v6346_v46  ;;  %v7215_v46 = vld [vmem:[%s10540_s1 + $0x924] sm:$0xf]  ;;  %v6135_v54 = vld [vmem:[%s10540_s1 + $0xa10] sm:$0xf0]  ;;  %v6010_v6 = vor.u32 %v7211_v28, %v6007_v32  ;;  %v7206_v15 = vld [vmem:[%s10540_s1 + $0x8d4] sm:$0xf0]  ;;  %v6382_v5 = vor.u32 %v7306_v43, %v6381_v60 }
 0x13a   : > { %3183 = vmatpush.bf16.msrb.mxu0 %v5946_v24  ;;  %v5898_v24 = vor.u32 %v7183_v7, %v5895_v20  ;;  %v7243_v49 = vld [vmem:[%s10540_s1 + $0xa04] sm:$0xf]  ;;  %v2085_v50 = vpop.f32.mrf.mxu2  ;;  %v6263_v55 = vld [vmem:[%s10540_s1 + $0xb10] sm:$0xf0]  ;;  %v7270_v7 = vld [vmem:[%s10540_s1 + $0xad4] sm:$0xf0] }
 0x13b   : > { %3197 = vmatpush.bf16.msrb.mxu1 %v6074_v36  ;;  %v5879_v36 = vld [vmem:[%s10540_s1 + $0x810] sm:$0xf0]  ;;  %v7275_v31 = vld [vmem:[%s10540_s1 + $0xb04] sm:$0xf]  ;;  %v2086_v58 = vadd.f32 %v2085_v50, %v2072_v21  ;;  %v2099_v59 = vpop.f32.mrf.mxu3  ;;  %v6138_v52 = vor.u32 %v7243_v49, %v6135_v54  ;;  %v6365_v20 = vld [vmem:[%s10540_s1 + $0xbc8] sm:$0xf] }
 0x13c   : > { %3211 = vmatpush.bf16.msrb.mxu2 %v6202_v23  ;;  %v6026_v23 = vor.u32 %v7215_v46, %v6023_v22  ;;  %v5882_v42 = vor.u32 %v7179_v45, %v5879_v36  ;;  %v6266_v8 = vor.u32 %v7275_v31, %v6263_v55  ;;  %v7302_v46 = vld [vmem:[%s10540_s1 + $0xbd4] sm:$0xf0]  ;;  %v5965_v40 = vld [vmem:[%s10540_s1 + $0x8a8] sm:$0xf] }
 0x13d   : > { %3225 = vmatpush.bf16.msrb.mxu3 %v6330_v37  ;;  %v6282_v37 = vor.u32 %v7279_v62, %v6279_v63  ;;  %v7202_v57 = vld [vmem:[%s10540_s1 + $0x8b4] sm:$0xf0]  ;;  %v6093_v62 = vld [vmem:[%s10540_s1 + $0x9a8] sm:$0xf]  ;;  %v6366_v63 = vor.u32 %v7302_v46, %v6365_v20 }
 0x13e   : > { %3184 = vmatpush.bf16.msrb.mxu0 %v5930_v61  ;;  %v5997_v61 = vld [vmem:[%s10540_s1 + $0x8e8] sm:$0xf]  ;;  %v7266_v36 = vld [vmem:[%s10540_s1 + $0xab4] sm:$0xf0]  ;;  %v5966_v28 = vor.u32 %v7202_v57, %v5965_v40 }
 0x13f   : > { %3198 = vmatpush.bf16.msrb.mxu1 %v6058_v35  ;;  %v7210_v35 = vld [vmem:[%s10540_s1 + $0x8f4] sm:$0xf0]  ;;  %v6221_v45 = vld [vmem:[%s10540_s1 + $0xaa8] sm:$0xf] }
 0x140   : > { %3212 = vmatpush.bf16.msrb.mxu2 %v6186_v33  ;;  %v6125_v33 = vld [vmem:[%s10540_s1 + $0x9e8] sm:$0xf]  ;;  %v5998_v10 = vor.u32 %v7210_v35, %v5997_v61  ;;  %v6222_v49 = vor.u32 %v7266_v36, %v6221_v45  ;;  %v7198_v50 = vld [vmem:[%s10540_s1 + $0x894] sm:$0xf0]  ;;  %v1177_v61 = vadd.f32 %v9125_v47, %v9123_v41 }
 0x141   : > { %3226 = vmatpush.bf16.msrb.mxu3 %v6314_v3  ;;  %v9824_v3 = vadd.f32 %v2099_v59, %v2086_v58  ;;  %v6126_v11 = vor.u32 %v7242_v26, %v6125_v33  ;;  %v6077_v54 = vld [vmem:[%s10540_s1 + $0x988] sm:$0xf]  ;;  %v7230_v55 = vld [vmem:[%s10540_s1 + $0x994] sm:$0xf0] }
 0x142   : > { %3185 = vmatpush.bf16.msrb.mxu0 %v5914_v16  ;;  %v6109_v16 = vld [vmem:[%s10540_s1 + $0x9c8] sm:$0xf]  ;;  %v7262_v59 = vld [vmem:[%s10540_s1 + $0xa94] sm:$0xf0] }
 0x143   : > { %3199 = vmatpush.bf16.msrb.mxu1 %v6042_v18  ;;  %v7238_v18 = vld [vmem:[%s10540_s1 + $0x9d4] sm:$0xf0]  ;;  %v6205_v58 = vld [vmem:[%s10540_s1 + $0xa88] sm:$0xf] }
 0x144   : > { %3213 = vmatpush.bf16.msrb.mxu2 %v6170_v19  ;;  %v6237_v19 = vld [vmem:[%s10540_s1 + $0xac8] sm:$0xf]  ;;  %v6110_v21 = vor.u32 %v7238_v18, %v6109_v16  ;;  %v7194_v47 = vld [vmem:[%s10540_s1 + $0x874] sm:$0xf0] }
 0x145   : > { %3227 = vmatpush.bf16.msrb.mxu3 %v6298_v14  ;;  %v5982_v14 = vor.u32 %v7206_v15, %v5981_v13  ;;  %v6238_v22 = vor.u32 %v7270_v7, %v6237_v19  ;;  %v6333_v33 = vld [vmem:[%s10540_s1 + $0xb88] sm:$0xf]  ;;  %v7290_v15 = vld [vmem:[%s10540_s1 + $0xb74] sm:$0xf0] }
 0x146   : > { %3186 = vmatpush.bf16.msrb.mxu0 %v5898_v24  ;;  %v7234_v24 = vld [vmem:[%s10540_s1 + $0x9b4] sm:$0xf0]  ;;  %v5933_v41 = vld [vmem:[%s10540_s1 + $0x868] sm:$0xf] }
 0x147   : > { %3200 = vmatpush.bf16.msrb.mxu1 %v6026_v23  ;;  %v6349_v23 = vld [vmem:[%s10540_s1 + $0xba8] sm:$0xf]  ;;  %v6094_v32 = vor.u32 %v7234_v24, %v6093_v62  ;;  %v5934_v16 = vor.u32 %v7194_v47, %v5933_v41  ;;  %v7222_v20 = vld [vmem:[%s10540_s1 + $0x954] sm:$0xf0] }
 0x148   : > { %3214 = vmatpush.bf16.msrb.mxu2 %v6154_v27  ;;  %v7298_v27 = vld [vmem:[%s10540_s1 + $0xbb4] sm:$0xf0]  ;;  %v6061_v60 = vld [vmem:[%s10540_s1 + $0x968] sm:$0xf] }
 0x149   : > { %3228 = vmatpush.bf16.msrb.mxu3 %v6282_v37  ;;  %v5949_v37 = vld [vmem:[%s10540_s1 + $0x888] sm:$0xf]  ;;  %v6350_v31 = vor.u32 %v7298_v27, %v6349_v23  ;;  %v7286_v45 = vld [vmem:[%s10540_s1 + $0xb54] sm:$0xf0] }
 0x14a   : > { %3187 = vmatpush.bf16.msrb.mxu0 %v5882_v42  ;;  %v2111_v35 = vpop.f32.mrf.mxu0  ;;  %v7294_v42 = vld [vmem:[%s10540_s1 + $0xb94] sm:$0xf0]  ;;  %v5950_v1 = vor.u32 %v7198_v50, %v5949_v37  ;;  %v6317_v13 = vld [vmem:[%s10540_s1 + $0xb68] sm:$0xf] }
 0x14b   : > { %3201 = vmatpush.bf16.msrb.mxu1 %v6010_v6  ;;  %v2112_v26 = vadd.f32 %v2111_v35, %v9025_v56  ;;  %v2125_v29 = vpop.f32.mrf.mxu1  ;;  %v6078_v6 = vor.u32 %v7230_v55, %v6077_v54  ;;  %v6334_v56 = vor.u32 %v7294_v42, %v6333_v33  ;;  %v6045_v7 = vld [vmem:[%s10540_s1 + $0x948] sm:$0xf]  ;;  %v6318_v46 = vor.u32 %v7290_v15, %v6317_v13  ;;  %v7182_v42 = vld [vmem:[%s10540_s1 + $0x814] sm:$0xf0]  ;;  %v5999_v13 = vld [vmem:[%s10540_s1 + $0x8f8] sm:$0xf0] }
 0x14c   : > { %3215 = vmatpush.bf16.msrb.mxu2 %v6138_v52  ;;  %v6206_v52 = vor.u32 %v7262_v59, %v6205_v58  ;;  %v6301_v24 = vld [vmem:[%s10540_s1 + $0xb48] sm:$0xf]  ;;  %v6046_v23 = vor.u32 %v7222_v20, %v6045_v7  ;;  %v7250_v58 = vld [vmem:[%s10540_s1 + $0xa34] sm:$0xf0]  ;;  %v7240_v15 = vld [vmem:[%s10540_s1 + $0x9ec] sm:$0xf] }
 0x14d   : > { %3229 = vmatpush.bf16.msrb.mxu3 %v6266_v8  ;;  %3188 = vmatmul.bf16.vlgmr.msrb.gmra.mxu0 %v9646_v44  ;;  %v2126_v43 = vadd.f32 %v2125_v29, %v2112_v26  ;;  %v7226_v8 = vld [vmem:[%s10540_s1 + $0x974] sm:$0xf0]  ;;  %v6029_v37 = vld [vmem:[%s10540_s1 + $0x928] sm:$0xf]  ;;  %v6302_v50 = vor.u32 %v7286_v45, %v6301_v24  ;;  %v7236_v24 = vld [vmem:[%s10540_s1 + $0x9cc] sm:$0xf] }
 0x14e   : > { %3236 = vmatpush.bf16.msra.mxu0 %v5998_v10  ;;  %3202 = vmatmul.bf16.vlgmr.msrb.gmra.mxu1 %v9649_v4  ;;  %v6189_v10 = vld [vmem:[%s10540_s1 + $0xa68] sm:$0xf]  ;;  %v6062_v18 = vor.u32 %v7226_v8, %v6061_v60  ;;  %v7278_v8 = vld [vmem:[%s10540_s1 + $0xb14] sm:$0xf0] }
 0x14f   : > { %3250 = vmatpush.bf16.msra.mxu1 %v6126_v11  ;;  %3216 = vmatmul.bf16.vlgmr.msrb.gmra.mxu2 %v9634_v34  ;;  %v7258_v11 = vld [vmem:[%s10540_s1 + $0xa74] sm:$0xf0]  ;;  %v6157_v55 = vld [vmem:[%s10540_s1 + $0xa28] sm:$0xf] }
 0x150   : > { %3264 = vmatpush.bf16.msra.mxu2 %v6254_v9  ;;  %3230 = vmatmul.bf16.vlgmr.msrb.gmra.mxu3 %v9643_v51  ;;  %v1191_v9 = vadd.f32 %v9155_v0, %v1177_v61  ;;  %v6190_v19 = vor.u32 %v7258_v11, %v6189_v10  ;;  %v7190_v0 = vld [vmem:[%s10540_s1 + $0x854] sm:$0xf0]  ;;  %v6285_v59 = vld [vmem:[%s10540_s1 + $0xb28] sm:$0xf]  ;;  %v6158_v29 = vor.u32 %v7250_v58, %v6157_v55  ;;  %v7232_v55 = vld [vmem:[%s10540_s1 + $0x9ac] sm:$0xf] }
 0x151   : > { %3278 = vmatpush.bf16.msra.mxu3 %v6382_v5  ;;  %v5917_v5 = vld [vmem:[%s10540_s1 + $0x848] sm:$0xf]  ;;  %v7282_v61 = vld [vmem:[%s10540_s1 + $0xb34] sm:$0xf0] }
 0x152   : > { %3237 = vmatpush.bf16.msra.mxu0 %v5982_v14  ;;  %v2139_v14 = vpop.f32.mrf.mxu2  ;;  %v1205_v40 = vadd.f32 %v9172_v53, %v1191_v9  ;;  %v2113_v62 = vpop.f32.mrf.mxu0  ;;  %v5918_v36 = vor.u32 %v7190_v0, %v5917_v5  ;;  %v5885_v33 = vld [vmem:[%s10540_s1 + $0x808] sm:$0xf]  ;;  %v6286_v47 = vor.u32 %v7282_v61, %v6285_v59  ;;  %v7208_v9 = vld [vmem:[%s10540_s1 + $0x8ec] sm:$0xf]  ;;  %v6127_v5 = vld [vmem:[%s10540_s1 + $0x9f8] sm:$0xf0] }
 0x153   : > { %3251 = vmatpush.bf16.msra.mxu1 %v6110_v21  ;;  %v6173_v21 = vld [vmem:[%s10540_s1 + $0xa48] sm:$0xf]  ;;  %v2140_v57 = vadd.f32 %v2139_v14, %v2126_v43  ;;  %v2127_v54 = vpop.f32.mrf.mxu1  ;;  %v6383_v14 = vld [vmem:[%s10540_s1 + $0xbf8] sm:$0xf0]  ;;  %v7264_v61 = vld [vmem:[%s10540_s1 + $0xaac] sm:$0xf] }
 0x154   : > { %3265 = vmatpush.bf16.msra.mxu2 %v6238_v22  ;;  %v7254_v22 = vld [vmem:[%s10540_s1 + $0xa54] sm:$0xf0]  ;;  %v2114_v27 = vadd.f32 %v2113_v62, %v1205_v40  ;;  %v6141_v41 = vld [vmem:[%s10540_s1 + $0xa08] sm:$0xf]  ;;  %v6130_v40 = vor.u32 %v7240_v15, %v6127_v5  ;;  %v7204_v62 = vld [vmem:[%s10540_s1 + $0x8cc] sm:$0xf] }
 0x155   : > { %3279 = vmatpush.bf16.msra.mxu3 %v6366_v63  ;;  %v2153_v63 = vpop.f32.mrf.mxu3  ;;  %v6174_v53 = vor.u32 %v7254_v22, %v6173_v21  ;;  %v6269_v43 = vld [vmem:[%s10540_s1 + $0xb08] sm:$0xf]  ;;  %v6002_v22 = vor.u32 %v7208_v9, %v5999_v13  ;;  %v6095_v59 = vld [vmem:[%s10540_s1 + $0x9b8] sm:$0xf0]  ;;  %v7192_v5 = vld [vmem:[%s10540_s1 + $0x86c] sm:$0xf] }
 0x156   : > { %3238 = vmatpush.bf16.msra.mxu0 %v5966_v28  ;;  %v9961_v28 = vadd.f32 %v2153_v63, %v2140_v57  ;;  %v2128_v26 = vadd.f32 %v2127_v54, %v2114_v27  ;;  %v6270_v21 = vor.u32 %v7278_v8, %v6269_v43  ;;  %v5983_v63 = vld [vmem:[%s10540_s1 + $0x8d8] sm:$0xf0]  ;;  %v7200_v54 = vld [vmem:[%s10540_s1 + $0x8ac] sm:$0xf] }
 0x157   : > { %3252 = vmatpush.bf16.msra.mxu1 %v6094_v32  ;;  %v5901_v32 = vld [vmem:[%s10540_s1 + $0x828] sm:$0xf]  ;;  %v6239_v27 = vld [vmem:[%s10540_s1 + $0xad8] sm:$0xf0]  ;;  %v7260_v43 = vld [vmem:[%s10540_s1 + $0xa8c] sm:$0xf] }
 0x158   : > { %3266 = vmatpush.bf16.msra.mxu2 %v6222_v49  ;;  %v7186_v49 = vld [vmem:[%s10540_s1 + $0x834] sm:$0xf0]  ;;  %v6207_v8 = vld [vmem:[%s10540_s1 + $0xa98] sm:$0xf0] }
 0x159   : > { %3280 = vmatpush.bf16.msra.mxu3 %v6350_v31  ;;  %v7218_v31 = vld [vmem:[%s10540_s1 + $0x934] sm:$0xf0]  ;;  %v5902_v35 = vor.u32 %v7186_v49, %v5901_v32  ;;  %v6367_v32 = vld [vmem:[%s10540_s1 + $0xbd8] sm:$0xf0]  ;;  %v5986_v49 = vor.u32 %v7204_v62, %v5983_v63  ;;  %v7188_v63 = vld [vmem:[%s10540_s1 + $0x84c] sm:$0xf] }
 0x15a   : > { %3239 = vmatpush.bf16.msra.mxu0 %v5950_v1  ;;  %v6030_v1 = vor.u32 %v7218_v31, %v6029_v37  ;;  %v2141_v60 = vpop.f32.mrf.mxu2  ;;  %v5967_v31 = vld [vmem:[%s10540_s1 + $0x8b8] sm:$0xf0] }
 0x15b   : > { %3253 = vmatpush.bf16.msra.mxu1 %v6078_v6  ;;  %v6013_v6 = vld [vmem:[%s10540_s1 + $0x908] sm:$0xf]  ;;  %v2142_v10 = vadd.f32 %v2141_v60, %v2128_v26  ;;  %v5970_v26 = vor.u32 %v7200_v54, %v5967_v31  ;;  %v6303_v31 = vld [vmem:[%s10540_s1 + $0xb58] sm:$0xf0] }
 0x15c   : > { %3267 = vmatpush.bf16.msra.mxu2 %v6206_v52  ;;  %v7214_v52 = vld [vmem:[%s10540_s1 + $0x914] sm:$0xf0] }
 0x15d   : > { %3281 = vmatpush.bf16.msra.mxu3 %v6334_v56  ;;  %v7246_v56 = vld [vmem:[%s10540_s1 + $0xa14] sm:$0xf0]  ;;  %v2155_v11 = vpop.f32.mrf.mxu3  ;;  %v6014_v7 = vor.u32 %v7214_v52, %v6013_v6  ;;  %v7196_v6 = vld [vmem:[%s10540_s1 + $0x88c] sm:$0xf]  ;;  %v5951_v52 = vld [vmem:[%s10540_s1 + $0x898] sm:$0xf0] }
 0x15e   : > { %3240 = vmatpush.bf16.msra.mxu0 %v5934_v16  ;;  %v5886_v16 = vor.u32 %v7182_v42, %v5885_v33  ;;  %v10029_v0 = vadd.f32 %v2155_v11, %v2142_v10  ;;  %v6142_v20 = vor.u32 %v7246_v56, %v6141_v41  ;;  %v7296_v33 = vld [vmem:[%s10540_s1 + $0xbac] sm:$0xf]  ;;  %v6351_v42 = vld [vmem:[%s10540_s1 + $0xbb8] sm:$0xf0]  ;;  %v5954_v9 = vor.u32 %v7196_v6, %v5951_v52 }
 0x15f   : > { %3254 = vmatpush.bf16.msra.mxu1 %v6062_v18  ;;  %v7272_v18 = vld [vmem:[%s10540_s1 + $0xaec] sm:$0xf]  ;;  %v6354_v60 = vor.u32 %v7296_v33, %v6351_v42  ;;  %v6079_v56 = vld [vmem:[%s10540_s1 + $0x998] sm:$0xf0] }
 0x160   : > { %3268 = vmatpush.bf16.msra.mxu2 %v6190_v19  ;;  %v6255_v19 = vld [vmem:[%s10540_s1 + $0xaf8] sm:$0xf0]  ;;  %v7228_v41 = vld [vmem:[%s10540_s1 + $0x98c] sm:$0xf] }
 0x161   : > { %3282 = vmatpush.bf16.msra.mxu3 %v6318_v46  ;;  %v7304_v46 = vld [vmem:[%s10540_s1 + $0xbec] sm:$0xf]  ;;  %v6258_v57 = vor.u32 %v7272_v18, %v6255_v19  ;;  %v6082_v15 = vor.u32 %v7228_v41, %v6079_v56  ;;  %v5935_v18 = vld [vmem:[%s10540_s1 + $0x878] sm:$0xf0] }
 0x162   : > { %3241 = vmatpush.bf16.msra.mxu0 %v5918_v36  ;;  %v6386_v45 = vor.u32 %v7304_v46, %v6383_v14  ;;  %v6111_v36 = vld [vmem:[%s10540_s1 + $0x9d8] sm:$0xf0]  ;;  %v7292_v11 = vld [vmem:[%s10540_s1 + $0xb8c] sm:$0xf] }
 0x163   : > { %3255 = vmatpush.bf16.msra.mxu1 %v6046_v23  ;;  %v7268_v23 = vld [vmem:[%s10540_s1 + $0xacc] sm:$0xf]  ;;  %v6114_v37 = vor.u32 %v7236_v24, %v6111_v36  ;;  %v6063_v46 = vld [vmem:[%s10540_s1 + $0x978] sm:$0xf0] }
 0x164   : > { %3269 = vmatpush.bf16.msra.mxu2 %v6174_v53  ;;  %v7300_v53 = vld [vmem:[%s10540_s1 + $0xbcc] sm:$0xf]  ;;  %v5919_v24 = vld [vmem:[%s10540_s1 + $0x858] sm:$0xf0] }
 0x165   : > { %3283 = vmatpush.bf16.msra.mxu3 %v6302_v50  ;;  %v6242_v50 = vor.u32 %v7268_v23, %v6239_v27  ;;  %v6370_v58 = vor.u32 %v7300_v53, %v6367_v32  ;;  %v7224_v19 = vld [vmem:[%s10540_s1 + $0x96c] sm:$0xf]  ;;  %v6047_v53 = vld [vmem:[%s10540_s1 + $0x958] sm:$0xf0] }
 0x166   : > { %3242 = vmatpush.bf16.msra.mxu0 %v5902_v35  ;;  %v6223_v35 = vld [vmem:[%s10540_s1 + $0xab8] sm:$0xf0]  ;;  %v7256_v14 = vld [vmem:[%s10540_s1 + $0xa6c] sm:$0xf] }
 0x167   : > { %3256 = vmatpush.bf16.msra.mxu1 %v6030_v1  ;;  %v6098_v1 = vor.u32 %v7232_v55, %v6095_v59  ;;  %v7252_v32 = vld [vmem:[%s10540_s1 + $0xa4c] sm:$0xf]  ;;  %v6031_v52 = vld [vmem:[%s10540_s1 + $0x938] sm:$0xf0] }
 0x168   : > { %3270 = vmatpush.bf16.msra.mxu2 %v6158_v29  ;;  %v6226_v29 = vor.u32 %v7264_v61, %v6223_v35  ;;  %v7184_v42 = vld [vmem:[%s10540_s1 + $0x82c] sm:$0xf]  ;;  %v6287_v56 = vld [vmem:[%s10540_s1 + $0xb38] sm:$0xf0] }
 0x169   : > { %3284 = vmatpush.bf16.msra.mxu3 %v6286_v47  ;;  %v1233_v47 = vadd.f32 %v9322_v48, %v9320_v38  ;;  %v6335_v38 = vld [vmem:[%s10540_s1 + $0xb98] sm:$0xf0]  ;;  %v7248_v41 = vld [vmem:[%s10540_s1 + $0xa2c] sm:$0xf] }
 0x16a   : > { %3243 = vmatpush.bf16.msra.mxu0 %v5886_v16  ;;  %v2167_v10 = vpop.f32.mrf.mxu0  ;;  %v6210_v16 = vor.u32 %v7260_v43, %v6207_v8 }
 0x16b   : > { %3257 = vmatpush.bf16.msra.mxu1 %v6014_v7  ;;  %v2168_v48 = vadd.f32 %v2167_v10, %v9222_v39  ;;  %v2181_v13 = vpop.f32.mrf.mxu1  ;;  %v1247_v39 = vadd.f32 %v9373_v2, %v1233_v47  ;;  %v6338_v7 = vor.u32 %v7292_v11, %v6335_v38  ;;  %v6319_v2 = vld [vmem:[%s10540_s1 + $0xb78] sm:$0xf0]  ;;  %v7180_v11 = vld [vmem:[%s10540_s1 + $0x80c] sm:$0xf] }
 0x16c   : > { %3271 = vmatpush.bf16.msra.mxu2 %v6142_v20  ;;  %v6159_v47 = vld [vmem:[%s10540_s1 + $0xa38] sm:$0xf0] }
 0x16d   : > { %3285 = vmatpush.bf16.msra.mxu3 %v6270_v21  ;;  %3244 = vmatmul.bf16.vlgmr.msra.gmra.mxu0 %v9646_v44  ;;  %v2182_v20 = vadd.f32 %v2181_v13, %v2168_v48  ;;  %v6191_v21 = vld [vmem:[%s10540_s1 + $0xa78] sm:$0xf0]  ;;  %v1261_v36 = vadd.f32 %v9384_v12, %v1247_v39  ;;  %v7284_v12 = vld [vmem:[%s10540_s1 + $0xb4c] sm:$0xf]  ;;  %v6162_v10 = vor.u32 %v7248_v41, %v6159_v47  ;;  %v7321_v41 = vld [vmem:[%s10541_s2 + $0x70] sm:$0xff] }
 0x16e   : > { %3292 = vmatpush.bf16.msrb.mxu0 %v6002_v22  ;;  %3258 = vmatmul.bf16.vlgmr.msra.gmra.mxu1 %v9649_v4  ;;  %v7288_v22 = vld [vmem:[%s10540_s1 + $0xb6c] sm:$0xf]  ;;  %v6194_v62 = vor.u32 %v7256_v14, %v6191_v21  ;;  %v5887_v38 = vld [vmem:[%s10540_s1 + $0x818] sm:$0xf0] }
 0x16f   : > { %3306 = vmatpush.bf16.msrb.mxu1 %v6130_v40  ;;  %3272 = vmatmul.bf16.vlgmr.msra.gmra.mxu2 %v9634_v34  ;;  %v5938_v40 = vor.u32 %v7192_v5, %v5935_v18  ;;  %v6322_v23 = vor.u32 %v7288_v22, %v6319_v2  ;;  %v7212_v48 = vld [vmem:[%s10540_s1 + $0x90c] sm:$0xf]  ;;  %v6143_v5 = vld [vmem:[%s10540_s1 + $0xa18] sm:$0xf0] }
 0x170   : > { %3320 = vmatpush.bf16.msrb.mxu2 %v6258_v57  ;;  %3286 = vmatmul.bf16.vlgmr.msra.gmra.mxu3 %v9643_v51  ;;  %v6066_v57 = vor.u32 %v7224_v19, %v6063_v46  ;;  %v7276_v39 = vld [vmem:[%s10540_s1 + $0xb0c] sm:$0xf] }
 0x171   : > { %3334 = vmatpush.bf16.msrb.mxu3 %v6386_v45  ;;  %v7220_v45 = vld [vmem:[%s10540_s1 + $0x94c] sm:$0xf] }
 0x172   : > { %3293 = vmatpush.bf16.msrb.mxu0 %v5986_v49  ;;  %v2195_v27 = vpop.f32.mrf.mxu2  ;;  %v6175_v49 = vld [vmem:[%s10540_s1 + $0xa58] sm:$0xf0]  ;;  %v6050_v35 = vor.u32 %v7220_v45, %v6047_v53  ;;  %v7352_v53 = vld [vmem:[%s10541_s2 + $0x168] sm:$0xff] }
 0x173   : > { %3307 = vmatpush.bf16.msrb.mxu1 %v6114_v37  ;;  %v2196_v37 = vadd.f32 %v2195_v27, %v2182_v20  ;;  %v2209_v54 = vpop.f32.mrf.mxu3  ;;  %v2183_v59 = vpop.f32.mrf.mxu1  ;;  %v6178_v33 = vor.u32 %v7252_v32, %v6175_v49  ;;  %v5890_v20 = vor.u32 %v7180_v11, %v5887_v38  ;;  %v7344_v27 = vld [vmem:[%s10541_s2 + $0x128] sm:$0xff]  ;;  %v7310_v38 = vld [vmem:[%s10541_s2 + $0x18] sm:$0xff] }
 0x174   : > { %3321 = vmatpush.bf16.msrb.mxu2 %v6242_v50  ;;  %v2169_v50 = vpop.f32.mrf.mxu0  ;;  %v7312_v47 = vld [vmem:[%s10541_s2 + $0x28] sm:$0xff] }
 0x175   : > { %3335 = vmatpush.bf16.msrb.mxu3 %v6370_v58  ;;  %v2170_v55 = vadd.f32 %v2169_v50, %v1261_v36  ;;  %v5922_v58 = vor.u32 %v7188_v63, %v5919_v24  ;;  %v10166_v61 = vadd.f32 %v2209_v54, %v2196_v37  ;;  %v7354_v63 = vld [vmem:[%s10541_s2 + $0x178] sm:$0xff]  ;;  %v7343_v37 = vld [vmem:[%s10541_s2 + $0x120] sm:$0xff] }
 0x176   : > { %3294 = vmatpush.bf16.msrb.mxu0 %v5970_v26  ;;  %v5903_v26 = vld [vmem:[%s10540_s1 + $0x838] sm:$0xf0] }
 0x177   : > { %3308 = vmatpush.bf16.msrb.mxu1 %v6098_v1  ;;  %v7216_v1 = vld [vmem:[%s10540_s1 + $0x92c] sm:$0xf]  ;;  %v2184_v6 = vadd.f32 %v2183_v59, %v2170_v55  ;;  %v5906_v43 = vor.u32 %v7184_v42, %v5903_v26  ;;  %v7350_v55 = vld [vmem:[%s10541_s2 + $0x158] sm:$0xff]  ;;  %v7341_v59 = vld [vmem:[%s10541_s2 + $0x110] sm:$0xff] }
 0x178   : > { %3322 = vmatpush.bf16.msrb.mxu2 %v6226_v29  ;;  %v6306_v29 = vor.u32 %v7284_v12, %v6303_v31  ;;  %v6034_v8 = vor.u32 %v7216_v1, %v6031_v52  ;;  %v7342_v31 = vld [vmem:[%s10541_s2 + $0x118] sm:$0xff]  ;;  %v7348_v42 = vld [vmem:[%s10541_s2 + $0x148] sm:$0xff]  ;;  %v7339_v26 = vld [vmem:[%s10541_s2 + $0x100] sm:$0xff] }
 0x179   : > { %3336 = vmatpush.bf16.msrb.mxu3 %v6354_v60  ;;  %v7280_v60 = vld [vmem:[%s10540_s1 + $0xb2c] sm:$0xf]  ;;  %v7347_v1 = vld [vmem:[%s10541_s2 + $0x140] sm:$0xff]  ;;  %v7313_v52 = vld [vmem:[%s10541_s2 + $0x30] sm:$0xff] }
 0x17a   : > { %3295 = vmatpush.bf16.msrb.mxu0 %v5954_v9  ;;  %v6290_v9 = vor.u32 %v7280_v60, %v6287_v56  ;;  %v2197_v13 = vpop.f32.mrf.mxu2  ;;  %v7320_v60 = vld [vmem:[%s10541_s2 + $0x68] sm:$0xff]  ;;  %v7424_v56 = vmov 0  }
 0x17b   : > { %3309 = vmatpush.bf16.msrb.mxu1 %v6082_v15  ;;  %v6015_v15 = vld [vmem:[%s10540_s1 + $0x918] sm:$0xf0]  ;;  %v2198_v18 = vadd.f32 %v2197_v13, %v2184_v6  ;;  %v2211_v19 = vpop.f32.mrf.mxu3  ;;  %3356 = vst [vmem:[#allocation2] sm:$0xff] %v7424_v56 }
 0x17c   : > { %3323 = vmatpush.bf16.msrb.mxu2 %v6210_v16  ;;  %v7244_v16 = vld [vmem:[%s10540_s1 + $0xa0c] sm:$0xf]  ;;  %v6018_v14 = vor.u32 %v7212_v48, %v6015_v15  ;;  %v7322_v6 = vld [vmem:[%s10541_s2 + $0x78] sm:$0xff]  ;;  %3357 = vst [vmem:[#allocation2 + $0x8] sm:$0xff] %v7424_v56  ;;  %v7309_v15 = vld [vmem:[%s10541_s2 + $0x10] sm:$0xff] }
 0x17d   : > { %3337 = vmatpush.bf16.msrb.mxu3 %v6338_v7  ;;  %v6271_v7 = vld [vmem:[%s10540_s1 + $0xb18] sm:$0xf0]  ;;  %v10216_v46 = vadd.f32 %v2211_v19, %v2198_v18  ;;  %v6146_v21 = vor.u32 %v7244_v16, %v6143_v5  ;;  %3358 = vst [vmem:[#allocation2 + $0x30] sm:$0xff] %v7424_v56  ;;  %v7317_v16 = vld [vmem:[%s10541_s2 + $0x50] sm:$0xff]  ;;  %v7308_v19 = vld [vmem:[%s10541_s2 + $0x8] sm:$0xff] }
 0x17e   : > { %3296 = vmatpush.bf16.msrb.mxu0 %v5938_v40  ;;  %v6274_v22 = vor.u32 %v7276_v39, %v6271_v7  ;;  %3359 = vst [vmem:[#allocation2 + $0x38] sm:$0xff] %v7424_v56  ;;  %v7318_v48 = vld [vmem:[%s10541_s2 + $0x58] sm:$0xff]  ;;  %v7316_v39 = vld [vmem:[%s10541_s2 + $0x48] sm:$0xff] }
 0x17f   : > { %3310 = vmatpush.bf16.msrb.mxu1 %v6066_v57 }
 0x180   : > { %3324 = vmatpush.bf16.msrb.mxu2 %v6194_v62  ;;  %v7346_v62 = vld [vmem:[%s10541_s2 + $0x138] sm:$0xff] }
 0x181   : > { %3338 = vmatpush.bf16.msrb.mxu3 %v6322_v23 }
 0x182   : > { %3297 = vmatpush.bf16.msrb.mxu0 %v5922_v58 }
 0x183   : > { %3311 = vmatpush.bf16.msrb.mxu1 %v6050_v35  ;;  %v7349_v35 = vld [vmem:[%s10541_s2 + $0x150] sm:$0xff] }
 0x184   : > { %3325 = vmatpush.bf16.msrb.mxu2 %v6178_v33  ;;  %v7340_v33 = vld [vmem:[%s10541_s2 + $0x108] sm:$0xff] }
 0x185   : > { %3339 = vmatpush.bf16.msrb.mxu3 %v6306_v29  ;;  %v7314_v29 = vld [vmem:[%s10541_s2 + $0x38] sm:$0xff] }
 0x186   : > { %3298 = vmatpush.bf16.msrb.mxu0 %v5906_v43  ;;  %v7311_v43 = vld [vmem:[%s10541_s2 + $0x20] sm:$0xff] }
 0x187   : > { %3312 = vmatpush.bf16.msrb.mxu1 %v6034_v8  ;;  %v7319_v8 = vld [vmem:[%s10541_s2 + $0x60] sm:$0xff] }
 0x188   : > { %3326 = vmatpush.bf16.msrb.mxu2 %v6162_v10 }
 0x189   : > { %3340 = vmatpush.bf16.msrb.mxu3 %v6290_v9 }
 0x18a   : > { %3299 = vmatpush.bf16.msrb.mxu0 %v5890_v20  ;;  %v2223_v2 = vpop.f32.mrf.mxu0 }
 0x18b   : > { %3313 = vmatpush.bf16.msrb.mxu1 %v6018_v14  ;;  %v2224_v40 = vadd.f32 %v2223_v2, %v9535_v25  ;;  %v2237_v57 = vpop.f32.mrf.mxu1  ;;  %v7353_v25 = vld [vmem:[%s10541_s2 + $0x170] sm:$0xff]  ;;  %v7307_v14 = vld [vmem:[%s10541_s2] sm:$0xff]  ;;  %v7362_v2 = vld [vmem:[%s10541_s2 + $0x1b8] sm:$0xff] }
 0x18c   : > { %3327 = vmatpush.bf16.msrb.mxu2 %v6146_v21  ;;  %v7315_v21 = vld [vmem:[%s10541_s2 + $0x40] sm:$0xff] }
 0x18d   : > { %3341 = vmatpush.bf16.msrb.mxu3 %v6274_v22  ;;  %3300 = vmatmul.bf16.vlgmr.msrb.gmra.mxu0 %v9646_v44  ;;  %v2238_v24 = vadd.f32 %v2237_v57, %v2224_v40  ;;  %v7370_v40 = vld [vmem:[%s10541_s2 + $0x1f8] sm:$0xff] }
 0x18e   : > { %3314 = vmatmul.bf16.vlgmr.msrb.gmra.mxu1 %v9649_v4  ;;  %3723 = vmatpush.bf16.msra.mxu0 %v7346_v62 }
 0x18f   : > { %3328 = vmatmul.bf16.vlgmr.msrb.gmra.mxu2 %v9634_v34  ;;  %3737 = vmatpush.bf16.msra.mxu1 %v7354_v63  ;;  %v7345_v34 = vld [vmem:[%s10541_s2 + $0x130] sm:$0xff] }
 0x190   : > { %3342 = vmatmul.bf16.vlgmr.msrb.gmra.mxu3 %v9643_v51  ;;  %3751 = vmatpush.bf16.msra.mxu2 %v7362_v2 }
 0x191   : > { %3765 = vmatpush.bf16.msra.mxu3 %v7370_v40 }
 0x192   : > { %v2251_v51 = vpop.f32.mrf.mxu2  ;;  %3724 = vmatpush.bf16.msra.mxu0 %v7345_v34  ;;  %v2225_v4 = vpop.f32.mrf.mxu0  ;;  %v7361_v34 = vld [vmem:[%s10541_s2 + $0x1b0] sm:$0xff] }
 0x193   : > { %3738 = vmatpush.bf16.msra.mxu1 %v7353_v25  ;;  %v2252_v44 = vadd.f32 %v2251_v51, %v2238_v24  ;;  %v2265_v45 = vpop.f32.mrf.mxu3  ;;  %v2226_v36 = vadd.f32 %v2225_v4, %v9613_v30  ;;  %v2239_v23 = vpop.f32.mrf.mxu1  ;;  %v7351_v30 = vld [vmem:[%s10541_s2 + $0x160] sm:$0xff]  ;;  %v7369_v25 = vld [vmem:[%s10541_s2 + $0x1f0] sm:$0xff] }
 0x194   : > { %3752 = vmatpush.bf16.msra.mxu2 %v7361_v34 }
 0x195   : > { %v10242_v32 = vadd.f32 %v2265_v45, %v2252_v44  ;;  %v2240_v49 = vadd.f32 %v2239_v23, %v2226_v36  ;;  %3766 = vmatpush.bf16.msra.mxu3 %v7369_v25  ;;  %v7360_v23 = vld [vmem:[%s10541_s2 + $0x1a8] sm:$0xff] }
 0x196   : > { %3725 = vmatpush.bf16.msra.mxu0 %v7344_v27  ;;  %v7368_v27 = vld [vmem:[%s10541_s2 + $0x1e8] sm:$0xff] }
 0x197   : > { %3739 = vmatpush.bf16.msra.mxu1 %v7352_v53 }
 0x198   : > { %3753 = vmatpush.bf16.msra.mxu2 %v7360_v23 }
 0x199   : > { %3767 = vmatpush.bf16.msra.mxu3 %v7368_v27  ;;  %v7381_v27 = vld [vmem:[%s10541_s2 + $0x230] sm:$0xff] }
 0x19a   : > { %v2253_v50 = vpop.f32.mrf.mxu2  ;;  %3726 = vmatpush.bf16.msra.mxu0 %v7343_v37 }
 0x19b   : > { %3740 = vmatpush.bf16.msra.mxu1 %v7351_v30  ;;  %v2254_v54 = vadd.f32 %v2253_v50, %v2240_v49  ;;  %v2267_v12 = vpop.f32.mrf.mxu3 }
 0x19d   : > { %v10256_v58 = vadd.f32 %v2267_v12, %v2254_v54 }
 0x19e   : > { %3727 = vmatpush.bf16.msra.mxu0 %v7342_v31  ;;  %v7359_v31 = vld [vmem:[%s10541_s2 + $0x1a0] sm:$0xff] }
 0x19f   : > { %3741 = vmatpush.bf16.msra.mxu1 %v7350_v55  ;;  %v7367_v55 = vld [vmem:[%s10541_s2 + $0x1e0] sm:$0xff]  ;;  %3754 = vmatpush.bf16.msra.mxu2 %v7359_v31 }
 0x1a0   : > { %3768 = vmatpush.bf16.msra.mxu3 %v7367_v55 }
 0x1a2   : > { %3728 = vmatpush.bf16.msra.mxu0 %v7341_v59 }
 0x1a3   : > { %3742 = vmatpush.bf16.msra.mxu1 %v7349_v35 }
 0x1a6   : > { %3729 = vmatpush.bf16.msra.mxu0 %v7340_v33  ;;  %v3376_v33 = vld [vmem:[#allocation2] sm:$0x88] }
 0x1a7   : > { %3743 = vmatpush.bf16.msra.mxu1 %v7348_v42 }
 0x1aa   : > { %3730 = vmatpush.bf16.msra.mxu0 %v7339_v26  ;;  %v3133_v10 = vpop.f32.mrf.mxu0 }
 0x1ab   : > { %3744 = vmatpush.bf16.msra.mxu1 %v7347_v1  ;;  %v3147_v11 = vpop.f32.mrf.mxu1 }
 0x1ac   : > { %v3148_v7 = vadd.f32 %v3147_v11, %v3133_v10  ;;  %v7357_v10 = vld [vmem:[%s10541_s2 + $0x190] sm:$0xff] }
 0x1ad   : > { %v7365_v11 = vld [vmem:[%s10541_s2 + $0x1d0] sm:$0xff] }
 0x1ae   : > { %4057 = vmatpush.bf16.msrb.mxu0 %v7314_v29 }
 0x1af   : > { %4071 = vmatpush.bf16.msrb.mxu1 %v7322_v6  ;;  %v7366_v6 = vld [vmem:[%s10541_s2 + $0x1d8] sm:$0xff] }
 0x1b0   : > { %3769 = vmatpush.bf16.msra.mxu3 %v7366_v6  ;;  %v7387_v6 = vld [vmem:[%s10541_s2 + $0x260] sm:$0xff] }
 0x1b2   : > { %4058 = vmatpush.bf16.msrb.mxu0 %v7313_v52  ;;  %v3161_v9 = vpop.f32.mrf.mxu2  ;;  %v3135_v5 = vpop.f32.mrf.mxu0  ;;  %v3781_v52 = vunpack.c.l.b16 %v3376_v33 }
 0x1b3   : > { %4072 = vmatpush.bf16.msrb.mxu1 %v7321_v41  ;;  %v3175_v13 = vpop.f32.mrf.mxu3  ;;  %v3149_v18 = vpop.f32.mrf.mxu1  ;;  %v3162_v57 = vadd.f32 %v3161_v9, %v3148_v7  ;;  %v3782_v41 = vunpack.c.h.b16 %v3376_v33  ;;  %v7388_v33 = vld [vmem:[%s10541_s2 + $0x268] sm:$0xff] }
 0x1b4   : > { %v3150_v44 = vadd.f32 %v3149_v18, %v3135_v5  ;;  %3770 = vmatpush.bf16.msra.mxu3 %v7365_v11  ;;  %v7386_v11 = vld [vmem:[%s10541_s2 + $0x258] sm:$0xff] }
 0x1b5   : > { %v3176_v51 = vadd.f32 %v3175_v13, %v3162_v57  ;;  %v7355_v57 = vld [vmem:[%s10541_s2 + $0x180] sm:$0xff] }
 0x1b6   : > { %4059 = vmatpush.bf16.msrb.mxu0 %v7312_v47 }
 0x1b7   : > { %4073 = vmatpush.bf16.msrb.mxu1 %v7320_v60  ;;  %v3348_v53 = vadd.f32 %v3176_v51, %v9756_v17  ;;  %v7330_v51 = vld [vmem:[%s10541_s2 + $0xb8] sm:$0xff] }
 0x1b9   : > { %v3360_v59 = vmax.f32 %v3348_v53, 0.0  ;;  %v7389_v53 = vld [vmem:[%s10541_s2 + $0x270] sm:$0xff] }
 0x1ba   : > { %4060 = vmatpush.bf16.msrb.mxu0 %v7311_v43  ;;  %v3163_v20 = vpop.f32.mrf.mxu2 }
 0x1bb   : > { %4074 = vmatpush.bf16.msrb.mxu1 %v7319_v8  ;;  %v3177_v22 = vpop.f32.mrf.mxu3  ;;  %v3164_v49 = vadd.f32 %v3163_v20, %v3150_v44  ;;  %v7382_v20 = vld [vmem:[%s10541_s2 + $0x238] sm:$0xff] }
 0x1bc   : > { %v7338_v44 = vld [vmem:[%s10541_s2 + $0xf8] sm:$0xff] }
 0x1bd   : > { %v3178_v35 = vadd.f32 %v3177_v22, %v3164_v49 }
 0x1be   : > { %4061 = vmatpush.bf16.msrb.mxu0 %v7310_v38 }
 0x1bf   : > { %4075 = vmatpush.bf16.msrb.mxu1 %v7318_v48  ;;  %v3352_v47 = vadd.f32 %v3178_v35, %v9824_v3  ;;  %v7337_v35 = vld [vmem:[%s10541_s2 + $0xf0] sm:$0xff] }
 0x1c1   : > { %v3364_v9 = vmax.f32 %v3352_v47, 0.0 }
 0x1c2   : > { %4062 = vmatpush.bf16.msrb.mxu0 %v7309_v15  ;;  %v7356_v15 = vld [vmem:[%s10541_s2 + $0x188] sm:$0xff] }
 0x1c3   : > { %4076 = vmatpush.bf16.msrb.mxu1 %v7317_v16 }
 0x1c6   : > { %4063 = vmatpush.bf16.msrb.mxu0 %v7308_v19 }
 0x1c7   : > { %4077 = vmatpush.bf16.msrb.mxu1 %v7316_v39 }
 0x1ca   : > { %4064 = vmatpush.bf16.msrb.mxu0 %v7307_v14  ;;  %v3189_v62 = vpop.f32.mrf.mxu0  ;;  %v7390_v14 = vld [vmem:[%s10541_s2 + $0x278] sm:$0xff] }
 0x1cb   : > { %4078 = vmatpush.bf16.msrb.mxu1 %v7315_v21  ;;  %v3203_v63 = vpop.f32.mrf.mxu1 }
 0x1cc   : > { %v3204_v24 = vadd.f32 %v3203_v63, %v3189_v62  ;;  %v7363_v62 = vld [vmem:[%s10541_s2 + $0x1c0] sm:$0xff] }
 0x1d2   : > { %v3217_v4 = vpop.f32.mrf.mxu2  ;;  %v3191_v30 = vpop.f32.mrf.mxu0 }
 0x1d3   : > { %v3218_v45 = vadd.f32 %v3217_v4, %v3204_v24  ;;  %v3231_v36 = vpop.f32.mrf.mxu3  ;;  %v3205_v50 = vpop.f32.mrf.mxu1 }
 0x1d4   : > { %v3206_v12 = vadd.f32 %v3205_v50, %v3191_v30 }
 0x1d5   : > { %v3232_v37 = vadd.f32 %v3231_v36, %v3218_v45 }
 0x1d7   : > { %v3349_v54 = vadd.f32 %v3232_v37, %v9961_v28  ;;  %v7358_v28 = vld [vmem:[%s10541_s2 + $0x198] sm:$0xff] }
 0x1d8   : > { %3755 = vmatpush.bf16.msra.mxu2 %v7358_v28  ;;  %v7379_v28 = vld [vmem:[%s10541_s2 + $0x220] sm:$0xff] }
 0x1d9   : > { %v3361_v17 = vmax.f32 %v3349_v54, 0.0  ;;  %v7329_v54 = vld [vmem:[%s10541_s2 + $0xb0] sm:$0xff] }
 0x1da   : > { %v3219_v42 = vpop.f32.mrf.mxu2 }
 0x1db   : > { %v3368_v26 = vpack.c.bf16 %v3361_v17, %v3360_v59  ;;  %v3220_v1 = vadd.f32 %v3219_v42, %v3206_v12  ;;  %v3233_v29 = vpop.f32.mrf.mxu3  ;;  %v7380_v17 = vld [vmem:[%s10541_s2 + $0x228] sm:$0xff] }
 0x1dc   : > { %3756 = vmatpush.bf16.msra.mxu2 %v7357_v10  ;;  %v7378_v10 = vld [vmem:[%s10541_s2 + $0x218] sm:$0xff] }
 0x1dd   : > { %3372 = vst [vmem:[#allocation2 + $0x10] sm:$0xff] %v3368_v26  ;;  %v3234_v60 = vadd.f32 %v3233_v29, %v3220_v1  ;;  %v3515_v56 = vunpack.c.l.b16 %v3368_v26  ;;  %v3516_v43 = vunpack.c.h.b16 %v3368_v26  ;;  %v7328_v1 = vld [vmem:[%s10541_s2 + $0xa8] sm:$0xff] }
 0x1de   : > { %v7336_v29 = vld [vmem:[%s10541_s2 + $0xe8] sm:$0xff] }
 0x1df   : > { %v3353_v8 = vadd.f32 %v3234_v60, %v10029_v0  ;;  %v3785_v38 = vpack.c.b16 %v3515_v56, %v3781_v52  ;;  %v3786_v48 = vpack.c.b16 %v3516_v43, %v3782_v41  ;;  %v7364_v0 = vld [vmem:[%s10541_s2 + $0x1c8] sm:$0xff]  ;;  %v7327_v52 = vld [vmem:[%s10541_s2 + $0xa0] sm:$0xff]  ;;  %v4117_v60 = vld [vmem:[#allocation2 + $0x30] sm:$0x11] }
 0x1e0   : > { %3757 = vmatpush.bf16.msra.mxu2 %v7356_v15  ;;  %3771 = vmatpush.bf16.msra.mxu3 %v7364_v0  ;;  %v7335_v41 = vld [vmem:[%s10541_s2 + $0xe0] sm:$0xff]  ;;  %v7326_v0 = vld [vmem:[%s10541_s2 + $0x98] sm:$0xff] }
 0x1e1   : > { %v3365_v3 = vmax.f32 %v3353_v8, 0.0  ;;  %v3794_v16 = vshrl.u32 %v3785_v38, 16  ;;  %v3797_v5 = vshll.u32 %v3785_v38, 16  ;;  %v3811_v18 = vshrl.u32 %v3786_v48, 16 }
 0x1e2   : > { %v3814_v19 = vshll.u32 %v3786_v48, 16 }
 0x1e3   : > { %v3370_v13 = vpack.c.bf16 %v3365_v3, %v3364_v9  ;;  %v3796_v63 = vrot.slane %v3794_v16, 3  ;;  %v3799_v24 = vrot.slane %v3797_v5, 4  ;;  %v3813_v34 = vrot.slane %v3811_v18, 3  ;;  %v7334_v16 = vld [vmem:[%s10541_s2 + $0xd8] sm:$0xff]  ;;  %v7377_v5 = vld [vmem:[%s10541_s2 + $0x210] sm:$0xff] }
 0x1e4   : > { %v3816_v25 = vrot.slane %v3814_v19, 4  ;;  %3758 = vmatpush.bf16.msra.mxu2 %v7355_v57  ;;  %3772 = vmatpush.bf16.msra.mxu3 %v7363_v62  ;;  %v6773_v38 = vld [vmem:[#allocation2 + $0x10] sm:$0xf]  ;;  %v7371_v48 = vld [vmem:[#allocation2 + $0x14] sm:$0xf]  ;;  %v4198_v9 = vunpack.c.l.b16 %v4117_v60  ;;  %v7384_v57 = vld [vmem:[%s10541_s2 + $0x248] sm:$0xff] }
 0x1e5   : > { %3374 = vst [vmem:[#allocation2 + $0x20] sm:$0xff] %v3370_v13  ;;  %v3519_v39 = vunpack.c.l.b16 %v3370_v13  ;;  %v3520_v7 = vunpack.c.h.b16 %v3370_v13  ;;  %v3800_v12 = vor.u32 %v3799_v24, %v3796_v63  ;;  %v4199_v13 = vunpack.c.h.b16 %v4117_v60  ;;  %v7385_v18 = vld [vmem:[%s10541_s2 + $0x250] sm:$0xff] }
 0x1e6   : > { %v3817_v55 = vor.u32 %v3816_v25, %v3813_v34 }
 0x1e7   : > { %v3523_v21 = vpack.c.b16 %v3519_v39, %v3515_v56  ;;  %v3524_v22 = vpack.c.b16 %v3520_v7, %v3516_v43  ;;  %v3789_v2 = vpack.c.b16 %v3519_v39, %v3519_v39  ;;  %v3790_v40 = vpack.c.b16 %v3520_v7, %v3520_v7 }
 0x1e8   : > { %4085 = vmatpush.bf16.msrb.mxu2 %v7330_v51  ;;  %4099 = vmatpush.bf16.msrb.mxu3 %v7338_v44  ;;  %v4206_v39 = vpack.c.b16 %v4198_v9, %v4198_v9  ;;  %v7324_v44 = vld [vmem:[%s10541_s2 + $0x88] sm:$0xff] }
 0x1e9   : > { %3731 = vmatmul.bf16.vlgmr.msra.gmra.mxu0 %v3523_v21  ;;  %3745 = vmatmul.bf16.vlgmr.msra.gmra.mxu1 %v3524_v22  ;;  %v3802_v4 = vshrl.u32 %v3789_v2, 16  ;;  %v3805_v45 = vshll.u32 %v3789_v2, 16  ;;  %v3819_v36 = vshrl.u32 %v3790_v40, 16  ;;  %v3822_v23 = vshll.u32 %v3790_v40, 16  ;;  %v7325_v21 = vld [vmem:[%s10541_s2 + $0x90] sm:$0xff]  ;;  %v7376_v40 = vld [vmem:[%s10541_s2 + $0x208] sm:$0xff] }
 0x1ea   : > { %4454 = vmatpush.bf16.msra.mxu0 %v7382_v20  ;;  %4468 = vmatpush.bf16.msra.mxu1 %v7390_v14  ;;  %v3245_v43 = vpop.f32.mrf.mxu0  ;;  %v4207_v20 = vpack.c.b16 %v4199_v13, %v4199_v13  ;;  %v7333_v22 = vld [vmem:[%s10541_s2 + $0xd0] sm:$0xff]  ;;  %v4218_v34 = vshll.u32 %v4206_v39, 16  ;;  %v3377_v9 = vld [vmem:[#allocation2 + $0x8] sm:$0x88] }
 0x1eb   : > { %v3804_v49 = vrot.slane %v3802_v4, 3  ;;  %v3807_v37 = vrot.slane %v3805_v45, 4  ;;  %v3821_v30 = vrot.slane %v3819_v36, 3  ;;  %v3824_v50 = vrot.slane %v3822_v23, 4  ;;  %v3259_v8 = vpop.f32.mrf.mxu1  ;;  %v7332_v4 = vld [vmem:[%s10541_s2 + $0xc8] sm:$0xff]  ;;  %v7375_v45 = vld [vmem:[%s10541_s2 + $0x200] sm:$0xff] }
 0x1ec   : > { %4086 = vmatpush.bf16.msrb.mxu2 %v7329_v54  ;;  %4100 = vmatpush.bf16.msrb.mxu3 %v7337_v35  ;;  %v7373_v47 = vld [vmem:[#allocation2 + $0x1c] sm:$0xf0]  ;;  %v6775_v56 = vld [vmem:[#allocation2 + $0x20] sm:$0xf0]  ;;  %v4230_v51 = vshll.u32 %v4207_v20, 16 }
 0x1ed   : > { %v3808_v31 = vor.u32 %v3807_v37, %v3804_v49  ;;  %v3825_v59 = vor.u32 %v3824_v50, %v3821_v30  ;;  %v6774_v3 = vor.u32 %v7373_v47, %v6773_v38  ;;  %v6778_v15 = vor.u32 %v7371_v48, %v6775_v56  ;;  %v7383_v36 = vld [vmem:[%s10541_s2 + $0x240] sm:$0xff] }
 0x1ee   : > { %4455 = vmatpush.bf16.msra.mxu0 %v7381_v27  ;;  %4469 = vmatpush.bf16.msra.mxu1 %v7389_v53  ;;  %v4220_v49 = vrot.slane %v4218_v34, 1  ;;  %v4232_v30 = vrot.slane %v4230_v51, 1  ;;  %v7323_v50 = vld [vmem:[%s10541_s2 + $0x80] sm:$0xff] }
 0x1ef   : > { %v3809_v42 = vsel %vm1333_vm0, %v3800_v12, %v3808_v31  ;;  %v3826_v26 = vsel %vm1333_vm0, %v3817_v55, %v3825_v59  ;;  %v4213_v7 = vshll.u32 %v6774_v3, 16  ;;  %v4225_v14 = vshll.u32 %v6778_v15, 16  ;;  %v7331_v54 = vld [vmem:[%s10541_s2 + $0xc0] sm:$0xff] }
 0x1f0   : > { %4087 = vmatpush.bf16.msrb.mxu2 %v7328_v1  ;;  %4101 = vmatpush.bf16.msrb.mxu3 %v7336_v29  ;;  %v4211_v23 = vshrl.u32 %v6774_v3, 16  ;;  %v4223_v27 = vshrl.u32 %v6778_v15, 16  ;;  %v3260_v12 = vadd.f32 %v3259_v8, %v3245_v43 }
 0x1f1   : > { %v4215_v24 = vrot.slane %v4213_v7, 1  ;;  %v4227_v25 = vrot.slane %v4225_v14, 1 }
 0x1f2   : > { %4456 = vmatpush.bf16.msra.mxu0 %v7380_v17  ;;  %4470 = vmatpush.bf16.msra.mxu1 %v7388_v33  ;;  %v3273_v19 = vpop.f32.mrf.mxu2  ;;  %v3247_v62 = vpop.f32.mrf.mxu0 }
 0x1f3   : > { %v3287_v2 = vpop.f32.mrf.mxu3  ;;  %v3261_v63 = vpop.f32.mrf.mxu1  ;;  %v4216_v53 = vor.u32 %v4215_v24, %v4211_v23  ;;  %v4228_v37 = vor.u32 %v4227_v25, %v4223_v27 }
 0x1f4   : > { %4088 = vmatpush.bf16.msrb.mxu2 %v7327_v52  ;;  %4102 = vmatpush.bf16.msrb.mxu3 %v7335_v41  ;;  %v3262_v29 = vadd.f32 %v3261_v63, %v3247_v62 }
 0x1f5   : > { %v4221_v17 = vsel %vm2431_vm1, %v4216_v53, %v4220_v49  ;;  %v4233_v33 = vsel %vm2431_vm1, %v4228_v37, %v4232_v30  ;;  %v7397_v30 = vld [vmem:[%s10541_s2 + $0x2b0] sm:$0xff] }
 0x1f6   : > { %4457 = vmatpush.bf16.msra.mxu0 %v7379_v28  ;;  %4471 = vmatpush.bf16.msra.mxu1 %v7387_v6 }
 0x1f8   : > { %4089 = vmatpush.bf16.msrb.mxu2 %v7326_v0  ;;  %4103 = vmatpush.bf16.msrb.mxu3 %v7334_v16  ;;  %v3783_v16 = vunpack.c.l.b16 %v3377_v9 }
 0x1f9   : > { %4065 = vmatmul.bf16.vlgmr.msrb.gmra.mxu0 %v3809_v42  ;;  %4079 = vmatmul.bf16.vlgmr.msrb.gmra.mxu1 %v3826_v26  ;;  %v3274_v42 = vadd.f32 %v3273_v19, %v3260_v12 }
 0x1fa   : > { %4458 = vmatpush.bf16.msra.mxu0 %v7378_v10  ;;  %4472 = vmatpush.bf16.msra.mxu1 %v7386_v11  ;;  %v3275_v31 = vpop.f32.mrf.mxu2 }
 0x1fb   : > { %v3289_v55 = vpop.f32.mrf.mxu3  ;;  %v3288_v1 = vadd.f32 %v3287_v2, %v3274_v42  ;;  %v3276_v47 = vadd.f32 %v3275_v31, %v3262_v29  ;;  %v7396_v42 = vld [vmem:[%s10541_s2 + $0x2a8] sm:$0xff] }
 0x1fc   : > { %4090 = vmatpush.bf16.msrb.mxu2 %v7325_v21  ;;  %4104 = vmatpush.bf16.msrb.mxu3 %v7333_v22 }
 0x1fd   : > { %v3350_v41 = vadd.f32 %v3288_v1, %v10166_v61  ;;  %v3290_v11 = vadd.f32 %v3289_v55, %v3276_v47 }
 0x1fe   : > { %4459 = vmatpush.bf16.msra.mxu0 %v7377_v5  ;;  %4473 = vmatpush.bf16.msra.mxu1 %v7385_v18  ;;  %v3784_v5 = vunpack.c.h.b16 %v3377_v9  ;;  %v7393_v9 = vld [vmem:[%s10541_s2 + $0x290] sm:$0xff] }
 0x1ff   : > { %v3362_v10 = vmax.f32 %v3350_v41, 0.0  ;;  %v3354_v18 = vadd.f32 %v3290_v11, %v10216_v46  ;;  %v7398_v46 = vld [vmem:[%s10541_s2 + $0x2b8] sm:$0xff] }
 0x200   : > { %4091 = vmatpush.bf16.msrb.mxu2 %v7324_v44  ;;  %4105 = vmatpush.bf16.msrb.mxu3 %v7332_v4  ;;  %v4118_v41 = vld [vmem:[#allocation2 + $0x38] sm:$0x11] }
 0x201   : > { %v3366_v14 = vmax.f32 %v3354_v18, 0.0  ;;  %v7400_v18 = vld [vmem:[%s10541_s2 + $0x2c8] sm:$0xff] }
 0x202   : > { %4460 = vmatpush.bf16.msra.mxu0 %v7376_v40  ;;  %4474 = vmatpush.bf16.msra.mxu1 %v7384_v57 }
 0x204   : > { %4092 = vmatpush.bf16.msrb.mxu2 %v7323_v50  ;;  %4106 = vmatpush.bf16.msrb.mxu3 %v7331_v54  ;;  %v7405_v50 = vld [vmem:[%s10541_s2 + $0x2f0] sm:$0xff] }
 0x206   : > { %4461 = vmatpush.bf16.msra.mxu0 %v7375_v45  ;;  %4475 = vmatpush.bf16.msra.mxu1 %v7383_v36 }
 0x209   : > { %4462 = vmatmul.bf16.vlgmr.msra.gmra.mxu0 %v4221_v17  ;;  %4476 = vmatmul.bf16.vlgmr.msra.gmra.mxu1 %v4233_v33 }
 0x20a   : > { %v3301_v59 = vpop.f32.mrf.mxu0 }
 0x20b   : > { %v3315_v35 = vpop.f32.mrf.mxu1 }
 0x20c   : > { %v3316_v26 = vadd.f32 %v3315_v35, %v3301_v59 }
 0x212   : > { %v3329_v28 = vpop.f32.mrf.mxu2  ;;  %v3303_v56 = vpop.f32.mrf.mxu0 }
 0x213   : > { %v3330_v6 = vadd.f32 %v3329_v28, %v3316_v26  ;;  %v3343_v52 = vpop.f32.mrf.mxu3  ;;  %v3317_v43 = vpop.f32.mrf.mxu1  ;;  %v7404_v26 = vld [vmem:[%s10541_s2 + $0x2e8] sm:$0xff]  ;;  %v7395_v28 = vld [vmem:[%s10541_s2 + $0x2a0] sm:$0xff] }
 0x214   : > { %v3318_v48 = vadd.f32 %v3317_v43, %v3303_v56  ;;  %v7402_v56 = vld [vmem:[%s10541_s2 + $0x2d8] sm:$0xff] }
 0x215   : > { %v3344_v60 = vadd.f32 %v3343_v52, %v3330_v6  ;;  %v7403_v6 = vld [vmem:[%s10541_s2 + $0x2e0] sm:$0xff] }
 0x217   : > { %v3351_v8 = vadd.f32 %v3344_v60, %v10242_v32  ;;  %v7394_v60 = vld [vmem:[%s10541_s2 + $0x298] sm:$0xff] }
 0x219   : > { %v3363_v38 = vmax.f32 %v3351_v8, 0.0 }
 0x21a   : > { %v3331_v3 = vpop.f32.mrf.mxu2 }
 0x21b   : > { %v3369_v13 = vpack.c.bf16 %v3363_v38, %v3362_v10  ;;  %v3332_v15 = vadd.f32 %v3331_v3, %v3318_v48  ;;  %v3345_v0 = vpop.f32.mrf.mxu3  ;;  %v4200_v10 = vunpack.c.l.b16 %v4118_v41  ;;  %v4201_v38 = vunpack.c.h.b16 %v4118_v41  ;;  %v7401_v3 = vld [vmem:[%s10541_s2 + $0x2d0] sm:$0xff] }
 0x21d   : > { %3373 = vst [vmem:[#allocation2 + $0x18] sm:$0xff] %v3369_v13  ;;  %v3346_v61 = vadd.f32 %v3345_v0, %v3332_v15  ;;  %v3517_v19 = vunpack.c.l.b16 %v3369_v13  ;;  %v3518_v39 = vunpack.c.h.b16 %v3369_v13  ;;  %v4208_v13 = vpack.c.b16 %v4200_v10, %v4200_v10 }
 0x21e   : > { %v4209_v0 = vpack.c.b16 %v4201_v38, %v4201_v38 }
 0x21f   : > { %v3355_v7 = vadd.f32 %v3346_v61, %v10256_v58  ;;  %v3787_v32 = vpack.c.b16 %v3517_v19, %v3783_v16  ;;  %v3788_v20 = vpack.c.b16 %v3518_v39, %v3784_v5  ;;  %v7406_v58 = vld [vmem:[%s10541_s2 + $0x2f8] sm:$0xff]  ;;  %v7392_v5 = vld [vmem:[%s10541_s2 + $0x288] sm:$0xff] }
 0x221   : > { %v3367_v21 = vmax.f32 %v3355_v7, 0.0  ;;  %v3828_v2 = vshrl.u32 %v3787_v32, 16  ;;  %v3831_v40 = vshll.u32 %v3787_v32, 16  ;;  %v3845_v57 = vshrl.u32 %v3788_v20, 16  ;;  %v7391_v32 = vld [vmem:[%s10541_s2 + $0x280] sm:$0xff] }
 0x222   : > { %v3848_v62 = vshll.u32 %v3788_v20, 16  ;;  %v4254_v7 = vshll.u32 %v4209_v0, 16  ;;  %v7399_v20 = vld [vmem:[%s10541_s2 + $0x2c0] sm:$0xff] }
 0x223   : > { %v3371_v22 = vpack.c.bf16 %v3367_v21, %v3366_v14  ;;  %v3830_v4 = vrot.slane %v3828_v2, 3  ;;  %v3833_v45 = vrot.slane %v3831_v40, 4  ;;  %v3847_v36 = vrot.slane %v3845_v57, 3 }
 0x224   : > { %v3850_v23 = vrot.slane %v3848_v62, 4  ;;  %v6781_v43 = vld [vmem:[#allocation2 + $0x18] sm:$0xf]  ;;  %v7372_v8 = vld [vmem:[#allocation2 + $0x1c] sm:$0xf]  ;;  %v4256_v57 = vrot.slane %v4254_v7, 1 }
 0x225   : > { %3375 = vst [vmem:[#allocation2 + $0x28] sm:$0xff] %v3371_v22  ;;  %v3521_v63 = vunpack.c.l.b16 %v3371_v22  ;;  %v3522_v24 = vunpack.c.h.b16 %v3371_v22  ;;  %v3834_v59 = vor.u32 %v3833_v45, %v3830_v4 }
 0x226   : > { %v3851_v17 = vor.u32 %v3850_v23, %v3847_v36 }
 0x227   : > { %v3525_v34 = vpack.c.b16 %v3521_v63, %v3517_v19  ;;  %v3526_v25 = vpack.c.b16 %v3522_v24, %v3518_v39  ;;  %v3791_v51 = vpack.c.b16 %v3521_v63, %v3521_v63  ;;  %v3792_v44 = vpack.c.b16 %v3522_v24, %v3522_v24 }
 0x228   : > { %v4242_v19 = vshll.u32 %v4208_v13, 16 }
 0x229   : > { %3759 = vmatmul.bf16.vlgmr.msra.gmra.mxu2 %v3525_v34  ;;  %3773 = vmatmul.bf16.vlgmr.msra.gmra.mxu3 %v3526_v25  ;;  %v3836_v27 = vshrl.u32 %v3791_v51, 16  ;;  %v3839_v53 = vshll.u32 %v3791_v51, 16  ;;  %v3853_v49 = vshrl.u32 %v3792_v44, 16  ;;  %v3856_v37 = vshll.u32 %v3792_v44, 16 }
 0x22a   : > { %4482 = vmatpush.bf16.msra.mxu2 %v7398_v46  ;;  %4496 = vmatpush.bf16.msra.mxu3 %v7406_v58  ;;  %v4244_v2 = vrot.slane %v4242_v19, 1 }
 0x22b   : > { %v3838_v54 = vrot.slane %v3836_v27, 3  ;;  %v3841_v12 = vrot.slane %v3839_v53, 4  ;;  %v3855_v31 = vrot.slane %v3853_v49, 3  ;;  %v3858_v55 = vrot.slane %v3856_v37, 4 }
 0x22c   : > { %v7374_v52 = vld [vmem:[#allocation2 + $0x24] sm:$0xf0]  ;;  %v6783_v47 = vld [vmem:[#allocation2 + $0x28] sm:$0xf0] }
 0x22d   : > { %v3842_v35 = vor.u32 %v3841_v12, %v3838_v54  ;;  %v3859_v33 = vor.u32 %v3858_v55, %v3855_v31  ;;  %v6782_v11 = vor.u32 %v7374_v52, %v6781_v43  ;;  %v6786_v48 = vor.u32 %v7372_v8, %v6783_v47 }
 0x22e   : > { %4483 = vmatpush.bf16.msra.mxu2 %v7397_v30  ;;  %4497 = vmatpush.bf16.msra.mxu3 %v7405_v50 }
 0x22f   : > { %v3843_v1 = vsel %vm1333_vm0, %v3834_v59, %v3842_v35  ;;  %v3860_v29 = vsel %vm1333_vm0, %v3851_v17, %v3859_v33  ;;  %v4237_v15 = vshll.u32 %v6782_v11, 16  ;;  %v4249_v16 = vshll.u32 %v6786_v48, 16 }
 0x230   : > { %v4235_v14 = vshrl.u32 %v6782_v11, 16  ;;  %v4247_v21 = vshrl.u32 %v6786_v48, 16 }
 0x231   : > { %v4239_v61 = vrot.slane %v4237_v15, 1  ;;  %v4251_v39 = vrot.slane %v4249_v16, 1 }
 0x232   : > { %4484 = vmatpush.bf16.msra.mxu2 %v7396_v42  ;;  %4498 = vmatpush.bf16.msra.mxu3 %v7404_v26 }
 0x233   : > { %v4240_v22 = vor.u32 %v4239_v61, %v4235_v14  ;;  %v4252_v40 = vor.u32 %v4251_v39, %v4247_v21 }
 0x235   : > { %v4245_v62 = vsel %vm2431_vm1, %v4240_v22, %v4244_v2  ;;  %v4257_v63 = vsel %vm2431_vm1, %v4252_v40, %v4256_v57 }
 0x236   : > { %4485 = vmatpush.bf16.msra.mxu2 %v7395_v28  ;;  %4499 = vmatpush.bf16.msra.mxu3 %v7403_v6 }
 0x239   : > { %4093 = vmatmul.bf16.vlgmr.msrb.gmra.mxu2 %v3843_v1  ;;  %4107 = vmatmul.bf16.vlgmr.msrb.gmra.mxu3 %v3860_v29 }
 0x23a   : > { %4486 = vmatpush.bf16.msra.mxu2 %v7394_v60  ;;  %4500 = vmatpush.bf16.msra.mxu3 %v7402_v56 }
 0x23e   : > { %4487 = vmatpush.bf16.msra.mxu2 %v7393_v9  ;;  %4501 = vmatpush.bf16.msra.mxu3 %v7401_v3 }
 0x242   : > { %4488 = vmatpush.bf16.msra.mxu2 %v7392_v5  ;;  %4502 = vmatpush.bf16.msra.mxu3 %v7400_v18 }
 0x246   : > { %4489 = vmatpush.bf16.msra.mxu2 %v7391_v32  ;;  %4503 = vmatpush.bf16.msra.mxu3 %v7399_v20 }
 0x249   : > { %4490 = vmatmul.bf16.vlgmr.msra.gmra.mxu2 %v4245_v62  ;;  %4504 = vmatmul.bf16.vlgmr.msra.gmra.mxu3 %v4257_v63 }
 0x266   : > { %v3732_v24 = vpop.f32.mrf.mxu0  ;;  %v3746_v46 = vpop.f32.mrf.mxu1 }
 0x267   : > { %v3747_v23 = vadd.f32 %v3746_v46, %v3732_v24 }
 0x26e   : > { %v3734_v58 = vpop.f32.mrf.mxu0  ;;  %v3748_v34 = vpop.f32.mrf.mxu1 }
 0x26f   : > { %v3749_v54 = vadd.f32 %v3748_v34, %v3734_v58 }
 0x276   : > { %v4066_v44 = vpop.f32.mrf.mxu0  ;;  %v4080_v4 = vpop.f32.mrf.mxu1 }
 0x27e   : > { %v4068_v27 = vpop.f32.mrf.mxu0  ;;  %v4082_v53 = vpop.f32.mrf.mxu1 }
 0x286   : > { %v4463_v35 = vpop.f32.mrf.mxu0  ;;  %v4477_v17 = vpop.f32.mrf.mxu1 }
 0x287   : > { %v4478_v26 = vadd.f32 %v4477_v17, %v4463_v35 }
 0x28e   : > { %v4465_v60 = vpop.f32.mrf.mxu0  ;;  %v4479_v56 = vpop.f32.mrf.mxu1 }
 0x28f   : > { %v4480_v10 = vadd.f32 %v4479_v56, %v4465_v60 }
 0x2ac   : > { %v3760_v25 = vpop.f32.mrf.mxu2  ;;  %v3774_v51 = vpop.f32.mrf.mxu3 }
 0x2ad   : > { %v3761_v30 = vadd.f32 %v3760_v25, %v3747_v23 }
 0x2af   : > { %v3775_v50 = vadd.f32 %v3774_v51, %v3761_v30 }
 0x2b1   : > { %v4067_v55 = vadd.f32 %v4066_v44, %v3775_v50 }
 0x2b3   : > { %v4081_v42 = vadd.f32 %v4080_v4, %v4067_v55 }
 0x2b4   : > { %v3762_v45 = vpop.f32.mrf.mxu2  ;;  %v3776_v36 = vpop.f32.mrf.mxu3 }
 0x2b5   : > { %v3763_v59 = vadd.f32 %v3762_v45, %v3749_v54 }
 0x2b7   : > { %v3777_v33 = vadd.f32 %v3776_v36, %v3763_v59 }
 0x2b9   : > { %v4069_v6 = vadd.f32 %v4068_v27, %v3777_v33 }
 0x2bb   : > { %v4083_v43 = vadd.f32 %v4082_v53, %v4069_v6 }
 0x2bc   : > { %v4094_v49 = vpop.f32.mrf.mxu2  ;;  %v4108_v37 = vpop.f32.mrf.mxu3 }
 0x2bd   : > { %v4095_v1 = vadd.f32 %v4094_v49, %v4081_v42 }
 0x2bf   : > { %v4109_v41 = vadd.f32 %v4108_v37, %v4095_v1 }
 0x2c4   : > { %v4096_v12 = vpop.f32.mrf.mxu2  ;;  %v4110_v31 = vpop.f32.mrf.mxu3 }
 0x2c5   : > { %v4097_v11 = vadd.f32 %v4096_v12, %v4083_v43 }
 0x2c7   : > { %v4111_v3 = vadd.f32 %v4110_v31, %v4097_v11 }
 0x2cc   : > { %v4491_v29 = vpop.f32.mrf.mxu2  ;;  %v4505_v28 = vpop.f32.mrf.mxu3 }
 0x2cd   : > { %v4492_v52 = vadd.f32 %v4491_v29, %v4478_v26 }
 0x2cf   : > { %v4506_v47 = vadd.f32 %v4505_v28, %v4492_v52 }
 0x2d1   : > { %v4510_v8 = vadd.f32 %v4506_v47, %v4109_v41 }
 0x2d3   : > { %4513 = vst.msk [vmem:[%s170_s9] sm:$0xff] %vm4512_vm2, %v4510_v8 }
 0x2d4   : > { %v4493_v38 = vpop.f32.mrf.mxu2  ;;  %v4507_v9 = vpop.f32.mrf.mxu3 }
 0x2d5   : > { %v4494_v48 = vadd.f32 %v4493_v38, %v4480_v10 }
 0x2d7   : > { %v4508_v13 = vadd.f32 %v4507_v9, %v4494_v48 }
 0x2d9   : > { %v4511_v15 = vadd.f32 %v4508_v13, %v4111_v3 }
 0x2db   : > { %4514 = vst.msk [vmem:[%s170_s9 + $0x8] sm:$0xff] %vm4512_vm2, %v4511_v15 }
 0x2dc PF: > { %s13_s12 = sadd.s32 1, %s7422_s12  }
 0x2dd   : > { %p10_p4 = scmp.ge.s32.totalorder %s13_s12, 4  }
 0x2df   :  { %12 = sbr.rel (!%p10_p4) target bundleno = 1 (0x1), region = 66 }

// kernel: point_flow_forward.9
= control target key start
LH: loop header
LB: loop body
LE: loop exit
PB: predicated region body
PF: predicated region fallthrough
CT: control target
= control target key end

     0   :  { %s3459_s13 = smov 0   ;;  %s4635_s0 = inlined_call_operand.vmem [shape: f32[2,64,32], index: 0, kind: input, shape index: {}]   ;;  %s4636_s1 = inlined_call_operand.vmem [shape: bf16[2,64,32], index: 1, kind: input, shape index: {}]   ;;  %s4637_s2 = inlined_call_operand.vmem [shape: bf16[32,32], index: 2, kind: input, shape index: {}]   ;;  %s4638_s3 = inlined_call_operand.vmem [shape: bf16[32,32], index: 3, kind: input, shape index: {}]   ;;  %s4639_s4 = inlined_call_operand.vmem [shape: bf16[32,32], index: 4, kind: input, shape index: {}]   ;;  %s4640_s5 = inlined_call_operand.vmem [shape: bf16[8,4,32], index: 5, kind: input, shape index: {}]   ;;  %s4641_s6 = inlined_call_operand.vmem [shape: f32[1,32], index: 6, kind: input, shape index: {}]   ;;  %s4642_s7 = inlined_call_operand.vmem [shape: f32[1,32], index: 7, kind: input, shape index: {}]   ;;  %s4643_s8 = inlined_call_operand.vmem [shape: f32[1,32], index: 8, kind: input, shape index: {}]   ;;  %s4644_s9 = inlined_call_operand.vmem [shape: f32[1,32], index: 9, kind: input, shape index: {}]   ;;  %s4645_s10 = inlined_call_operand.vmem [shape: f32[2,64,32], index: 10, kind: output, shape index: {}]  }
   0x1 LB: > { %s2918_s14 = sadd.s32 4294967295, %s3395_s13   ;;  %p2922_p0 = scmp.ge.s32.totalorder %s3395_s13, 1  ;;  %s3395_s13 = sphi %s3459_s13, %s20_s13  }
   0x2   : > { %p322_p1 = scmp.lt.s32.totalorder %s3395_s13, 3 }
   0x4   : > { %p323_p2 = pnand %p2922_p0, %p322_p1 }
   0x6   : > { %326 = sbr.rel (%p323_p2) target bundleno = 3325 (0xcfd), region = 60 }
   0xb   : > { %v3096_v0 = vld [vmem:[%s4638_s3 + $0x8] sm:$0xff]  ;;  %p365_p3 = scmp.lt.s32.totalorder %s2918_s14, 1  ;;  %v3095_v2 = vld [vmem:[%s4638_s3] sm:$0xff]  ;;  %vm421_vm0 = vcmask 261120   ;;  %vm669_vm1 = vcmask 31744   ;;  %vm723_vm2 = vcmask 523264  }
   0xc   : > { %v3094_v1 = vld [vmem:[%s4637_s2 + $0x8] sm:$0xff]  ;;  %3101 = vmatpush.bf16.msra.mxu1 %v3096_v0  ;;  %v3093_v3 = vld [vmem:[%s4637_s2] sm:$0xff]  ;;  %s3398_s25 = smov 116   ;;  %s3399_s26 = smov 120   ;;  %vm898_vm3 = vcmask 1041408  }
   0xd   : > { %s4649_s14 = smov (!%p365_p3, %s2918_s14), 1  ;;  %440 = vmatpush.bf16.msra.mxu0 %v3094_v1  ;;  %3099 = vmatpush.bf16.msra.mxu3 %v3094_v1  ;;  %v3098_v11 = vld [vmem:[%s4639_s4 + $0x8] sm:$0xff]  ;;  %v3097_v12 = vld [vmem:[%s4639_s4] sm:$0xff]  ;;  %s3400_s16 = smov 108  }
   0xe   : > { %s3087_s21 = sshll.u32 %s4649_s14, 5  ;;  %s3086_s24 = sshll.u32 %s4649_s14, 6  ;;  %3103 = vmatpush.bf16.msra.mxu2 %v3098_v11  ;;  %v3120_v23 = vld [vmem:[%s4642_s7] ss:$0 sm:$0xff] }
   0xf   : > { %s3486_s27 = scalar_lea.vmem %s4636_s1, %s3087_s21  ;;  %s3493_s30 = scalar_lea.vmem %s4635_s0, %s3086_s24  ;;  %v3531_v26 = vld [vmem:[%s4641_s6] ss:$0 sm:$0xff] }
  0x10   : > { %3102 = vmatpush.bf16.msra.mxu1 %v3095_v2  ;;  %v3090_v4 = vld [vmem:[%s3486_s27 + $0x8] sm:$0xff]  ;;  %v381_v5 = vld [vmem:[%s3493_s30] sm:$0xff]  ;;  %v383_v8 = vld [vmem:[%s3493_s30 + $0x10] sm:$0xff]  ;;  %s3397_s21 = smov 124   ;;  %s3401_s17 = smov 112  }
  0x11   : > { %441 = vmatpush.bf16.msra.mxu0 %v3093_v3  ;;  %v382_v6 = vld [vmem:[%s3493_s30 + $0x8] sm:$0xff]  ;;  %3100 = vmatpush.bf16.msra.mxu3 %v3093_v3  ;;  %v384_v9 = vld [vmem:[%s3493_s30 + $0x18] sm:$0xff]  ;;  %v3091_v13 = vld [vmem:[%s3486_s27 + $0x10] sm:$0xff]  ;;  %s3402_s22 = smov 100   ;;  %s3403_s23 = smov 104  }
  0x12   : > { %v389_v7 = vpack.c.bf16 %v382_v6, %v381_v5  ;;  %v390_v10 = vpack.c.bf16 %v384_v9, %v383_v8  ;;  %3104 = vmatpush.bf16.msra.mxu2 %v3097_v12  ;;  %v385_v14 = vld [vmem:[%s3493_s30 + $0x20] sm:$0xff]  ;;  %v386_v15 = vld [vmem:[%s3493_s30 + $0x28] sm:$0xff]  ;;  %v3092_v18 = vld [vmem:[%s3486_s27 + $0x18] sm:$0xff]  ;;  %s4606_s20 = scalar_lea.vmem %s4645_s10, %s3086_s24 }
  0x13   : > { %2966 = vmatmul.msk.bf16.vlgmr.msra.gmra.mxu1 %vm421_vm0, %v3090_v4  ;;  %v3089_v16 = vld [vmem:[%s3486_s27] sm:$0xff]  ;;  %v391_v17 = vpack.c.bf16 %v386_v15, %v385_v14  ;;  %v387_v19 = vld [vmem:[%s3493_s30 + $0x30] sm:$0xff]  ;;  %v388_v20 = vld [vmem:[%s3493_s30 + $0x38] sm:$0xff] }
  0x14   : > { %2937 = vmatmul.msk.bf16.vlgmr.msra.gmra.mxu0 %vm421_vm0, %v389_v7  ;;  %2938 = vmatmul.msk.bf16.vlgmr.msra.gmra.mxu3 %vm421_vm0, %v390_v10  ;;  %v392_v21 = vpack.c.bf16 %v388_v20, %v387_v19 }
  0x15   : > { %529 = vmatpush.bf16.msrb.mxu0 %v3096_v0  ;;  %2978 = vmatmul.msk.bf16.vlgmr.msra.gmra.mxu2 %vm421_vm0, %v3090_v4 }
  0x19   : > { %530 = vmatpush.bf16.msrb.mxu0 %v3095_v2 }
  0x1d   : > { %586 = vmatpush.bf16.msra.mxu0 %v3098_v11 }
  0x21   : > { %587 = vmatpush.bf16.msra.mxu0 %v3097_v12 }
  0x23   : > { %2967 = vmatmul.msk.bf16.gmra.mxu1 %vm421_vm0, %v3091_v13 }
  0x24   : > { %2965 = vmatmul.msk.bf16.vlgmr.msrb.gmra.mxu0 %vm421_vm0, %v3089_v16  ;;  %2939 = vmatmul.msk.bf16.gmra.mxu3 %vm421_vm0, %v391_v17 }
  0x25   : > { %2979 = vmatmul.msk.bf16.gmra.mxu2 %vm421_vm0, %v3091_v13 }
  0x33   : > { %2968 = vmatmul.msk.bf16.gmra.mxu1 %vm421_vm0, %v3092_v18 }
  0x34   : > { %2977 = vmatmul.msk.bf16.vlgmr.msra.gmra.mxu0 %vm421_vm0, %v3089_v16  ;;  %2940 = vmatmul.msk.bf16.gmra.mxu3 %vm421_vm0, %v392_v21 }
  0x35   : > { %2980 = vmatmul.msk.bf16.gmra.mxu2 %vm421_vm0, %v3092_v18 }
  0x90   : > { %v537_v22 = vpop.f32.mrf.mxu1 }
  0x91   : > { %v443_v24 = vpop.f32.mrf.mxu0  ;;  %v538_v25 = vadd.f32 %v3120_v23, %v537_v22 }
  0x92   : > { %v444_v27 = vadd.f32 %v3531_v26, %v443_v24 }
  0x93   : > { %v554_v29 = vpack.c.bf16 %v538_v25, %v538_v25 }
  0x94   : > { %v463_v31 = vpack.c.bf16 %v444_v27, %v444_v27 }
  0x95   : > { %v659_v37 = vunpack.c.l.b16 %v554_v29 }
  0x96   : > { %v637_v35 = vunpack.c.l.b16 %v463_v31 }
  0x97   : > { %v448_v59 = vpop.f32.mrf.mxu3 }
  0x98   : > { %v539_v28 = vpop.f32.mrf.mxu1  ;;  %v449_v1 = vadd.f32 %v3531_v26, %v448_v59 }
  0x99   : > { %v540_v30 = vadd.f32 %v3120_v23, %v539_v28  ;;  %v445_v32 = vpop.f32.mrf.mxu0 }
  0x9a   : > { %v446_v33 = vadd.f32 %v3531_v26, %v445_v32  ;;  %v465_v6 = vpack.c.bf16 %v449_v1, %v449_v1 }
  0x9b   : > { %v555_v34 = vpack.c.bf16 %v540_v30, %v540_v30 }
  0x9c   : > { %v464_v36 = vpack.c.bf16 %v446_v33, %v446_v33  ;;  %v639_v11 = vunpack.c.l.b16 %v465_v6 }
  0x9d   : > { %v660_v38 = vunpack.c.l.b16 %v555_v34 }
  0x9e   : > { %v638_v39 = vunpack.c.l.b16 %v464_v36 }
  0x9f   : > { %v3535_v40 = vpack.c.b16 %v660_v38, %v659_v37  ;;  %v450_v7 = vpop.f32.mrf.mxu3  ;;  %v594_v37 = vpop.f32.mrf.mxu2 }
  0xa0   : > { %v542_v41 = vpop.f32.mrf.mxu1  ;;  %v3537_v42 = vpack.c.b16 %v638_v39, %v637_v35  ;;  %v451_v9 = vadd.f32 %v3531_v26, %v450_v7 }
  0xa1   : > { %949 = vrot.lane.b32.xlu1 %v3535_v40, %s3397_s21  ;;  %v532_v43 = vpop.f32.mrf.mxu0  ;;  %v543_v60 = vadd.f32 %v3120_v23, %v542_v41  ;;  %v686_v18 = vsel %vm669_vm1, %v3535_v40, 0 }
  0xa2   : > { %939 = vrot.lane.b32.xlu2 %v3537_v42, %s3397_s21  ;;  %v533_v44 = vadd.f32 %v3120_v23, %v532_v43  ;;  %v466_v12 = vpack.c.bf16 %v451_v9, %v451_v9 }
  0xa3   : > { %v556_v2 = vpack.c.bf16 %v543_v60, %v543_v60 }
  0xa4   : > { %v552_v46 = vpack.c.bf16 %v533_v44, %v533_v44  ;;  %v640_v13 = vunpack.c.l.b16 %v466_v12 }
  0xa5   : > { %v661_v8 = vunpack.c.l.b16 %v556_v2 }
  0xa6   : > { %v657_v49 = vunpack.c.l.b16 %v552_v46  ;;  %v3561_v15 = vpack.c.b16 %v640_v13, %v639_v11 }
  0xa7   : > { %v453_v16 = vpop.f32.mrf.mxu3  ;;  %v596_v38 = vpop.f32.mrf.mxu2 }
  0xa8   : > { %v544_v45 = vpop.f32.mrf.mxu1  ;;  %v454_v17 = vadd.f32 %v3531_v26, %v453_v16 }
  0xa9   : > { %v534_v47 = vpop.f32.mrf.mxu0  ;;  %v545_v56 = vadd.f32 %v3120_v23, %v544_v45 }
  0xaa   : > { %v535_v48 = vadd.f32 %v3120_v23, %v534_v47  ;;  %941 = vrot.lane.b32.xlu2 %v3561_v15, %s3397_s21  ;;  %v467_v19 = vpack.c.bf16 %v454_v17, %v454_v17 }
  0xab   : > { %v557_v62 = vpack.c.bf16 %v545_v56, %v545_v56 }
  0xac   : > { %v553_v50 = vpack.c.bf16 %v535_v48, %v535_v48  ;;  %v641_v22 = vunpack.c.l.b16 %v467_v19 }
  0xad   : > { %v662_v4 = vunpack.c.l.b16 %v557_v62 }
  0xae   : > { %v658_v51 = vunpack.c.l.b16 %v553_v50 }
  0xaf   : > { %v3555_v10 = vpack.c.b16 %v662_v4, %v661_v8  ;;  %v455_v20 = vpop.f32.mrf.mxu3  ;;  %v599_v39 = vpop.f32.mrf.mxu2 }
  0xb0   : > { %v547_v52 = vpop.f32.mrf.mxu1  ;;  %v3543_v53 = vpack.c.b16 %v658_v51, %v657_v49  ;;  %v456_v21 = vadd.f32 %v3531_v26, %v455_v20 }
  0xb1   : > { %v548_v54 = vadd.f32 %v3120_v23, %v547_v52  ;;  %v689_v14 = vsel %vm669_vm1, %v3555_v10, 0 }
  0xb2   : > { %947 = vrot.lane.b32.xlu1 %v3543_v53, %s3397_s21  ;;  %v683_v25 = vsel %vm669_vm1, %v3543_v53, 0 }
  0xb3   : > { %v558_v57 = vpack.c.bf16 %v548_v54, %v548_v54 }
  0xb5   : > { %v663_v63 = vunpack.c.l.b16 %v558_v57 }
  0xb7   : > { %v458_v28 = vpop.f32.mrf.mxu3  ;;  %v601_v41 = vpop.f32.mrf.mxu2 }
  0xb8   : > { %v549_v55 = vpop.f32.mrf.mxu1  ;;  %v459_v29 = vadd.f32 %v3531_v26, %v458_v28 }
  0xb9   : > { %v550_v58 = vadd.f32 %v3120_v23, %v549_v55  ;;  %v468_v23 = vpack.c.bf16 %v456_v21, %v456_v21 }
  0xba   : > { %v469_v30 = vpack.c.bf16 %v459_v29, %v459_v29 }
  0xbb   : > { %v559_v61 = vpack.c.bf16 %v550_v58, %v550_v58  ;;  %v642_v24 = vunpack.c.l.b16 %v468_v23 }
  0xbc   : > { %v643_v33 = vunpack.c.l.b16 %v469_v30 }
  0xbd   : > { %v664_v0 = vunpack.c.l.b16 %v559_v61  ;;  %v3571_v27 = vpack.c.b16 %v642_v24, %v641_v22 }
  0xbf   : > { %v3548_v3 = vpack.c.b16 %v664_v0, %v663_v63  ;;  %v460_v31 = vpop.f32.mrf.mxu3  ;;  %v604_v43 = vpop.f32.mrf.mxu2 }
  0xc0   : > { %v461_v32 = vadd.f32 %v3531_v26, %v460_v31  ;;  %v3590_v26 = vld [vmem:[%s4643_s8] ss:$0 sm:$0xff] }
  0xc1   : > { %953 = vrot.lane.b32.xlu0 %v3548_v3, %s3397_s21  ;;  %v692_v5 = vsel %vm669_vm1, %v3548_v3, 0  ;;  %v605_v44 = vadd.f32 %v3590_v26, %v604_v43  ;;  %v600_v45 = vadd.f32 %v3590_v26, %v599_v39  ;;  %v602_v46 = vadd.f32 %v3590_v26, %v601_v41 }
  0xc2   : > { %698 = vmatpush.bf16.xpose.msrb.mxu3 %v692_v5  ;;  %v470_v34 = vpack.c.bf16 %v461_v32, %v461_v32  ;;  %v595_v48 = vadd.f32 %v3590_v26, %v594_v37  ;;  %v597_v50 = vadd.f32 %v3590_v26, %v596_v38 }
  0xc3   : > { %v615_v47 = vpack.c.bf16 %v605_v44, %v605_v44  ;;  %v613_v51 = vpack.c.bf16 %v600_v45, %v600_v45  ;;  %v614_v52 = vpack.c.bf16 %v602_v46, %v602_v46  ;;  %v589_v46 = vpop.f32.mrf.mxu0 }
  0xc4   : > { %v644_v35 = vunpack.c.l.b16 %v470_v34  ;;  %v611_v57 = vpack.c.bf16 %v595_v48, %v595_v48  ;;  %v612_v58 = vpack.c.bf16 %v597_v50, %v597_v50  ;;  %v590_v50 = vadd.f32 %v3590_v26, %v589_v46 }
  0xc5   : > { %v830_v55 = vunpack.c.l.b16 %v615_v47  ;;  %v828_v59 = vunpack.c.l.b16 %v613_v51  ;;  %v829_v60 = vunpack.c.l.b16 %v614_v52 }
  0xc6   : > { %v3579_v36 = vpack.c.b16 %v644_v35, %v643_v33  ;;  %v826_v63 = vunpack.c.l.b16 %v611_v57  ;;  %v827_v0 = vunpack.c.l.b16 %v612_v58 }
  0xc7   : > { %v606_v49 = vpop.f32.mrf.mxu2  ;;  %v3602_v1 = vpack.c.b16 %v829_v60, %v828_v59 }
  0xc8   : > { %945 = vrot.lane.b32.xlu1 %v3579_v36, %s3397_s21  ;;  %v607_v54 = vadd.f32 %v3590_v26, %v606_v49  ;;  %v3607_v2 = vpack.c.b16 %v827_v0, %v826_v63 }
  0xc9   : > { %951 = vrot.lane.b32.xlu0 %v3555_v10, %s3397_s21 }
  0xca   : > { %699 = vmatpush.bf16.xpose.msrb.mxu3 %v689_v14  ;;  %v616_v56 = vpack.c.bf16 %v607_v54, %v607_v54 }
  0xcb   : > { %v591_v57 = vpop.f32.mrf.mxu0 }
  0xcc   : > { %v831_v61 = vunpack.c.l.b16 %v616_v56  ;;  %v592_v59 = vadd.f32 %v3590_v26, %v591_v57 }
  0xce   : > { %v3600_v62 = vpack.c.b16 %v831_v61, %v830_v55  ;;  %v609_v55 = vpack.c.bf16 %v590_v50, %v590_v50  ;;  %v610_v61 = vpack.c.bf16 %v592_v59, %v592_v59 }
  0xd0   : > { %1106 = vrot.lane.b32.xlu2 %v3600_v62, %s3397_s21  ;;  %856 = vmatpush.bf16.msrb.mxu0 %v3600_v62  ;;  %v824_v60 = vunpack.c.l.b16 %v609_v55  ;;  %v825_v63 = vunpack.c.l.b16 %v610_v61 }
  0xd1   : > { %943 = vrot.lane.b32.xlu0 %v3571_v27, %s3397_s21 }
  0xd2   : > { %700 = vmatpush.bf16.xpose.msrb.mxu3 %v686_v18 }
  0xd4   : > { %857 = vmatpush.bf16.msrb.mxu0 %v3602_v1 }
  0xd8   : > { %858 = vmatpush.bf16.msrb.mxu0 %v3607_v2 }
  0xda   : > { %701 = vmatpush.bf16.xpose.msrb.mxu3 %v683_v25 }
  0xe1   : > { %2981 = vmatmul.msk.bf16.vlgmr.msrb.gmra.mxu3 %vm669_vm1, %v3537_v42 }
  0xf1   : > { %2982 = vmatmul.msk.bf16.gmra.mxu3 %vm669_vm1, %v3561_v15 }
  0xfc   : > { %v940_v13 = vpop.permute.xlu2 %939 }
 0x101   : > { %2983 = vmatmul.msk.bf16.gmra.mxu3 %vm669_vm1, %v3571_v27 }
 0x104   : > { %v942_v14 = vpop.permute.xlu2 %941 }
 0x111   : > { %2984 = vmatmul.msk.bf16.gmra.mxu3 %vm669_vm1, %v3579_v36 }
 0x113   : > { %v950_v8 = vpop.permute.xlu1 %949 }
 0x114   : > { %v971_v9 = vsel %vm669_vm1, %v950_v8, 0 }
 0x124   : > { %v948_v11 = vpop.permute.xlu1 %947 }
 0x125   : > { %v968_v12 = vsel %vm669_vm1, %v948_v11, 0 }
 0x12a   : > { %v1107_v25 = vpop.permute.xlu2 %1106 }
 0x12b   : > { %1128 = vmatpush.bf16.msra.mxu3 %v1107_v25 }
 0x133   : > { %v954_v4 = vpop.permute.xlu0 %953 }
 0x134   : > { %v977_v5 = vsel %vm669_vm1, %v954_v4, 0  ;;  %v3657_v4 = vpack.c.b16 %v825_v63, %v824_v60 }
 0x135   : > { %983 = vmatpush.bf16.xpose.msrb.mxu2 %v977_v5 }
 0x136   : > { %859 = vmatpush.bf16.msrb.mxu0 %v3657_v4 }
 0x13a   : > { %v946_v28 = vpop.permute.xlu1 %945 }
 0x13b   : > { %v952_v6 = vpop.permute.xlu0 %951 }
 0x13c   : > { %v974_v7 = vsel %vm669_vm1, %v952_v6, 0 }
 0x13d   : > { %984 = vmatpush.bf16.xpose.msrb.mxu2 %v974_v7 }
 0x143   : > { %v944_v20 = vpop.permute.xlu0 %943 }
 0x145   : > { %985 = vmatpush.bf16.xpose.msrb.mxu2 %v971_v9 }
 0x14d   : > { %986 = vmatpush.bf16.xpose.msrb.mxu2 %v968_v12 }
 0x154   : > { %2993 = vmatmul.msk.bf16.vlgmr.msrb.gmra.mxu2 %vm669_vm1, %v940_v13 }
 0x164   : > { %v703_v16 = vpop.f32.mrf.mxu3  ;;  %2994 = vmatmul.msk.bf16.gmra.mxu2 %vm669_vm1, %v942_v14 }
 0x165   : > { %v724_v17 = vsel %vm723_vm2, %v703_v16, -inf }
 0x166   : > { %725 = vmax.xlane.f32.xlu2 %v724_v17 }
 0x16c   : > { %v705_v18 = vpop.f32.mrf.mxu3 }
 0x16d   : > { %v727_v19 = vsel %vm723_vm2, %v705_v18, -inf }
 0x16e   : > { %728 = vmax.xlane.f32.xlu0 %v727_v19 }
 0x174   : > { %v3619_v21 = vpop.f32.mrf.mxu3  ;;  %2995 = vmatmul.msk.bf16.gmra.mxu2 %vm669_vm1, %v944_v20 }
 0x175   : > { %v730_v22 = vsel %vm723_vm2, %v3619_v21, -inf }
 0x176   : > { %731 = vmax.xlane.f32.xlu2 %v730_v22 }
 0x17c   : > { %v3624_v23 = vpop.f32.mrf.mxu3 }
 0x17d   : > { %v733_v24 = vsel %vm723_vm2, %v3624_v23, -inf }
 0x17e   : > { %734 = vmax.xlane.f32.xlu0 %v733_v24 }
 0x184   : > { %v3628_v29 = vpop.f32.mrf.mxu3  ;;  %2996 = vmatmul.msk.bf16.gmra.mxu2 %vm669_vm1, %v946_v28 }
 0x185   : > { %v736_v30 = vsel %vm723_vm2, %v3628_v29, -inf }
 0x186   : > { %737 = vmax.xlane.f32.xlu0 %v736_v30 }
 0x18c   : > { %v3633_v31 = vpop.f32.mrf.mxu3 }
 0x18d   : > { %v739_v32 = vsel %vm723_vm2, %v3633_v31, -inf }
 0x18e   : > { %740 = vmax.xlane.f32.xlu1 %v739_v32 }
 0x194   : > { %v3637_v33 = vpop.f32.mrf.mxu3 }
 0x195   : > { %v742_v34 = vsel %vm723_vm2, %v3637_v33, -inf }
 0x196   : > { %743 = vmax.xlane.f32.xlu1 %v742_v34 }
 0x19c   : > { %v3641_v35 = vpop.f32.mrf.mxu3 }
 0x19d   : > { %v745_v37 = vsel %vm723_vm2, %v3641_v35, -inf }
 0x19e   : > { %746 = vmax.xlane.f32.xlu2 %v745_v37 }
 0x1d7   : > { %v988_v38 = vpop.f32.mrf.mxu2 }
 0x1d8   : > { %v1008_v39 = vsel %vm723_vm2, %v988_v38, -inf }
 0x1d9   : > { %v726_v41 = vpop.xlane.xlu2 %725  ;;  %1009 = vmax.xlane.f32.xlu1 %v1008_v39 }
 0x1da   : > { %v748_v43 = vsub.f32 %v703_v16, %v726_v41 }
 0x1dc   : > { %v756_v44 = vmul.f32 1.442695, %v748_v43 }
 0x1de   : > { %3124 = vpow2.f32 %v756_v44 }
 0x1df   : > { %v990_v45 = vpop.f32.mrf.mxu2 }
 0x1e0   : > { %v1011_v47 = vsel %vm723_vm2, %v990_v45, -inf }
 0x1e1   : > { %v729_v48 = vpop.xlane.xlu0 %728  ;;  %1012 = vmax.xlane.f32.xlu2 %v1011_v47 }
 0x1e2   : > { %v749_v49 = vsub.f32 %v705_v18, %v729_v48 }
 0x1e4   : > { %v3648_v51 = vpop.eup %3124  ;;  %v758_v52 = vmul.f32 1.442695, %v749_v49 }
 0x1e5   : > { %v772_v54 = vsel %vm723_vm2, %v3648_v51, 0.0 }
 0x1e6   : > { %773 = vadd.xlane.f32.xlu0 %v772_v54  ;;  %3126 = vpow2.f32 %v758_v52 }
 0x1e7   : > { %v3652_v56 = vpop.f32.mrf.mxu2 }
 0x1e8   : > { %v1014_v58 = vsel %vm723_vm2, %v3652_v56, -inf }
 0x1e9   : > { %1015 = vmax.xlane.f32.xlu1 %v1014_v58  ;;  %v732_v17 = vpop.xlane.xlu2 %731 }
 0x1ea   : > { %v750_v18 = vsub.f32 %v3619_v21, %v732_v17 }
 0x1ec   : > { %v3127_v0 = vpop.eup %3126  ;;  %v760_v19 = vmul.f32 1.442695, %v750_v18 }
 0x1ed   : > { %v775_v6 = vsel %vm723_vm2, %v3127_v0, 0.0 }
 0x1ee   : > { %3128 = vpow2.f32 %v760_v19 }
 0x1ef   : > { %v995_v5 = vpop.f32.mrf.mxu2 }
 0x1f0   : > { %v1017_v7 = vsel %vm723_vm2, %v995_v5, -inf }
 0x1f1   : > { %776 = vadd.xlane.f32.xlu1 %v775_v6  ;;  %1018 = vmax.xlane.f32.xlu2 %v1017_v7  ;;  %v735_v34 = vpop.xlane.xlu0 %734 }
 0x1f4   : > { %v3681_v20 = vpop.eup %3128 }
 0x1f5   : > { %v778_v22 = vsel %vm723_vm2, %v3681_v20, 0.0 }
 0x1f7   : > { %v3662_v8 = vpop.f32.mrf.mxu2 }
 0x1f8   : > { %v1020_v26 = vsel %vm723_vm2, %v3662_v8, -inf }
 0x1f9   : > { %1021 = vmax.xlane.f32.xlu2 %v1020_v26  ;;  %v738_v44 = vpop.xlane.xlu0 %737 }
 0x1fa   : > { %v752_v19 = vsub.f32 %v3628_v29, %v738_v44 }
 0x1ff   : > { %v3666_v9 = vpop.f32.mrf.mxu2 }
 0x200   : > { %v1023_v11 = vsel %vm723_vm2, %v3666_v9, -inf }
 0x201   : > { %1024 = vmax.xlane.f32.xlu0 %v1023_v11  ;;  %v741_v24 = vpop.xlane.xlu1 %740 }
 0x202   : > { %v753_v54 = vsub.f32 %v3633_v31, %v741_v24 }
 0x204   : > { %v766_v59 = vmul.f32 1.442695, %v753_v54 }
 0x207   : > { %v3670_v12 = vpop.f32.mrf.mxu2 }
 0x208   : > { %v1026_v13 = vsel %vm723_vm2, %v3670_v12, -inf }
 0x209   : > { %1027 = vmax.xlane.f32.xlu0 %v1026_v13  ;;  %v744_v25 = vpop.xlane.xlu1 %743  ;;  %v751_v13 = vsub.f32 %v3624_v23, %v735_v34 }
 0x20a   : > { %v754_v7 = vsub.f32 %v3637_v33, %v744_v25 }
 0x20b   : > { %v762_v18 = vmul.f32 1.442695, %v751_v13 }
 0x20f   : > { %v3674_v14 = vpop.f32.mrf.mxu2 }
 0x210   : > { %v1029_v16 = vsel %vm723_vm2, %v3674_v14, -inf }
 0x211   : > { %1030 = vmax.xlane.f32.xlu1 %v1029_v16  ;;  %1100 = vrot.lane.b32.xlu2 %v3657_v4, %s3397_s21  ;;  %v3685_v28 = vpop.xlane.xlu2 %746 }
 0x23a   : > { %779 = vadd.xlane.f32.xlu2 %v778_v22 }
 0x24c   : > { %v1010_v30 = vpop.xlane.xlu1 %1009 }
 0x24d   : > { %v1032_v32 = vsub.f32 %v988_v38, %v1010_v30  ;;  %v764_v30 = vmul.f32 1.442695, %v752_v19 }
 0x24f   : > { %v1040_v37 = vmul.f32 1.442695, %v1032_v32 }
 0x251   : > { %3130 = vpow2.f32 %v1040_v37 }
 0x254   : > { %v1013_v39 = vpop.xlane.xlu2 %1012 }
 0x255   : > { %v1033_v41 = vsub.f32 %v990_v45, %v1013_v39 }
 0x257   : > { %v3687_v21 = vpop.eup %3130  ;;  %v1042_v43 = vmul.f32 1.442695, %v1033_v41 }
 0x258   : > { %v1056_v46 = vsel %vm723_vm2, %v3687_v21, 0.0 }
 0x259   : > { %3132 = vpow2.f32 %v1042_v43  ;;  %1057 = vadd.xlane.f32.xlu0 %v1056_v46  ;;  %v774_v49 = vpop.xlane.xlu0 %773 }
 0x25a   : > { %3134 = vrcp.f32 %v774_v49 }
 0x25c   : > { %v1016_v47 = vpop.xlane.xlu1 %1015 }
 0x25d   : > { %v1034_v32 = vsub.f32 %v3652_v56, %v1016_v47 }
 0x25f   : > { %v3691_v48 = vpop.eup %3132 }
 0x260   : > { %v1059_v38 = vsel %vm723_vm2, %v3691_v48, 0.0  ;;  %v3135_v57 = vpop.eup %3134 }
 0x261   : > { %1060 = vadd.xlane.f32.xlu1 %v1059_v38  ;;  %v804_v60 = vmul.f32 %v3135_v57, %v3648_v51  ;;  %v755_v38 = vsub.f32 %v3641_v35, %v3685_v28 }
 0x264   : > { %v777_v50 = vpop.xlane.xlu1 %776  ;;  %v1019_v45 = vpop.xlane.xlu2 %1018 }
 0x265   : > { %3136 = vrcp.f32 %v777_v50  ;;  %v1035_v52 = vsub.f32 %v995_v5, %v1019_v45  ;;  %v768_v5 = vmul.f32 1.442695, %v754_v7 }
 0x267   : > { %v1046_v55 = vmul.f32 1.442695, %v1035_v52 }
 0x269   : > { %3138 = vpow2.f32 %v1046_v55 }
 0x26a   : > { %3140 = vpow2.f32 %v766_v59 }
 0x26b   : > { %v3137_v58 = vpop.eup %3136  ;;  %3142 = vpow2.f32 %v768_v5 }
 0x26c   : > { %v805_v61 = vmul.f32 %v3137_v58, %v3127_v0  ;;  %v1022_v29 = vpop.xlane.xlu2 %1021  ;;  %v885_v58 = vld [vmem:[%s4640_s5] sm:$0x3] }
 0x26d   : > { %1104 = vrot.lane.b32.xlu0 %v3602_v1, %s3397_s21  ;;  %v1036_v41 = vsub.f32 %v3662_v8, %v1022_v29  ;;  %v900_v59 = vsel %vm898_vm3, %v885_v58, 0 }
 0x26e   : > { %v812_v63 = vpack.c.bf16 %v805_v61, %v804_v60  ;;  %909 = vmatpush.bf16.msrb.mxu1 %v900_v59 }
 0x26f   : > { %v3699_v6 = vpop.eup %3138  ;;  %v1048_v46 = vmul.f32 1.442695, %v1036_v41 }
 0x270   : > { %2985 = vmatmul.msk.bf16.vlgmr.msrb.gmra.mxu0 %vm723_vm2, %v812_v63  ;;  %v1065_v31 = vsel %vm723_vm2, %v3699_v6, 0.0  ;;  %v3705_v26 = vpop.eup %3140 }
 0x271   : > { %1066 = vadd.xlane.f32.xlu2 %v1065_v31  ;;  %v787_v51 = vsel %vm723_vm2, %v3705_v26, 0.0  ;;  %v3711_v0 = vpop.eup %3142 }
 0x272   : > { %v790_v33 = vsel %vm723_vm2, %v3711_v0, 0.0 }
 0x274   : > { %v1025_v24 = vpop.xlane.xlu0 %1024  ;;  %v1101_v60 = vpop.permute.xlu2 %1100 }
 0x275   : > { %v1037_v23 = vsub.f32 %v3666_v9, %v1025_v24 }
 0x277   : > { %v1050_v39 = vmul.f32 1.442695, %v1037_v23 }
 0x279   : > { %788 = vadd.xlane.f32.xlu2 %v787_v51 }
 0x27a   : > { %1102 = vrot.lane.b32.xlu1 %v3607_v2, %s3397_s21 }
 0x27c   : > { %v1028_v43 = vpop.xlane.xlu0 %1027 }
 0x27d   : > { %v1038_v56 = vsub.f32 %v3670_v12, %v1028_v43  ;;  %v770_v12 = vmul.f32 1.442695, %v755_v38 }
 0x27f   : > { %v1052_v49 = vmul.f32 1.442695, %v1038_v56 }
 0x281   : > { %791 = vadd.xlane.f32.xlu2 %v790_v33  ;;  %v3001_v33 = vld [vmem:[%s4640_s5 + $0x2] sm:$0x3] }
 0x282   : > { %v1172_v13 = vsel %vm898_vm3, %v3001_v33, 0 }
 0x283   : > { %1181 = vmatpush.bf16.msra.mxu0 %v1172_v13 }
 0x284   : > { %v1031_v11 = vpop.xlane.xlu1 %1030 }
 0x285   : > { %v1039_v16 = vsub.f32 %v3674_v14, %v1031_v11  ;;  %v1044_v14 = vmul.f32 1.442695, %v1034_v32 }
 0x287   : > { %v1054_v17 = vmul.f32 1.442695, %v1039_v16 }
 0x289   : > { %3144 = vpow2.f32 %v1054_v17 }
 0x28a   : > { %3146 = vpow2.f32 %v762_v18 }
 0x28b   : > { %3148 = vpow2.f32 %v764_v30 }
 0x28c   : > { %3150 = vpow2.f32 %v1044_v14 }
 0x28d   : > { %3152 = vpow2.f32 %v1050_v39 }
 0x28e   : > { %3154 = vpow2.f32 %v1048_v46 }
 0x28f   : > { %v3718_v22 = vpop.eup %3144  ;;  %3156 = vpow2.f32 %v1052_v49 }
 0x290   : > { %v1077_v25 = vsel %vm723_vm2, %v3718_v22, 0.0  ;;  %v3723_v37 = vpop.eup %3146  ;;  %3158 = vpow2.f32 %v770_v12 }
 0x291   : > { %1078 = vadd.xlane.f32.xlu2 %v1077_v25  ;;  %v781_v34 = vsel %vm723_vm2, %v3723_v37, 0.0  ;;  %v3729_v44 = vpop.eup %3148 }
 0x292   : > { %v784_v9 = vsel %vm723_vm2, %v3729_v44, 0.0  ;;  %v3734_v47 = vpop.eup %3150 }
 0x293   : > { %v3738_v50 = vpop.eup %3152  ;;  %v1062_v8 = vsel %vm723_vm2, %v3734_v47, 0.0 }
 0x294   : > { %v1071_v45 = vsel %vm723_vm2, %v3738_v50, 0.0  ;;  %v3744_v52 = vpop.eup %3154 }
 0x295   : > { %v3748_v35 = vpop.eup %3156  ;;  %v1068_v28 = vsel %vm723_vm2, %v3744_v52, 0.0 }
 0x296   : > { %v1074_v54 = vsel %vm723_vm2, %v3748_v35, 0.0  ;;  %v3754_v55 = vpop.eup %3158 }
 0x297   : > { %782 = vadd.xlane.f32.xlu0 %v781_v34  ;;  %v793_v57 = vsel %vm723_vm2, %v3754_v55, 0.0 }
 0x29f   : > { %785 = vadd.xlane.f32.xlu0 %v784_v9 }
 0x2a4   : > { %1063 = vadd.xlane.f32.xlu1 %v1062_v8 }
 0x2a7   : > { %1072 = vadd.xlane.f32.xlu0 %v1071_v45 }
 0x2a9   : > { %1497 = vrot.lane.b32.xlu2 %v3548_v3, %s3398_s25 }
 0x2ac   : > { %1069 = vadd.xlane.f32.xlu1 %v1068_v28 }
 0x2ad   : > { %v780_v7 = vpop.xlane.xlu2 %779 }
 0x2af   : > { %1075 = vadd.xlane.f32.xlu0 %v1074_v54 }
 0x2b1   : > { %1219 = vrot.lane.b32.xlu2 %v3543_v53, %s3399_s26 }
 0x2b4   : > { %794 = vadd.xlane.f32.xlu1 %v793_v57 }
 0x2b9   : > { %1491 = vrot.lane.b32.xlu2 %v3543_v53, %s3398_s25 }
 0x2c1   : > { %1485 = vrot.lane.b32.xlu2 %v3561_v15, %s3398_s25 }
 0x2c3   : > { %1223 = vrot.lane.b32.xlu0 %v3555_v10, %s3399_s26 }
 0x2c9   : > { %1217 = vrot.lane.b32.xlu2 %v3579_v36, %s3399_s26 }
 0x2cb   : > { %1221 = vrot.lane.b32.xlu0 %v3535_v40, %s3399_s26 }
 0x2cc   : > { %v1058_v61 = vpop.xlane.xlu0 %1057 }
 0x2cd   : > { %1225 = vrot.lane.b32.xlu1 %v3548_v3, %s3399_s26 }
 0x2d1   : > { %1374 = vrot.lane.b32.xlu2 %v3607_v2, %s3399_s26 }
 0x2d3   : > { %1493 = vrot.lane.b32.xlu0 %v3535_v40, %s3398_s25 }
 0x2d4   : > { %v1061_v31 = vpop.xlane.xlu1 %1060 }
 0x2d5   : > { %1495 = vrot.lane.b32.xlu1 %v3555_v10, %s3398_s25  ;;  %3160 = vrcp.f32 %v1061_v31 }
 0x2d6   : > { %3162 = vrcp.f32 %v1058_v61 }
 0x2d7   : > { %3164 = vrcp.f32 %v780_v7 }
 0x2db   : > { %1483 = vrot.lane.b32.xlu0 %v3537_v42, %s3398_s25  ;;  %v3161_v51 = vpop.eup %3160 }
 0x2dc   : > { %v3163_v16 = vpop.eup %3162  ;;  %v1089_v18 = vmul.f32 %v3161_v51, %v3691_v48 }
 0x2dd   : > { %1211 = vrot.lane.b32.xlu1 %v3537_v42, %s3399_s26  ;;  %v1088_v19 = vmul.f32 %v3163_v16, %v3687_v21  ;;  %v3165_v29 = vpop.eup %3164 }
 0x2de   : > { %v806_v41 = vmul.f32 %v3165_v29, %v3681_v20 }
 0x2df   : > { %v1105_v63 = vpop.permute.xlu0 %1104  ;;  %v1096_v24 = vpack.c.bf16 %v1089_v18, %v1088_v19 }
 0x2e0   : > { %1129 = vmatpush.bf16.msra.mxu3 %v1105_v63 }
 0x2e3   : > { %1215 = vrot.lane.b32.xlu0 %v3571_v27, %s3399_s26 }
 0x2e4   : > { %v1067_v5 = vpop.xlane.xlu2 %1066 }
 0x2e5   : > { %1213 = vrot.lane.b32.xlu1 %v3561_v15, %s3399_s26 }
 0x2eb   : > { %1489 = vrot.lane.b32.xlu0 %v3579_v36, %s3398_s25 }
 0x2ec   : > { %v1103_v11 = vpop.permute.xlu1 %1102  ;;  %v789_v25 = vpop.xlane.xlu2 %788 }
 0x2ed   : > { %v861_v17 = vpop.f32.mrf.mxu0  ;;  %1130 = vmatpush.bf16.msra.mxu3 %v1103_v11  ;;  %1487 = vrot.lane.b32.xlu1 %v3571_v27, %s3398_s25 }
 0x2f1   : > { %1131 = vmatpush.bf16.msra.mxu3 %v1101_v60 }
 0x2f3   : > { %1378 = vrot.lane.b32.xlu0 %v3600_v62, %s3399_s26 }
 0x2f4   : > { %2997 = vmatmul.msk.bf16.vlgmr.msra.gmra.mxu3 %vm723_vm2, %v1096_v24  ;;  %v792_v48 = vpop.xlane.xlu2 %791 }
 0x2f5   : > { %v863_v30 = vpop.f32.mrf.mxu0  ;;  %1376 = vrot.lane.b32.xlu1 %v3602_v1, %s3399_s26 }
 0x2f6   : > { %v881_v32 = vpack.c.bf16 %v863_v30, %v861_v17 }
 0x2f8   : > { %2989 = vmatmul.msk.bf16.vlgmr.msrb.gmra.mxu1 %vm669_vm1, %v881_v32 }
 0x2fb   : > { %1372 = vrot.lane.b32.xlu0 %v3657_v4, %s3399_s26 }
 0x2fd   : > { %1650 = vrot.lane.b32.xlu1 %v3600_v62, %s3398_s25 }
 0x304   : > { %v1079_v21 = vpop.xlane.xlu2 %1078 }
 0x30a   : > { %v783_v23 = vpop.xlane.xlu0 %782 }
 0x30b   : > { %3166 = vrcp.f32 %v783_v23 }
 0x30c   : > { %v1498_v14 = vpop.permute.xlu2 %1497  ;;  %3168 = vrcp.f32 %v1067_v5 }
 0x30d   : > { %v1521_v34 = vsel %vm669_vm1, %v1498_v14, 0 }
 0x30e   : > { %1527 = vmatpush.bf16.xpose.msrb.mxu0 %v1521_v34 }
 0x311   : > { %v3167_v39 = vpop.eup %3166 }
 0x312   : > { %v807_v43 = vmul.f32 %v3167_v39, %v3723_v37  ;;  %v786_v56 = vpop.xlane.xlu0 %785  ;;  %v3169_v49 = vpop.eup %3168 }
 0x313   : > { %3170 = vrcp.f32 %v786_v56  ;;  %v1091_v20 = vmul.f32 %v3169_v49, %v3699_v6 }
 0x314   : > { %v813_v46 = vpack.c.bf16 %v807_v43, %v806_v41  ;;  %v1220_v19 = vpop.permute.xlu2 %1219 }
 0x315   : > { %v1240_v29 = vsel %vm669_vm1, %v1220_v19, 0 }
 0x316   : > { %2986 = vmatmul.msk.bf16.gmra.mxu0 %vm723_vm2, %v813_v46 }
 0x317   : > { %v1064_v9 = vpop.xlane.xlu1 %1063 }
 0x318   : > { %3172 = vrcp.f32 %v1064_v9 }
 0x319   : > { %3174 = vrcp.f32 %v789_v25  ;;  %v3171_v38 = vpop.eup %3170 }
 0x31a   : > { %v808_v37 = vmul.f32 %v3171_v38, %v3729_v44  ;;  %v1073_v58 = vpop.xlane.xlu0 %1072 }
 0x31e   : > { %v3173_v8 = vpop.eup %3172 }
 0x31f   : > { %v3175_v12 = vpop.eup %3174  ;;  %v1070_v45 = vpop.xlane.xlu1 %1069  ;;  %v1090_v28 = vmul.f32 %v3173_v8, %v3734_v47 }
 0x320   : > { %v809_v57 = vmul.f32 %v3175_v12, %v3705_v26  ;;  %3176 = vrcp.f32 %v1070_v45 }
 0x321   : > { %v1097_v54 = vpack.c.bf16 %v1091_v20, %v1090_v28  ;;  %3178 = vrcp.f32 %v1073_v58 }
 0x322   : > { %v814_v59 = vpack.c.bf16 %v809_v57, %v808_v37  ;;  %v1076_v63 = vpop.xlane.xlu0 %1075 }
 0x323   : > { %2998 = vmatmul.msk.bf16.gmra.mxu3 %vm723_vm2, %v1097_v54 }
 0x326   : > { %2987 = vmatmul.msk.bf16.gmra.mxu0 %vm723_vm2, %v814_v59  ;;  %v3177_v61 = vpop.eup %3176 }
 0x327   : > { %v795_v60 = vpop.xlane.xlu1 %794  ;;  %v3179_v47 = vpop.eup %3178  ;;  %v1092_v6 = vmul.f32 %v3177_v61, %v3744_v52 }
 0x328   : > { %3180 = vrcp.f32 %v795_v60  ;;  %v1093_v26 = vmul.f32 %v3179_v47, %v3738_v50 }
 0x329   : > { %3182 = vrcp.f32 %v792_v48 }
 0x32a   : > { %v1098_v5 = vpack.c.bf16 %v1093_v26, %v1092_v6  ;;  %3184 = vrcp.f32 %v1076_v63 }
 0x32b   : > { %3186 = vrcp.f32 %v1079_v21 }
 0x32e   : > { %v3181_v44 = vpop.eup %3180 }
 0x32f   : > { %v3183_v7 = vpop.eup %3182  ;;  %v811_v31 = vmul.f32 %v3181_v44, %v3754_v55 }
 0x330   : > { %v810_v51 = vmul.f32 %v3183_v7, %v3711_v0  ;;  %v3185_v13 = vpop.eup %3184 }
 0x331   : > { %v3187_v16 = vpop.eup %3186  ;;  %v1094_v17 = vmul.f32 %v3185_v13, %v3748_v35  ;;  %v1492_v35 = vpop.permute.xlu2 %1491  ;;  %v3123_v13 = vld [vmem:[%s4644_s9] ss:$0 sm:$0xff] }
 0x332   : > { %v815_v33 = vpack.c.bf16 %v811_v31, %v810_v51  ;;  %v1095_v50 = vmul.f32 %v3187_v16, %v3718_v22  ;;  %v1512_v39 = vsel %vm669_vm1, %v1492_v35, 0  ;;  %v3380_v16 = vld [vmem:[%s3493_s30] sm:$0xff] }
 0x333   : > { %2999 = vmatmul.msk.bf16.gmra.mxu3 %vm723_vm2, %v1098_v5 }
 0x334   : > { %v1099_v0 = vpack.c.bf16 %v1095_v50, %v1094_v17 }
 0x335   : > { %v1224_v11 = vpop.permute.xlu0 %1223 }
 0x336   : > { %2988 = vmatmul.msk.bf16.gmra.mxu0 %vm723_vm2, %v815_v33  ;;  %v1246_v30 = vsel %vm669_vm1, %v1224_v11, 0 }
 0x339   : > { %v1486_v41 = vpop.permute.xlu2 %1485 }
 0x33d   : > { %v1222_v52 = vpop.permute.xlu0 %1221 }
 0x33e   : > { %v1243_v22 = vsel %vm669_vm1, %v1222_v52, 0  ;;  %v621_v52 = vadd.f32 %v3380_v16, %v3123_v13 }
 0x33f   : > { %v1226_v18 = vpop.permute.xlu1 %1225 }
 0x340   : > { %v1249_v55 = vsel %vm669_vm1, %v1226_v18, 0 }
 0x341   : > { %1255 = vmatpush.bf16.xpose.msra.mxu1 %v1249_v55  ;;  %v1218_v46 = vpop.permute.xlu2 %1217 }
 0x343   : > { %3000 = vmatmul.msk.bf16.gmra.mxu3 %vm723_vm2, %v1099_v0 }
 0x345   : > { %v1494_v24 = vpop.permute.xlu0 %1493 }
 0x346   : > { %v1515_v23 = vsel %vm669_vm1, %v1494_v24, 0 }
 0x347   : > { %v1496_v25 = vpop.permute.xlu1 %1495 }
 0x348   : > { %v1518_v32 = vsel %vm669_vm1, %v1496_v25, 0 }
 0x349   : > { %1256 = vmatpush.bf16.xpose.msra.mxu1 %v1246_v30  ;;  %1528 = vmatpush.bf16.xpose.msrb.mxu0 %v1518_v32  ;;  %v1375_v38 = vpop.permute.xlu2 %1374  ;;  %v3381_v30 = vld [vmem:[%s3493_s30 + $0x10] sm:$0xff] }
 0x34a   : > { %v623_v32 = vadd.f32 %v3381_v30, %v3123_v13 }
 0x34d   : > { %v1484_v48 = vpop.permute.xlu0 %1483 }
 0x34f   : > { %v1212_v21 = vpop.permute.xlu1 %1211 }
 0x351   : > { %1257 = vmatpush.bf16.xpose.msra.mxu1 %v1243_v22  ;;  %1529 = vmatpush.bf16.xpose.msrb.mxu0 %v1515_v23 }
 0x355   : > { %v1216_v14 = vpop.permute.xlu0 %1215 }
 0x357   : > { %v1214_v34 = vpop.permute.xlu1 %1213 }
 0x359   : > { %1258 = vmatpush.bf16.xpose.msra.mxu1 %v1240_v29  ;;  %1530 = vmatpush.bf16.xpose.msrb.mxu0 %v1512_v39 }
 0x35d   : > { %v1490_v43 = vpop.permute.xlu0 %1489 }
 0x35f   : > { %v1488_v56 = vpop.permute.xlu1 %1487 }
 0x365   : > { %v1379_v9 = vpop.permute.xlu0 %1378 }
 0x366   : > { %1400 = vmatpush.bf16.msra.mxu2 %v1379_v9 }
 0x367   : > { %v1377_v49 = vpop.permute.xlu1 %1376 }
 0x36a   : > { %1401 = vmatpush.bf16.msra.mxu2 %v1377_v49  ;;  %v3383_v49 = vld [vmem:[%s3493_s30 + $0x30] sm:$0xff] }
 0x36d   : > { %v1373_v12 = vpop.permute.xlu0 %1372 }
 0x36e   : > { %1402 = vmatpush.bf16.msra.mxu2 %v1375_v38  ;;  %v627_v38 = vadd.f32 %v3383_v49, %v3123_v13 }
 0x36f   : > { %v1651_v8 = vpop.permute.xlu1 %1650 }
 0x370   : > { %1672 = vmatpush.bf16.msrb.mxu1 %v1651_v8 }
 0x372   : > { %1403 = vmatpush.bf16.msra.mxu2 %v1373_v12 }
 0x375   : > { %v911_v17 = vpop.f32.mrf.mxu1 }
 0x376   : > { %v931_v18 = vadd.f32 %v911_v17, %v621_v52 }
 0x377   : > { %v1133_v45 = vpop.f32.mrf.mxu3 }
 0x37d   : > { %v3857_v0 = vpop.f32.mrf.mxu1 }
 0x37f   : > { %v1135_v28 = vpop.f32.mrf.mxu3 }
 0x380   : > { %v1153_v20 = vpack.c.bf16 %v1135_v28, %v1133_v45 }
 0x382   : > { %3002 = vmatmul.msk.bf16.vlgmr.msra.gmra.mxu0 %vm669_vm1, %v1153_v20 }
 0x393   : > { %v866_v37 = vpop.f32.mrf.mxu0 }
 0x39b   : > { %v868_v54 = vpop.f32.mrf.mxu0 }
 0x39c   : > { %v882_v57 = vpack.c.bf16 %v868_v54, %v866_v37 }
 0x39e   : > { %2990 = vmatmul.msk.bf16.gmra.mxu1 %vm669_vm1, %v882_v57 }
 0x3a3   : > { %v871_v58 = vpop.f32.mrf.mxu0 }
 0x3a6   : > { %v1138_v59 = vpop.f32.mrf.mxu3 }
 0x3ab   : > { %v873_v60 = vpop.f32.mrf.mxu0 }
 0x3ac   : > { %v883_v61 = vpack.c.bf16 %v873_v60, %v871_v58 }
 0x3ae   : > { %2991 = vmatmul.msk.bf16.gmra.mxu1 %vm669_vm1, %v883_v61  ;;  %v1140_v47 = vpop.f32.mrf.mxu3 }
 0x3af   : > { %v1154_v63 = vpack.c.bf16 %v1140_v47, %v1138_v59 }
 0x3b1   : > { %3003 = vmatmul.msk.bf16.gmra.mxu0 %vm669_vm1, %v1154_v63 }
 0x3b3   : > { %v876_v6 = vpop.f32.mrf.mxu0 }
 0x3b6   : > { %v1143_v44 = vpop.f32.mrf.mxu3 }
 0x3bb   : > { %v878_v7 = vpop.f32.mrf.mxu0 }
 0x3bc   : > { %v884_v26 = vpack.c.bf16 %v878_v7, %v876_v6 }
 0x3be   : > { %2992 = vmatmul.msk.bf16.gmra.mxu1 %vm669_vm1, %v884_v26  ;;  %v1145_v31 = vpop.f32.mrf.mxu3 }
 0x3bf   : > { %v1155_v5 = vpack.c.bf16 %v1145_v31, %v1143_v44 }
 0x3c1   : > { %3004 = vmatmul.msk.bf16.gmra.mxu0 %vm669_vm1, %v1155_v5 }
 0x3c6   : > { %v1148_v51 = vpop.f32.mrf.mxu3 }
 0x3ce   : > { %v1150_v33 = vpop.f32.mrf.mxu3  ;;  %3006 = vmatmul.msk.bf16.vlgmr.msra.gmra.mxu1 %vm669_vm1, %v1212_v21 }
 0x3cf   : > { %v1156_v11 = vpack.c.bf16 %v1150_v33, %v1148_v51 }
 0x3d1   : > { %3005 = vmatmul.msk.bf16.gmra.mxu0 %vm669_vm1, %v1156_v11 }
 0x3de   : > { %3007 = vmatmul.msk.bf16.gmra.mxu1 %vm669_vm1, %v1214_v34  ;;  %v3382_v34 = vld [vmem:[%s3493_s30 + $0x20] sm:$0xff] }
 0x3df   : > { %v625_v29 = vadd.f32 %v3382_v34, %v3123_v13 }
 0x3e1   : > { %3019 = vmatmul.msk.bf16.vlgmr.msrb.gmra.mxu0 %vm669_vm1, %v1484_v48 }
 0x3ee   : > { %3008 = vmatmul.msk.bf16.gmra.mxu1 %vm669_vm1, %v1216_v14 }
 0x3f1   : > { %3020 = vmatmul.msk.bf16.gmra.mxu0 %vm669_vm1, %v1486_v41 }
 0x3fe   : > { %3009 = vmatmul.msk.bf16.gmra.mxu1 %vm669_vm1, %v1218_v46 }
 0x3ff   : > { %v1183_v50 = vpop.f32.mrf.mxu0 }
 0x400   : > { %v3853_v55 = vadd.f32 %v1183_v50, %v931_v18 }
 0x401   : > { %3021 = vmatmul.msk.bf16.gmra.mxu0 %vm669_vm1, %v1488_v56 }
 0x407   : > { %v3861_v25 = vpop.f32.mrf.mxu0 }
 0x411   : > { %3022 = vmatmul.msk.bf16.gmra.mxu0 %vm669_vm1, %v1490_v43 }
 0x41b   : > { %v916_v19 = vpop.f32.mrf.mxu1 }
 0x41c   : > { %v933_v35 = vadd.f32 %v916_v19, %v623_v32 }
 0x423   : > { %v3859_v24 = vpop.f32.mrf.mxu1 }
 0x42b   : > { %v921_v48 = vpop.f32.mrf.mxu1 }
 0x42c   : > { %v935_v41 = vadd.f32 %v921_v48, %v625_v29 }
 0x42e   : > { %v1188_v21 = vpop.f32.mrf.mxu0 }
 0x42f   : > { %v3864_v22 = vadd.f32 %v1188_v21, %v933_v35 }
 0x433   : > { %v3866_v23 = vpop.f32.mrf.mxu1 }
 0x436   : > { %v3868_v14 = vpop.f32.mrf.mxu0 }
 0x43b   : > { %v926_v39 = vpop.f32.mrf.mxu1 }
 0x43c   : > { %v937_v45 = vadd.f32 %v926_v39, %v627_v38 }
 0x43e   : > { %v1193_v43 = vpop.f32.mrf.mxu0 }
 0x43f   : > { %v3871_v56 = vadd.f32 %v1193_v43, %v935_v41 }
 0x443   : > { %v3873_v46 = vpop.f32.mrf.mxu1 }
 0x446   : > { %v3875_v9 = vpop.f32.mrf.mxu0 }
 0x44b   : > { %v1260_v8 = vpop.f32.mrf.mxu1 }
 0x44c   : > { %v1280_v12 = vsel %vm723_vm2, %v1260_v8, -inf }
 0x44d   : > { %1281 = vmax.xlane.f32.xlu1 %v1280_v12 }
 0x44e   : > { %v1198_v28 = vpop.f32.mrf.mxu0 }
 0x44f   : > { %v3879_v20 = vadd.f32 %v1198_v28, %v937_v45 }
 0x453   : > { %v1262_v37 = vpop.f32.mrf.mxu1 }
 0x454   : > { %v1283_v54 = vsel %vm723_vm2, %v1262_v37, -inf }
 0x455   : > { %1284 = vmax.xlane.f32.xlu2 %v1283_v54 }
 0x456   : > { %v3882_v57 = vpop.f32.mrf.mxu0 }
 0x45b   : > { %v3884_v58 = vpop.f32.mrf.mxu1 }
 0x45c   : > { %v1286_v59 = vsel %vm723_vm2, %v3884_v58, -inf }
 0x45d   : > { %1287 = vmax.xlane.f32.xlu2 %v1286_v59 }
 0x45e   : > { %v3888_v60 = vpop.f32.mrf.mxu0 }
 0x45f   : > { %v1552_v5 = vsel %vm723_vm2, %v3888_v60, -inf }
 0x463   : > { %v1267_v61 = vpop.f32.mrf.mxu1 }
 0x464   : > { %v1289_v47 = vsel %vm723_vm2, %v1267_v61, -inf }
 0x465   : > { %1290 = vmax.xlane.f32.xlu0 %v1289_v47 }
 0x466   : > { %v3891_v63 = vpop.f32.mrf.mxu0 }
 0x467   : > { %v1555_v49 = vsel %vm723_vm2, %v3891_v63, -inf }
 0x46b   : > { %v1270_v6 = vpop.f32.mrf.mxu1 }
 0x46c   : > { %v1292_v44 = vsel %vm723_vm2, %v1270_v6, -inf }
 0x46d   : > { %1293 = vmax.xlane.f32.xlu0 %v1292_v44 }
 0x46e   : > { %v3894_v7 = vpop.f32.mrf.mxu0 }
 0x46f   : > { %v1558_v28 = vsel %vm723_vm2, %v3894_v7, -inf }
 0x473   : > { %v3896_v26 = vpop.f32.mrf.mxu1 }
 0x474   : > { %v1295_v31 = vsel %vm723_vm2, %v3896_v26, -inf }
 0x475   : > { %1296 = vmax.xlane.f32.xlu1 %v1295_v31  ;;  %1553 = vmax.xlane.f32.xlu0 %v1552_v5 }
 0x476   : > { %v3902_v51 = vpop.f32.mrf.mxu0 }
 0x47b   : > { %v3904_v33 = vpop.f32.mrf.mxu1 }
 0x47c   : > { %v1298_v11 = vsel %vm723_vm2, %v3904_v33, -inf }
 0x47d   : > { %1299 = vmax.xlane.f32.xlu1 %v1298_v11 }
 0x47e   : > { %v3908_v13 = vpop.f32.mrf.mxu0 }
 0x47f   : > { %v1564_v11 = vsel %vm723_vm2, %v3908_v13, -inf }
 0x483   : > { %v3910_v16 = vpop.f32.mrf.mxu1 }
 0x484   : > { %v1301_v52 = vsel %vm723_vm2, %v3910_v16, -inf }
 0x485   : > { %1302 = vmax.xlane.f32.xlu2 %v1301_v52 }
 0x486   : > { %v3914_v17 = vpop.f32.mrf.mxu0 }
 0x487   : > { %v1567_v18 = vsel %vm723_vm2, %v3914_v17, -inf }
 0x488   : > { %1568 = vmax.xlane.f32.xlu0 %v1567_v18 }
 0x48e   : > { %v3918_v50 = vpop.f32.mrf.mxu0 }
 0x496   : > { %v3920_v19 = vpop.f32.mrf.mxu0 }
 0x497   : > { %v1573_v30 = vsel %vm723_vm2, %v3920_v19, -inf }
 0x498   : > { %1574 = vmax.xlane.f32.xlu0 %v1573_v30 }
 0x4ac   : > { %1648 = vrot.lane.b32.xlu0 %v3602_v1, %s3398_s25 }
 0x4c0   : > { %v1282_v32 = vpop.xlane.xlu1 %1281 }
 0x4c1   : > { %v1304_v48 = vsub.f32 %v1260_v8, %v1282_v32 }
 0x4c3   : > { %v1312_v35 = vmul.f32 1.442695, %v1304_v48 }
 0x4c5   : > { %3188 = vpow2.f32 %v1312_v35 }
 0x4c8   : > { %v1285_v21 = vpop.xlane.xlu2 %1284 }
 0x4c9   : > { %v1305_v34 = vsub.f32 %v1262_v37, %v1285_v21  ;;  %v1561_v37 = vsel %vm723_vm2, %v3902_v51, -inf }
 0x4cb   : > { %v3926_v29 = vpop.eup %3188  ;;  %v1314_v39 = vmul.f32 1.442695, %v1305_v34  ;;  %v1570_v34 = vsel %vm723_vm2, %v3918_v50, -inf }
 0x4cc   : > { %v1328_v41 = vsel %vm723_vm2, %v3926_v29, 0.0 }
 0x4cd   : > { %3190 = vpow2.f32 %v1314_v39  ;;  %1329 = vadd.xlane.f32.xlu1 %v1328_v41 }
 0x4d0   : > { %v1288_v54 = vpop.xlane.xlu2 %1287 }
 0x4d1   : > { %v1306_v31 = vsub.f32 %v3884_v58, %v1288_v54 }
 0x4d3   : > { %v3930_v43 = vpop.eup %3190  ;;  %v1316_v52 = vmul.f32 1.442695, %v1306_v31 }
 0x4d4   : > { %v1331_v38 = vsel %vm723_vm2, %v3930_v43, 0.0 }
 0x4d5   : > { %1556 = vmax.xlane.f32.xlu1 %v1555_v49  ;;  %1332 = vadd.xlane.f32.xlu2 %v1331_v38 }
 0x4d8   : > { %v1291_v8 = vpop.xlane.xlu0 %1290 }
 0x4d9   : > { %v1307_v12 = vsub.f32 %v1267_v61, %v1291_v8 }
 0x4db   : > { %v1318_v45 = vmul.f32 1.442695, %v1307_v12 }
 0x4dd   : > { %3192 = vpow2.f32 %v1318_v45  ;;  %1559 = vmax.xlane.f32.xlu1 %v1558_v28  ;;  %1562 = vmax.xlane.f32.xlu2 %v1561_v37 }
 0x4e0   : > { %v1294_v59 = vpop.xlane.xlu0 %1293 }
 0x4e1   : > { %v1308_v47 = vsub.f32 %v1270_v6, %v1294_v59 }
 0x4e3   : > { %v3940_v44 = vpop.eup %3192  ;;  %v1320_v5 = vmul.f32 1.442695, %v1308_v47 }
 0x4e4   : > { %v1337_v61 = vsel %vm723_vm2, %v3940_v44, 0.0 }
 0x4e5   : > { %3194 = vpow2.f32 %v1320_v5  ;;  %1338 = vadd.xlane.f32.xlu0 %v1337_v61  ;;  %1565 = vmax.xlane.f32.xlu2 %v1564_v11 }
 0x4e6   : > { %3196 = vpow2.f32 %v1316_v52 }
 0x4e8   : > { %v1297_v18 = vpop.xlane.xlu1 %1296  ;;  %v1554_v30 = vpop.xlane.xlu0 %1553 }
 0x4e9   : > { %v1309_v32 = vsub.f32 %v3896_v26, %v1297_v18  ;;  %v1576_v6 = vsub.f32 %v3888_v60, %v1554_v30 }
 0x4eb   : > { %v3949_v48 = vpop.eup %3194  ;;  %v1322_v58 = vmul.f32 1.442695, %v1309_v32  ;;  %v1584_v35 = vmul.f32 1.442695, %v1576_v6 }
 0x4ec   : > { %v1340_v21 = vsel %vm723_vm2, %v3949_v48, 0.0  ;;  %v3955_v39 = vpop.eup %3196 }
 0x4ed   : > { %3198 = vpow2.f32 %v1322_v58  ;;  %1341 = vadd.xlane.f32.xlu0 %v1340_v21  ;;  %1571 = vmax.xlane.f32.xlu2 %v1570_v34  ;;  %v1334_v49 = vsel %vm723_vm2, %v3955_v39, 0.0 }
 0x4ee   : > { %3200 = vpow2.f32 %v1584_v35 }
 0x4f0   : > { %v1300_v28 = vpop.xlane.xlu1 %1299 }
 0x4f3   : > { %v3957_v26 = vpop.eup %3198 }
 0x4f4   : > { %v3959_v60 = vpop.eup %3200  ;;  %v1343_v41 = vsel %vm723_vm2, %v3957_v26, 0.0 }
 0x4f5   : > { %1344 = vadd.xlane.f32.xlu0 %v1343_v41  ;;  %v1600_v38 = vsel %vm723_vm2, %v3959_v60, 0.0  ;;  %1335 = vadd.xlane.f32.xlu2 %v1334_v49 }
 0x4f6   : > { %1601 = vadd.xlane.f32.xlu1 %v1600_v38 }
 0x4f8   : > { %v3969_v37 = vpop.xlane.xlu2 %1302 }
 0x4fb   : > { %v1569_v8 = vpop.xlane.xlu0 %1568 }
 0x4fc   : > { %v1581_v21 = vsub.f32 %v3914_v17, %v1569_v8 }
 0x50b   : > { %v1575_v12 = vpop.xlane.xlu0 %1574 }
 0x50f   : > { %1646 = vrot.lane.b32.xlu1 %v3607_v2, %s3398_s25 }
 0x51e   : > { %v1649_v45 = vpop.permute.xlu0 %1648 }
 0x51f   : > { %1673 = vmatpush.bf16.msrb.mxu1 %v1649_v45 }
 0x540   : > { %v1330_v54 = vpop.xlane.xlu1 %1329 }
 0x541   : > { %3202 = vrcp.f32 %v1330_v54 }
 0x547   : > { %v3203_v61 = vpop.eup %3202 }
 0x548   : > { %v1557_v59 = vpop.xlane.xlu1 %1556  ;;  %v1333_v47 = vpop.xlane.xlu2 %1332  ;;  %v1360_v52 = vmul.f32 %v3203_v61, %v3926_v29  ;;  %v1594_v29 = vmul.f32 1.442695, %v1581_v21 }
 0x549   : > { %v1577_v31 = vsub.f32 %v3891_v63, %v1557_v59  ;;  %3204 = vrcp.f32 %v1333_v47 }
 0x54b   : > { %v1586_v5 = vmul.f32 1.442695, %v1577_v31 }
 0x54d   : > { %3206 = vpow2.f32 %v1586_v5 }
 0x54f   : > { %v3205_v11 = vpop.eup %3204 }
 0x550   : > { %v1361_v18 = vmul.f32 %v3205_v11, %v3930_v43  ;;  %v1560_v30 = vpop.xlane.xlu1 %1559  ;;  %v3974_v32 = vpop.xlane.xlu2 %1562 }
 0x551   : > { %v1578_v6 = vsub.f32 %v3894_v7, %v1560_v30  ;;  %v1310_v7 = vsub.f32 %v3904_v33, %v1300_v28 }
 0x552   : > { %v1368_v58 = vpack.c.bf16 %v1361_v18, %v1360_v52 }
 0x553   : > { %v3977_v35 = vpop.eup %3206  ;;  %v1588_v63 = vmul.f32 1.442695, %v1578_v6  ;;  %v1324_v8 = vmul.f32 1.442695, %v1310_v7 }
 0x554   : > { %3010 = vmatmul.msk.bf16.vlgmr.msra.gmra.mxu2 %vm723_vm2, %v1368_v58  ;;  %v1603_v34 = vsel %vm723_vm2, %v3977_v35, 0.0 }
 0x555   : > { %3208 = vpow2.f32 %v1588_v63  ;;  %1604 = vadd.xlane.f32.xlu2 %v1603_v34 }
 0x556   : > { %3210 = vpow2.f32 %v1594_v29 }
 0x558   : > { %v1566_v43 = vpop.xlane.xlu2 %1565  ;;  %v1339_v45 = vpop.xlane.xlu0 %1338 }
 0x559   : > { %v1580_v41 = vsub.f32 %v3908_v13, %v1566_v43  ;;  %v1583_v13 = vsub.f32 %v3920_v19, %v1575_v12 }
 0x55b   : > { %v3984_v49 = vpop.eup %3208  ;;  %v1592_v38 = vmul.f32 1.442695, %v1580_v41  ;;  %v1598_v61 = vmul.f32 1.442695, %v1583_v13 }
 0x55c   : > { %v1606_v17 = vsel %vm723_vm2, %v3984_v49, 0.0  ;;  %v3989_v59 = vpop.eup %3210 }
 0x55d   : > { %3212 = vpow2.f32 %v1592_v38  ;;  %1607 = vadd.xlane.f32.xlu1 %v1606_v17  ;;  %v1615_v28 = vsel %vm723_vm2, %v3989_v59, 0.0 }
 0x55e   : > { %3214 = vpow2.f32 %v1324_v8 }
 0x560   : > { %v1572_v54 = vpop.xlane.xlu2 %1571 }
 0x561   : > { %v1582_v47 = vsub.f32 %v3918_v50, %v1572_v54  ;;  %v1342_v50 = vpop.xlane.xlu0 %1341 }
 0x563   : > { %v3993_v31 = vpop.eup %3212  ;;  %v1596_v33 = vmul.f32 1.442695, %v1582_v47  ;;  %v3014_v47 = vld [vmem:[%s4640_s5 + $0x4] sm:$0x3] }
 0x564   : > { %v1612_v5 = vsel %vm723_vm2, %v3993_v31, 0.0  ;;  %v3999_v52 = vpop.eup %3214  ;;  %v1444_v13 = vsel %vm898_vm3, %v3014_v47, 0 }
 0x565   : > { %3216 = vpow2.f32 %v1596_v33  ;;  %1616 = vadd.xlane.f32.xlu1 %v1615_v28  ;;  %1613 = vadd.xlane.f32.xlu0 %v1612_v5  ;;  %v1346_v12 = vsel %vm723_vm2, %v3999_v52, 0.0 }
 0x566   : > { %3218 = vrcp.f32 %v1339_v45  ;;  %1453 = vmatpush.bf16.msrb.mxu3 %v1444_v13 }
 0x567   : > { %3220 = vpow2.f32 %v1598_v61 }
 0x568   : > { %v1336_v11 = vpop.xlane.xlu2 %1335 }
 0x569   : > { %3222 = vrcp.f32 %v1336_v11  ;;  %v1345_v34 = vpop.xlane.xlu0 %1344  ;;  %v1602_v41 = vpop.xlane.xlu1 %1601 }
 0x56a   : > { %3224 = vrcp.f32 %v1345_v34 }
 0x56b   : > { %v4001_v19 = vpop.eup %3216  ;;  %3226 = vrcp.f32 %v1342_v50 }
 0x56c   : > { %v1618_v18 = vsel %vm723_vm2, %v4001_v19, 0.0  ;;  %v3219_v30 = vpop.eup %3218 }
 0x56d   : > { %1644 = vrot.lane.b32.xlu2 %v3657_v4, %s3398_s25  ;;  %1347 = vadd.xlane.f32.xlu0 %v1346_v12  ;;  %v4009_v6 = vpop.eup %3220  ;;  %v1363_v63 = vmul.f32 %v3219_v30, %v3940_v44  ;;  %v1579_v44 = vsub.f32 %v3902_v51, %v3974_v32  ;;  %v3027_v30 = vld [vmem:[%s4640_s5 + $0x6] sm:$0x3] }
 0x56e   : > { %1619 = vadd.xlane.f32.xlu1 %v1618_v18  ;;  %v1621_v43 = vsel %vm723_vm2, %v4009_v6, 0.0 }
 0x56f   : > { %v3223_v58 = vpop.eup %3222  ;;  %v1590_v54 = vmul.f32 1.442695, %v1579_v44 }
 0x570   : > { %v1362_v21 = vmul.f32 %v3223_v58, %v3955_v39  ;;  %v3225_v7 = vpop.eup %3224  ;;  %v1716_v58 = vsel %vm898_vm3, %v3027_v30, 0 }
 0x571   : > { %v3227_v38 = vpop.eup %3226  ;;  %v1365_v17 = vmul.f32 %v3225_v7, %v3957_v26  ;;  %v1311_v26 = vsub.f32 %v3910_v16, %v3969_v37  ;;  %3228 = vpow2.f32 %v1590_v54  ;;  %1725 = vmatpush.bf16.msrb.mxu2 %v1716_v58 }
 0x572   : > { %v1369_v29 = vpack.c.bf16 %v1363_v63, %v1362_v21  ;;  %v1364_v39 = vmul.f32 %v3227_v38, %v3949_v48 }
 0x573   : > { %v1326_v51 = vmul.f32 1.442695, %v1311_v26 }
 0x574   : > { %3011 = vmatmul.msk.bf16.gmra.mxu2 %vm723_vm2, %v1369_v29  ;;  %v1370_v45 = vpack.c.bf16 %v1365_v17, %v1364_v39 }
 0x575   : > { %1622 = vadd.xlane.f32.xlu0 %v1621_v43  ;;  %3230 = vpow2.f32 %v1326_v51 }
 0x576   : > { %3232 = vrcp.f32 %v1602_v41 }
 0x577   : > { %v3229_v48 = vpop.eup %3228 }
 0x578   : > { %v1609_v32 = vsel %vm723_vm2, %v3229_v48, 0.0 }
 0x57b   : > { %v4036_v16 = vpop.eup %3230 }
 0x57c   : > { %v1349_v37 = vsel %vm723_vm2, %v4036_v16, 0.0  ;;  %v3233_v28 = vpop.eup %3232 }
 0x57d   : > { %v1632_v61 = vmul.f32 %v3233_v28, %v3959_v60 }
 0x581   : > { %v1647_v8 = vpop.permute.xlu1 %1646 }
 0x582   : > { %1674 = vmatpush.bf16.msrb.mxu1 %v1647_v8 }
 0x584   : > { %3012 = vmatmul.msk.bf16.gmra.mxu2 %vm723_vm2, %v1370_v45 }
 0x587   : > { %2041 = vrot.lane.b32.xlu1 %v3548_v3, %s3400_s16 }
 0x589   : > { %1767 = vrot.lane.b32.xlu0 %v3555_v10, %s3401_s17 }
 0x58f   : > { %2037 = vrot.lane.b32.xlu1 %v3535_v40, %s3400_s16 }
 0x591   : > { %1765 = vrot.lane.b32.xlu0 %v3535_v40, %s3401_s17 }
 0x596   : > { %1610 = vadd.xlane.f32.xlu2 %v1609_v32 }
 0x597   : > { %1755 = vrot.lane.b32.xlu1 %v3537_v42, %s3401_s17 }
 0x599   : > { %2035 = vrot.lane.b32.xlu0 %v3543_v53, %s3400_s16 }
 0x59e   : > { %1350 = vadd.xlane.f32.xlu2 %v1349_v37 }
 0x59f   : > { %2029 = vrot.lane.b32.xlu1 %v3561_v15, %s3400_s16 }
 0x5a1   : > { %1757 = vrot.lane.b32.xlu0 %v3561_v15, %s3401_s17 }
 0x5a7   : > { %1761 = vrot.lane.b32.xlu1 %v3579_v36, %s3401_s17 }
 0x5a9   : > { %2031 = vrot.lane.b32.xlu0 %v3571_v27, %s3400_s16 }
 0x5b6   : > { %1769 = vrot.lane.b32.xlu2 %v3548_v3, %s3401_s17 }
 0x5be   : > { %2039 = vrot.lane.b32.xlu2 %v3555_v10, %s3400_s16 }
 0x5c6   : > { %1763 = vrot.lane.b32.xlu2 %v3543_v53, %s3401_s17 }
 0x5c8   : > { %v1605_v33 = vpop.xlane.xlu2 %1604 }
 0x5c9   : > { %3234 = vrcp.f32 %v1605_v33 }
 0x5ce   : > { %2027 = vrot.lane.b32.xlu2 %v3537_v42, %s3400_s16 }
 0x5cf   : > { %v3235_v5 = vpop.eup %3234 }
 0x5d0   : > { %v1633_v11 = vmul.f32 %v3235_v5, %v3977_v35  ;;  %v1645_v50 = vpop.permute.xlu2 %1644  ;;  %v1608_v21 = vpop.xlane.xlu1 %1607 }
 0x5d1   : > { %1675 = vmatpush.bf16.msrb.mxu1 %v1645_v50  ;;  %3236 = vrcp.f32 %v1608_v21 }
 0x5d2   : > { %v1640_v12 = vpack.c.bf16 %v1633_v11, %v1632_v61 }
 0x5d4   : > { %3023 = vmatmul.msk.bf16.vlgmr.msrb.gmra.mxu1 %vm723_vm2, %v1640_v12 }
 0x5d6   : > { %1759 = vrot.lane.b32.xlu2 %v3571_v27, %s3401_s17 }
 0x5d7   : > { %v1405_v18 = vpop.f32.mrf.mxu2  ;;  %v3237_v45 = vpop.eup %3236 }
 0x5d8   : > { %v1617_v63 = vpop.xlane.xlu1 %1616  ;;  %v1614_v7 = vpop.xlane.xlu0 %1613  ;;  %v1634_v51 = vmul.f32 %v3237_v45, %v3984_v49 }
 0x5de   : > { %2033 = vrot.lane.b32.xlu2 %v3579_v36, %s3400_s16 }
 0x5df   : > { %v1407_v60 = vpop.f32.mrf.mxu2 }
 0x5e0   : > { %v1425_v35 = vpack.c.bf16 %v1407_v60, %v1405_v18  ;;  %v1348_v39 = vpop.xlane.xlu0 %1347 }
 0x5e1   : > { %v1620_v34 = vpop.xlane.xlu1 %1619 }
 0x5e2   : > { %3015 = vmatmul.msk.bf16.vlgmr.msrb.gmra.mxu3 %vm669_vm1, %v1425_v35 }
 0x5e6   : > { %1922 = vrot.lane.b32.xlu2 %v3600_v62, %s3401_s17 }
 0x5e8   : > { %v1623_v13 = vpop.xlane.xlu0 %1622 }
 0x5f7   : > { %v1410_v29 = vpop.f32.mrf.mxu2 }
 0x5f9   : > { %v2042_v43 = vpop.permute.xlu1 %2041 }
 0x5fa   : > { %v2065_v41 = vsel %vm669_vm1, %v2042_v43, 0 }
 0x5fb   : > { %2071 = vmatpush.bf16.xpose.msra.mxu2 %v2065_v41  ;;  %v1768_v12 = vpop.permute.xlu0 %1767 }
 0x5fc   : > { %v1790_v35 = vsel %vm669_vm1, %v1768_v12, 0 }
 0x5ff   : > { %v1412_v38 = vpop.f32.mrf.mxu2 }
 0x600   : > { %v1426_v17 = vpack.c.bf16 %v1412_v38, %v1410_v29 }
 0x601   : > { %v2038_v29 = vpop.permute.xlu1 %2037 }
 0x602   : > { %3016 = vmatmul.msk.bf16.gmra.mxu3 %vm669_vm1, %v1426_v17  ;;  %v2059_v41 = vsel %vm669_vm1, %v2038_v29, 0 }
 0x607   : > { %v1415_v8 = vpop.f32.mrf.mxu2 }
 0x609   : > { %v1611_v44 = vpop.xlane.xlu2 %1610 }
 0x60a   : > { %3238 = vrcp.f32 %v1611_v44 }
 0x60b   : > { %3240 = vrcp.f32 %v1348_v39 }
 0x60f   : > { %v1417_v26 = vpop.f32.mrf.mxu2 }
 0x610   : > { %v3239_v54 = vpop.eup %3238  ;;  %v1427_v37 = vpack.c.bf16 %v1417_v26, %v1415_v8 }
 0x611   : > { %v1635_v32 = vmul.f32 %v3239_v54, %v3229_v48  ;;  %v1351_v47 = vpop.xlane.xlu2 %1350  ;;  %v3241_v28 = vpop.eup %3240 }
 0x612   : > { %3242 = vrcp.f32 %v1351_v47  ;;  %3017 = vmatmul.msk.bf16.gmra.mxu3 %vm669_vm1, %v1427_v37  ;;  %v1366_v11 = vmul.f32 %v3241_v28, %v3999_v52 }
 0x613   : > { %v1641_v33 = vpack.c.bf16 %v1635_v32, %v1634_v51  ;;  %3244 = vrcp.f32 %v1617_v63  ;;  %v1766_v63 = vpop.permute.xlu0 %1765 }
 0x614   : > { %3246 = vrcp.f32 %v1614_v7 }
 0x615   : > { %3024 = vmatmul.msk.bf16.gmra.mxu1 %vm723_vm2, %v1641_v33  ;;  %3248 = vrcp.f32 %v1623_v13 }
 0x616   : > { %3250 = vrcp.f32 %v1620_v34 }
 0x618   : > { %v3243_v5 = vpop.eup %3242 }
 0x619   : > { %v1770_v61 = vpop.permute.xlu2 %1769  ;;  %v1367_v50 = vmul.f32 %v3243_v5, %v4036_v16  ;;  %v3245_v48 = vpop.eup %3244 }
 0x61a   : > { %v1793_v49 = vsel %vm669_vm1, %v1770_v61, 0  ;;  %v3247_v30 = vpop.eup %3246  ;;  %v1637_v58 = vmul.f32 %v3245_v48, %v3989_v59  ;;  %v1787_v59 = vsel %vm669_vm1, %v1766_v63, 0 }
 0x61b   : > { %1799 = vmatpush.bf16.xpose.msra.mxu3 %v1793_v49  ;;  %v1371_v18 = vpack.c.bf16 %v1367_v50, %v1366_v11  ;;  %v1636_v21 = vmul.f32 %v3247_v30, %v3993_v31  ;;  %v3249_v31 = vpop.eup %3248  ;;  %v2036_v17 = vpop.permute.xlu0 %2035 }
 0x61c   : > { %v3251_v7 = vpop.eup %3250  ;;  %v1639_v38 = vmul.f32 %v3249_v31, %v4009_v6  ;;  %v2056_v44 = vsel %vm669_vm1, %v2036_v17, 0 }
 0x61d   : > { %3013 = vmatmul.msk.bf16.gmra.mxu2 %vm723_vm2, %v1371_v18  ;;  %v1642_v16 = vpack.c.bf16 %v1637_v58, %v1636_v21  ;;  %v1638_v8 = vmul.f32 %v3251_v7, %v4001_v19 }
 0x61f   : > { %v1643_v34 = vpack.c.bf16 %v1639_v38, %v1638_v8 }
 0x621   : > { %v2040_v60 = vpop.permute.xlu2 %2039 }
 0x622   : > { %v2062_v52 = vsel %vm669_vm1, %v2040_v60, 0  ;;  %v1756_v60 = vpop.permute.xlu1 %1755 }
 0x623   : > { %1800 = vmatpush.bf16.xpose.msra.mxu3 %v1790_v35  ;;  %2072 = vmatpush.bf16.xpose.msra.mxu2 %v2062_v52 }
 0x625   : > { %3025 = vmatmul.msk.bf16.gmra.mxu1 %vm723_vm2, %v1642_v16 }
 0x629   : > { %v1764_v43 = vpop.permute.xlu2 %1763 }
 0x62a   : > { %v1784_v45 = vsel %vm669_vm1, %v1764_v43, 0  ;;  %v2030_v16 = vpop.permute.xlu1 %2029 }
 0x62b   : > { %1801 = vmatpush.bf16.xpose.msra.mxu3 %v1787_v59  ;;  %2073 = vmatpush.bf16.xpose.msra.mxu2 %v2059_v41 }
 0x631   : > { %v2028_v39 = vpop.permute.xlu2 %2027 }
 0x632   : > { %v1762_v43 = vpop.permute.xlu1 %1761 }
 0x633   : > { %1802 = vmatpush.bf16.xpose.msra.mxu3 %v1784_v45  ;;  %2074 = vmatpush.bf16.xpose.msra.mxu2 %v2056_v44 }
 0x635   : > { %3026 = vmatmul.msk.bf16.gmra.mxu1 %vm723_vm2, %v1643_v34 }
 0x639   : > { %v1760_v54 = vpop.permute.xlu2 %1759 }
 0x641   : > { %v2034_v26 = vpop.permute.xlu2 %2033 }
 0x649   : > { %v1923_v51 = vpop.permute.xlu2 %1922 }
 0x64a   : > { %1944 = vmatpush.bf16.msra.mxu0 %v1923_v51 }
 0x651   : > { %v1677_v32 = vpop.f32.mrf.mxu1 }
 0x659   : > { %v1679_v37 = vpop.f32.mrf.mxu1 }
 0x65a   : > { %v1697_v6 = vpack.c.bf16 %v1679_v37, %v1677_v32 }
 0x65c   : > { %3028 = vmatmul.msk.bf16.vlgmr.msrb.gmra.mxu2 %vm669_vm1, %v1697_v6 }
 0x665   : > { %v1455_v19 = vpop.f32.mrf.mxu3 }
 0x666   : > { %v1475_v47 = vadd.f32 %v1455_v19, %v3853_v55 }
 0x66d   : > { %v4097_v13 = vpop.f32.mrf.mxu3 }
 0x685   : > { %v1460_v33 = vpop.f32.mrf.mxu3 }
 0x686   : > { %v1477_v28 = vadd.f32 %v1460_v33, %v3864_v22 }
 0x68d   : > { %v4100_v5 = vpop.f32.mrf.mxu3 }
 0x692   : > { %v1682_v61 = vpop.f32.mrf.mxu1 }
 0x695   : > { %v1465_v11 = vpop.f32.mrf.mxu3 }
 0x696   : > { %v1479_v50 = vadd.f32 %v1465_v11, %v3871_v56  ;;  %v1758_v56 = vpop.permute.xlu0 %1757 }
 0x69a   : > { %v1684_v49 = vpop.f32.mrf.mxu1 }
 0x69b   : > { %v1698_v48 = vpack.c.bf16 %v1684_v49, %v1682_v61 }
 0x69d   : > { %3029 = vmatmul.msk.bf16.gmra.mxu2 %vm669_vm1, %v1698_v48  ;;  %v4121_v38 = vpop.f32.mrf.mxu3 }
 0x69e   : > { %v2032_v41 = vpop.permute.xlu0 %2031 }
 0x6a0   : > { %v1420_v12 = vpop.f32.mrf.mxu2 }
 0x6a2   : > { %v1687_v18 = vpop.f32.mrf.mxu1 }
 0x6a8   : > { %v1422_v30 = vpop.f32.mrf.mxu2 }
 0x6a9   : > { %v1428_v58 = vpack.c.bf16 %v1422_v30, %v1420_v12 }
 0x6aa   : > { %v1689_v55 = vpop.f32.mrf.mxu1 }
 0x6ab   : > { %v1699_v21 = vpack.c.bf16 %v1689_v55, %v1687_v18  ;;  %3018 = vmatmul.msk.bf16.gmra.mxu3 %vm669_vm1, %v1428_v58 }
 0x6ad   : > { %3030 = vmatmul.msk.bf16.gmra.mxu2 %vm669_vm1, %v1699_v21 }
 0x6b2   : > { %v1692_v22 = vpop.f32.mrf.mxu1 }
 0x6ba   : > { %v1694_v35 = vpop.f32.mrf.mxu1 }
 0x6bb   : > { %v1700_v52 = vpack.c.bf16 %v1694_v35, %v1692_v22  ;;  %3032 = vmatmul.msk.bf16.vlgmr.msra.gmra.mxu3 %vm669_vm1, %v1756_v60 }
 0x6bd   : > { %3031 = vmatmul.msk.bf16.gmra.mxu2 %vm669_vm1, %v1700_v52 }
 0x6cb   : > { %3033 = vmatmul.msk.bf16.gmra.mxu3 %vm669_vm1, %v1758_v56 }
 0x6cd   : > { %3045 = vmatmul.msk.bf16.vlgmr.msra.gmra.mxu2 %vm669_vm1, %v2028_v39 }
 0x6db   : > { %3034 = vmatmul.msk.bf16.gmra.mxu3 %vm669_vm1, %v1760_v54 }
 0x6dd   : > { %3046 = vmatmul.msk.bf16.gmra.mxu2 %vm669_vm1, %v2030_v16 }
 0x6df   : > { %v1727_v63 = vpop.f32.mrf.mxu2 }
 0x6e0   : > { %v4112_v29 = vadd.f32 %v1727_v63, %v1475_v47 }
 0x6e7   : > { %v4117_v59 = vpop.f32.mrf.mxu2 }
 0x6e8   : > { %4646 = vst [vmem:[#allocation2_spill] sm:$0xff] %v4117_v59 }
 0x6eb   : > { %3035 = vmatmul.msk.bf16.gmra.mxu3 %vm669_vm1, %v1762_v43 }
 0x6ed   : > { %3047 = vmatmul.msk.bf16.gmra.mxu2 %vm669_vm1, %v2032_v41 }
 0x6fd   : > { %3048 = vmatmul.msk.bf16.gmra.mxu2 %vm669_vm1, %v2034_v26 }
 0x720   : > { %v1732_v31 = vpop.f32.mrf.mxu2 }
 0x721   : > { %v4119_v7 = vadd.f32 %v1732_v31, %v1477_v28 }
 0x728   : > { %v4123_v17 = vpop.f32.mrf.mxu2 }
 0x72e   : > { %v1470_v8 = vpop.f32.mrf.mxu3 }
 0x72f   : > { %v1481_v39 = vadd.f32 %v1470_v8, %v3879_v20 }
 0x730   : > { %v1737_v44 = vpop.f32.mrf.mxu2 }
 0x731   : > { %v4126_v45 = vadd.f32 %v1737_v44, %v1479_v50 }
 0x736   : > { %v4128_v34 = vpop.f32.mrf.mxu3 }
 0x738   : > { %v4130_v54 = vpop.f32.mrf.mxu2 }
 0x73e   : > { %v1804_v26 = vpop.f32.mrf.mxu3 }
 0x73f   : > { %v1824_v51 = vsel %vm723_vm2, %v1804_v26, -inf }
 0x740   : > { %v1742_v32 = vpop.f32.mrf.mxu2  ;;  %1825 = vmax.xlane.f32.xlu0 %v1824_v51 }
 0x741   : > { %v4133_v37 = vadd.f32 %v1742_v32, %v1481_v39 }
 0x746   : > { %v1806_v6 = vpop.f32.mrf.mxu3 }
 0x747   : > { %v1827_v19 = vsel %vm723_vm2, %v1806_v6, -inf }
 0x748   : > { %1828 = vmax.xlane.f32.xlu1 %v1827_v19  ;;  %v4144_v61 = vpop.f32.mrf.mxu2 }
 0x74e   : > { %v4136_v47 = vpop.f32.mrf.mxu3 }
 0x74f   : > { %v1830_v20 = vsel %vm723_vm2, %v4136_v47, -inf }
 0x750   : > { %1831 = vmax.xlane.f32.xlu1 %v1830_v20  ;;  %v2076_v49 = vpop.f32.mrf.mxu2 }
 0x751   : > { %v2096_v12 = vsel %vm723_vm2, %v2076_v49, -inf }
 0x756   : > { %v4140_v33 = vpop.f32.mrf.mxu3 }
 0x757   : > { %v1833_v28 = vsel %vm723_vm2, %v4140_v33, -inf }
 0x758   : > { %1834 = vmax.xlane.f32.xlu2 %v1833_v28  ;;  %v4156_v55 = vpop.f32.mrf.mxu2 }
 0x759   : > { %v2099_v22 = vsel %vm723_vm2, %v4156_v55, -inf }
 0x75e   : > { %v1814_v11 = vpop.f32.mrf.mxu3 }
 0x75f   : > { %v1836_v50 = vsel %vm723_vm2, %v1814_v11, -inf }
 0x760   : > { %1837 = vmax.xlane.f32.xlu2 %v1836_v50  ;;  %v4164_v35 = vpop.f32.mrf.mxu2 }
 0x761   : > { %v2102_v52 = vsel %vm723_vm2, %v4164_v35, -inf }
 0x766   : > { %v4147_v48 = vpop.f32.mrf.mxu3 }
 0x767   : > { %v1839_v18 = vsel %vm723_vm2, %v4147_v48, -inf }
 0x768   : > { %2097 = vmax.xlane.f32.xlu2 %v2096_v12  ;;  %1840 = vmax.xlane.f32.xlu0 %v1839_v18  ;;  %v4174_v56 = vpop.f32.mrf.mxu2 }
 0x769   : > { %v2105_v12 = vsel %vm723_vm2, %v4174_v56, -inf }
 0x76e   : > { %v4152_v30 = vpop.f32.mrf.mxu3 }
 0x76f   : > { %v1842_v58 = vsel %vm723_vm2, %v4152_v30, -inf }
 0x770   : > { %1843 = vmax.xlane.f32.xlu0 %v1842_v58  ;;  %v4176_v16 = vpop.f32.mrf.mxu2 }
 0x776   : > { %v4158_v21 = vpop.f32.mrf.mxu3 }
 0x777   : > { %v1845_v60 = vsel %vm723_vm2, %v4158_v21, -inf }
 0x778   : > { %2100 = vmax.xlane.f32.xlu0 %v2099_v22  ;;  %1846 = vmax.xlane.f32.xlu1 %v1845_v60  ;;  %v4178_v63 = vpop.f32.mrf.mxu2  ;;  %v2108_v60 = vsel %vm723_vm2, %v4176_v16, -inf }
 0x779   : > { %v2111_v43 = vsel %vm723_vm2, %v4178_v63, -inf }
 0x780   : > { %1920 = vrot.lane.b32.xlu2 %v3602_v1, %s3401_s17  ;;  %2103 = vmax.xlane.f32.xlu0 %v2102_v52  ;;  %v4182_v39 = vpop.f32.mrf.mxu2 }
 0x781   : > { %v2114_v32 = vsel %vm723_vm2, %v4182_v39, -inf }
 0x788   : > { %2192 = vrot.lane.b32.xlu2 %v3602_v1, %s3400_s16 }
 0x794   : > { %2194 = vrot.lane.b32.xlu0 %v3600_v62, %s3400_s16 }
 0x7b1   : > { %2112 = vmax.xlane.f32.xlu2 %v2111_v43 }
 0x7b3   : > { %v1826_v41 = vpop.xlane.xlu0 %1825 }
 0x7b4   : > { %v1848_v31 = vsub.f32 %v1804_v26, %v1826_v41  ;;  %v4206_v41 = vpop.f32.mrf.mxu2 }
 0x7b6   : > { %v1856_v8 = vmul.f32 1.442695, %v1848_v31 }
 0x7b8   : > { %3252 = vpow2.f32 %v1856_v8 }
 0x7bb   : > { %v1829_v44 = vpop.xlane.xlu1 %1828 }
 0x7bc   : > { %v1849_v51 = vsub.f32 %v1806_v6, %v1829_v44 }
 0x7be   : > { %v4186_v19 = vpop.eup %3252  ;;  %v1858_v20 = vmul.f32 1.442695, %v1849_v51  ;;  %2115 = vmax.xlane.f32.xlu0 %v2114_v32 }
 0x7bf   : > { %v1872_v28 = vsel %vm723_vm2, %v4186_v19, 0.0 }
 0x7c0   : > { %3254 = vpow2.f32 %v1858_v20  ;;  %1873 = vadd.xlane.f32.xlu1 %v1872_v28 }
 0x7c6   : > { %v4190_v50 = vpop.eup %3254 }
 0x7c7   : > { %v1875_v26 = vsel %vm723_vm2, %v4190_v50, 0.0 }
 0x7c8   : > { %1876 = vadd.xlane.f32.xlu1 %v1875_v26 }
 0x7c9   : > { %2190 = vrot.lane.b32.xlu2 %v3607_v2, %s3400_s16 }
 0x7cb   : > { %v1835_v6 = vpop.xlane.xlu2 %1834 }
 0x7d0   : > { %2106 = vmax.xlane.f32.xlu1 %v2105_v12 }
 0x7d1   : > { %1916 = vrot.lane.b32.xlu2 %v3657_v4, %s3401_s17 }
 0x7d3   : > { %v1838_v18 = vpop.xlane.xlu2 %1837 }
 0x7d4   : > { %v1852_v58 = vsub.f32 %v1814_v11, %v1838_v18  ;;  %v2117_v11 = vsel %vm723_vm2, %v4206_v41, -inf }
 0x7d6   : > { %v1864_v22 = vmul.f32 1.442695, %v1852_v58  ;;  %v1851_v58 = vsub.f32 %v4140_v33, %v1835_v6 }
 0x7d8   : > { %3256 = vpow2.f32 %v1864_v22  ;;  %2109 = vmax.xlane.f32.xlu1 %v2108_v60  ;;  %v1862_v22 = vmul.f32 1.442695, %v1851_v58 }
 0x7d9   : > { %2188 = vrot.lane.b32.xlu2 %v3657_v4, %s3400_s16 }
 0x7db   : > { %v4204_v52 = vpop.xlane.xlu0 %1840  ;;  %v2098_v43 = vpop.xlane.xlu2 %2097 }
 0x7dc   : > { %v2120_v31 = vsub.f32 %v2076_v49, %v2098_v43 }
 0x7de   : > { %v4208_v8 = vpop.eup %3256  ;;  %v2128_v44 = vmul.f32 1.442695, %v2120_v31 }
 0x7df   : > { %v1884_v51 = vsel %vm723_vm2, %v4208_v8, 0.0 }
 0x7e0   : > { %2118 = vmax.xlane.f32.xlu1 %v2117_v11  ;;  %1885 = vadd.xlane.f32.xlu0 %v1884_v51  ;;  %3258 = vpow2.f32 %v2128_v44 }
 0x7e3   : > { %v1844_v32 = vpop.xlane.xlu0 %1843  ;;  %v1921_v20 = vpop.permute.xlu2 %1920 }
 0x7e4   : > { %1945 = vmatpush.bf16.msra.mxu0 %v1921_v20  ;;  %v1854_v51 = vsub.f32 %v4152_v30, %v1844_v32 }
 0x7e6   : > { %v4214_v28 = vpop.eup %3258 }
 0x7e7   : > { %v2144_v49 = vsel %vm723_vm2, %v4214_v28, 0.0 }
 0x7e8   : > { %2145 = vadd.xlane.f32.xlu1 %v2144_v49 }
 0x7eb   : > { %v2101_v26 = vpop.xlane.xlu0 %2100 }
 0x7ec   : > { %v2121_v12 = vsub.f32 %v4156_v55, %v2101_v26  ;;  %v1868_v55 = vmul.f32 1.442695, %v1854_v51  ;;  %v2193_v26 = vpop.permute.xlu2 %2192 }
 0x7ee   : > { %v2130_v18 = vmul.f32 1.442695, %v2121_v12  ;;  %v1832_v12 = vpop.xlane.xlu1 %1831 }
 0x7f0   : > { %3260 = vpow2.f32 %v2130_v18  ;;  %v1850_v18 = vsub.f32 %v4136_v47, %v1832_v12 }
 0x7f1   : > { %3262 = vpow2.f32 %v1862_v22 }
 0x7f2   : > { %v1860_v58 = vmul.f32 1.442695, %v1850_v18 }
 0x7f3   : > { %v2104_v60 = vpop.xlane.xlu0 %2103 }
 0x7f4   : > { %v2122_v43 = vsub.f32 %v4164_v35, %v2104_v60 }
 0x7f6   : > { %v4221_v31 = vpop.eup %3260  ;;  %v2132_v44 = vmul.f32 1.442695, %v2122_v43  ;;  %v1847_v43 = vpop.xlane.xlu1 %1846 }
 0x7f7   : > { %v2147_v11 = vsel %vm723_vm2, %v4221_v31, 0.0  ;;  %v4226_v20 = vpop.eup %3262 }
 0x7f8   : > { %3264 = vpow2.f32 %v2132_v44  ;;  %2148 = vadd.xlane.f32.xlu0 %v2147_v11  ;;  %v1881_v35 = vsel %vm723_vm2, %v4226_v20, 0.0 }
 0x7f9   : > { %3266 = vpow2.f32 %v1868_v55 }
 0x7fa   : > { %3268 = vpow2.f32 %v1860_v58 }
 0x7fe   : > { %v4228_v33 = vpop.eup %3264 }
 0x7ff   : > { %v2150_v6 = vsel %vm723_vm2, %v4228_v33, 0.0  ;;  %v4236_v30 = vpop.eup %3266 }
 0x800   : > { %2151 = vadd.xlane.f32.xlu0 %v2150_v6  ;;  %v1890_v49 = vsel %vm723_vm2, %v4236_v30, 0.0  ;;  %v4241_v60 = vpop.eup %3268 }
 0x801   : > { %1918 = vrot.lane.b32.xlu1 %v3607_v2, %s3401_s17  ;;  %v1878_v44 = vsel %vm723_vm2, %v4241_v60, 0.0 }
 0x802   : > { %1882 = vadd.xlane.f32.xlu2 %v1881_v35 }
 0x806   : > { %v2195_v32 = vpop.permute.xlu0 %2194 }
 0x807   : > { %2216 = vmatpush.bf16.msrb.mxu3 %v2195_v32 }
 0x80a   : > { %1891 = vadd.xlane.f32.xlu2 %v1890_v49  ;;  %v1853_v49 = vsub.f32 %v4147_v48, %v4204_v52 }
 0x80b   : > { %2217 = vmatpush.bf16.msrb.mxu3 %v2193_v26 }
 0x80c   : > { %v1866_v12 = vmul.f32 1.442695, %v1853_v49 }
 0x824   : > { %v2113_v22 = vpop.xlane.xlu2 %2112 }
 0x82b   : > { %1879 = vadd.xlane.f32.xlu1 %v1878_v44 }
 0x82c   : > { %v2191_v11 = vpop.permute.xlu2 %2190 }
 0x82d   : > { %2218 = vmatpush.bf16.msrb.mxu3 %v2191_v11  ;;  %v1855_v11 = vsub.f32 %v4158_v21, %v1847_v43 }
 0x82f   : > { %v1870_v48 = vmul.f32 1.442695, %v1855_v11 }
 0x831   : > { %v2116_v49 = vpop.xlane.xlu0 %2115 }
 0x833   : > { %v1874_v51 = vpop.xlane.xlu1 %1873 }
 0x834   : > { %v4245_v55 = vpop.permute.xlu2 %1916 }
 0x83b   : > { %v1877_v6 = vpop.xlane.xlu1 %1876 }
 0x83c   : > { %v2189_v35 = vpop.permute.xlu2 %2188 }
 0x83d   : > { %2219 = vmatpush.bf16.msrb.mxu3 %v2189_v35  ;;  %v2125_v35 = vsub.f32 %v4178_v63, %v2113_v22  ;;  %v2126_v63 = vsub.f32 %v4182_v39, %v2116_v49 }
 0x83f   : > { %v2138_v52 = vmul.f32 1.442695, %v2125_v35  ;;  %v2140_v43 = vmul.f32 1.442695, %v2126_v63 }
 0x843   : > { %v2107_v32 = vpop.xlane.xlu1 %2106 }
 0x844   : > { %v2123_v47 = vsub.f32 %v4174_v56, %v2107_v32 }
 0x846   : > { %v2134_v26 = vmul.f32 1.442695, %v2123_v47 }
 0x848   : > { %3270 = vpow2.f32 %v2134_v26 }
 0x849   : > { %3272 = vpow2.f32 %v1866_v12 }
 0x84b   : > { %v2110_v18 = vpop.xlane.xlu1 %2109 }
 0x84c   : > { %v2124_v58 = vsub.f32 %v4176_v16, %v2110_v18 }
 0x84e   : > { %v4251_v44 = vpop.eup %3270  ;;  %v2136_v59 = vmul.f32 1.442695, %v2124_v58 }
 0x84f   : > { %v2153_v56 = vsel %vm723_vm2, %v4251_v44, 0.0  ;;  %v4257_v47 = vpop.eup %3272 }
 0x850   : > { %3274 = vpow2.f32 %v2136_v59  ;;  %2154 = vadd.xlane.f32.xlu0 %v2153_v56  ;;  %v1887_v22 = vsel %vm723_vm2, %v4257_v47, 0.0 }
 0x851   : > { %3276 = vpow2.f32 %v1870_v48 }
 0x852   : > { %3278 = vpow2.f32 %v2138_v52 }
 0x853   : > { %v2119_v32 = vpop.xlane.xlu1 %2118  ;;  %v4279_v35 = vpop.xlane.xlu0 %1885 }
 0x854   : > { %v2127_v16 = vsub.f32 %v4206_v41, %v2119_v32 }
 0x856   : > { %v4260_v26 = vpop.eup %3274  ;;  %v2142_v21 = vmul.f32 1.442695, %v2127_v16 }
 0x857   : > { %v2156_v59 = vsel %vm723_vm2, %v4260_v26, 0.0  ;;  %v4267_v12 = vpop.eup %3276 }
 0x858   : > { %3280 = vpow2.f32 %v2142_v21  ;;  %1888 = vadd.xlane.f32.xlu0 %v1887_v22  ;;  %2157 = vadd.xlane.f32.xlu1 %v2156_v59  ;;  %v4269_v41 = vpop.eup %3278  ;;  %v1893_v58 = vsel %vm723_vm2, %v4267_v12, 0.0 }
 0x859   : > { %3282 = vpow2.f32 %v2140_v43  ;;  %v2159_v11 = vsel %vm723_vm2, %v4269_v41, 0.0 }
 0x85b   : > { %v2146_v48 = vpop.xlane.xlu1 %2145 }
 0x85c   : > { %3284 = vrcp.f32 %v2146_v48 }
 0x85e   : > { %v4271_v18 = vpop.eup %3280 }
 0x85f   : > { %v2165_v39 = vsel %vm723_vm2, %v4271_v18, 0.0  ;;  %v4281_v56 = vpop.eup %3282 }
 0x860   : > { %2166 = vadd.xlane.f32.xlu2 %v2165_v39  ;;  %1894 = vadd.xlane.f32.xlu1 %v1893_v58  ;;  %v2162_v52 = vsel %vm723_vm2, %v4281_v56, 0.0 }
 0x861   : > { %2160 = vadd.xlane.f32.xlu0 %v2159_v11 }
 0x862   : > { %v3285_v49 = vpop.eup %3284 }
 0x863   : > { %v2176_v63 = vmul.f32 %v3285_v49, %v4214_v28 }
 0x869   : > { %2163 = vadd.xlane.f32.xlu0 %v2162_v52  ;;  %v3040_v52 = vld [vmem:[%s4640_s5 + $0x8] sm:$0x3] }
 0x86a   : > { %v1988_v49 = vsel %vm898_vm3, %v3040_v52, 0 }
 0x86b   : > { %v2149_v32 = vpop.xlane.xlu0 %2148  ;;  %1997 = vmatpush.bf16.msra.mxu1 %v1988_v49 }
 0x86c   : > { %3286 = vrcp.f32 %v2149_v32 }
 0x86d   : > { %3288 = vrcp.f32 %v1877_v6 }
 0x86e   : > { %3290 = vrcp.f32 %v1874_v51 }
 0x872   : > { %v3287_v16 = vpop.eup %3286 }
 0x873   : > { %v3289_v21 = vpop.eup %3288  ;;  %v2177_v22 = vmul.f32 %v3287_v16, %v4221_v31  ;;  %v1919_v59 = vpop.permute.xlu1 %1918 }
 0x874   : > { %v3291_v43 = vpop.eup %3290  ;;  %1946 = vmatpush.bf16.msra.mxu0 %v1919_v59  ;;  %v1905_v58 = vmul.f32 %v3289_v21, %v4190_v50 }
 0x875   : > { %v2184_v39 = vpack.c.bf16 %v2177_v22, %v2176_v63  ;;  %v1904_v11 = vmul.f32 %v3291_v43, %v4186_v19  ;;  %v2152_v19 = vpop.xlane.xlu0 %2151 }
 0x877   : > { %3049 = vmatmul.msk.bf16.vlgmr.msrb.gmra.mxu3 %vm723_vm2, %v2184_v39  ;;  %v1912_v28 = vpack.c.bf16 %v1905_v58, %v1904_v11 }
 0x878   : > { %2585 = vrot.lane.b32.xlu2 %v3548_v3, %s3402_s22  ;;  %1947 = vmatpush.bf16.msra.mxu0 %v4245_v55 }
 0x879   : > { %2313 = vrot.lane.b32.xlu1 %v3548_v3, %s3403_s23 }
 0x87b   : > { %3036 = vmatmul.msk.bf16.vlgmr.msra.gmra.mxu0 %vm723_vm2, %v1912_v28 }
 0x87d   : > { %2311 = vrot.lane.b32.xlu0 %v3555_v10, %s3403_s23 }
 0x880   : > { %2307 = vrot.lane.b32.xlu2 %v3543_v53, %s3403_s23 }
 0x881   : > { %2583 = vrot.lane.b32.xlu1 %v3555_v10, %s3402_s22 }
 0x885   : > { %2309 = vrot.lane.b32.xlu0 %v3535_v40, %s3403_s23 }
 0x888   : > { %2579 = vrot.lane.b32.xlu2 %v3543_v53, %s3402_s22  ;;  %v1883_v53 = vpop.xlane.xlu2 %1882 }
 0x889   : > { %2299 = vrot.lane.b32.xlu1 %v3537_v42, %s3403_s23  ;;  %3292 = vrcp.f32 %v1883_v53 }
 0x88d   : > { %2581 = vrot.lane.b32.xlu0 %v3535_v40, %s3402_s22 }
 0x890   : > { %2573 = vrot.lane.b32.xlu2 %v3561_v15, %s3402_s22  ;;  %v1892_v51 = vpop.xlane.xlu2 %1891 }
 0x891   : > { %2301 = vrot.lane.b32.xlu1 %v3561_v15, %s3403_s23 }
 0x895   : > { %2571 = vrot.lane.b32.xlu0 %v3537_v42, %s3402_s22  ;;  %v3293_v42 = vpop.eup %3292 }
 0x896   : > { %v1907_v10 = vmul.f32 %v3293_v42, %v4226_v20 }
 0x898   : > { %2305 = vrot.lane.b32.xlu2 %v3579_v36, %s3403_s23 }
 0x899   : > { %2575 = vrot.lane.b32.xlu1 %v3571_v27, %s3402_s22 }
 0x89d   : > { %2303 = vrot.lane.b32.xlu0 %v3571_v27, %s3403_s23 }
 0x89e   : > { %v1880_v40 = vpop.xlane.xlu1 %1879 }
 0x89f   : > { %3294 = vrcp.f32 %v1880_v40 }
 0x8a0   : > { %2462 = vrot.lane.b32.xlu2 %v3607_v2, %s3403_s23  ;;  %3296 = vrcp.f32 %v2152_v19 }
 0x8a1   : > { %2464 = vrot.lane.b32.xlu1 %v3602_v1, %s3403_s23 }
 0x8a5   : > { %2577 = vrot.lane.b32.xlu0 %v3579_v36, %s3402_s22  ;;  %v3295_v3 = vpop.eup %3294  ;;  %v3053_v36 = vld [vmem:[%s4640_s5 + $0xa] sm:$0x3] }
 0x8a6   : > { %v1906_v15 = vmul.f32 %v3295_v3, %v4241_v60  ;;  %v2260_v50 = vsel %vm898_vm3, %v3053_v36, 0  ;;  %v3297_v20 = vpop.eup %3296 }
 0x8a7   : > { %2269 = vmatpush.bf16.msrb.mxu0 %v2260_v50 }
 0x8a8   : > { %v1913_v27 = vpack.c.bf16 %v1907_v10, %v1906_v15 }
 0x8a9   : > { %2738 = vrot.lane.b32.xlu1 %v3600_v62, %s3402_s22 }
 0x8aa   : > { %3037 = vmatmul.msk.bf16.gmra.mxu0 %vm723_vm2, %v1913_v27 }
 0x8ad   : > { %2466 = vrot.lane.b32.xlu0 %v3600_v62, %s3403_s23  ;;  %v2178_v62 = vmul.f32 %v3297_v20, %v4228_v33 }
 0x8b5   : > { %2460 = vrot.lane.b32.xlu0 %v3657_v4, %s3403_s23 }
 0x8c3   : > { %v2155_v31 = vpop.xlane.xlu0 %2154 }
 0x8c4   : > { %3298 = vrcp.f32 %v2155_v31 }
 0x8c5   : > { %3300 = vrcp.f32 %v4279_v35 }
 0x8ca   : > { %v3299_v60 = vpop.eup %3298 }
 0x8cb   : > { %v2179_v55 = vmul.f32 %v3299_v60, %v4251_v44  ;;  %v1889_v6 = vpop.xlane.xlu0 %1888  ;;  %v2158_v48 = vpop.xlane.xlu1 %2157 }
 0x8cc   : > { %3302 = vrcp.f32 %v1889_v6  ;;  %v3301_v16 = vpop.eup %3300 }
 0x8cd   : > { %v2185_v32 = vpack.c.bf16 %v2179_v55, %v2178_v62  ;;  %v1908_v21 = vmul.f32 %v3301_v16, %v4208_v8  ;;  %3304 = vrcp.f32 %v2158_v48 }
 0x8cf   : > { %3050 = vmatmul.msk.bf16.gmra.mxu3 %vm723_vm2, %v2185_v32 }
 0x8d2   : > { %v3303_v35 = vpop.eup %3302 }
 0x8d3   : > { %v1909_v33 = vmul.f32 %v3303_v35, %v4257_v47  ;;  %v2167_v44 = vpop.xlane.xlu2 %2166  ;;  %v1895_v22 = vpop.xlane.xlu1 %1894 }
 0x8d4   : > { %v2161_v63 = vpop.xlane.xlu0 %2160  ;;  %v3305_v43 = vpop.eup %3304 }
 0x8d5   : > { %3306 = vrcp.f32 %v2161_v63  ;;  %v1914_v59 = vpack.c.bf16 %v1909_v33, %v1908_v21  ;;  %v2180_v11 = vmul.f32 %v3305_v43, %v4260_v26 }
 0x8d6   : > { %3308 = vrcp.f32 %v1895_v22 }
 0x8d7   : > { %3038 = vmatmul.msk.bf16.gmra.mxu0 %vm723_vm2, %v1914_v59  ;;  %3310 = vrcp.f32 %v1892_v51 }
 0x8db   : > { %v3307_v39 = vpop.eup %3306  ;;  %v2586_v58 = vpop.permute.xlu2 %2585 }
 0x8dc   : > { %v2181_v28 = vmul.f32 %v3307_v39, %v4269_v41  ;;  %v2609_v8 = vsel %vm669_vm1, %v2586_v58, 0  ;;  %v3309_v47 = vpop.eup %3308  ;;  %v2164_v53 = vpop.xlane.xlu0 %2163 }
 0x8dd   : > { %2615 = vmatpush.bf16.xpose.msra.mxu0 %v2609_v8  ;;  %v3311_v42 = vpop.eup %3310  ;;  %v1911_v3 = vmul.f32 %v3309_v47, %v4267_v12  ;;  %3312 = vrcp.f32 %v2164_v53 }
 0x8de   : > { %v2186_v40 = vpack.c.bf16 %v2181_v28, %v2180_v11  ;;  %v1910_v10 = vmul.f32 %v3311_v42, %v4236_v30  ;;  %3314 = vrcp.f32 %v2167_v44 }
 0x8e0   : > { %3051 = vmatmul.msk.bf16.gmra.mxu3 %vm723_vm2, %v2186_v40  ;;  %v1915_v15 = vpack.c.bf16 %v1911_v3, %v1910_v10 }
 0x8e3   : > { %v3313_v27 = vpop.eup %3312  ;;  %v2308_v55 = vpop.permute.xlu2 %2307 }
 0x8e4   : > { %v3315_v26 = vpop.eup %3314  ;;  %v2182_v41 = vmul.f32 %v3313_v27, %v4281_v56  ;;  %v2328_v33 = vsel %vm669_vm1, %v2308_v55, 0 }
 0x8e5   : > { %v2183_v36 = vmul.f32 %v3315_v26, %v4271_v18 }
 0x8e7   : > { %3039 = vmatmul.msk.bf16.gmra.mxu0 %vm723_vm2, %v1915_v15  ;;  %v2187_v31 = vpack.c.bf16 %v2183_v36, %v2182_v41 }
 0x8eb   : > { %v2314_v19 = vpop.permute.xlu1 %2313  ;;  %v2580_v44 = vpop.permute.xlu2 %2579 }
 0x8ec   : > { %v2337_v50 = vsel %vm669_vm1, %v2314_v19, 0  ;;  %v2600_v22 = vsel %vm669_vm1, %v2580_v44, 0 }
 0x8ed   : > { %2343 = vmatpush.bf16.xpose.msrb.mxu1 %v2337_v50 }
 0x8ef   : > { %v2312_v20 = vpop.permute.xlu0 %2311 }
 0x8f0   : > { %3052 = vmatmul.msk.bf16.gmra.mxu3 %vm723_vm2, %v2187_v31  ;;  %v2334_v30 = vsel %vm669_vm1, %v2312_v20, 0 }
 0x8f3   : > { %v2584_v12 = vpop.permute.xlu1 %2583  ;;  %v2574_v39 = vpop.permute.xlu2 %2573 }
 0x8f4   : > { %v2606_v60 = vsel %vm669_vm1, %v2584_v12, 0 }
 0x8f5   : > { %2344 = vmatpush.bf16.xpose.msrb.mxu1 %v2334_v30  ;;  %2616 = vmatpush.bf16.xpose.msra.mxu0 %v2606_v60 }
 0x8f7   : > { %v2310_v51 = vpop.permute.xlu0 %2309 }
 0x8f8   : > { %v1949_v62 = vpop.f32.mrf.mxu0  ;;  %v2331_v18 = vsel %vm669_vm1, %v2310_v51, 0 }
 0x8fa   : > { %v2221_v56 = vpop.f32.mrf.mxu3 }
 0x8fb   : > { %v2300_v6 = vpop.permute.xlu1 %2299  ;;  %v2306_v8 = vpop.permute.xlu2 %2305 }
 0x8fd   : > { %2345 = vmatpush.bf16.xpose.msrb.mxu1 %v2331_v18 }
 0x8ff   : > { %v2582_v48 = vpop.permute.xlu0 %2581 }
 0x900   : > { %v2603_v52 = vsel %vm669_vm1, %v2582_v48, 0  ;;  %v1951_v32 = vpop.f32.mrf.mxu0 }
 0x901   : > { %2617 = vmatpush.bf16.xpose.msra.mxu0 %v2603_v52  ;;  %v1969_v49 = vpack.c.bf16 %v1951_v32, %v1949_v62 }
 0x902   : > { %v2223_v16 = vpop.f32.mrf.mxu3 }
 0x903   : > { %v2241_v35 = vpack.c.bf16 %v2223_v16, %v2221_v56  ;;  %v2302_v21 = vpop.permute.xlu1 %2301  ;;  %3041 = vmatmul.msk.bf16.vlgmr.msra.gmra.mxu1 %vm669_vm1, %v1969_v49  ;;  %v2463_v53 = vpop.permute.xlu2 %2462 }
 0x905   : > { %3054 = vmatmul.msk.bf16.vlgmr.msrb.gmra.mxu0 %vm669_vm1, %v2241_v35  ;;  %2346 = vmatpush.bf16.xpose.msrb.mxu1 %v2328_v33  ;;  %v3384_v35 = vld [vmem:[%s3493_s30 + $0x18] sm:$0xff] }
 0x907   : > { %v2572_v63 = vpop.permute.xlu0 %2571 }
 0x909   : > { %2618 = vmatpush.bf16.xpose.msra.mxu0 %v2600_v22 }
 0x90b   : > { %v2576_v59 = vpop.permute.xlu1 %2575 }
 0x90f   : > { %v2304_v43 = vpop.permute.xlu0 %2303 }
 0x913   : > { %v2465_v58 = vpop.permute.xlu1 %2464 }
 0x917   : > { %v2578_v11 = vpop.permute.xlu0 %2577 }
 0x91b   : > { %v2739_v28 = vpop.permute.xlu1 %2738 }
 0x91c   : > { %2760 = vmatpush.bf16.msra.mxu1 %v2739_v28 }
 0x91f   : > { %v2467_v47 = vpop.permute.xlu0 %2466 }
 0x920   : > { %2488 = vmatpush.bf16.msrb.mxu2 %v2467_v47 }
 0x924   : > { %2489 = vmatpush.bf16.msrb.mxu2 %v2465_v58 }
 0x927   : > { %v1954_v40 = vpop.f32.mrf.mxu0  ;;  %v2461_v42 = vpop.permute.xlu0 %2460 }
 0x928   : > { %2490 = vmatpush.bf16.msrb.mxu2 %v2463_v53  ;;  %v3386_v53 = vld [vmem:[%s3493_s30 + $0x28] sm:$0xff] }
 0x92c   : > { %2491 = vmatpush.bf16.msrb.mxu2 %v2461_v42 }
 0x92f   : > { %v1956_v3 = vpop.f32.mrf.mxu0 }
 0x930   : > { %v1970_v10 = vpack.c.bf16 %v1956_v3, %v1954_v40 }
 0x932   : > { %3042 = vmatmul.msk.bf16.gmra.mxu1 %vm669_vm1, %v1970_v10 }
 0x952   : > { %v2226_v15 = vpop.f32.mrf.mxu3 }
 0x954   : > { %v1959_v27 = vpop.f32.mrf.mxu0 }
 0x95a   : > { %v2228_v26 = vpop.f32.mrf.mxu3 }
 0x95b   : > { %v2242_v41 = vpack.c.bf16 %v2228_v26, %v2226_v15 }
 0x95c   : > { %v1961_v19 = vpop.f32.mrf.mxu0 }
 0x95d   : > { %v1971_v36 = vpack.c.bf16 %v1961_v19, %v1959_v27  ;;  %3055 = vmatmul.msk.bf16.gmra.mxu0 %vm669_vm1, %v2242_v41  ;;  %v3387_v19 = vld [vmem:[%s3493_s30 + $0x38] sm:$0xff] }
 0x95f   : > { %3043 = vmatmul.msk.bf16.gmra.mxu1 %vm669_vm1, %v1971_v36 }
 0x963   : > { %v2231_v50 = vpop.f32.mrf.mxu3 }
 0x964   : > { %v1964_v31 = vpop.f32.mrf.mxu0 }
 0x96b   : > { %v2233_v20 = vpop.f32.mrf.mxu3 }
 0x96c   : > { %v2243_v12 = vpack.c.bf16 %v2233_v20, %v2231_v50  ;;  %v1966_v30 = vpop.f32.mrf.mxu0 }
 0x96d   : > { %v1972_v60 = vpack.c.bf16 %v1966_v30, %v1964_v31 }
 0x96e   : > { %3056 = vmatmul.msk.bf16.gmra.mxu0 %vm669_vm1, %v2243_v12 }
 0x96f   : > { %3044 = vmatmul.msk.bf16.gmra.mxu1 %vm669_vm1, %v1972_v60 }
 0x973   : > { %v2236_v51 = vpop.f32.mrf.mxu3 }
 0x97b   : > { %v2238_v62 = vpop.f32.mrf.mxu3 }
 0x97c   : > { %v2244_v56 = vpack.c.bf16 %v2238_v62, %v2236_v51 }
 0x97e   : > { %3057 = vmatmul.msk.bf16.gmra.mxu0 %vm669_vm1, %v2244_v56 }
 0x97f   : > { %3058 = vmatmul.msk.bf16.vlgmr.msrb.gmra.mxu1 %vm669_vm1, %v2300_v6 }
 0x980   : > { %v1999_v55 = vpop.f32.mrf.mxu1 }
 0x981   : > { %v2019_v18 = vadd.f32 %v1999_v55, %v4112_v29 }
 0x982   : > { %v2271_v48 = vpop.f32.mrf.mxu0 }
 0x983   : > { %v4379_v52 = vadd.f32 %v2271_v48, %v2019_v18 }
 0x988   : > { %v4385_v32 = vpop.f32.mrf.mxu1 }
 0x98a   : > { %v4391_v49 = vpop.f32.mrf.mxu0 }
 0x98e   : > { %3071 = vmatmul.msk.bf16.vlgmr.msra.gmra.mxu0 %vm669_vm1, %v2572_v63 }
 0x98f   : > { %3059 = vmatmul.msk.bf16.gmra.mxu1 %vm669_vm1, %v2302_v21  ;;  %v4397_v21 = vld [vmem:[%s4644_s9] ss:$0 sm:$0xff] }
 0x990   : > { %v624_v33 = vadd.f32 %v4397_v21, %v3384_v35 }
 0x992   : > { %v934_v44 = vadd.f32 %v3859_v24, %v624_v33  ;;  %v626_v24 = vadd.f32 %v3386_v53, %v4397_v21 }
 0x994   : > { %v1206_v22 = vadd.f32 %v3868_v14, %v934_v44  ;;  %v936_v14 = vadd.f32 %v3866_v23, %v626_v24  ;;  %v628_v23 = vadd.f32 %v3387_v19, %v4397_v21 }
 0x996   : > { %v1208_v42 = vadd.f32 %v3875_v9, %v936_v14  ;;  %v938_v36 = vadd.f32 %v3873_v46, %v628_v23 }
 0x998   : > { %v1210_v50 = vadd.f32 %v3882_v57, %v938_v36 }
 0x99e   : > { %3072 = vmatmul.msk.bf16.gmra.mxu0 %vm669_vm1, %v2574_v39 }
 0x99f   : > { %3060 = vmatmul.msk.bf16.gmra.mxu1 %vm669_vm1, %v2304_v43  ;;  %v1478_v43 = vadd.f32 %v4100_v5, %v1206_v22 }
 0x9a1   : > { %v1750_v58 = vadd.f32 %v4123_v17, %v1478_v43  ;;  %v1480_v17 = vadd.f32 %v4121_v38, %v1208_v42 }
 0x9a3   : > { %v1752_v10 = vadd.f32 %v4130_v54, %v1480_v17  ;;  %v1482_v54 = vadd.f32 %v4128_v34, %v1210_v50 }
 0x9a5   : > { %v1754_v20 = vadd.f32 %v4144_v61, %v1482_v54 }
 0x9ae   : > { %3073 = vmatmul.msk.bf16.gmra.mxu0 %vm669_vm1, %v2576_v59 }
 0x9af   : > { %3061 = vmatmul.msk.bf16.gmra.mxu1 %vm669_vm1, %v2306_v8  ;;  %v2004_v6 = vpop.f32.mrf.mxu1 }
 0x9b0   : > { %v2021_v29 = vadd.f32 %v2004_v6, %v4119_v7 }
 0x9b7   : > { %v2006_v16 = vpop.f32.mrf.mxu1 }
 0x9be   : > { %3074 = vmatmul.msk.bf16.gmra.mxu0 %vm669_vm1, %v2578_v11  ;;  %v2022_v11 = vadd.f32 %v2006_v16, %v1750_v58 }
 0x9da   : > { %v2276_v63 = vpop.f32.mrf.mxu0 }
 0x9db   : > { %v4402_v7 = vadd.f32 %v2276_v63, %v2021_v29 }
 0x9dc   : > { %v2009_v59 = vpop.f32.mrf.mxu1 }
 0x9dd   : > { %v2023_v39 = vadd.f32 %v2009_v59, %v4126_v45 }
 0x9e2   : > { %v2278_v28 = vpop.f32.mrf.mxu0 }
 0x9e3   : > { %v4407_v8 = vadd.f32 %v2278_v28, %v2022_v11 }
 0x9e4   : > { %v2011_v47 = vpop.f32.mrf.mxu1 }
 0x9e5   : > { %v2024_v15 = vadd.f32 %v2011_v47, %v1752_v10 }
 0x9eb   : > { %v2281_v40 = vpop.f32.mrf.mxu0 }
 0x9ec   : > { %v4413_v3 = vadd.f32 %v2281_v40, %v2023_v39  ;;  %v2014_v5 = vpop.f32.mrf.mxu1 }
 0x9ed   : > { %v2025_v45 = vadd.f32 %v2014_v5, %v4133_v37 }
 0x9f3   : > { %v2283_v27 = vpop.f32.mrf.mxu0 }
 0x9f4   : > { %v4418_v26 = vadd.f32 %v2283_v27, %v2024_v15  ;;  %v2016_v41 = vpop.f32.mrf.mxu1 }
 0x9f5   : > { %v2026_v12 = vadd.f32 %v2016_v41, %v1754_v20 }
 0x9fb   : > { %v2286_v9 = vpop.f32.mrf.mxu0 }
 0x9fc   : > { %v4424_v31 = vadd.f32 %v2286_v9, %v2025_v45  ;;  %v2348_v37 = vpop.f32.mrf.mxu1 }
 0x9fd   : > { %v2368_v38 = vsel %vm723_vm2, %v2348_v37, -inf }
 0x9fe   : > { %2369 = vmax.xlane.f32.xlu1 %v2368_v38 }
 0xa03   : > { %v2288_v30 = vpop.f32.mrf.mxu0 }
 0xa04   : > { %v4429_v60 = vadd.f32 %v2288_v30, %v2026_v12  ;;  %v2350_v51 = vpop.f32.mrf.mxu1 }
 0xa05   : > { %v2371_v46 = vsel %vm723_vm2, %v2350_v51, -inf }
 0xa06   : > { %2372 = vmax.xlane.f32.xlu2 %v2371_v46 }
 0xa0b   : > { %v4432_v62 = vpop.f32.mrf.mxu0 }
 0xa0c   : > { %v4434_v57 = vpop.f32.mrf.mxu1  ;;  %v2640_v33 = vsel %vm723_vm2, %v4432_v62, -inf }
 0xa0d   : > { %v2374_v56 = vsel %vm723_vm2, %v4434_v57, -inf }
 0xa0e   : > { %2375 = vmax.xlane.f32.xlu2 %v2374_v56 }
 0xa13   : > { %v4438_v34 = vpop.f32.mrf.mxu0 }
 0xa14   : > { %v2355_v55 = vpop.f32.mrf.mxu1  ;;  %v2643_v15 = vsel %vm723_vm2, %v4438_v34, -inf }
 0xa15   : > { %v2377_v61 = vsel %vm723_vm2, %v2355_v55, -inf }
 0xa16   : > { %2378 = vmax.xlane.f32.xlu0 %v2377_v61 }
 0xa1b   : > { %v4441_v18 = vpop.f32.mrf.mxu0 }
 0xa1c   : > { %v2358_v48 = vpop.f32.mrf.mxu1  ;;  %v2646_v23 = vsel %vm723_vm2, %v4441_v18, -inf }
 0xa1d   : > { %v2380_v6 = vsel %vm723_vm2, %v2358_v48, -inf }
 0xa1e   : > { %2381 = vmax.xlane.f32.xlu0 %v2380_v6 }
 0xa23   : > { %v4444_v29 = vpop.f32.mrf.mxu0 }
 0xa24   : > { %v2360_v16 = vpop.f32.mrf.mxu1  ;;  %v2649_v36 = vsel %vm723_vm2, %v4444_v29, -inf }
 0xa25   : > { %v2383_v35 = vsel %vm723_vm2, %v2360_v16, -inf }
 0xa26   : > { %2384 = vmax.xlane.f32.xlu1 %v2383_v35  ;;  %2641 = vmax.xlane.f32.xlu0 %v2640_v33 }
 0xa2b   : > { %v4449_v44 = vpop.f32.mrf.mxu0 }
 0xa2c   : > { %v4451_v63 = vpop.f32.mrf.mxu1  ;;  %v2652_v20 = vsel %vm723_vm2, %v4449_v44, -inf }
 0xa2d   : > { %v2386_v22 = vsel %vm723_vm2, %v4451_v63, -inf }
 0xa2e   : > { %2387 = vmax.xlane.f32.xlu1 %v2386_v22 }
 0xa33   : > { %v4455_v59 = vpop.f32.mrf.mxu0 }
 0xa34   : > { %v2655_v43 = vsel %vm723_vm2, %v4455_v59, -inf  ;;  %v4459_v39 = vpop.f32.mrf.mxu1 }
 0xa35   : > { %2656 = vmax.xlane.f32.xlu0 %v2655_v43  ;;  %v2389_v58 = vsel %vm723_vm2, %v4459_v39, -inf }
 0xa36   : > { %2390 = vmax.xlane.f32.xlu2 %v2389_v58 }
 0xa3b   : > { %v4463_v11 = vpop.f32.mrf.mxu0 }
 0xa3c   : > { %v2658_v33 = vsel %vm723_vm2, %v4463_v11, -inf }
 0xa43   : > { %v4465_v28 = vpop.f32.mrf.mxu0 }
 0xa44   : > { %v2661_v47 = vsel %vm723_vm2, %v4465_v28, -inf }
 0xa45   : > { %2662 = vmax.xlane.f32.xlu0 %v2661_v47 }
 0xa59   : > { %2736 = vrot.lane.b32.xlu0 %v3602_v1, %s3402_s22 }
 0xa71   : > { %v2370_v53 = vpop.xlane.xlu1 %2369 }
 0xa72   : > { %v2392_v24 = vsub.f32 %v2348_v37, %v2370_v53 }
 0xa74   : > { %v2400_v14 = vmul.f32 1.442695, %v2392_v24 }
 0xa76   : > { %3316 = vpow2.f32 %v2400_v14 }
 0xa79   : > { %v2373_v40 = vpop.xlane.xlu2 %2372 }
 0xa7a   : > { %v2393_v42 = vsub.f32 %v2350_v51, %v2373_v40 }
 0xa7c   : > { %v4471_v5 = vpop.eup %3316  ;;  %v2402_v45 = vmul.f32 1.442695, %v2393_v42 }
 0xa7d   : > { %v2416_v17 = vsel %vm723_vm2, %v4471_v5, 0.0 }
 0xa7e   : > { %3318 = vpow2.f32 %v2402_v45  ;;  %2417 = vadd.xlane.f32.xlu1 %v2416_v17 }
 0xa81   : > { %v2376_v51 = vpop.xlane.xlu2 %2375 }
 0xa82   : > { %v2394_v6 = vsub.f32 %v4434_v57, %v2376_v51 }
 0xa84   : > { %v4475_v10 = vpop.eup %3318  ;;  %v2404_v22 = vmul.f32 1.442695, %v2394_v6 }
 0xa85   : > { %v2419_v1 = vsel %vm723_vm2, %v4475_v10, 0.0 }
 0xa86   : > { %2644 = vmax.xlane.f32.xlu1 %v2643_v15  ;;  %2420 = vadd.xlane.f32.xlu2 %v2419_v1 }
 0xa89   : > { %v2379_v27 = vpop.xlane.xlu0 %2378 }
 0xa8a   : > { %v2395_v41 = vsub.f32 %v2355_v55, %v2379_v27 }
 0xa8c   : > { %v2406_v19 = vmul.f32 1.442695, %v2395_v41 }
 0xa8e   : > { %3320 = vpow2.f32 %v2406_v19  ;;  %2647 = vmax.xlane.f32.xlu1 %v2646_v23  ;;  %2650 = vmax.xlane.f32.xlu2 %v2649_v36 }
 0xa91   : > { %v2382_v9 = vpop.xlane.xlu0 %2381 }
 0xa92   : > { %v2396_v50 = vsub.f32 %v2358_v48, %v2382_v9 }
 0xa94   : > { %v4485_v37 = vpop.eup %3320  ;;  %v2408_v38 = vmul.f32 1.442695, %v2396_v50 }
 0xa95   : > { %v2425_v54 = vsel %vm723_vm2, %v4485_v37, 0.0 }
 0xa96   : > { %3322 = vpow2.f32 %v2408_v38  ;;  %2426 = vadd.xlane.f32.xlu0 %v2425_v54  ;;  %2653 = vmax.xlane.f32.xlu2 %v2652_v20 }
 0xa99   : > { %v2385_v12 = vpop.xlane.xlu1 %2384  ;;  %v2642_v30 = vpop.xlane.xlu0 %2641 }
 0xa9a   : > { %v2397_v46 = vsub.f32 %v2360_v16, %v2385_v12  ;;  %v2664_v56 = vsub.f32 %v4432_v62, %v2642_v30 }
 0xa9c   : > { %v4492_v55 = vpop.eup %3322  ;;  %v2410_v61 = vmul.f32 1.442695, %v2397_v46  ;;  %v2672_v48 = vmul.f32 1.442695, %v2664_v56 }
 0xa9d   : > { %v2428_v35 = vsel %vm723_vm2, %v4492_v55, 0.0 }
 0xa9e   : > { %3324 = vpow2.f32 %v2410_v61  ;;  %2429 = vadd.xlane.f32.xlu0 %v2428_v35  ;;  %2659 = vmax.xlane.f32.xlu2 %v2658_v33 }
 0xa9f   : > { %3326 = vpow2.f32 %v2672_v48 }
 0xaa0   : > { %3328 = vpow2.f32 %v2404_v22 }
 0xaa1   : > { %v2388_v40 = vpop.xlane.xlu1 %2387 }
 0xaa4   : > { %v4499_v16 = vpop.eup %3324 }
 0xaa5   : > { %v4501_v62 = vpop.eup %3326  ;;  %v2431_v43 = vsel %vm723_vm2, %v4499_v16, 0.0 }
 0xaa6   : > { %2432 = vadd.xlane.f32.xlu0 %v2431_v43  ;;  %v2688_v57 = vsel %vm723_vm2, %v4501_v62, 0.0  ;;  %v4507_v58 = vpop.eup %3328 }
 0xaa7   : > { %2689 = vadd.xlane.f32.xlu1 %v2688_v57  ;;  %v2422_v47 = vsel %vm723_vm2, %v4507_v58, 0.0 }
 0xaa8   : > { %v4511_v53 = vpop.xlane.xlu0 %2656 }
 0xaa9   : > { %v4515_v42 = vpop.xlane.xlu2 %2390 }
 0xaaf   : > { %2423 = vadd.xlane.f32.xlu1 %v2422_v47 }
 0xab8   : > { %v2663_v24 = vpop.xlane.xlu0 %2662 }
 0xac8   : > { %2732 = vrot.lane.b32.xlu1 %v3657_v4, %s3402_s22 }
 0xacb   : > { %v2737_v14 = vpop.permute.xlu0 %2736 }
 0xacc   : > { %2761 = vmatpush.bf16.msra.mxu1 %v2737_v14 }
 0xaf1   : > { %v2418_v45 = vpop.xlane.xlu1 %2417 }
 0xaf2   : > { %3330 = vrcp.f32 %v2418_v45 }
 0xaf8   : > { %v3331_v41 = vpop.eup %3330 }
 0xaf9   : > { %v2645_v17 = vpop.xlane.xlu1 %2644  ;;  %v2421_v15 = vpop.xlane.xlu2 %2420  ;;  %v2448_v23 = vmul.f32 %v3331_v41, %v4471_v5  ;;  %v2398_v5 = vsub.f32 %v4451_v63, %v2388_v40 }
 0xafa   : > { %v2665_v1 = vsub.f32 %v4438_v34, %v2645_v17  ;;  %3332 = vrcp.f32 %v2421_v15 }
 0xafb   : > { %v2412_v51 = vmul.f32 1.442695, %v2398_v5 }
 0xafc   : > { %v2674_v27 = vmul.f32 1.442695, %v2665_v1 }
 0xafe   : > { %3334 = vpow2.f32 %v2674_v27 }
 0xb00   : > { %v3333_v19 = vpop.eup %3332 }
 0xb01   : > { %v2449_v4 = vmul.f32 %v3333_v19, %v4475_v10  ;;  %v2651_v36 = vpop.xlane.xlu2 %2650  ;;  %v2648_v56 = vpop.xlane.xlu1 %2647 }
 0xb02   : > { %v2667_v9 = vsub.f32 %v4444_v29, %v2651_v36  ;;  %v2666_v19 = vsub.f32 %v4441_v18, %v2648_v56 }
 0xb03   : > { %v2456_v50 = vpack.c.bf16 %v2449_v4, %v2448_v23 }
 0xb04   : > { %v4521_v38 = vpop.eup %3334  ;;  %v2678_v54 = vmul.f32 1.442695, %v2667_v9  ;;  %v2676_v36 = vmul.f32 1.442695, %v2666_v19 }
 0xb05   : > { %3062 = vmatmul.msk.bf16.vlgmr.msrb.gmra.mxu2 %vm723_vm2, %v2456_v50  ;;  %v2691_v34 = vsel %vm723_vm2, %v4521_v38, 0.0 }
 0xb06   : > { %2692 = vadd.xlane.f32.xlu2 %v2691_v34  ;;  %3336 = vpow2.f32 %v2678_v54  ;;  %v2399_v34 = vsub.f32 %v4459_v39, %v4515_v42 }
 0xb09   : > { %v2654_v20 = vpop.xlane.xlu2 %2653  ;;  %v2427_v33 = vpop.xlane.xlu0 %2426 }
 0xb0a   : > { %v2668_v12 = vsub.f32 %v4449_v44, %v2654_v20  ;;  %v2671_v44 = vsub.f32 %v4465_v28, %v2663_v24 }
 0xb0c   : > { %v2680_v10 = vmul.f32 1.442695, %v2668_v12  ;;  %v4528_v30 = vpop.eup %3336  ;;  %v2686_v35 = vmul.f32 1.442695, %v2671_v44 }
 0xb0d   : > { %v2697_v29 = vsel %vm723_vm2, %v4528_v30, 0.0 }
 0xb0e   : > { %3338 = vpow2.f32 %v2680_v10  ;;  %2698 = vadd.xlane.f32.xlu1 %v2697_v29 }
 0xb0f   : > { %3340 = vpow2.f32 %v2412_v51 }
 0xb11   : > { %v2660_v46 = vpop.xlane.xlu2 %2659  ;;  %v2430_v24 = vpop.xlane.xlu0 %2429 }
 0xb12   : > { %v2670_v61 = vsub.f32 %v4463_v11, %v2660_v46 }
 0xb14   : > { %v4533_v48 = vpop.eup %3338  ;;  %v2684_v6 = vmul.f32 1.442695, %v2670_v61 }
 0xb15   : > { %v2700_v63 = vsel %vm723_vm2, %v4533_v48, 0.0  ;;  %v4538_v22 = vpop.eup %3340 }
 0xb16   : > { %3342 = vpow2.f32 %v2684_v6  ;;  %2701 = vadd.xlane.f32.xlu0 %v2700_v63  ;;  %v2434_v11 = vsel %vm723_vm2, %v4538_v22, 0.0 }
 0xb17   : > { %3344 = vpow2.f32 %v2686_v35 }
 0xb18   : > { %3346 = vrcp.f32 %v2427_v33 }
 0xb19   : > { %v2433_v27 = vpop.xlane.xlu0 %2432 }
 0xb1a   : > { %v2690_v43 = vpop.xlane.xlu1 %2689 }
 0xb1c   : > { %v4540_v57 = vpop.eup %3342 }
 0xb1d   : > { %v2706_v28 = vsel %vm723_vm2, %v4540_v57, 0.0  ;;  %v4548_v47 = vpop.eup %3344 }
 0xb1e   : > { %2734 = vrot.lane.b32.xlu2 %v3607_v2, %s3402_s22  ;;  %2435 = vadd.xlane.f32.xlu0 %v2434_v11  ;;  %v2709_v40 = vsel %vm723_vm2, %v4548_v47, 0.0  ;;  %v3347_v45 = vpop.eup %3346 }
 0xb1f   : > { %2707 = vadd.xlane.f32.xlu1 %v2706_v28  ;;  %v2451_v15 = vmul.f32 %v3347_v45, %v4485_v37  ;;  %v2669_v37 = vsub.f32 %v4455_v59, %v4511_v53  ;;  %v3066_v53 = vld [vmem:[%s4640_s5 + $0xc] sm:$0x3] }
 0xb20   : > { %v2532_v5 = vsel %vm898_vm3, %v3066_v53, 0 }
 0xb21   : > { %2541 = vmatpush.bf16.msra.mxu3 %v2532_v5 }
 0xb22   : > { %v2424_v14 = vpop.xlane.xlu1 %2423 }
 0xb23   : > { %3348 = vrcp.f32 %v2424_v14 }
 0xb24   : > { %3350 = vrcp.f32 %v2433_v27 }
 0xb25   : > { %3352 = vrcp.f32 %v2430_v24 }
 0xb26   : > { %2710 = vadd.xlane.f32.xlu0 %v2709_v40  ;;  %3354 = vpow2.f32 %v2676_v36 }
 0xb29   : > { %v3349_v17 = vpop.eup %3348 }
 0xb2a   : > { %v2450_v1 = vmul.f32 %v3349_v17, %v4507_v58  ;;  %v3351_v41 = vpop.eup %3350  ;;  %v2682_v58 = vmul.f32 1.442695, %v2669_v37 }
 0xb2b   : > { %v3353_v23 = vpop.eup %3352  ;;  %v2453_v4 = vmul.f32 %v3351_v41, %v4499_v16  ;;  %v2414_v16 = vmul.f32 1.442695, %v2399_v34 }
 0xb2c   : > { %v2457_v2 = vpack.c.bf16 %v2451_v15, %v2450_v1  ;;  %v2452_v9 = vmul.f32 %v3353_v23, %v4492_v55  ;;  %v3355_v54 = vpop.eup %3354  ;;  %3356 = vpow2.f32 %v2682_v58 }
 0xb2d   : > { %v2694_v18 = vsel %vm723_vm2, %v3355_v54, 0.0  ;;  %3358 = vpow2.f32 %v2414_v16 }
 0xb2e   : > { %3063 = vmatmul.msk.bf16.gmra.mxu2 %vm723_vm2, %v2457_v2  ;;  %v2458_v50 = vpack.c.bf16 %v2453_v4, %v2452_v9 }
 0xb32   : > { %v3357_v20 = vpop.eup %3356 }
 0xb33   : > { %v2703_v55 = vsel %vm723_vm2, %v3357_v20, 0.0  ;;  %v3359_v12 = vpop.eup %3358 }
 0xb34   : > { %v2437_v59 = vsel %vm723_vm2, %v3359_v12, 0.0 }
 0xb3a   : > { %v2733_v56 = vpop.permute.xlu1 %2732 }
 0xb3e   : > { %3064 = vmatmul.msk.bf16.gmra.mxu2 %vm723_vm2, %v2458_v50 }
 0xb47   : > { %2695 = vadd.xlane.f32.xlu2 %v2694_v18 }
 0xb4f   : > { %2704 = vadd.xlane.f32.xlu2 %v2703_v55 }
 0xb57   : > { %2438 = vadd.xlane.f32.xlu2 %v2437_v59 }
 0xb79   : > { %v2693_v39 = vpop.xlane.xlu2 %2692 }
 0xb7a   : > { %3360 = vrcp.f32 %v2693_v39 }
 0xb7b   : > { %3362 = vrcp.f32 %v2690_v43 }
 0xb80   : > { %v3361_v42 = vpop.eup %3360 }
 0xb81   : > { %v2735_v10 = vpop.permute.xlu2 %2734  ;;  %v3363_v29 = vpop.eup %3362  ;;  %v2721_v51 = vmul.f32 %v3361_v42, %v4521_v38 }
 0xb82   : > { %2762 = vmatpush.bf16.msra.mxu1 %v2735_v10  ;;  %v2720_v46 = vmul.f32 %v3363_v29, %v4501_v62  ;;  %v2699_v33 = vpop.xlane.xlu1 %2698 }
 0xb83   : > { %3364 = vrcp.f32 %v2699_v33 }
 0xb84   : > { %v2728_v61 = vpack.c.bf16 %v2721_v51, %v2720_v46 }
 0xb86   : > { %2763 = vmatpush.bf16.msra.mxu1 %v2733_v56 }
 0xb88   : > { %v2493_v44 = vpop.f32.mrf.mxu2 }
 0xb89   : > { %3075 = vmatmul.msk.bf16.vlgmr.msra.gmra.mxu1 %vm723_vm2, %v2728_v61  ;;  %v2702_v38 = vpop.xlane.xlu0 %2701  ;;  %v3365_v62 = vpop.eup %3364 }
 0xb8a   : > { %v2723_v40 = vmul.f32 %v3365_v62, %v4528_v30  ;;  %v4647_v62 = vld [vmem:[#allocation2_spill] sm:$0xff] }
 0xb90   : > { %v2495_v6 = vpop.f32.mrf.mxu2 }
 0xb91   : > { %v2513_v63 = vpack.c.bf16 %v2495_v6, %v2493_v44  ;;  %v2436_v1 = vpop.xlane.xlu0 %2435 }
 0xb92   : > { %v2708_v18 = vpop.xlane.xlu1 %2707 }
 0xb93   : > { %3067 = vmatmul.msk.bf16.vlgmr.msra.gmra.mxu3 %vm669_vm1, %v2513_v63 }
 0xb99   : > { %v2711_v58 = vpop.xlane.xlu0 %2710 }
 0xbb1   : > { %v2498_v35 = vpop.f32.mrf.mxu2 }
 0xbb9   : > { %v2500_v43 = vpop.f32.mrf.mxu2 }
 0xbba   : > { %v2514_v11 = vpack.c.bf16 %v2500_v43, %v2498_v35  ;;  %v2696_v28 = vpop.xlane.xlu2 %2695  ;;  %v3388_v35 = vld [vmem:[%s3493_s30 + $0x8] sm:$0xff] }
 0xbbb   : > { %3366 = vrcp.f32 %v2696_v28  ;;  %v622_v33 = vadd.f32 %v3388_v35, %v4397_v21 }
 0xbbc   : > { %3068 = vmatmul.msk.bf16.gmra.mxu3 %vm669_vm1, %v2514_v11 }
 0xbbd   : > { %v932_v43 = vadd.f32 %v3857_v0, %v622_v33 }
 0xbbf   : > { %v1204_v28 = vadd.f32 %v3861_v25, %v932_v43 }
 0xbc1   : > { %v3367_v24 = vpop.eup %3366  ;;  %v2503_v14 = vpop.f32.mrf.mxu2 }
 0xbc2   : > { %v2722_v45 = vmul.f32 %v3367_v24, %v3355_v54  ;;  %v2705_v17 = vpop.xlane.xlu2 %2704 }
 0xbc3   : > { %3368 = vrcp.f32 %v2705_v17 }
 0xbc4   : > { %v2729_v15 = vpack.c.bf16 %v2723_v40, %v2722_v45  ;;  %3370 = vrcp.f32 %v2702_v38  ;;  %v1476_v38 = vadd.f32 %v4097_v13, %v1204_v28 }
 0xbc5   : > { %3372 = vrcp.f32 %v2436_v1 }
 0xbc6   : > { %3076 = vmatmul.msk.bf16.gmra.mxu1 %vm723_vm2, %v2729_v15  ;;  %v1748_v24 = vadd.f32 %v4647_v62, %v1476_v38 }
 0xbc8   : > { %v2020_v0 = vadd.f32 %v4385_v32, %v1748_v24 }
 0xbc9   : > { %v2505_v27 = vpop.f32.mrf.mxu2  ;;  %v3369_v19 = vpop.eup %3368 }
 0xbca   : > { %v2515_v2 = vpack.c.bf16 %v2505_v27, %v2503_v14  ;;  %v2439_v41 = vpop.xlane.xlu2 %2438  ;;  %v3371_v23 = vpop.eup %3370  ;;  %v2725_v36 = vmul.f32 %v3369_v19, %v3357_v20  ;;  %v2292_v13 = vadd.f32 %v4391_v49, %v2020_v0 }
 0xbcb   : > { %3374 = vrcp.f32 %v2439_v41  ;;  %v3373_v4 = vpop.eup %3372  ;;  %v2724_v9 = vmul.f32 %v3371_v23, %v4533_v48 }
 0xbcc   : > { %3069 = vmatmul.msk.bf16.gmra.mxu3 %vm669_vm1, %v2515_v2  ;;  %v2454_v50 = vmul.f32 %v3373_v4, %v4538_v22  ;;  %3376 = vrcp.f32 %v2711_v58  ;;  %v3079_v22 = vld [vmem:[%s4640_s5 + $0xe] sm:$0x3] }
 0xbcd   : > { %v2730_v34 = vpack.c.bf16 %v2725_v36, %v2724_v9  ;;  %3378 = vrcp.f32 %v2708_v18 }
 0xbd1   : > { %v3375_v30 = vpop.eup %3374 }
 0xbd2   : > { %v2455_v37 = vmul.f32 %v3375_v30, %v3359_v12  ;;  %v3377_v16 = vpop.eup %3376  ;;  %v2804_v12 = vsel %vm898_vm3, %v3079_v22, 0 }
 0xbd3   : > { %v3379_v55 = vpop.eup %3378  ;;  %v2727_v20 = vmul.f32 %v3377_v16, %v4548_v47  ;;  %2813 = vmatpush.bf16.msra.mxu2 %v2804_v12 }
 0xbd4   : > { %v2459_v54 = vpack.c.bf16 %v2455_v37, %v2454_v50  ;;  %v2726_v59 = vmul.f32 %v3379_v55, %v4540_v57 }
 0xbd6   : > { %3065 = vmatmul.msk.bf16.gmra.mxu2 %vm723_vm2, %v2459_v54  ;;  %3077 = vmatmul.msk.bf16.gmra.mxu1 %vm723_vm2, %v2730_v34  ;;  %v2731_v48 = vpack.c.bf16 %v2727_v20, %v2726_v59 }
 0xbe6   : > { %3078 = vmatmul.msk.bf16.gmra.mxu1 %vm723_vm2, %v2731_v48 }
 0xc06   : > { %v2765_v53 = vpop.f32.mrf.mxu1 }
 0xc0e   : > { %v2767_v5 = vpop.f32.mrf.mxu1 }
 0xc0f   : > { %v2785_v39 = vpack.c.bf16 %v2767_v5, %v2765_v53 }
 0xc11   : > { %3080 = vmatmul.msk.bf16.vlgmr.msra.gmra.mxu2 %vm669_vm1, %v2785_v39 }
 0xc16   : > { %v2543_v11 = vpop.f32.mrf.mxu3 }
 0xc17   : > { %v2563_v14 = vadd.f32 %v2543_v11, %v4379_v52 }
 0xc1e   : > { %v2545_v25 = vpop.f32.mrf.mxu3 }
 0xc1f   : > { %v2564_v52 = vadd.f32 %v2545_v25, %v2292_v13 }
 0xc3f   : > { %v2548_v15 = vpop.f32.mrf.mxu3 }
 0xc40   : > { %v2565_v27 = vadd.f32 %v2548_v15, %v4402_v7 }
 0xc43   : > { %v2770_v42 = vpop.f32.mrf.mxu1 }
 0xc47   : > { %v2550_v1 = vpop.f32.mrf.mxu3 }
 0xc48   : > { %v2566_v32 = vadd.f32 %v2550_v1, %v4407_v8 }
 0xc4b   : > { %v2772_v47 = vpop.f32.mrf.mxu1 }
 0xc4c   : > { %v2786_v10 = vpack.c.bf16 %v2772_v47, %v2770_v42 }
 0xc4e   : > { %3081 = vmatmul.msk.bf16.gmra.mxu2 %vm669_vm1, %v2786_v10 }
 0xc4f   : > { %v2553_v19 = vpop.f32.mrf.mxu3 }
 0xc50   : > { %v2567_v4 = vadd.f32 %v2553_v19, %v4413_v3 }
 0xc53   : > { %v2775_v57 = vpop.f32.mrf.mxu1 }
 0xc57   : > { %v2555_v9 = vpop.f32.mrf.mxu3 }
 0xc58   : > { %v2568_v7 = vadd.f32 %v2555_v9, %v4418_v26 }
 0xc59   : > { %v2508_v29 = vpop.f32.mrf.mxu2 }
 0xc5b   : > { %v2777_v51 = vpop.f32.mrf.mxu1 }
 0xc5c   : > { %v2787_v46 = vpack.c.bf16 %v2777_v51, %v2775_v57 }
 0xc5e   : > { %3082 = vmatmul.msk.bf16.gmra.mxu2 %vm669_vm1, %v2787_v46 }
 0xc61   : > { %v2510_v56 = vpop.f32.mrf.mxu2 }
 0xc62   : > { %v2516_v61 = vpack.c.bf16 %v2510_v56, %v2508_v29 }
 0xc63   : > { %v2780_v44 = vpop.f32.mrf.mxu1 }
 0xc64   : > { %3070 = vmatmul.msk.bf16.gmra.mxu3 %vm669_vm1, %v2516_v61 }
 0xc6b   : > { %v2782_v6 = vpop.f32.mrf.mxu1 }
 0xc6c   : > { %v2788_v63 = vpack.c.bf16 %v2782_v6, %v2780_v44 }
 0xc6e   : > { %3083 = vmatmul.msk.bf16.gmra.mxu2 %vm669_vm1, %v2788_v63 }
 0xc94   : > { %v2815_v21 = vpop.f32.mrf.mxu2 }
 0xc95   : > { %v2835_v40 = vadd.f32 %v2815_v21, %v2563_v14 }
 0xc97   : > { %2843 = vst.msk [vmem:[%s4606_s20] sm:$0xff] %vm421_vm0, %v2835_v40 }
 0xc9c   : > { %v2817_v45 = vpop.f32.mrf.mxu2 }
 0xc9d   : > { %v2836_v17 = vadd.f32 %v2817_v45, %v2564_v52 }
 0xc9f   : > { %2844 = vst.msk [vmem:[%s4606_s20 + $0x8] sm:$0xff] %vm421_vm0, %v2836_v17 }
 0xcd1   : > { %v2820_v2 = vpop.f32.mrf.mxu2 }
 0xcd2   : > { %v2837_v41 = vadd.f32 %v2820_v2, %v2565_v27 }
 0xcd4   : > { %2845 = vst.msk [vmem:[%s4606_s20 + $0x10] sm:$0xff] %vm421_vm0, %v2837_v41 }
 0xcd9   : > { %v2822_v23 = vpop.f32.mrf.mxu2 }
 0xcda   : > { %v2838_v49 = vadd.f32 %v2822_v23, %v2566_v32 }
 0xcdc   : > { %2846 = vst.msk [vmem:[%s4606_s20 + $0x18] sm:$0xff] %vm421_vm0, %v2838_v49 }
 0xce1   : > { %v2825_v36 = vpop.f32.mrf.mxu2 }
 0xce2   : > { %v2839_v30 = vadd.f32 %v2825_v36, %v2567_v4 }
 0xce4   : > { %2847 = vst.msk [vmem:[%s4606_s20 + $0x20] sm:$0xff] %vm421_vm0, %v2839_v30 }
 0xce7   : > { %v2558_v58 = vpop.f32.mrf.mxu3 }
 0xce8   : > { %v2569_v8 = vadd.f32 %v2558_v58, %v4424_v31 }
 0xce9   : > { %v2827_v50 = vpop.f32.mrf.mxu2 }
 0xcea   : > { %v2840_v37 = vadd.f32 %v2827_v50, %v2568_v7 }
 0xcec   : > { %2848 = vst.msk [vmem:[%s4606_s20 + $0x28] sm:$0xff] %vm421_vm0, %v2840_v37 }
 0xcef   : > { %v2560_v3 = vpop.f32.mrf.mxu3 }
 0xcf0   : > { %v2570_v18 = vadd.f32 %v2560_v3, %v4429_v60 }
 0xcf1   : > { %v2830_v54 = vpop.f32.mrf.mxu2 }
 0xcf2   : > { %v2841_v34 = vadd.f32 %v2830_v54, %v2569_v8 }
 0xcf4   : > { %2849 = vst.msk [vmem:[%s4606_s20 + $0x30] sm:$0xff] %vm421_vm0, %v2841_v34 }
 0xcf9   : > { %v2832_v16 = vpop.f32.mrf.mxu2 }
 0xcfa   : > { %v2842_v55 = vadd.f32 %v2832_v16, %v2570_v18 }
 0xcfc   : > { %2850 = vst.msk [vmem:[%s4606_s20 + $0x38] sm:$0xff] %vm421_vm0, %v2842_v55 }
 0xcfd PF: > { %s20_s13 = sadd.s32 1, %s3395_s13  }
 0xcfe   : > { %p17_p4 = scmp.ge.s32.totalorder %s20_s13, 4  }
 0xd00   :  { %19 = sbr.rel (!%p17_p4) target bundleno = 1 (0x1), region = 100 }

</bundles_post_ra>
